<compile_context>
chip_gen: v7x
topology: tpu7x:2x2x1
jax: 0.10.0
libtpu: 0.0.40
codegen_flags: <defaults>
</compile_context>

<pallas_src>
import jax
import jax.numpy as jnp
from jax.experimental import pallas as pl
from jax.experimental.pallas import tpu as pltpu

# ---- model hyper-parameters (from the PyTorch __init__) ---------------------
INPUT_DIM = 15
NUM_CLASSES = 3
D_MODEL = 32
NHEAD = 4
HEAD_DIM = D_MODEL // NHEAD
NUM_LAYERS = 2
DIM_FF = 64
SEQ_LEN = 5            # PositionalEncoding max_len
CLS_HIDDEN = 64
CLS_PAD = 128          # lane-dense logits slab width (sliced back to 3 outside)
LN_EPS = 1e-5          # nn.LayerNorm default


def _layer_norm(x, w, b):
    mu = jnp.mean(x, axis=-1, keepdims=True)
    var = jnp.mean((x - mu) ** 2, axis=-1, keepdims=True)
    return (x - mu) * jax.lax.rsqrt(var + LN_EPS) * w + b


# =============================================================================
# Single fused kernel: feature embed + pos-enc + 2-layer transformer encoder
# (unrolled over the 5 time steps) + classifier.  The residual stream for each
# time step is a flat (B, 32) tile; all weights arrive pre-transposed so every
# matmul is x @ W.  The classifier hidden pre-activation is accumulated across
# time steps to avoid any (B, 5*32) relayout.
# =============================================================================
def fused_kernel(
    x_ref,                         # (B, S, F)
    pos_ref,                       # (S, 1, E)
    fe_w_ref, fe_b_ref,            # (F, E), (1, E)
    in_w_ref, in_b_ref,            # (L, E, 3E), (L, 1, 3E)
    out_w_ref, out_b_ref,          # (L, E, E), (L, 1, E)
    l1_w_ref, l1_b_ref,            # (L, E, FF), (L, 1, FF)
    l2_w_ref, l2_b_ref,            # (L, FF, E), (L, 1, E)
    n1_w_ref, n1_b_ref,            # (L, 1, E) each
    n2_w_ref, n2_b_ref,            # (L, 1, E) each
    cl1_w_ref, cl1_b_ref,          # (S, E, HID), (1, HID)
    cl2_w_ref, cl2_b_ref,          # (HID, CLS_PAD), (1, CLS_PAD)
    o_ref,                         # (B, CLS_PAD)
):
    B = x_ref.shape[0]
    E = D_MODEL
    scale = 1.0 / (HEAD_DIM ** 0.5)

    x = x_ref[...]                                       # (B, S, F), load once
    z = jnp.zeros((B, CLS_HIDDEN), jnp.float32)          # classifier accumulator

    for s in range(SEQ_LEN):
        # feature embedding + positional encoding (flat (B, E))
        h = jnp.dot(x[:, s, :], fe_w_ref[...],
                    preferred_element_type=jnp.float32)
        h = h + fe_b_ref[...] + pos_ref[s]

        # transformer encoder layers (post-norm, relu, eval => no dropout).
        # Attention mixes over B (PyTorch batch_first=False quirk); this time
        # step is one independent attention "batch" element.
        for layer in range(NUM_LAYERS):
            qkv = jnp.dot(h, in_w_ref[layer],
                          preferred_element_type=jnp.float32) + in_b_ref[layer]  # (B, 3E)

            # all heads batched into one contraction: (H, B, hd) operands
            q = jnp.transpose(qkv[:, 0 * E:1 * E].reshape(B, NHEAD, HEAD_DIM), (1, 0, 2))
            k = jnp.transpose(qkv[:, 1 * E:2 * E].reshape(B, NHEAD, HEAD_DIM), (1, 0, 2))
            v = jnp.transpose(qkv[:, 2 * E:3 * E].reshape(B, NHEAD, HEAD_DIM), (1, 0, 2))

            sc = jnp.einsum('hbd,hcd->hbc', q, k,
                            preferred_element_type=jnp.float32) * scale          # (H, B, B)
            sc = sc - jnp.max(sc, axis=-1, keepdims=True)
            p = jnp.exp(sc)
            p = p * pl.reciprocal(jnp.sum(p, axis=-1, keepdims=True), approx=True)

            ctx = jnp.einsum('hbc,hcd->hbd', p, v,
                             preferred_element_type=jnp.float32)                 # (H, B, hd)
            # merge heads back to a contiguous 32-lane minor dim, one out-proj
            ctx = jnp.transpose(ctx, (1, 0, 2)).reshape(B, E)
            attn = jnp.dot(ctx, out_w_ref[layer],
                           preferred_element_type=jnp.float32) + out_b_ref[layer]

            # residual + layernorm 1
            h = _layer_norm(h + attn, n1_w_ref[layer], n1_b_ref[layer])

            # feed forward (relu); dropout identity in eval mode
            ff = jnp.dot(h, l1_w_ref[layer],
                         preferred_element_type=jnp.float32) + l1_b_ref[layer]
            ff = jnp.maximum(ff, 0.0)
            ff = jnp.dot(ff, l2_w_ref[layer],
                         preferred_element_type=jnp.float32) + l2_b_ref[layer]

            # residual + layernorm 2
            h = _layer_norm(h + ff, n2_w_ref[layer], n2_b_ref[layer])

        # classifier hidden accumulation: z += h_s @ W1[s*E:(s+1)*E, :]
        z = z + jnp.dot(h, cl1_w_ref[s], preferred_element_type=jnp.float32)

    # classifier head: ReLU -> Linear(64, 3) into the lane-dense slab
    z = jnp.maximum(z + cl1_b_ref[...], 0.0)
    o_ref[...] = jnp.dot(z, cl2_w_ref[...],
                         preferred_element_type=jnp.float32) + cl2_b_ref[...]


@jax.jit
def forward(x, params):
    B = x.shape[0]
    vmem = pl.BlockSpec(memory_space=pltpu.MemorySpace.VMEM)
    logits_pad = pl.pallas_call(
        fused_kernel,
        out_shape=jax.ShapeDtypeStruct((B, CLS_PAD), jnp.float32),
        in_specs=[vmem] * 20,
        out_specs=vmem,
        compiler_params=pltpu.CompilerParams(vmem_limit_bytes=32 * 1024 * 1024),
    )(x, params['pos'], params['fe_w'], params['fe_b'],
      params['in_w'], params['in_b'], params['out_w'], params['out_b'],
      params['l1_w'], params['l1_b'], params['l2_w'], params['l2_b'],
      params['n1_w'], params['n1_b'], params['n2_w'], params['n2_b'],
      params['cl1_w'], params['cl1_b'], params['cl2_w'], params['cl2_b'])
    return logits_pad[:, :NUM_CLASSES]


# ---- deterministic parameter init -------------------------------------------
# Weights are stored PRE-TRANSPOSED in (in_features, out_features) layout so
# the kernel never transposes.  cl1_w is stored as (S, E, HID) (== the (160,64)
# matrix split per time step); cl2_w / cl2_b are stored pre-padded to the
# lane-dense width 128 (zero columns, sliced off after the kernel).
# (To load real PyTorch weights, transpose each nn.Linear.weight /
#  in_proj_weight / out_proj.weight once on the host and apply the same
#  reshape / zero-pad.)
def init_params(key):
    ks = jax.random.split(key, 20)
    n = lambda k, shape, s=0.05: (s * jax.random.normal(k, shape)).astype(jnp.float32)
    cl2_w = jnp.zeros((CLS_HIDDEN, CLS_PAD), jnp.float32)
    cl2_w = cl2_w.at[:, :NUM_CLASSES].set(n(ks[17], (CLS_HIDDEN, NUM_CLASSES)))
    cl2_b = jnp.zeros((1, CLS_PAD), jnp.float32)
    cl2_b = cl2_b.at[:, :NUM_CLASSES].set(n(ks[18], (1, NUM_CLASSES)))
    return dict(
        fe_w=n(ks[0], (INPUT_DIM, D_MODEL)),
        fe_b=n(ks[1], (1, D_MODEL)),
        pos=n(ks[2], (SEQ_LEN, 1, D_MODEL)),
        in_w=n(ks[3], (NUM_LAYERS, D_MODEL, 3 * D_MODEL)),
        in_b=n(ks[4], (NUM_LAYERS, 1, 3 * D_MODEL)),
        out_w=n(ks[5], (NUM_LAYERS, D_MODEL, D_MODEL)),
        out_b=n(ks[6], (NUM_LAYERS, 1, D_MODEL)),
        l1_w=n(ks[7], (NUM_LAYERS, D_MODEL, DIM_FF)),
        l1_b=n(ks[8], (NUM_LAYERS, 1, DIM_FF)),
        l2_w=n(ks[9], (NUM_LAYERS, DIM_FF, D_MODEL)),
        l2_b=n(ks[10], (NUM_LAYERS, 1, D_MODEL)),
        n1_w=1.0 + n(ks[11], (NUM_LAYERS, 1, D_MODEL)),
        n1_b=n(ks[12], (NUM_LAYERS, 1, D_MODEL)),
        n2_w=1.0 + n(ks[13], (NUM_LAYERS, 1, D_MODEL)),
        n2_b=n(ks[14], (NUM_LAYERS, 1, D_MODEL)),
        cl1_w=n(ks[15], (SEQ_LEN, D_MODEL, CLS_HIDDEN)),
        cl1_b=n(ks[16], (1, CLS_HIDDEN)),
        cl2_w=cl2_w,
        cl2_b=cl2_b,
    )


# ---- plain-JAX reference (mirrors PyTorch eval-mode semantics) ---------------
def reference_forward(x, p):
    B, S, _ = x.shape
    h = x @ p['fe_w'] + p['fe_b']
    h = h + jnp.transpose(p['pos'], (1, 0, 2))            # (1, S, E)
    for l in range(NUM_LAYERS):
        qkv = h @ p['in_w'][l] + p['in_b'][l]
        q, k, v = jnp.split(qkv, 3, axis=-1)
        qh = q.reshape(B, S, NHEAD, HEAD_DIM)
        kh = k.reshape(B, S, NHEAD, HEAD_DIM)
        vh = v.reshape(B, S, NHEAD, HEAD_DIM)
        # batch_first=False: attention sequence axis is B, batch axis is S
        scores = jnp.einsum('lnhd,mnhd->nhlm', qh, kh) / (HEAD_DIM ** 0.5)
        attn = jax.nn.softmax(scores, axis=-1)
        o = jnp.einsum('nhlm,mnhd->lnhd', attn, vh).reshape(B, S, D_MODEL)
        o = o @ p['out_w'][l] + p['out_b'][l]
        h = _layer_norm(h + o, p['n1_w'][l], p['n1_b'][l])
        ff = jax.nn.relu(h @ p['l1_w'][l] + p['l1_b'][l]) @ p['l2_w'][l] + p['l2_b'][l]
        h = _layer_norm(h + ff, p['n2_w'][l], p['n2_b'][l])
    flat = h.reshape(B, S * D_MODEL)
    w1 = p['cl1_w'].reshape(S * D_MODEL, CLS_HIDDEN)
    z = jax.nn.relu(flat @ w1 + p['cl1_b'])
    return z @ p['cl2_w'][:, :NUM_CLASSES] + p['cl2_b'][:, :NUM_CLASSES]


if __name__ == "__main__":
    key = jax.random.PRNGKey(0)
    kx, kp = jax.random.split(key)
    batch = 2
    x = jax.random.normal(kx, (batch, SEQ_LEN, INPUT_DIM), dtype=jnp.float32)
    params = init_params(kp)

    out = forward(x, params)
    jax.block_until_ready(out)

    ref = reference_forward(x, params)
    assert out.shape == (batch, NUM_CLASSES)
    # tolerance relaxed slightly vs 1e-4 because the softmax denominator uses
    # the approximate EUP reciprocal (pl.reciprocal(..., approx=True)).
    assert jnp.allclose(out, ref, atol=2e-3, rtol=2e-3), (out, ref)
    print("KERNEL_OK")
</pallas_src>

<mosaic_0001>
module attributes {stable_mosaic.version = 11 : i64} {
  func.func @fused_kernel(%arg0: memref<2x5x15xf32, #tpu.memory_space<vmem>>, %arg1: memref<5x1x32xf32, #tpu.memory_space<vmem>>, %arg2: memref<15x32xf32, #tpu.memory_space<vmem>>, %arg3: memref<1x32xf32, #tpu.memory_space<vmem>>, %arg4: memref<2x32x96xf32, #tpu.memory_space<vmem>>, %arg5: memref<2x1x96xf32, #tpu.memory_space<vmem>>, %arg6: memref<2x32x32xf32, #tpu.memory_space<vmem>>, %arg7: memref<2x1x32xf32, #tpu.memory_space<vmem>>, %arg8: memref<2x32x64xf32, #tpu.memory_space<vmem>>, %arg9: memref<2x1x64xf32, #tpu.memory_space<vmem>>, %arg10: memref<2x64x32xf32, #tpu.memory_space<vmem>>, %arg11: memref<2x1x32xf32, #tpu.memory_space<vmem>>, %arg12: memref<2x1x32xf32, #tpu.memory_space<vmem>>, %arg13: memref<2x1x32xf32, #tpu.memory_space<vmem>>, %arg14: memref<2x1x32xf32, #tpu.memory_space<vmem>>, %arg15: memref<2x1x32xf32, #tpu.memory_space<vmem>>, %arg16: memref<5x32x64xf32, #tpu.memory_space<vmem>>, %arg17: memref<1x64xf32, #tpu.memory_space<vmem>>, %arg18: memref<64x128xf32, #tpu.memory_space<vmem>>, %arg19: memref<1x128xf32, #tpu.memory_space<vmem>>, %arg20: memref<2x128xf32, #tpu.memory_space<vmem>>) attributes {dimension_semantics = [], scalar_prefetch = 0 : i64, scratch_operands = 0 : i64, tpu.core_type = #tpu.core_type<tc>} {
    %c0 = arith.constant 0 : index
    %c0_0 = arith.constant 0 : index
    %c0_1 = arith.constant 0 : index
    %0 = vector.load %arg0[%c0, %c0_0, %c0_1] : memref<2x5x15xf32, #tpu.memory_space<vmem>>, vector<2x5x15xf32>
    %cst = arith.constant 0.000000e+00 : f32
    %1 = vector.broadcast %cst : f32 to vector<2x64xf32>
    %2 = vector.extract_strided_slice %0 {offsets = [0, 0, 0], sizes = [2, 1, 15], strides = [1, 1, 1]} : vector<2x5x15xf32> to vector<2x1x15xf32>
    %3 = vector.shape_cast %2 : vector<2x1x15xf32> to vector<2x15xf32>
    %c0_2 = arith.constant 0 : index
    %c0_3 = arith.constant 0 : index
    %4 = vector.load %arg2[%c0_2, %c0_3] : memref<15x32xf32, #tpu.memory_space<vmem>>, vector<15x32xf32>
    %cst_4 = arith.constant dense<0.000000e+00> : vector<2x32xf32>
    %5 = tpu.matmul %3, %4, %cst_4 {dimension_numbers = #tpu.dot_dimension_numbers<[1], [0], [0], [1], [0, 0, 1, 1], [], []>} : vector<2x15xf32>, vector<15x32xf32>, vector<2x32xf32> -> vector<2x32xf32>
    %c0_5 = arith.constant 0 : index
    %c0_6 = arith.constant 0 : index
    %6 = vector.load %arg3[%c0_5, %c0_6] : memref<1x32xf32, #tpu.memory_space<vmem>>, vector<1x32xf32>
    %7 = vector.broadcast %6 : vector<1x32xf32> to vector<2x32xf32>
    %8 = arith.addf %5, %7 : vector<2x32xf32>
    %c0_7 = arith.constant 0 : index
    %c0_8 = arith.constant 0 : index
    %c0_9 = arith.constant 0 : index
    %9 = vector.load %arg1[%c0_7, %c0_8, %c0_9] : memref<5x1x32xf32, #tpu.memory_space<vmem>>, vector<1x1x32xf32>
    %10 = vector.shape_cast %9 : vector<1x1x32xf32> to vector<1x32xf32>
    %11 = vector.broadcast %10 : vector<1x32xf32> to vector<2x32xf32>
    %12 = arith.addf %8, %11 : vector<2x32xf32>
    %c0_10 = arith.constant 0 : index
    %c0_11 = arith.constant 0 : index
    %c0_12 = arith.constant 0 : index
    %13 = vector.load %arg4[%c0_10, %c0_11, %c0_12] : memref<2x32x96xf32, #tpu.memory_space<vmem>>, vector<1x32x96xf32>
    %14 = vector.shape_cast %13 : vector<1x32x96xf32> to vector<32x96xf32>
    %cst_13 = arith.constant dense<0.000000e+00> : vector<2x96xf32>
    %15 = tpu.matmul %12, %14, %cst_13 {dimension_numbers = #tpu.dot_dimension_numbers<[1], [0], [0], [1], [0, 0, 1, 1], [], []>} : vector<2x32xf32>, vector<32x96xf32>, vector<2x96xf32> -> vector<2x96xf32>
    %c0_14 = arith.constant 0 : index
    %c0_15 = arith.constant 0 : index
    %c0_16 = arith.constant 0 : index
    %16 = vector.load %arg5[%c0_14, %c0_15, %c0_16] : memref<2x1x96xf32, #tpu.memory_space<vmem>>, vector<1x1x96xf32>
    %17 = vector.shape_cast %16 : vector<1x1x96xf32> to vector<1x96xf32>
    %18 = vector.broadcast %17 : vector<1x96xf32> to vector<2x96xf32>
    %19 = arith.addf %15, %18 : vector<2x96xf32>
    %20 = vector.extract_strided_slice %19 {offsets = [0, 0], sizes = [2, 32], strides = [1, 1]} : vector<2x96xf32> to vector<2x32xf32>
    %21 = vector.shape_cast %20 : vector<2x32xf32> to vector<2x4x8xf32>
    %22 = tpu.transpose %21, [1, 0, 2] : vector<2x4x8xf32> -> vector<4x2x8xf32>
    %23 = vector.extract_strided_slice %19 {offsets = [0, 32], sizes = [2, 32], strides = [1, 1]} : vector<2x96xf32> to vector<2x32xf32>
    %24 = vector.shape_cast %23 : vector<2x32xf32> to vector<2x4x8xf32>
    %25 = tpu.transpose %24, [1, 0, 2] : vector<2x4x8xf32> -> vector<4x2x8xf32>
    %26 = vector.extract_strided_slice %19 {offsets = [0, 64], sizes = [2, 32], strides = [1, 1]} : vector<2x96xf32> to vector<2x32xf32>
    %27 = vector.shape_cast %26 : vector<2x32xf32> to vector<2x4x8xf32>
    %28 = tpu.transpose %27, [1, 0, 2] : vector<2x4x8xf32> -> vector<4x2x8xf32>
    "tpu.trace_start"() <{level = 10 : i32, message = "hbd,hcd->hbc"}> : () -> ()
    %cst_17 = arith.constant dense<0.000000e+00> : vector<4x2x2xf32>
    %29 = tpu.matmul %22, %25, %cst_17 {dimension_numbers = #tpu.dot_dimension_numbers<[2], [2], [1], [1], [0, 0, 0, 1, 1, 1], [0], [0]>} : vector<4x2x8xf32>, vector<4x2x8xf32>, vector<4x2x2xf32> -> vector<4x2x2xf32>
    "tpu.trace_stop"() : () -> ()
    %cst_18 = arith.constant 0.353553385 : f32
    %30 = vector.broadcast %cst_18 : f32 to vector<4x2x2xf32>
    %31 = arith.mulf %29, %30 : vector<4x2x2xf32>
    %cst_19 = arith.constant dense<0xFF800000> : vector<4x2xf32>
    %32 = vector.multi_reduction <maximumf>, %31, %cst_19 [2] : vector<4x2x2xf32> to vector<4x2xf32>
    %33 = vector.shape_cast %32 : vector<4x2xf32> to vector<4x2x1xf32>
    %34 = vector.broadcast %33 : vector<4x2x1xf32> to vector<4x2x2xf32>
    %35 = arith.subf %31, %34 : vector<4x2x2xf32>
    %36 = math.exp %35 : vector<4x2x2xf32>
    %cst_20 = arith.constant dense<0.000000e+00> : vector<4x2xf32>
    %37 = vector.multi_reduction <add>, %36, %cst_20 [2] : vector<4x2x2xf32> to vector<4x2xf32>
    %38 = vector.shape_cast %37 : vector<4x2xf32> to vector<4x2x1xf32>
    %39 = tpu.reciprocal %38 {approx = true} : vector<4x2x1xf32> -> vector<4x2x1xf32>
    %40 = vector.broadcast %39 : vector<4x2x1xf32> to vector<4x2x2xf32>
    %41 = arith.mulf %36, %40 : vector<4x2x2xf32>
    "tpu.trace_start"() <{level = 10 : i32, message = "hbc,hcd->hbd"}> : () -> ()
    %cst_21 = arith.constant dense<0.000000e+00> : vector<4x2x8xf32>
    %42 = tpu.matmul %41, %28, %cst_21 {dimension_numbers = #tpu.dot_dimension_numbers<[2], [1], [1], [2], [0, 0, 0, 1, 1, 2], [0], [0]>} : vector<4x2x2xf32>, vector<4x2x8xf32>, vector<4x2x8xf32> -> vector<4x2x8xf32>
    "tpu.trace_stop"() : () -> ()
    %43 = tpu.transpose %42, [1, 0, 2] : vector<4x2x8xf32> -> vector<2x4x8xf32>
    %44 = vector.shape_cast %43 : vector<2x4x8xf32> to vector<2x32xf32>
    %c0_22 = arith.constant 0 : index
    %c0_23 = arith.constant 0 : index
    %c0_24 = arith.constant 0 : index
    %45 = vector.load %arg6[%c0_22, %c0_23, %c0_24] : memref<2x32x32xf32, #tpu.memory_space<vmem>>, vector<1x32x32xf32>
    %46 = vector.shape_cast %45 : vector<1x32x32xf32> to vector<32x32xf32>
    %cst_25 = arith.constant dense<0.000000e+00> : vector<2x32xf32>
    %47 = tpu.matmul %44, %46, %cst_25 {dimension_numbers = #tpu.dot_dimension_numbers<[1], [0], [0], [1], [0, 0, 1, 1], [], []>} : vector<2x32xf32>, vector<32x32xf32>, vector<2x32xf32> -> vector<2x32xf32>
    %c0_26 = arith.constant 0 : index
    %c0_27 = arith.constant 0 : index
    %c0_28 = arith.constant 0 : index
    %48 = vector.load %arg7[%c0_26, %c0_27, %c0_28] : memref<2x1x32xf32, #tpu.memory_space<vmem>>, vector<1x1x32xf32>
    %49 = vector.shape_cast %48 : vector<1x1x32xf32> to vector<1x32xf32>
    %50 = vector.broadcast %49 : vector<1x32xf32> to vector<2x32xf32>
    %51 = arith.addf %47, %50 : vector<2x32xf32>
    %52 = arith.addf %12, %51 : vector<2x32xf32>
    %c0_29 = arith.constant 0 : index
    %c0_30 = arith.constant 0 : index
    %c0_31 = arith.constant 0 : index
    %53 = vector.load %arg12[%c0_29, %c0_30, %c0_31] : memref<2x1x32xf32, #tpu.memory_space<vmem>>, vector<1x1x32xf32>
    %54 = vector.shape_cast %53 : vector<1x1x32xf32> to vector<1x32xf32>
    %c0_32 = arith.constant 0 : index
    %c0_33 = arith.constant 0 : index
    %c0_34 = arith.constant 0 : index
    %55 = vector.load %arg13[%c0_32, %c0_33, %c0_34] : memref<2x1x32xf32, #tpu.memory_space<vmem>>, vector<1x1x32xf32>
    %56 = vector.shape_cast %55 : vector<1x1x32xf32> to vector<1x32xf32>
    %cst_35 = arith.constant dense<0.000000e+00> : vector<2xf32>
    %57 = vector.multi_reduction <add>, %52, %cst_35 [1] : vector<2x32xf32> to vector<2xf32>
    %58 = vector.shape_cast %57 : vector<2xf32> to vector<2x1xf32>
    %cst_36 = arith.constant 3.200000e+01 : f32
    %59 = vector.broadcast %cst_36 : f32 to vector<2x1xf32>
    %60 = arith.divf %58, %59 : vector<2x1xf32>
    %61 = vector.broadcast %60 : vector<2x1xf32> to vector<2x32xf32>
    %62 = arith.subf %52, %61 : vector<2x32xf32>
    %63 = arith.mulf %62, %62 : vector<2x32xf32>
    %cst_37 = arith.constant dense<0.000000e+00> : vector<2xf32>
    %64 = vector.multi_reduction <add>, %63, %cst_37 [1] : vector<2x32xf32> to vector<2xf32>
    %65 = vector.shape_cast %64 : vector<2xf32> to vector<2x1xf32>
    %cst_38 = arith.constant 3.200000e+01 : f32
    %66 = vector.broadcast %cst_38 : f32 to vector<2x1xf32>
    %67 = arith.divf %65, %66 : vector<2x1xf32>
    %68 = vector.broadcast %60 : vector<2x1xf32> to vector<2x32xf32>
    %69 = arith.subf %52, %68 : vector<2x32xf32>
    %cst_39 = arith.constant 9.99999974E-6 : f32
    %70 = vector.broadcast %cst_39 : f32 to vector<2x1xf32>
    %71 = arith.addf %67, %70 : vector<2x1xf32>
    %72 = math.rsqrt %71 : vector<2x1xf32>
    %73 = vector.broadcast %72 : vector<2x1xf32> to vector<2x32xf32>
    %74 = arith.mulf %69, %73 : vector<2x32xf32>
    %75 = vector.broadcast %54 : vector<1x32xf32> to vector<2x32xf32>
    %76 = arith.mulf %74, %75 : vector<2x32xf32>
    %77 = vector.broadcast %56 : vector<1x32xf32> to vector<2x32xf32>
    %78 = arith.addf %76, %77 : vector<2x32xf32>
    %c0_40 = arith.constant 0 : index
    %c0_41 = arith.constant 0 : index
    %c0_42 = arith.constant 0 : index
    %79 = vector.load %arg8[%c0_40, %c0_41, %c0_42] : memref<2x32x64xf32, #tpu.memory_space<vmem>>, vector<1x32x64xf32>
    %80 = vector.shape_cast %79 : vector<1x32x64xf32> to vector<32x64xf32>
    %cst_43 = arith.constant dense<0.000000e+00> : vector<2x64xf32>
    %81 = tpu.matmul %78, %80, %cst_43 {dimension_numbers = #tpu.dot_dimension_numbers<[1], [0], [0], [1], [0, 0, 1, 1], [], []>} : vector<2x32xf32>, vector<32x64xf32>, vector<2x64xf32> -> vector<2x64xf32>
    %c0_44 = arith.constant 0 : index
    %c0_45 = arith.constant 0 : index
    %c0_46 = arith.constant 0 : index
    %82 = vector.load %arg9[%c0_44, %c0_45, %c0_46] : memref<2x1x64xf32, #tpu.memory_space<vmem>>, vector<1x1x64xf32>
    %83 = vector.shape_cast %82 : vector<1x1x64xf32> to vector<1x64xf32>
    %84 = vector.broadcast %83 : vector<1x64xf32> to vector<2x64xf32>
    %85 = arith.addf %81, %84 : vector<2x64xf32>
    %cst_47 = arith.constant 0.000000e+00 : f32
    %86 = vector.broadcast %cst_47 : f32 to vector<2x64xf32>
    %87 = arith.maximumf %85, %86 : vector<2x64xf32>
    %c0_48 = arith.constant 0 : index
    %c0_49 = arith.constant 0 : index
    %c0_50 = arith.constant 0 : index
    %88 = vector.load %arg10[%c0_48, %c0_49, %c0_50] : memref<2x64x32xf32, #tpu.memory_space<vmem>>, vector<1x64x32xf32>
    %89 = vector.shape_cast %88 : vector<1x64x32xf32> to vector<64x32xf32>
    %cst_51 = arith.constant dense<0.000000e+00> : vector<2x32xf32>
    %90 = tpu.matmul %87, %89, %cst_51 {dimension_numbers = #tpu.dot_dimension_numbers<[1], [0], [0], [1], [0, 0, 1, 1], [], []>} : vector<2x64xf32>, vector<64x32xf32>, vector<2x32xf32> -> vector<2x32xf32>
    %c0_52 = arith.constant 0 : index
    %c0_53 = arith.constant 0 : index
    %c0_54 = arith.constant 0 : index
    %91 = vector.load %arg11[%c0_52, %c0_53, %c0_54] : memref<2x1x32xf32, #tpu.memory_space<vmem>>, vector<1x1x32xf32>
    %92 = vector.shape_cast %91 : vector<1x1x32xf32> to vector<1x32xf32>
    %93 = vector.broadcast %92 : vector<1x32xf32> to vector<2x32xf32>
    %94 = arith.addf %90, %93 : vector<2x32xf32>
    %95 = arith.addf %78, %94 : vector<2x32xf32>
    %c0_55 = arith.constant 0 : index
    %c0_56 = arith.constant 0 : index
    %c0_57 = arith.constant 0 : index
    %96 = vector.load %arg14[%c0_55, %c0_56, %c0_57] : memref<2x1x32xf32, #tpu.memory_space<vmem>>, vector<1x1x32xf32>
    %97 = vector.shape_cast %96 : vector<1x1x32xf32> to vector<1x32xf32>
    %c0_58 = arith.constant 0 : index
    %c0_59 = arith.constant 0 : index
    %c0_60 = arith.constant 0 : index
    %98 = vector.load %arg15[%c0_58, %c0_59, %c0_60] : memref<2x1x32xf32, #tpu.memory_space<vmem>>, vector<1x1x32xf32>
    %99 = vector.shape_cast %98 : vector<1x1x32xf32> to vector<1x32xf32>
    %cst_61 = arith.constant dense<0.000000e+00> : vector<2xf32>
    %100 = vector.multi_reduction <add>, %95, %cst_61 [1] : vector<2x32xf32> to vector<2xf32>
    %101 = vector.shape_cast %100 : vector<2xf32> to vector<2x1xf32>
    %cst_62 = arith.constant 3.200000e+01 : f32
    %102 = vector.broadcast %cst_62 : f32 to vector<2x1xf32>
    %103 = arith.divf %101, %102 : vector<2x1xf32>
    %104 = vector.broadcast %103 : vector<2x1xf32> to vector<2x32xf32>
    %105 = arith.subf %95, %104 : vector<2x32xf32>
    %106 = arith.mulf %105, %105 : vector<2x32xf32>
    %cst_63 = arith.constant dense<0.000000e+00> : vector<2xf32>
    %107 = vector.multi_reduction <add>, %106, %cst_63 [1] : vector<2x32xf32> to vector<2xf32>
    %108 = vector.shape_cast %107 : vector<2xf32> to vector<2x1xf32>
    %cst_64 = arith.constant 3.200000e+01 : f32
    %109 = vector.broadcast %cst_64 : f32 to vector<2x1xf32>
    %110 = arith.divf %108, %109 : vector<2x1xf32>
    %111 = vector.broadcast %103 : vector<2x1xf32> to vector<2x32xf32>
    %112 = arith.subf %95, %111 : vector<2x32xf32>
    %cst_65 = arith.constant 9.99999974E-6 : f32
    %113 = vector.broadcast %cst_65 : f32 to vector<2x1xf32>
    %114 = arith.addf %110, %113 : vector<2x1xf32>
    %115 = math.rsqrt %114 : vector<2x1xf32>
    %116 = vector.broadcast %115 : vector<2x1xf32> to vector<2x32xf32>
    %117 = arith.mulf %112, %116 : vector<2x32xf32>
    %118 = vector.broadcast %97 : vector<1x32xf32> to vector<2x32xf32>
    %119 = arith.mulf %117, %118 : vector<2x32xf32>
    %120 = vector.broadcast %99 : vector<1x32xf32> to vector<2x32xf32>
    %121 = arith.addf %119, %120 : vector<2x32xf32>
    %c1 = arith.constant 1 : index
    %c0_66 = arith.constant 0 : index
    %c0_67 = arith.constant 0 : index
    %122 = vector.load %arg4[%c1, %c0_66, %c0_67] : memref<2x32x96xf32, #tpu.memory_space<vmem>>, vector<1x32x96xf32>
    %123 = vector.shape_cast %122 : vector<1x32x96xf32> to vector<32x96xf32>
    %cst_68 = arith.constant dense<0.000000e+00> : vector<2x96xf32>
    %124 = tpu.matmul %121, %123, %cst_68 {dimension_numbers = #tpu.dot_dimension_numbers<[1], [0], [0], [1], [0, 0, 1, 1], [], []>} : vector<2x32xf32>, vector<32x96xf32>, vector<2x96xf32> -> vector<2x96xf32>
    %c1_69 = arith.constant 1 : index
    %c0_70 = arith.constant 0 : index
    %c0_71 = arith.constant 0 : index
    %125 = vector.load %arg5[%c1_69, %c0_70, %c0_71] : memref<2x1x96xf32, #tpu.memory_space<vmem>>, vector<1x1x96xf32>
    %126 = vector.shape_cast %125 : vector<1x1x96xf32> to vector<1x96xf32>
    %127 = vector.broadcast %126 : vector<1x96xf32> to vector<2x96xf32>
    %128 = arith.addf %124, %127 : vector<2x96xf32>
    %129 = vector.extract_strided_slice %128 {offsets = [0, 0], sizes = [2, 32], strides = [1, 1]} : vector<2x96xf32> to vector<2x32xf32>
    %130 = vector.shape_cast %129 : vector<2x32xf32> to vector<2x4x8xf32>
    %131 = tpu.transpose %130, [1, 0, 2] : vector<2x4x8xf32> -> vector<4x2x8xf32>
    %132 = vector.extract_strided_slice %128 {offsets = [0, 32], sizes = [2, 32], strides = [1, 1]} : vector<2x96xf32> to vector<2x32xf32>
    %133 = vector.shape_cast %132 : vector<2x32xf32> to vector<2x4x8xf32>
    %134 = tpu.transpose %133, [1, 0, 2] : vector<2x4x8xf32> -> vector<4x2x8xf32>
    %135 = vector.extract_strided_slice %128 {offsets = [0, 64], sizes = [2, 32], strides = [1, 1]} : vector<2x96xf32> to vector<2x32xf32>
    %136 = vector.shape_cast %135 : vector<2x32xf32> to vector<2x4x8xf32>
    %137 = tpu.transpose %136, [1, 0, 2] : vector<2x4x8xf32> -> vector<4x2x8xf32>
    "tpu.trace_start"() <{level = 10 : i32, message = "hbd,hcd->hbc"}> : () -> ()
    %cst_72 = arith.constant dense<0.000000e+00> : vector<4x2x2xf32>
    %138 = tpu.matmul %131, %134, %cst_72 {dimension_numbers = #tpu.dot_dimension_numbers<[2], [2], [1], [1], [0, 0, 0, 1, 1, 1], [0], [0]>} : vector<4x2x8xf32>, vector<4x2x8xf32>, vector<4x2x2xf32> -> vector<4x2x2xf32>
    "tpu.trace_stop"() : () -> ()
    %cst_73 = arith.constant 0.353553385 : f32
    %139 = vector.broadcast %cst_73 : f32 to vector<4x2x2xf32>
    %140 = arith.mulf %138, %139 : vector<4x2x2xf32>
    %cst_74 = arith.constant dense<0xFF800000> : vector<4x2xf32>
    %141 = vector.multi_reduction <maximumf>, %140, %cst_74 [2] : vector<4x2x2xf32> to vector<4x2xf32>
    %142 = vector.shape_cast %141 : vector<4x2xf32> to vector<4x2x1xf32>
    %143 = vector.broadcast %142 : vector<4x2x1xf32> to vector<4x2x2xf32>
    %144 = arith.subf %140, %143 : vector<4x2x2xf32>
    %145 = math.exp %144 : vector<4x2x2xf32>
    %cst_75 = arith.constant dense<0.000000e+00> : vector<4x2xf32>
    %146 = vector.multi_reduction <add>, %145, %cst_75 [2] : vector<4x2x2xf32> to vector<4x2xf32>
    %147 = vector.shape_cast %146 : vector<4x2xf32> to vector<4x2x1xf32>
    %148 = tpu.reciprocal %147 {approx = true} : vector<4x2x1xf32> -> vector<4x2x1xf32>
    %149 = vector.broadcast %148 : vector<4x2x1xf32> to vector<4x2x2xf32>
    %150 = arith.mulf %145, %149 : vector<4x2x2xf32>
    "tpu.trace_start"() <{level = 10 : i32, message = "hbc,hcd->hbd"}> : () -> ()
    %cst_76 = arith.constant dense<0.000000e+00> : vector<4x2x8xf32>
    %151 = tpu.matmul %150, %137, %cst_76 {dimension_numbers = #tpu.dot_dimension_numbers<[2], [1], [1], [2], [0, 0, 0, 1, 1, 2], [0], [0]>} : vector<4x2x2xf32>, vector<4x2x8xf32>, vector<4x2x8xf32> -> vector<4x2x8xf32>
    "tpu.trace_stop"() : () -> ()
    %152 = tpu.transpose %151, [1, 0, 2] : vector<4x2x8xf32> -> vector<2x4x8xf32>
    %153 = vector.shape_cast %152 : vector<2x4x8xf32> to vector<2x32xf32>
    %c1_77 = arith.constant 1 : index
    %c0_78 = arith.constant 0 : index
    %c0_79 = arith.constant 0 : index
    %154 = vector.load %arg6[%c1_77, %c0_78, %c0_79] : memref<2x32x32xf32, #tpu.memory_space<vmem>>, vector<1x32x32xf32>
    %155 = vector.shape_cast %154 : vector<1x32x32xf32> to vector<32x32xf32>
    %cst_80 = arith.constant dense<0.000000e+00> : vector<2x32xf32>
    %156 = tpu.matmul %153, %155, %cst_80 {dimension_numbers = #tpu.dot_dimension_numbers<[1], [0], [0], [1], [0, 0, 1, 1], [], []>} : vector<2x32xf32>, vector<32x32xf32>, vector<2x32xf32> -> vector<2x32xf32>
    %c1_81 = arith.constant 1 : index
    %c0_82 = arith.constant 0 : index
    %c0_83 = arith.constant 0 : index
    %157 = vector.load %arg7[%c1_81, %c0_82, %c0_83] : memref<2x1x32xf32, #tpu.memory_space<vmem>>, vector<1x1x32xf32>
    %158 = vector.shape_cast %157 : vector<1x1x32xf32> to vector<1x32xf32>
    %159 = vector.broadcast %158 : vector<1x32xf32> to vector<2x32xf32>
    %160 = arith.addf %156, %159 : vector<2x32xf32>
    %161 = arith.addf %121, %160 : vector<2x32xf32>
    %c1_84 = arith.constant 1 : index
    %c0_85 = arith.constant 0 : index
    %c0_86 = arith.constant 0 : index
    %162 = vector.load %arg12[%c1_84, %c0_85, %c0_86] : memref<2x1x32xf32, #tpu.memory_space<vmem>>, vector<1x1x32xf32>
    %163 = vector.shape_cast %162 : vector<1x1x32xf32> to vector<1x32xf32>
    %c1_87 = arith.constant 1 : index
    %c0_88 = arith.constant 0 : index
    %c0_89 = arith.constant 0 : index
    %164 = vector.load %arg13[%c1_87, %c0_88, %c0_89] : memref<2x1x32xf32, #tpu.memory_space<vmem>>, vector<1x1x32xf32>
    %165 = vector.shape_cast %164 : vector<1x1x32xf32> to vector<1x32xf32>
    %cst_90 = arith.constant dense<0.000000e+00> : vector<2xf32>
    %166 = vector.multi_reduction <add>, %161, %cst_90 [1] : vector<2x32xf32> to vector<2xf32>
    %167 = vector.shape_cast %166 : vector<2xf32> to vector<2x1xf32>
    %cst_91 = arith.constant 3.200000e+01 : f32
    %168 = vector.broadcast %cst_91 : f32 to vector<2x1xf32>
    %169 = arith.divf %167, %168 : vector<2x1xf32>
    %170 = vector.broadcast %169 : vector<2x1xf32> to vector<2x32xf32>
    %171 = arith.subf %161, %170 : vector<2x32xf32>
    %172 = arith.mulf %171, %171 : vector<2x32xf32>
    %cst_92 = arith.constant dense<0.000000e+00> : vector<2xf32>
    %173 = vector.multi_reduction <add>, %172, %cst_92 [1] : vector<2x32xf32> to vector<2xf32>
    %174 = vector.shape_cast %173 : vector<2xf32> to vector<2x1xf32>
    %cst_93 = arith.constant 3.200000e+01 : f32
    %175 = vector.broadcast %cst_93 : f32 to vector<2x1xf32>
    %176 = arith.divf %174, %175 : vector<2x1xf32>
    %177 = vector.broadcast %169 : vector<2x1xf32> to vector<2x32xf32>
    %178 = arith.subf %161, %177 : vector<2x32xf32>
    %cst_94 = arith.constant 9.99999974E-6 : f32
    %179 = vector.broadcast %cst_94 : f32 to vector<2x1xf32>
    %180 = arith.addf %176, %179 : vector<2x1xf32>
    %181 = math.rsqrt %180 : vector<2x1xf32>
    %182 = vector.broadcast %181 : vector<2x1xf32> to vector<2x32xf32>
    %183 = arith.mulf %178, %182 : vector<2x32xf32>
    %184 = vector.broadcast %163 : vector<1x32xf32> to vector<2x32xf32>
    %185 = arith.mulf %183, %184 : vector<2x32xf32>
    %186 = vector.broadcast %165 : vector<1x32xf32> to vector<2x32xf32>
    %187 = arith.addf %185, %186 : vector<2x32xf32>
    %c1_95 = arith.constant 1 : index
    %c0_96 = arith.constant 0 : index
    %c0_97 = arith.constant 0 : index
    %188 = vector.load %arg8[%c1_95, %c0_96, %c0_97] : memref<2x32x64xf32, #tpu.memory_space<vmem>>, vector<1x32x64xf32>
    %189 = vector.shape_cast %188 : vector<1x32x64xf32> to vector<32x64xf32>
    %cst_98 = arith.constant dense<0.000000e+00> : vector<2x64xf32>
    %190 = tpu.matmul %187, %189, %cst_98 {dimension_numbers = #tpu.dot_dimension_numbers<[1], [0], [0], [1], [0, 0, 1, 1], [], []>} : vector<2x32xf32>, vector<32x64xf32>, vector<2x64xf32> -> vector<2x64xf32>
    %c1_99 = arith.constant 1 : index
    %c0_100 = arith.constant 0 : index
    %c0_101 = arith.constant 0 : index
    %191 = vector.load %arg9[%c1_99, %c0_100, %c0_101] : memref<2x1x64xf32, #tpu.memory_space<vmem>>, vector<1x1x64xf32>
    %192 = vector.shape_cast %191 : vector<1x1x64xf32> to vector<1x64xf32>
    %193 = vector.broadcast %192 : vector<1x64xf32> to vector<2x64xf32>
    %194 = arith.addf %190, %193 : vector<2x64xf32>
    %cst_102 = arith.constant 0.000000e+00 : f32
    %195 = vector.broadcast %cst_102 : f32 to vector<2x64xf32>
    %196 = arith.maximumf %194, %195 : vector<2x64xf32>
    %c1_103 = arith.constant 1 : index
    %c0_104 = arith.constant 0 : index
    %c0_105 = arith.constant 0 : index
    %197 = vector.load %arg10[%c1_103, %c0_104, %c0_105] : memref<2x64x32xf32, #tpu.memory_space<vmem>>, vector<1x64x32xf32>
    %198 = vector.shape_cast %197 : vector<1x64x32xf32> to vector<64x32xf32>
    %cst_106 = arith.constant dense<0.000000e+00> : vector<2x32xf32>
    %199 = tpu.matmul %196, %198, %cst_106 {dimension_numbers = #tpu.dot_dimension_numbers<[1], [0], [0], [1], [0, 0, 1, 1], [], []>} : vector<2x64xf32>, vector<64x32xf32>, vector<2x32xf32> -> vector<2x32xf32>
    %c1_107 = arith.constant 1 : index
    %c0_108 = arith.constant 0 : index
    %c0_109 = arith.constant 0 : index
    %200 = vector.load %arg11[%c1_107, %c0_108, %c0_109] : memref<2x1x32xf32, #tpu.memory_space<vmem>>, vector<1x1x32xf32>
    %201 = vector.shape_cast %200 : vector<1x1x32xf32> to vector<1x32xf32>
    %202 = vector.broadcast %201 : vector<1x32xf32> to vector<2x32xf32>
    %203 = arith.addf %199, %202 : vector<2x32xf32>
    %204 = arith.addf %187, %203 : vector<2x32xf32>
    %c1_110 = arith.constant 1 : index
    %c0_111 = arith.constant 0 : index
    %c0_112 = arith.constant 0 : index
    %205 = vector.load %arg14[%c1_110, %c0_111, %c0_112] : memref<2x1x32xf32, #tpu.memory_space<vmem>>, vector<1x1x32xf32>
    %206 = vector.shape_cast %205 : vector<1x1x32xf32> to vector<1x32xf32>
    %c1_113 = arith.constant 1 : index
    %c0_114 = arith.constant 0 : index
    %c0_115 = arith.constant 0 : index
    %207 = vector.load %arg15[%c1_113, %c0_114, %c0_115] : memref<2x1x32xf32, #tpu.memory_space<vmem>>, vector<1x1x32xf32>
    %208 = vector.shape_cast %207 : vector<1x1x32xf32> to vector<1x32xf32>
    %cst_116 = arith.constant dense<0.000000e+00> : vector<2xf32>
    %209 = vector.multi_reduction <add>, %204, %cst_116 [1] : vector<2x32xf32> to vector<2xf32>
    %210 = vector.shape_cast %209 : vector<2xf32> to vector<2x1xf32>
    %cst_117 = arith.constant 3.200000e+01 : f32
    %211 = vector.broadcast %cst_117 : f32 to vector<2x1xf32>
    %212 = arith.divf %210, %211 : vector<2x1xf32>
    %213 = vector.broadcast %212 : vector<2x1xf32> to vector<2x32xf32>
    %214 = arith.subf %204, %213 : vector<2x32xf32>
    %215 = arith.mulf %214, %214 : vector<2x32xf32>
    %cst_118 = arith.constant dense<0.000000e+00> : vector<2xf32>
    %216 = vector.multi_reduction <add>, %215, %cst_118 [1] : vector<2x32xf32> to vector<2xf32>
    %217 = vector.shape_cast %216 : vector<2xf32> to vector<2x1xf32>
    %cst_119 = arith.constant 3.200000e+01 : f32
    %218 = vector.broadcast %cst_119 : f32 to vector<2x1xf32>
    %219 = arith.divf %217, %218 : vector<2x1xf32>
    %220 = vector.broadcast %212 : vector<2x1xf32> to vector<2x32xf32>
    %221 = arith.subf %204, %220 : vector<2x32xf32>
    %cst_120 = arith.constant 9.99999974E-6 : f32
    %222 = vector.broadcast %cst_120 : f32 to vector<2x1xf32>
    %223 = arith.addf %219, %222 : vector<2x1xf32>
    %224 = math.rsqrt %223 : vector<2x1xf32>
    %225 = vector.broadcast %224 : vector<2x1xf32> to vector<2x32xf32>
    %226 = arith.mulf %221, %225 : vector<2x32xf32>
    %227 = vector.broadcast %206 : vector<1x32xf32> to vector<2x32xf32>
    %228 = arith.mulf %226, %227 : vector<2x32xf32>
    %229 = vector.broadcast %208 : vector<1x32xf32> to vector<2x32xf32>
    %230 = arith.addf %228, %229 : vector<2x32xf32>
    %c0_121 = arith.constant 0 : index
    %c0_122 = arith.constant 0 : index
    %c0_123 = arith.constant 0 : index
    %231 = vector.load %arg16[%c0_121, %c0_122, %c0_123] : memref<5x32x64xf32, #tpu.memory_space<vmem>>, vector<1x32x64xf32>
    %232 = vector.shape_cast %231 : vector<1x32x64xf32> to vector<32x64xf32>
    %cst_124 = arith.constant dense<0.000000e+00> : vector<2x64xf32>
    %233 = tpu.matmul %230, %232, %cst_124 {dimension_numbers = #tpu.dot_dimension_numbers<[1], [0], [0], [1], [0, 0, 1, 1], [], []>} : vector<2x32xf32>, vector<32x64xf32>, vector<2x64xf32> -> vector<2x64xf32>
    %234 = arith.addf %1, %233 : vector<2x64xf32>
    %235 = vector.extract_strided_slice %0 {offsets = [0, 1, 0], sizes = [2, 1, 15], strides = [1, 1, 1]} : vector<2x5x15xf32> to vector<2x1x15xf32>
    %236 = vector.shape_cast %235 : vector<2x1x15xf32> to vector<2x15xf32>
    %c0_125 = arith.constant 0 : index
    %c0_126 = arith.constant 0 : index
    %237 = vector.load %arg2[%c0_125, %c0_126] : memref<15x32xf32, #tpu.memory_space<vmem>>, vector<15x32xf32>
    %cst_127 = arith.constant dense<0.000000e+00> : vector<2x32xf32>
    %238 = tpu.matmul %236, %237, %cst_127 {dimension_numbers = #tpu.dot_dimension_numbers<[1], [0], [0], [1], [0, 0, 1, 1], [], []>} : vector<2x15xf32>, vector<15x32xf32>, vector<2x32xf32> -> vector<2x32xf32>
    %c0_128 = arith.constant 0 : index
    %c0_129 = arith.constant 0 : index
    %239 = vector.load %arg3[%c0_128, %c0_129] : memref<1x32xf32, #tpu.memory_space<vmem>>, vector<1x32xf32>
    %240 = vector.broadcast %239 : vector<1x32xf32> to vector<2x32xf32>
    %241 = arith.addf %238, %240 : vector<2x32xf32>
    %c1_130 = arith.constant 1 : index
    %c0_131 = arith.constant 0 : index
    %c0_132 = arith.constant 0 : index
    %242 = vector.load %arg1[%c1_130, %c0_131, %c0_132] : memref<5x1x32xf32, #tpu.memory_space<vmem>>, vector<1x1x32xf32>
    %243 = vector.shape_cast %242 : vector<1x1x32xf32> to vector<1x32xf32>
    %244 = vector.broadcast %243 : vector<1x32xf32> to vector<2x32xf32>
    %245 = arith.addf %241, %244 : vector<2x32xf32>
    %c0_133 = arith.constant 0 : index
    %c0_134 = arith.constant 0 : index
    %c0_135 = arith.constant 0 : index
    %246 = vector.load %arg4[%c0_133, %c0_134, %c0_135] : memref<2x32x96xf32, #tpu.memory_space<vmem>>, vector<1x32x96xf32>
    %247 = vector.shape_cast %246 : vector<1x32x96xf32> to vector<32x96xf32>
    %cst_136 = arith.constant dense<0.000000e+00> : vector<2x96xf32>
    %248 = tpu.matmul %245, %247, %cst_136 {dimension_numbers = #tpu.dot_dimension_numbers<[1], [0], [0], [1], [0, 0, 1, 1], [], []>} : vector<2x32xf32>, vector<32x96xf32>, vector<2x96xf32> -> vector<2x96xf32>
    %c0_137 = arith.constant 0 : index
    %c0_138 = arith.constant 0 : index
    %c0_139 = arith.constant 0 : index
    %249 = vector.load %arg5[%c0_137, %c0_138, %c0_139] : memref<2x1x96xf32, #tpu.memory_space<vmem>>, vector<1x1x96xf32>
    %250 = vector.shape_cast %249 : vector<1x1x96xf32> to vector<1x96xf32>
    %251 = vector.broadcast %250 : vector<1x96xf32> to vector<2x96xf32>
    %252 = arith.addf %248, %251 : vector<2x96xf32>
    %253 = vector.extract_strided_slice %252 {offsets = [0, 0], sizes = [2, 32], strides = [1, 1]} : vector<2x96xf32> to vector<2x32xf32>
    %254 = vector.shape_cast %253 : vector<2x32xf32> to vector<2x4x8xf32>
    %255 = tpu.transpose %254, [1, 0, 2] : vector<2x4x8xf32> -> vector<4x2x8xf32>
    %256 = vector.extract_strided_slice %252 {offsets = [0, 32], sizes = [2, 32], strides = [1, 1]} : vector<2x96xf32> to vector<2x32xf32>
    %257 = vector.shape_cast %256 : vector<2x32xf32> to vector<2x4x8xf32>
    %258 = tpu.transpose %257, [1, 0, 2] : vector<2x4x8xf32> -> vector<4x2x8xf32>
    %259 = vector.extract_strided_slice %252 {offsets = [0, 64], sizes = [2, 32], strides = [1, 1]} : vector<2x96xf32> to vector<2x32xf32>
    %260 = vector.shape_cast %259 : vector<2x32xf32> to vector<2x4x8xf32>
    %261 = tpu.transpose %260, [1, 0, 2] : vector<2x4x8xf32> -> vector<4x2x8xf32>
    "tpu.trace_start"() <{level = 10 : i32, message = "hbd,hcd->hbc"}> : () -> ()
    %cst_140 = arith.constant dense<0.000000e+00> : vector<4x2x2xf32>
    %262 = tpu.matmul %255, %258, %cst_140 {dimension_numbers = #tpu.dot_dimension_numbers<[2], [2], [1], [1], [0, 0, 0, 1, 1, 1], [0], [0]>} : vector<4x2x8xf32>, vector<4x2x8xf32>, vector<4x2x2xf32> -> vector<4x2x2xf32>
    "tpu.trace_stop"() : () -> ()
    %cst_141 = arith.constant 0.353553385 : f32
    %263 = vector.broadcast %cst_141 : f32 to vector<4x2x2xf32>
    %264 = arith.mulf %262, %263 : vector<4x2x2xf32>
    %cst_142 = arith.constant dense<0xFF800000> : vector<4x2xf32>
    %265 = vector.multi_reduction <maximumf>, %264, %cst_142 [2] : vector<4x2x2xf32> to vector<4x2xf32>
    %266 = vector.shape_cast %265 : vector<4x2xf32> to vector<4x2x1xf32>
    %267 = vector.broadcast %266 : vector<4x2x1xf32> to vector<4x2x2xf32>
    %268 = arith.subf %264, %267 : vector<4x2x2xf32>
    %269 = math.exp %268 : vector<4x2x2xf32>
    %cst_143 = arith.constant dense<0.000000e+00> : vector<4x2xf32>
    %270 = vector.multi_reduction <add>, %269, %cst_143 [2] : vector<4x2x2xf32> to vector<4x2xf32>
    %271 = vector.shape_cast %270 : vector<4x2xf32> to vector<4x2x1xf32>
    %272 = tpu.reciprocal %271 {approx = true} : vector<4x2x1xf32> -> vector<4x2x1xf32>
    %273 = vector.broadcast %272 : vector<4x2x1xf32> to vector<4x2x2xf32>
    %274 = arith.mulf %269, %273 : vector<4x2x2xf32>
    "tpu.trace_start"() <{level = 10 : i32, message = "hbc,hcd->hbd"}> : () -> ()
    %cst_144 = arith.constant dense<0.000000e+00> : vector<4x2x8xf32>
    %275 = tpu.matmul %274, %261, %cst_144 {dimension_numbers = #tpu.dot_dimension_numbers<[2], [1], [1], [2], [0, 0, 0, 1, 1, 2], [0], [0]>} : vector<4x2x2xf32>, vector<4x2x8xf32>, vector<4x2x8xf32> -> vector<4x2x8xf32>
    "tpu.trace_stop"() : () -> ()
    %276 = tpu.transpose %275, [1, 0, 2] : vector<4x2x8xf32> -> vector<2x4x8xf32>
    %277 = vector.shape_cast %276 : vector<2x4x8xf32> to vector<2x32xf32>
    %c0_145 = arith.constant 0 : index
    %c0_146 = arith.constant 0 : index
    %c0_147 = arith.constant 0 : index
    %278 = vector.load %arg6[%c0_145, %c0_146, %c0_147] : memref<2x32x32xf32, #tpu.memory_space<vmem>>, vector<1x32x32xf32>
    %279 = vector.shape_cast %278 : vector<1x32x32xf32> to vector<32x32xf32>
    %cst_148 = arith.constant dense<0.000000e+00> : vector<2x32xf32>
    %280 = tpu.matmul %277, %279, %cst_148 {dimension_numbers = #tpu.dot_dimension_numbers<[1], [0], [0], [1], [0, 0, 1, 1], [], []>} : vector<2x32xf32>, vector<32x32xf32>, vector<2x32xf32> -> vector<2x32xf32>
    %c0_149 = arith.constant 0 : index
    %c0_150 = arith.constant 0 : index
    %c0_151 = arith.constant 0 : index
    %281 = vector.load %arg7[%c0_149, %c0_150, %c0_151] : memref<2x1x32xf32, #tpu.memory_space<vmem>>, vector<1x1x32xf32>
    %282 = vector.shape_cast %281 : vector<1x1x32xf32> to vector<1x32xf32>
    %283 = vector.broadcast %282 : vector<1x32xf32> to vector<2x32xf32>
    %284 = arith.addf %280, %283 : vector<2x32xf32>
    %285 = arith.addf %245, %284 : vector<2x32xf32>
    %c0_152 = arith.constant 0 : index
    %c0_153 = arith.constant 0 : index
    %c0_154 = arith.constant 0 : index
    %286 = vector.load %arg12[%c0_152, %c0_153, %c0_154] : memref<2x1x32xf32, #tpu.memory_space<vmem>>, vector<1x1x32xf32>
    %287 = vector.shape_cast %286 : vector<1x1x32xf32> to vector<1x32xf32>
    %c0_155 = arith.constant 0 : index
    %c0_156 = arith.constant 0 : index
    %c0_157 = arith.constant 0 : index
    %288 = vector.load %arg13[%c0_155, %c0_156, %c0_157] : memref<2x1x32xf32, #tpu.memory_space<vmem>>, vector<1x1x32xf32>
    %289 = vector.shape_cast %288 : vector<1x1x32xf32> to vector<1x32xf32>
    %cst_158 = arith.constant dense<0.000000e+00> : vector<2xf32>
    %290 = vector.multi_reduction <add>, %285, %cst_158 [1] : vector<2x32xf32> to vector<2xf32>
    %291 = vector.shape_cast %290 : vector<2xf32> to vector<2x1xf32>
    %cst_159 = arith.constant 3.200000e+01 : f32
    %292 = vector.broadcast %cst_159 : f32 to vector<2x1xf32>
    %293 = arith.divf %291, %292 : vector<2x1xf32>
    %294 = vector.broadcast %293 : vector<2x1xf32> to vector<2x32xf32>
    %295 = arith.subf %285, %294 : vector<2x32xf32>
    %296 = arith.mulf %295, %295 : vector<2x32xf32>
    %cst_160 = arith.constant dense<0.000000e+00> : vector<2xf32>
    %297 = vector.multi_reduction <add>, %296, %cst_160 [1] : vector<2x32xf32> to vector<2xf32>
    %298 = vector.shape_cast %297 : vector<2xf32> to vector<2x1xf32>
    %cst_161 = arith.constant 3.200000e+01 : f32
    %299 = vector.broadcast %cst_161 : f32 to vector<2x1xf32>
    %300 = arith.divf %298, %299 : vector<2x1xf32>
    %301 = vector.broadcast %293 : vector<2x1xf32> to vector<2x32xf32>
    %302 = arith.subf %285, %301 : vector<2x32xf32>
    %cst_162 = arith.constant 9.99999974E-6 : f32
    %303 = vector.broadcast %cst_162 : f32 to vector<2x1xf32>
    %304 = arith.addf %300, %303 : vector<2x1xf32>
    %305 = math.rsqrt %304 : vector<2x1xf32>
    %306 = vector.broadcast %305 : vector<2x1xf32> to vector<2x32xf32>
    %307 = arith.mulf %302, %306 : vector<2x32xf32>
    %308 = vector.broadcast %287 : vector<1x32xf32> to vector<2x32xf32>
    %309 = arith.mulf %307, %308 : vector<2x32xf32>
    %310 = vector.broadcast %289 : vector<1x32xf32> to vector<2x32xf32>
    %311 = arith.addf %309, %310 : vector<2x32xf32>
    %c0_163 = arith.constant 0 : index
    %c0_164 = arith.constant 0 : index
    %c0_165 = arith.constant 0 : index
    %312 = vector.load %arg8[%c0_163, %c0_164, %c0_165] : memref<2x32x64xf32, #tpu.memory_space<vmem>>, vector<1x32x64xf32>
    %313 = vector.shape_cast %312 : vector<1x32x64xf32> to vector<32x64xf32>
    %cst_166 = arith.constant dense<0.000000e+00> : vector<2x64xf32>
    %314 = tpu.matmul %311, %313, %cst_166 {dimension_numbers = #tpu.dot_dimension_numbers<[1], [0], [0], [1], [0, 0, 1, 1], [], []>} : vector<2x32xf32>, vector<32x64xf32>, vector<2x64xf32> -> vector<2x64xf32>
    %c0_167 = arith.constant 0 : index
    %c0_168 = arith.constant 0 : index
    %c0_169 = arith.constant 0 : index
    %315 = vector.load %arg9[%c0_167, %c0_168, %c0_169] : memref<2x1x64xf32, #tpu.memory_space<vmem>>, vector<1x1x64xf32>
    %316 = vector.shape_cast %315 : vector<1x1x64xf32> to vector<1x64xf32>
    %317 = vector.broadcast %316 : vector<1x64xf32> to vector<2x64xf32>
    %318 = arith.addf %314, %317 : vector<2x64xf32>
    %cst_170 = arith.constant 0.000000e+00 : f32
    %319 = vector.broadcast %cst_170 : f32 to vector<2x64xf32>
    %320 = arith.maximumf %318, %319 : vector<2x64xf32>
    %c0_171 = arith.constant 0 : index
    %c0_172 = arith.constant 0 : index
    %c0_173 = arith.constant 0 : index
    %321 = vector.load %arg10[%c0_171, %c0_172, %c0_173] : memref<2x64x32xf32, #tpu.memory_space<vmem>>, vector<1x64x32xf32>
    %322 = vector.shape_cast %321 : vector<1x64x32xf32> to vector<64x32xf32>
    %cst_174 = arith.constant dense<0.000000e+00> : vector<2x32xf32>
    %323 = tpu.matmul %320, %322, %cst_174 {dimension_numbers = #tpu.dot_dimension_numbers<[1], [0], [0], [1], [0, 0, 1, 1], [], []>} : vector<2x64xf32>, vector<64x32xf32>, vector<2x32xf32> -> vector<2x32xf32>
    %c0_175 = arith.constant 0 : index
    %c0_176 = arith.constant 0 : index
    %c0_177 = arith.constant 0 : index
    %324 = vector.load %arg11[%c0_175, %c0_176, %c0_177] : memref<2x1x32xf32, #tpu.memory_space<vmem>>, vector<1x1x32xf32>
    %325 = vector.shape_cast %324 : vector<1x1x32xf32> to vector<1x32xf32>
    %326 = vector.broadcast %325 : vector<1x32xf32> to vector<2x32xf32>
    %327 = arith.addf %323, %326 : vector<2x32xf32>
    %328 = arith.addf %311, %327 : vector<2x32xf32>
    %c0_178 = arith.constant 0 : index
    %c0_179 = arith.constant 0 : index
    %c0_180 = arith.constant 0 : index
    %329 = vector.load %arg14[%c0_178, %c0_179, %c0_180] : memref<2x1x32xf32, #tpu.memory_space<vmem>>, vector<1x1x32xf32>
    %330 = vector.shape_cast %329 : vector<1x1x32xf32> to vector<1x32xf32>
    %c0_181 = arith.constant 0 : index
    %c0_182 = arith.constant 0 : index
    %c0_183 = arith.constant 0 : index
    %331 = vector.load %arg15[%c0_181, %c0_182, %c0_183] : memref<2x1x32xf32, #tpu.memory_space<vmem>>, vector<1x1x32xf32>
    %332 = vector.shape_cast %331 : vector<1x1x32xf32> to vector<1x32xf32>
    %cst_184 = arith.constant dense<0.000000e+00> : vector<2xf32>
    %333 = vector.multi_reduction <add>, %328, %cst_184 [1] : vector<2x32xf32> to vector<2xf32>
    %334 = vector.shape_cast %333 : vector<2xf32> to vector<2x1xf32>
    %cst_185 = arith.constant 3.200000e+01 : f32
    %335 = vector.broadcast %cst_185 : f32 to vector<2x1xf32>
    %336 = arith.divf %334, %335 : vector<2x1xf32>
    %337 = vector.broadcast %336 : vector<2x1xf32> to vector<2x32xf32>
    %338 = arith.subf %328, %337 : vector<2x32xf32>
    %339 = arith.mulf %338, %338 : vector<2x32xf32>
    %cst_186 = arith.constant dense<0.000000e+00> : vector<2xf32>
    %340 = vector.multi_reduction <add>, %339, %cst_186 [1] : vector<2x32xf32> to vector<2xf32>
    %341 = vector.shape_cast %340 : vector<2xf32> to vector<2x1xf32>
    %cst_187 = arith.constant 3.200000e+01 : f32
    %342 = vector.broadcast %cst_187 : f32 to vector<2x1xf32>
    %343 = arith.divf %341, %342 : vector<2x1xf32>
    %344 = vector.broadcast %336 : vector<2x1xf32> to vector<2x32xf32>
    %345 = arith.subf %328, %344 : vector<2x32xf32>
    %cst_188 = arith.constant 9.99999974E-6 : f32
    %346 = vector.broadcast %cst_188 : f32 to vector<2x1xf32>
    %347 = arith.addf %343, %346 : vector<2x1xf32>
    %348 = math.rsqrt %347 : vector<2x1xf32>
    %349 = vector.broadcast %348 : vector<2x1xf32> to vector<2x32xf32>
    %350 = arith.mulf %345, %349 : vector<2x32xf32>
    %351 = vector.broadcast %330 : vector<1x32xf32> to vector<2x32xf32>
    %352 = arith.mulf %350, %351 : vector<2x32xf32>
    %353 = vector.broadcast %332 : vector<1x32xf32> to vector<2x32xf32>
    %354 = arith.addf %352, %353 : vector<2x32xf32>
    %c1_189 = arith.constant 1 : index
    %c0_190 = arith.constant 0 : index
    %c0_191 = arith.constant 0 : index
    %355 = vector.load %arg4[%c1_189, %c0_190, %c0_191] : memref<2x32x96xf32, #tpu.memory_space<vmem>>, vector<1x32x96xf32>
    %356 = vector.shape_cast %355 : vector<1x32x96xf32> to vector<32x96xf32>
    %cst_192 = arith.constant dense<0.000000e+00> : vector<2x96xf32>
    %357 = tpu.matmul %354, %356, %cst_192 {dimension_numbers = #tpu.dot_dimension_numbers<[1], [0], [0], [1], [0, 0, 1, 1], [], []>} : vector<2x32xf32>, vector<32x96xf32>, vector<2x96xf32> -> vector<2x96xf32>
    %c1_193 = arith.constant 1 : index
    %c0_194 = arith.constant 0 : index
    %c0_195 = arith.constant 0 : index
    %358 = vector.load %arg5[%c1_193, %c0_194, %c0_195] : memref<2x1x96xf32, #tpu.memory_space<vmem>>, vector<1x1x96xf32>
    %359 = vector.shape_cast %358 : vector<1x1x96xf32> to vector<1x96xf32>
    %360 = vector.broadcast %359 : vector<1x96xf32> to vector<2x96xf32>
    %361 = arith.addf %357, %360 : vector<2x96xf32>
    %362 = vector.extract_strided_slice %361 {offsets = [0, 0], sizes = [2, 32], strides = [1, 1]} : vector<2x96xf32> to vector<2x32xf32>
    %363 = vector.shape_cast %362 : vector<2x32xf32> to vector<2x4x8xf32>
    %364 = tpu.transpose %363, [1, 0, 2] : vector<2x4x8xf32> -> vector<4x2x8xf32>
    %365 = vector.extract_strided_slice %361 {offsets = [0, 32], sizes = [2, 32], strides = [1, 1]} : vector<2x96xf32> to vector<2x32xf32>
    %366 = vector.shape_cast %365 : vector<2x32xf32> to vector<2x4x8xf32>
    %367 = tpu.transpose %366, [1, 0, 2] : vector<2x4x8xf32> -> vector<4x2x8xf32>
    %368 = vector.extract_strided_slice %361 {offsets = [0, 64], sizes = [2, 32], strides = [1, 1]} : vector<2x96xf32> to vector<2x32xf32>
    %369 = vector.shape_cast %368 : vector<2x32xf32> to vector<2x4x8xf32>
    %370 = tpu.transpose %369, [1, 0, 2] : vector<2x4x8xf32> -> vector<4x2x8xf32>
    "tpu.trace_start"() <{level = 10 : i32, message = "hbd,hcd->hbc"}> : () -> ()
    %cst_196 = arith.constant dense<0.000000e+00> : vector<4x2x2xf32>
    %371 = tpu.matmul %364, %367, %cst_196 {dimension_numbers = #tpu.dot_dimension_numbers<[2], [2], [1], [1], [0, 0, 0, 1, 1, 1], [0], [0]>} : vector<4x2x8xf32>, vector<4x2x8xf32>, vector<4x2x2xf32> -> vector<4x2x2xf32>
    "tpu.trace_stop"() : () -> ()
    %cst_197 = arith.constant 0.353553385 : f32
    %372 = vector.broadcast %cst_197 : f32 to vector<4x2x2xf32>
    %373 = arith.mulf %371, %372 : vector<4x2x2xf32>
    %cst_198 = arith.constant dense<0xFF800000> : vector<4x2xf32>
    %374 = vector.multi_reduction <maximumf>, %373, %cst_198 [2] : vector<4x2x2xf32> to vector<4x2xf32>
    %375 = vector.shape_cast %374 : vector<4x2xf32> to vector<4x2x1xf32>
    %376 = vector.broadcast %375 : vector<4x2x1xf32> to vector<4x2x2xf32>
    %377 = arith.subf %373, %376 : vector<4x2x2xf32>
    %378 = math.exp %377 : vector<4x2x2xf32>
    %cst_199 = arith.constant dense<0.000000e+00> : vector<4x2xf32>
    %379 = vector.multi_reduction <add>, %378, %cst_199 [2] : vector<4x2x2xf32> to vector<4x2xf32>
    %380 = vector.shape_cast %379 : vector<4x2xf32> to vector<4x2x1xf32>
    %381 = tpu.reciprocal %380 {approx = true} : vector<4x2x1xf32> -> vector<4x2x1xf32>
    %382 = vector.broadcast %381 : vector<4x2x1xf32> to vector<4x2x2xf32>
    %383 = arith.mulf %378, %382 : vector<4x2x2xf32>
    "tpu.trace_start"() <{level = 10 : i32, message = "hbc,hcd->hbd"}> : () -> ()
    %cst_200 = arith.constant dense<0.000000e+00> : vector<4x2x8xf32>
    %384 = tpu.matmul %383, %370, %cst_200 {dimension_numbers = #tpu.dot_dimension_numbers<[2], [1], [1], [2], [0, 0, 0, 1, 1, 2], [0], [0]>} : vector<4x2x2xf32>, vector<4x2x8xf32>, vector<4x2x8xf32> -> vector<4x2x8xf32>
    "tpu.trace_stop"() : () -> ()
    %385 = tpu.transpose %384, [1, 0, 2] : vector<4x2x8xf32> -> vector<2x4x8xf32>
    %386 = vector.shape_cast %385 : vector<2x4x8xf32> to vector<2x32xf32>
    %c1_201 = arith.constant 1 : index
    %c0_202 = arith.constant 0 : index
    %c0_203 = arith.constant 0 : index
    %387 = vector.load %arg6[%c1_201, %c0_202, %c0_203] : memref<2x32x32xf32, #tpu.memory_space<vmem>>, vector<1x32x32xf32>
    %388 = vector.shape_cast %387 : vector<1x32x32xf32> to vector<32x32xf32>
    %cst_204 = arith.constant dense<0.000000e+00> : vector<2x32xf32>
    %389 = tpu.matmul %386, %388, %cst_204 {dimension_numbers = #tpu.dot_dimension_numbers<[1], [0], [0], [1], [0, 0, 1, 1], [], []>} : vector<2x32xf32>, vector<32x32xf32>, vector<2x32xf32> -> vector<2x32xf32>
    %c1_205 = arith.constant 1 : index
    %c0_206 = arith.constant 0 : index
    %c0_207 = arith.constant 0 : index
    %390 = vector.load %arg7[%c1_205, %c0_206, %c0_207] : memref<2x1x32xf32, #tpu.memory_space<vmem>>, vector<1x1x32xf32>
    %391 = vector.shape_cast %390 : vector<1x1x32xf32> to vector<1x32xf32>
    %392 = vector.broadcast %391 : vector<1x32xf32> to vector<2x32xf32>
    %393 = arith.addf %389, %392 : vector<2x32xf32>
    %394 = arith.addf %354, %393 : vector<2x32xf32>
    %c1_208 = arith.constant 1 : index
    %c0_209 = arith.constant 0 : index
    %c0_210 = arith.constant 0 : index
    %395 = vector.load %arg12[%c1_208, %c0_209, %c0_210] : memref<2x1x32xf32, #tpu.memory_space<vmem>>, vector<1x1x32xf32>
    %396 = vector.shape_cast %395 : vector<1x1x32xf32> to vector<1x32xf32>
    %c1_211 = arith.constant 1 : index
    %c0_212 = arith.constant 0 : index
    %c0_213 = arith.constant 0 : index
    %397 = vector.load %arg13[%c1_211, %c0_212, %c0_213] : memref<2x1x32xf32, #tpu.memory_space<vmem>>, vector<1x1x32xf32>
    %398 = vector.shape_cast %397 : vector<1x1x32xf32> to vector<1x32xf32>
    %cst_214 = arith.constant dense<0.000000e+00> : vector<2xf32>
    %399 = vector.multi_reduction <add>, %394, %cst_214 [1] : vector<2x32xf32> to vector<2xf32>
    %400 = vector.shape_cast %399 : vector<2xf32> to vector<2x1xf32>
    %cst_215 = arith.constant 3.200000e+01 : f32
    %401 = vector.broadcast %cst_215 : f32 to vector<2x1xf32>
    %402 = arith.divf %400, %401 : vector<2x1xf32>
    %403 = vector.broadcast %402 : vector<2x1xf32> to vector<2x32xf32>
    %404 = arith.subf %394, %403 : vector<2x32xf32>
    %405 = arith.mulf %404, %404 : vector<2x32xf32>
    %cst_216 = arith.constant dense<0.000000e+00> : vector<2xf32>
    %406 = vector.multi_reduction <add>, %405, %cst_216 [1] : vector<2x32xf32> to vector<2xf32>
    %407 = vector.shape_cast %406 : vector<2xf32> to vector<2x1xf32>
    %cst_217 = arith.constant 3.200000e+01 : f32
    %408 = vector.broadcast %cst_217 : f32 to vector<2x1xf32>
    %409 = arith.divf %407, %408 : vector<2x1xf32>
    %410 = vector.broadcast %402 : vector<2x1xf32> to vector<2x32xf32>
    %411 = arith.subf %394, %410 : vector<2x32xf32>
    %cst_218 = arith.constant 9.99999974E-6 : f32
    %412 = vector.broadcast %cst_218 : f32 to vector<2x1xf32>
    %413 = arith.addf %409, %412 : vector<2x1xf32>
    %414 = math.rsqrt %413 : vector<2x1xf32>
    %415 = vector.broadcast %414 : vector<2x1xf32> to vector<2x32xf32>
    %416 = arith.mulf %411, %415 : vector<2x32xf32>
    %417 = vector.broadcast %396 : vector<1x32xf32> to vector<2x32xf32>
    %418 = arith.mulf %416, %417 : vector<2x32xf32>
    %419 = vector.broadcast %398 : vector<1x32xf32> to vector<2x32xf32>
    %420 = arith.addf %418, %419 : vector<2x32xf32>
    %c1_219 = arith.constant 1 : index
    %c0_220 = arith.constant 0 : index
    %c0_221 = arith.constant 0 : index
    %421 = vector.load %arg8[%c1_219, %c0_220, %c0_221] : memref<2x32x64xf32, #tpu.memory_space<vmem>>, vector<1x32x64xf32>
    %422 = vector.shape_cast %421 : vector<1x32x64xf32> to vector<32x64xf32>
    %cst_222 = arith.constant dense<0.000000e+00> : vector<2x64xf32>
    %423 = tpu.matmul %420, %422, %cst_222 {dimension_numbers = #tpu.dot_dimension_numbers<[1], [0], [0], [1], [0, 0, 1, 1], [], []>} : vector<2x32xf32>, vector<32x64xf32>, vector<2x64xf32> -> vector<2x64xf32>
    %c1_223 = arith.constant 1 : index
    %c0_224 = arith.constant 0 : index
    %c0_225 = arith.constant 0 : index
    %424 = vector.load %arg9[%c1_223, %c0_224, %c0_225] : memref<2x1x64xf32, #tpu.memory_space<vmem>>, vector<1x1x64xf32>
    %425 = vector.shape_cast %424 : vector<1x1x64xf32> to vector<1x64xf32>
    %426 = vector.broadcast %425 : vector<1x64xf32> to vector<2x64xf32>
    %427 = arith.addf %423, %426 : vector<2x64xf32>
    %cst_226 = arith.constant 0.000000e+00 : f32
    %428 = vector.broadcast %cst_226 : f32 to vector<2x64xf32>
    %429 = arith.maximumf %427, %428 : vector<2x64xf32>
    %c1_227 = arith.constant 1 : index
    %c0_228 = arith.constant 0 : index
    %c0_229 = arith.constant 0 : index
    %430 = vector.load %arg10[%c1_227, %c0_228, %c0_229] : memref<2x64x32xf32, #tpu.memory_space<vmem>>, vector<1x64x32xf32>
    %431 = vector.shape_cast %430 : vector<1x64x32xf32> to vector<64x32xf32>
    %cst_230 = arith.constant dense<0.000000e+00> : vector<2x32xf32>
    %432 = tpu.matmul %429, %431, %cst_230 {dimension_numbers = #tpu.dot_dimension_numbers<[1], [0], [0], [1], [0, 0, 1, 1], [], []>} : vector<2x64xf32>, vector<64x32xf32>, vector<2x32xf32> -> vector<2x32xf32>
    %c1_231 = arith.constant 1 : index
    %c0_232 = arith.constant 0 : index
    %c0_233 = arith.constant 0 : index
    %433 = vector.load %arg11[%c1_231, %c0_232, %c0_233] : memref<2x1x32xf32, #tpu.memory_space<vmem>>, vector<1x1x32xf32>
    %434 = vector.shape_cast %433 : vector<1x1x32xf32> to vector<1x32xf32>
    %435 = vector.broadcast %434 : vector<1x32xf32> to vector<2x32xf32>
    %436 = arith.addf %432, %435 : vector<2x32xf32>
    %437 = arith.addf %420, %436 : vector<2x32xf32>
    %c1_234 = arith.constant 1 : index
    %c0_235 = arith.constant 0 : index
    %c0_236 = arith.constant 0 : index
    %438 = vector.load %arg14[%c1_234, %c0_235, %c0_236] : memref<2x1x32xf32, #tpu.memory_space<vmem>>, vector<1x1x32xf32>
    %439 = vector.shape_cast %438 : vector<1x1x32xf32> to vector<1x32xf32>
    %c1_237 = arith.constant 1 : index
    %c0_238 = arith.constant 0 : index
    %c0_239 = arith.constant 0 : index
    %440 = vector.load %arg15[%c1_237, %c0_238, %c0_239] : memref<2x1x32xf32, #tpu.memory_space<vmem>>, vector<1x1x32xf32>
    %441 = vector.shape_cast %440 : vector<1x1x32xf32> to vector<1x32xf32>
    %cst_240 = arith.constant dense<0.000000e+00> : vector<2xf32>
    %442 = vector.multi_reduction <add>, %437, %cst_240 [1] : vector<2x32xf32> to vector<2xf32>
    %443 = vector.shape_cast %442 : vector<2xf32> to vector<2x1xf32>
    %cst_241 = arith.constant 3.200000e+01 : f32
    %444 = vector.broadcast %cst_241 : f32 to vector<2x1xf32>
    %445 = arith.divf %443, %444 : vector<2x1xf32>
    %446 = vector.broadcast %445 : vector<2x1xf32> to vector<2x32xf32>
    %447 = arith.subf %437, %446 : vector<2x32xf32>
    %448 = arith.mulf %447, %447 : vector<2x32xf32>
    %cst_242 = arith.constant dense<0.000000e+00> : vector<2xf32>
    %449 = vector.multi_reduction <add>, %448, %cst_242 [1] : vector<2x32xf32> to vector<2xf32>
    %450 = vector.shape_cast %449 : vector<2xf32> to vector<2x1xf32>
    %cst_243 = arith.constant 3.200000e+01 : f32
    %451 = vector.broadcast %cst_243 : f32 to vector<2x1xf32>
    %452 = arith.divf %450, %451 : vector<2x1xf32>
    %453 = vector.broadcast %445 : vector<2x1xf32> to vector<2x32xf32>
    %454 = arith.subf %437, %453 : vector<2x32xf32>
    %cst_244 = arith.constant 9.99999974E-6 : f32
    %455 = vector.broadcast %cst_244 : f32 to vector<2x1xf32>
    %456 = arith.addf %452, %455 : vector<2x1xf32>
    %457 = math.rsqrt %456 : vector<2x1xf32>
    %458 = vector.broadcast %457 : vector<2x1xf32> to vector<2x32xf32>
    %459 = arith.mulf %454, %458 : vector<2x32xf32>
    %460 = vector.broadcast %439 : vector<1x32xf32> to vector<2x32xf32>
    %461 = arith.mulf %459, %460 : vector<2x32xf32>
    %462 = vector.broadcast %441 : vector<1x32xf32> to vector<2x32xf32>
    %463 = arith.addf %461, %462 : vector<2x32xf32>
    %c1_245 = arith.constant 1 : index
    %c0_246 = arith.constant 0 : index
    %c0_247 = arith.constant 0 : index
    %464 = vector.load %arg16[%c1_245, %c0_246, %c0_247] : memref<5x32x64xf32, #tpu.memory_space<vmem>>, vector<1x32x64xf32>
    %465 = vector.shape_cast %464 : vector<1x32x64xf32> to vector<32x64xf32>
    %cst_248 = arith.constant dense<0.000000e+00> : vector<2x64xf32>
    %466 = tpu.matmul %463, %465, %cst_248 {dimension_numbers = #tpu.dot_dimension_numbers<[1], [0], [0], [1], [0, 0, 1, 1], [], []>} : vector<2x32xf32>, vector<32x64xf32>, vector<2x64xf32> -> vector<2x64xf32>
    %467 = arith.addf %234, %466 : vector<2x64xf32>
    %468 = vector.extract_strided_slice %0 {offsets = [0, 2, 0], sizes = [2, 1, 15], strides = [1, 1, 1]} : vector<2x5x15xf32> to vector<2x1x15xf32>
    %469 = vector.shape_cast %468 : vector<2x1x15xf32> to vector<2x15xf32>
    %c0_249 = arith.constant 0 : index
    %c0_250 = arith.constant 0 : index
    %470 = vector.load %arg2[%c0_249, %c0_250] : memref<15x32xf32, #tpu.memory_space<vmem>>, vector<15x32xf32>
    %cst_251 = arith.constant dense<0.000000e+00> : vector<2x32xf32>
    %471 = tpu.matmul %469, %470, %cst_251 {dimension_numbers = #tpu.dot_dimension_numbers<[1], [0], [0], [1], [0, 0, 1, 1], [], []>} : vector<2x15xf32>, vector<15x32xf32>, vector<2x32xf32> -> vector<2x32xf32>
    %c0_252 = arith.constant 0 : index
    %c0_253 = arith.constant 0 : index
    %472 = vector.load %arg3[%c0_252, %c0_253] : memref<1x32xf32, #tpu.memory_space<vmem>>, vector<1x32xf32>
    %473 = vector.broadcast %472 : vector<1x32xf32> to vector<2x32xf32>
    %474 = arith.addf %471, %473 : vector<2x32xf32>
    %c2 = arith.constant 2 : index
    %c0_254 = arith.constant 0 : index
    %c0_255 = arith.constant 0 : index
    %475 = vector.load %arg1[%c2, %c0_254, %c0_255] : memref<5x1x32xf32, #tpu.memory_space<vmem>>, vector<1x1x32xf32>
    %476 = vector.shape_cast %475 : vector<1x1x32xf32> to vector<1x32xf32>
    %477 = vector.broadcast %476 : vector<1x32xf32> to vector<2x32xf32>
    %478 = arith.addf %474, %477 : vector<2x32xf32>
    %c0_256 = arith.constant 0 : index
    %c0_257 = arith.constant 0 : index
    %c0_258 = arith.constant 0 : index
    %479 = vector.load %arg4[%c0_256, %c0_257, %c0_258] : memref<2x32x96xf32, #tpu.memory_space<vmem>>, vector<1x32x96xf32>
    %480 = vector.shape_cast %479 : vector<1x32x96xf32> to vector<32x96xf32>
    %cst_259 = arith.constant dense<0.000000e+00> : vector<2x96xf32>
    %481 = tpu.matmul %478, %480, %cst_259 {dimension_numbers = #tpu.dot_dimension_numbers<[1], [0], [0], [1], [0, 0, 1, 1], [], []>} : vector<2x32xf32>, vector<32x96xf32>, vector<2x96xf32> -> vector<2x96xf32>
    %c0_260 = arith.constant 0 : index
    %c0_261 = arith.constant 0 : index
    %c0_262 = arith.constant 0 : index
    %482 = vector.load %arg5[%c0_260, %c0_261, %c0_262] : memref<2x1x96xf32, #tpu.memory_space<vmem>>, vector<1x1x96xf32>
    %483 = vector.shape_cast %482 : vector<1x1x96xf32> to vector<1x96xf32>
    %484 = vector.broadcast %483 : vector<1x96xf32> to vector<2x96xf32>
    %485 = arith.addf %481, %484 : vector<2x96xf32>
    %486 = vector.extract_strided_slice %485 {offsets = [0, 0], sizes = [2, 32], strides = [1, 1]} : vector<2x96xf32> to vector<2x32xf32>
    %487 = vector.shape_cast %486 : vector<2x32xf32> to vector<2x4x8xf32>
    %488 = tpu.transpose %487, [1, 0, 2] : vector<2x4x8xf32> -> vector<4x2x8xf32>
    %489 = vector.extract_strided_slice %485 {offsets = [0, 32], sizes = [2, 32], strides = [1, 1]} : vector<2x96xf32> to vector<2x32xf32>
    %490 = vector.shape_cast %489 : vector<2x32xf32> to vector<2x4x8xf32>
    %491 = tpu.transpose %490, [1, 0, 2] : vector<2x4x8xf32> -> vector<4x2x8xf32>
    %492 = vector.extract_strided_slice %485 {offsets = [0, 64], sizes = [2, 32], strides = [1, 1]} : vector<2x96xf32> to vector<2x32xf32>
    %493 = vector.shape_cast %492 : vector<2x32xf32> to vector<2x4x8xf32>
    %494 = tpu.transpose %493, [1, 0, 2] : vector<2x4x8xf32> -> vector<4x2x8xf32>
    "tpu.trace_start"() <{level = 10 : i32, message = "hbd,hcd->hbc"}> : () -> ()
    %cst_263 = arith.constant dense<0.000000e+00> : vector<4x2x2xf32>
    %495 = tpu.matmul %488, %491, %cst_263 {dimension_numbers = #tpu.dot_dimension_numbers<[2], [2], [1], [1], [0, 0, 0, 1, 1, 1], [0], [0]>} : vector<4x2x8xf32>, vector<4x2x8xf32>, vector<4x2x2xf32> -> vector<4x2x2xf32>
    "tpu.trace_stop"() : () -> ()
    %cst_264 = arith.constant 0.353553385 : f32
    %496 = vector.broadcast %cst_264 : f32 to vector<4x2x2xf32>
    %497 = arith.mulf %495, %496 : vector<4x2x2xf32>
    %cst_265 = arith.constant dense<0xFF800000> : vector<4x2xf32>
    %498 = vector.multi_reduction <maximumf>, %497, %cst_265 [2] : vector<4x2x2xf32> to vector<4x2xf32>
    %499 = vector.shape_cast %498 : vector<4x2xf32> to vector<4x2x1xf32>
    %500 = vector.broadcast %499 : vector<4x2x1xf32> to vector<4x2x2xf32>
    %501 = arith.subf %497, %500 : vector<4x2x2xf32>
    %502 = math.exp %501 : vector<4x2x2xf32>
    %cst_266 = arith.constant dense<0.000000e+00> : vector<4x2xf32>
    %503 = vector.multi_reduction <add>, %502, %cst_266 [2] : vector<4x2x2xf32> to vector<4x2xf32>
    %504 = vector.shape_cast %503 : vector<4x2xf32> to vector<4x2x1xf32>
    %505 = tpu.reciprocal %504 {approx = true} : vector<4x2x1xf32> -> vector<4x2x1xf32>
    %506 = vector.broadcast %505 : vector<4x2x1xf32> to vector<4x2x2xf32>
    %507 = arith.mulf %502, %506 : vector<4x2x2xf32>
    "tpu.trace_start"() <{level = 10 : i32, message = "hbc,hcd->hbd"}> : () -> ()
    %cst_267 = arith.constant dense<0.000000e+00> : vector<4x2x8xf32>
    %508 = tpu.matmul %507, %494, %cst_267 {dimension_numbers = #tpu.dot_dimension_numbers<[2], [1], [1], [2], [0, 0, 0, 1, 1, 2], [0], [0]>} : vector<4x2x2xf32>, vector<4x2x8xf32>, vector<4x2x8xf32> -> vector<4x2x8xf32>
    "tpu.trace_stop"() : () -> ()
    %509 = tpu.transpose %508, [1, 0, 2] : vector<4x2x8xf32> -> vector<2x4x8xf32>
    %510 = vector.shape_cast %509 : vector<2x4x8xf32> to vector<2x32xf32>
    %c0_268 = arith.constant 0 : index
    %c0_269 = arith.constant 0 : index
    %c0_270 = arith.constant 0 : index
    %511 = vector.load %arg6[%c0_268, %c0_269, %c0_270] : memref<2x32x32xf32, #tpu.memory_space<vmem>>, vector<1x32x32xf32>
    %512 = vector.shape_cast %511 : vector<1x32x32xf32> to vector<32x32xf32>
    %cst_271 = arith.constant dense<0.000000e+00> : vector<2x32xf32>
    %513 = tpu.matmul %510, %512, %cst_271 {dimension_numbers = #tpu.dot_dimension_numbers<[1], [0], [0], [1], [0, 0, 1, 1], [], []>} : vector<2x32xf32>, vector<32x32xf32>, vector<2x32xf32> -> vector<2x32xf32>
    %c0_272 = arith.constant 0 : index
    %c0_273 = arith.constant 0 : index
    %c0_274 = arith.constant 0 : index
    %514 = vector.load %arg7[%c0_272, %c0_273, %c0_274] : memref<2x1x32xf32, #tpu.memory_space<vmem>>, vector<1x1x32xf32>
    %515 = vector.shape_cast %514 : vector<1x1x32xf32> to vector<1x32xf32>
    %516 = vector.broadcast %515 : vector<1x32xf32> to vector<2x32xf32>
    %517 = arith.addf %513, %516 : vector<2x32xf32>
    %518 = arith.addf %478, %517 : vector<2x32xf32>
    %c0_275 = arith.constant 0 : index
    %c0_276 = arith.constant 0 : index
    %c0_277 = arith.constant 0 : index
    %519 = vector.load %arg12[%c0_275, %c0_276, %c0_277] : memref<2x1x32xf32, #tpu.memory_space<vmem>>, vector<1x1x32xf32>
    %520 = vector.shape_cast %519 : vector<1x1x32xf32> to vector<1x32xf32>
    %c0_278 = arith.constant 0 : index
    %c0_279 = arith.constant 0 : index
    %c0_280 = arith.constant 0 : index
    %521 = vector.load %arg13[%c0_278, %c0_279, %c0_280] : memref<2x1x32xf32, #tpu.memory_space<vmem>>, vector<1x1x32xf32>
    %522 = vector.shape_cast %521 : vector<1x1x32xf32> to vector<1x32xf32>
    %cst_281 = arith.constant dense<0.000000e+00> : vector<2xf32>
    %523 = vector.multi_reduction <add>, %518, %cst_281 [1] : vector<2x32xf32> to vector<2xf32>
    %524 = vector.shape_cast %523 : vector<2xf32> to vector<2x1xf32>
    %cst_282 = arith.constant 3.200000e+01 : f32
    %525 = vector.broadcast %cst_282 : f32 to vector<2x1xf32>
    %526 = arith.divf %524, %525 : vector<2x1xf32>
    %527 = vector.broadcast %526 : vector<2x1xf32> to vector<2x32xf32>
    %528 = arith.subf %518, %527 : vector<2x32xf32>
    %529 = arith.mulf %528, %528 : vector<2x32xf32>
    %cst_283 = arith.constant dense<0.000000e+00> : vector<2xf32>
    %530 = vector.multi_reduction <add>, %529, %cst_283 [1] : vector<2x32xf32> to vector<2xf32>
    %531 = vector.shape_cast %530 : vector<2xf32> to vector<2x1xf32>
    %cst_284 = arith.constant 3.200000e+01 : f32
    %532 = vector.broadcast %cst_284 : f32 to vector<2x1xf32>
    %533 = arith.divf %531, %532 : vector<2x1xf32>
    %534 = vector.broadcast %526 : vector<2x1xf32> to vector<2x32xf32>
    %535 = arith.subf %518, %534 : vector<2x32xf32>
    %cst_285 = arith.constant 9.99999974E-6 : f32
    %536 = vector.broadcast %cst_285 : f32 to vector<2x1xf32>
    %537 = arith.addf %533, %536 : vector<2x1xf32>
    %538 = math.rsqrt %537 : vector<2x1xf32>
    %539 = vector.broadcast %538 : vector<2x1xf32> to vector<2x32xf32>
    %540 = arith.mulf %535, %539 : vector<2x32xf32>
    %541 = vector.broadcast %520 : vector<1x32xf32> to vector<2x32xf32>
    %542 = arith.mulf %540, %541 : vector<2x32xf32>
    %543 = vector.broadcast %522 : vector<1x32xf32> to vector<2x32xf32>
    %544 = arith.addf %542, %543 : vector<2x32xf32>
    %c0_286 = arith.constant 0 : index
    %c0_287 = arith.constant 0 : index
    %c0_288 = arith.constant 0 : index
    %545 = vector.load %arg8[%c0_286, %c0_287, %c0_288] : memref<2x32x64xf32, #tpu.memory_space<vmem>>, vector<1x32x64xf32>
    %546 = vector.shape_cast %545 : vector<1x32x64xf32> to vector<32x64xf32>
    %cst_289 = arith.constant dense<0.000000e+00> : vector<2x64xf32>
    %547 = tpu.matmul %544, %546, %cst_289 {dimension_numbers = #tpu.dot_dimension_numbers<[1], [0], [0], [1], [0, 0, 1, 1], [], []>} : vector<2x32xf32>, vector<32x64xf32>, vector<2x64xf32> -> vector<2x64xf32>
    %c0_290 = arith.constant 0 : index
    %c0_291 = arith.constant 0 : index
    %c0_292 = arith.constant 0 : index
    %548 = vector.load %arg9[%c0_290, %c0_291, %c0_292] : memref<2x1x64xf32, #tpu.memory_space<vmem>>, vector<1x1x64xf32>
    %549 = vector.shape_cast %548 : vector<1x1x64xf32> to vector<1x64xf32>
    %550 = vector.broadcast %549 : vector<1x64xf32> to vector<2x64xf32>
    %551 = arith.addf %547, %550 : vector<2x64xf32>
    %cst_293 = arith.constant 0.000000e+00 : f32
    %552 = vector.broadcast %cst_293 : f32 to vector<2x64xf32>
    %553 = arith.maximumf %551, %552 : vector<2x64xf32>
    %c0_294 = arith.constant 0 : index
    %c0_295 = arith.constant 0 : index
    %c0_296 = arith.constant 0 : index
    %554 = vector.load %arg10[%c0_294, %c0_295, %c0_296] : memref<2x64x32xf32, #tpu.memory_space<vmem>>, vector<1x64x32xf32>
    %555 = vector.shape_cast %554 : vector<1x64x32xf32> to vector<64x32xf32>
    %cst_297 = arith.constant dense<0.000000e+00> : vector<2x32xf32>
    %556 = tpu.matmul %553, %555, %cst_297 {dimension_numbers = #tpu.dot_dimension_numbers<[1], [0], [0], [1], [0, 0, 1, 1], [], []>} : vector<2x64xf32>, vector<64x32xf32>, vector<2x32xf32> -> vector<2x32xf32>
    %c0_298 = arith.constant 0 : index
    %c0_299 = arith.constant 0 : index
    %c0_300 = arith.constant 0 : index
    %557 = vector.load %arg11[%c0_298, %c0_299, %c0_300] : memref<2x1x32xf32, #tpu.memory_space<vmem>>, vector<1x1x32xf32>
    %558 = vector.shape_cast %557 : vector<1x1x32xf32> to vector<1x32xf32>
    %559 = vector.broadcast %558 : vector<1x32xf32> to vector<2x32xf32>
    %560 = arith.addf %556, %559 : vector<2x32xf32>
    %561 = arith.addf %544, %560 : vector<2x32xf32>
    %c0_301 = arith.constant 0 : index
    %c0_302 = arith.constant 0 : index
    %c0_303 = arith.constant 0 : index
    %562 = vector.load %arg14[%c0_301, %c0_302, %c0_303] : memref<2x1x32xf32, #tpu.memory_space<vmem>>, vector<1x1x32xf32>
    %563 = vector.shape_cast %562 : vector<1x1x32xf32> to vector<1x32xf32>
    %c0_304 = arith.constant 0 : index
    %c0_305 = arith.constant 0 : index
    %c0_306 = arith.constant 0 : index
    %564 = vector.load %arg15[%c0_304, %c0_305, %c0_306] : memref<2x1x32xf32, #tpu.memory_space<vmem>>, vector<1x1x32xf32>
    %565 = vector.shape_cast %564 : vector<1x1x32xf32> to vector<1x32xf32>
    %cst_307 = arith.constant dense<0.000000e+00> : vector<2xf32>
    %566 = vector.multi_reduction <add>, %561, %cst_307 [1] : vector<2x32xf32> to vector<2xf32>
    %567 = vector.shape_cast %566 : vector<2xf32> to vector<2x1xf32>
    %cst_308 = arith.constant 3.200000e+01 : f32
    %568 = vector.broadcast %cst_308 : f32 to vector<2x1xf32>
    %569 = arith.divf %567, %568 : vector<2x1xf32>
    %570 = vector.broadcast %569 : vector<2x1xf32> to vector<2x32xf32>
    %571 = arith.subf %561, %570 : vector<2x32xf32>
    %572 = arith.mulf %571, %571 : vector<2x32xf32>
    %cst_309 = arith.constant dense<0.000000e+00> : vector<2xf32>
    %573 = vector.multi_reduction <add>, %572, %cst_309 [1] : vector<2x32xf32> to vector<2xf32>
    %574 = vector.shape_cast %573 : vector<2xf32> to vector<2x1xf32>
    %cst_310 = arith.constant 3.200000e+01 : f32
    %575 = vector.broadcast %cst_310 : f32 to vector<2x1xf32>
    %576 = arith.divf %574, %575 : vector<2x1xf32>
    %577 = vector.broadcast %569 : vector<2x1xf32> to vector<2x32xf32>
    %578 = arith.subf %561, %577 : vector<2x32xf32>
    %cst_311 = arith.constant 9.99999974E-6 : f32
    %579 = vector.broadcast %cst_311 : f32 to vector<2x1xf32>
    %580 = arith.addf %576, %579 : vector<2x1xf32>
    %581 = math.rsqrt %580 : vector<2x1xf32>
    %582 = vector.broadcast %581 : vector<2x1xf32> to vector<2x32xf32>
    %583 = arith.mulf %578, %582 : vector<2x32xf32>
    %584 = vector.broadcast %563 : vector<1x32xf32> to vector<2x32xf32>
    %585 = arith.mulf %583, %584 : vector<2x32xf32>
    %586 = vector.broadcast %565 : vector<1x32xf32> to vector<2x32xf32>
    %587 = arith.addf %585, %586 : vector<2x32xf32>
    %c1_312 = arith.constant 1 : index
    %c0_313 = arith.constant 0 : index
    %c0_314 = arith.constant 0 : index
    %588 = vector.load %arg4[%c1_312, %c0_313, %c0_314] : memref<2x32x96xf32, #tpu.memory_space<vmem>>, vector<1x32x96xf32>
    %589 = vector.shape_cast %588 : vector<1x32x96xf32> to vector<32x96xf32>
    %cst_315 = arith.constant dense<0.000000e+00> : vector<2x96xf32>
    %590 = tpu.matmul %587, %589, %cst_315 {dimension_numbers = #tpu.dot_dimension_numbers<[1], [0], [0], [1], [0, 0, 1, 1], [], []>} : vector<2x32xf32>, vector<32x96xf32>, vector<2x96xf32> -> vector<2x96xf32>
    %c1_316 = arith.constant 1 : index
    %c0_317 = arith.constant 0 : index
    %c0_318 = arith.constant 0 : index
    %591 = vector.load %arg5[%c1_316, %c0_317, %c0_318] : memref<2x1x96xf32, #tpu.memory_space<vmem>>, vector<1x1x96xf32>
    %592 = vector.shape_cast %591 : vector<1x1x96xf32> to vector<1x96xf32>
    %593 = vector.broadcast %592 : vector<1x96xf32> to vector<2x96xf32>
    %594 = arith.addf %590, %593 : vector<2x96xf32>
    %595 = vector.extract_strided_slice %594 {offsets = [0, 0], sizes = [2, 32], strides = [1, 1]} : vector<2x96xf32> to vector<2x32xf32>
    %596 = vector.shape_cast %595 : vector<2x32xf32> to vector<2x4x8xf32>
    %597 = tpu.transpose %596, [1, 0, 2] : vector<2x4x8xf32> -> vector<4x2x8xf32>
    %598 = vector.extract_strided_slice %594 {offsets = [0, 32], sizes = [2, 32], strides = [1, 1]} : vector<2x96xf32> to vector<2x32xf32>
    %599 = vector.shape_cast %598 : vector<2x32xf32> to vector<2x4x8xf32>
    %600 = tpu.transpose %599, [1, 0, 2] : vector<2x4x8xf32> -> vector<4x2x8xf32>
    %601 = vector.extract_strided_slice %594 {offsets = [0, 64], sizes = [2, 32], strides = [1, 1]} : vector<2x96xf32> to vector<2x32xf32>
    %602 = vector.shape_cast %601 : vector<2x32xf32> to vector<2x4x8xf32>
    %603 = tpu.transpose %602, [1, 0, 2] : vector<2x4x8xf32> -> vector<4x2x8xf32>
    "tpu.trace_start"() <{level = 10 : i32, message = "hbd,hcd->hbc"}> : () -> ()
    %cst_319 = arith.constant dense<0.000000e+00> : vector<4x2x2xf32>
    %604 = tpu.matmul %597, %600, %cst_319 {dimension_numbers = #tpu.dot_dimension_numbers<[2], [2], [1], [1], [0, 0, 0, 1, 1, 1], [0], [0]>} : vector<4x2x8xf32>, vector<4x2x8xf32>, vector<4x2x2xf32> -> vector<4x2x2xf32>
    "tpu.trace_stop"() : () -> ()
    %cst_320 = arith.constant 0.353553385 : f32
    %605 = vector.broadcast %cst_320 : f32 to vector<4x2x2xf32>
    %606 = arith.mulf %604, %605 : vector<4x2x2xf32>
    %cst_321 = arith.constant dense<0xFF800000> : vector<4x2xf32>
    %607 = vector.multi_reduction <maximumf>, %606, %cst_321 [2] : vector<4x2x2xf32> to vector<4x2xf32>
    %608 = vector.shape_cast %607 : vector<4x2xf32> to vector<4x2x1xf32>
    %609 = vector.broadcast %608 : vector<4x2x1xf32> to vector<4x2x2xf32>
    %610 = arith.subf %606, %609 : vector<4x2x2xf32>
    %611 = math.exp %610 : vector<4x2x2xf32>
    %cst_322 = arith.constant dense<0.000000e+00> : vector<4x2xf32>
    %612 = vector.multi_reduction <add>, %611, %cst_322 [2] : vector<4x2x2xf32> to vector<4x2xf32>
    %613 = vector.shape_cast %612 : vector<4x2xf32> to vector<4x2x1xf32>
    %614 = tpu.reciprocal %613 {approx = true} : vector<4x2x1xf32> -> vector<4x2x1xf32>
    %615 = vector.broadcast %614 : vector<4x2x1xf32> to vector<4x2x2xf32>
    %616 = arith.mulf %611, %615 : vector<4x2x2xf32>
    "tpu.trace_start"() <{level = 10 : i32, message = "hbc,hcd->hbd"}> : () -> ()
    %cst_323 = arith.constant dense<0.000000e+00> : vector<4x2x8xf32>
    %617 = tpu.matmul %616, %603, %cst_323 {dimension_numbers = #tpu.dot_dimension_numbers<[2], [1], [1], [2], [0, 0, 0, 1, 1, 2], [0], [0]>} : vector<4x2x2xf32>, vector<4x2x8xf32>, vector<4x2x8xf32> -> vector<4x2x8xf32>
    "tpu.trace_stop"() : () -> ()
    %618 = tpu.transpose %617, [1, 0, 2] : vector<4x2x8xf32> -> vector<2x4x8xf32>
    %619 = vector.shape_cast %618 : vector<2x4x8xf32> to vector<2x32xf32>
    %c1_324 = arith.constant 1 : index
    %c0_325 = arith.constant 0 : index
    %c0_326 = arith.constant 0 : index
    %620 = vector.load %arg6[%c1_324, %c0_325, %c0_326] : memref<2x32x32xf32, #tpu.memory_space<vmem>>, vector<1x32x32xf32>
    %621 = vector.shape_cast %620 : vector<1x32x32xf32> to vector<32x32xf32>
    %cst_327 = arith.constant dense<0.000000e+00> : vector<2x32xf32>
    %622 = tpu.matmul %619, %621, %cst_327 {dimension_numbers = #tpu.dot_dimension_numbers<[1], [0], [0], [1], [0, 0, 1, 1], [], []>} : vector<2x32xf32>, vector<32x32xf32>, vector<2x32xf32> -> vector<2x32xf32>
    %c1_328 = arith.constant 1 : index
    %c0_329 = arith.constant 0 : index
    %c0_330 = arith.constant 0 : index
    %623 = vector.load %arg7[%c1_328, %c0_329, %c0_330] : memref<2x1x32xf32, #tpu.memory_space<vmem>>, vector<1x1x32xf32>
    %624 = vector.shape_cast %623 : vector<1x1x32xf32> to vector<1x32xf32>
    %625 = vector.broadcast %624 : vector<1x32xf32> to vector<2x32xf32>
    %626 = arith.addf %622, %625 : vector<2x32xf32>
    %627 = arith.addf %587, %626 : vector<2x32xf32>
    %c1_331 = arith.constant 1 : index
    %c0_332 = arith.constant 0 : index
    %c0_333 = arith.constant 0 : index
    %628 = vector.load %arg12[%c1_331, %c0_332, %c0_333] : memref<2x1x32xf32, #tpu.memory_space<vmem>>, vector<1x1x32xf32>
    %629 = vector.shape_cast %628 : vector<1x1x32xf32> to vector<1x32xf32>
    %c1_334 = arith.constant 1 : index
    %c0_335 = arith.constant 0 : index
    %c0_336 = arith.constant 0 : index
    %630 = vector.load %arg13[%c1_334, %c0_335, %c0_336] : memref<2x1x32xf32, #tpu.memory_space<vmem>>, vector<1x1x32xf32>
    %631 = vector.shape_cast %630 : vector<1x1x32xf32> to vector<1x32xf32>
    %cst_337 = arith.constant dense<0.000000e+00> : vector<2xf32>
    %632 = vector.multi_reduction <add>, %627, %cst_337 [1] : vector<2x32xf32> to vector<2xf32>
    %633 = vector.shape_cast %632 : vector<2xf32> to vector<2x1xf32>
    %cst_338 = arith.constant 3.200000e+01 : f32
    %634 = vector.broadcast %cst_338 : f32 to vector<2x1xf32>
    %635 = arith.divf %633, %634 : vector<2x1xf32>
    %636 = vector.broadcast %635 : vector<2x1xf32> to vector<2x32xf32>
    %637 = arith.subf %627, %636 : vector<2x32xf32>
    %638 = arith.mulf %637, %637 : vector<2x32xf32>
    %cst_339 = arith.constant dense<0.000000e+00> : vector<2xf32>
    %639 = vector.multi_reduction <add>, %638, %cst_339 [1] : vector<2x32xf32> to vector<2xf32>
    %640 = vector.shape_cast %639 : vector<2xf32> to vector<2x1xf32>
    %cst_340 = arith.constant 3.200000e+01 : f32
    %641 = vector.broadcast %cst_340 : f32 to vector<2x1xf32>
    %642 = arith.divf %640, %641 : vector<2x1xf32>
    %643 = vector.broadcast %635 : vector<2x1xf32> to vector<2x32xf32>
    %644 = arith.subf %627, %643 : vector<2x32xf32>
    %cst_341 = arith.constant 9.99999974E-6 : f32
    %645 = vector.broadcast %cst_341 : f32 to vector<2x1xf32>
    %646 = arith.addf %642, %645 : vector<2x1xf32>
    %647 = math.rsqrt %646 : vector<2x1xf32>
    %648 = vector.broadcast %647 : vector<2x1xf32> to vector<2x32xf32>
    %649 = arith.mulf %644, %648 : vector<2x32xf32>
    %650 = vector.broadcast %629 : vector<1x32xf32> to vector<2x32xf32>
    %651 = arith.mulf %649, %650 : vector<2x32xf32>
    %652 = vector.broadcast %631 : vector<1x32xf32> to vector<2x32xf32>
    %653 = arith.addf %651, %652 : vector<2x32xf32>
    %c1_342 = arith.constant 1 : index
    %c0_343 = arith.constant 0 : index
    %c0_344 = arith.constant 0 : index
    %654 = vector.load %arg8[%c1_342, %c0_343, %c0_344] : memref<2x32x64xf32, #tpu.memory_space<vmem>>, vector<1x32x64xf32>
    %655 = vector.shape_cast %654 : vector<1x32x64xf32> to vector<32x64xf32>
    %cst_345 = arith.constant dense<0.000000e+00> : vector<2x64xf32>
    %656 = tpu.matmul %653, %655, %cst_345 {dimension_numbers = #tpu.dot_dimension_numbers<[1], [0], [0], [1], [0, 0, 1, 1], [], []>} : vector<2x32xf32>, vector<32x64xf32>, vector<2x64xf32> -> vector<2x64xf32>
    %c1_346 = arith.constant 1 : index
    %c0_347 = arith.constant 0 : index
    %c0_348 = arith.constant 0 : index
    %657 = vector.load %arg9[%c1_346, %c0_347, %c0_348] : memref<2x1x64xf32, #tpu.memory_space<vmem>>, vector<1x1x64xf32>
    %658 = vector.shape_cast %657 : vector<1x1x64xf32> to vector<1x64xf32>
    %659 = vector.broadcast %658 : vector<1x64xf32> to vector<2x64xf32>
    %660 = arith.addf %656, %659 : vector<2x64xf32>
    %cst_349 = arith.constant 0.000000e+00 : f32
    %661 = vector.broadcast %cst_349 : f32 to vector<2x64xf32>
    %662 = arith.maximumf %660, %661 : vector<2x64xf32>
    %c1_350 = arith.constant 1 : index
    %c0_351 = arith.constant 0 : index
    %c0_352 = arith.constant 0 : index
    %663 = vector.load %arg10[%c1_350, %c0_351, %c0_352] : memref<2x64x32xf32, #tpu.memory_space<vmem>>, vector<1x64x32xf32>
    %664 = vector.shape_cast %663 : vector<1x64x32xf32> to vector<64x32xf32>
    %cst_353 = arith.constant dense<0.000000e+00> : vector<2x32xf32>
    %665 = tpu.matmul %662, %664, %cst_353 {dimension_numbers = #tpu.dot_dimension_numbers<[1], [0], [0], [1], [0, 0, 1, 1], [], []>} : vector<2x64xf32>, vector<64x32xf32>, vector<2x32xf32> -> vector<2x32xf32>
    %c1_354 = arith.constant 1 : index
    %c0_355 = arith.constant 0 : index
    %c0_356 = arith.constant 0 : index
    %666 = vector.load %arg11[%c1_354, %c0_355, %c0_356] : memref<2x1x32xf32, #tpu.memory_space<vmem>>, vector<1x1x32xf32>
    %667 = vector.shape_cast %666 : vector<1x1x32xf32> to vector<1x32xf32>
    %668 = vector.broadcast %667 : vector<1x32xf32> to vector<2x32xf32>
    %669 = arith.addf %665, %668 : vector<2x32xf32>
    %670 = arith.addf %653, %669 : vector<2x32xf32>
    %c1_357 = arith.constant 1 : index
    %c0_358 = arith.constant 0 : index
    %c0_359 = arith.constant 0 : index
    %671 = vector.load %arg14[%c1_357, %c0_358, %c0_359] : memref<2x1x32xf32, #tpu.memory_space<vmem>>, vector<1x1x32xf32>
    %672 = vector.shape_cast %671 : vector<1x1x32xf32> to vector<1x32xf32>
    %c1_360 = arith.constant 1 : index
    %c0_361 = arith.constant 0 : index
    %c0_362 = arith.constant 0 : index
    %673 = vector.load %arg15[%c1_360, %c0_361, %c0_362] : memref<2x1x32xf32, #tpu.memory_space<vmem>>, vector<1x1x32xf32>
    %674 = vector.shape_cast %673 : vector<1x1x32xf32> to vector<1x32xf32>
    %cst_363 = arith.constant dense<0.000000e+00> : vector<2xf32>
    %675 = vector.multi_reduction <add>, %670, %cst_363 [1] : vector<2x32xf32> to vector<2xf32>
    %676 = vector.shape_cast %675 : vector<2xf32> to vector<2x1xf32>
    %cst_364 = arith.constant 3.200000e+01 : f32
    %677 = vector.broadcast %cst_364 : f32 to vector<2x1xf32>
    %678 = arith.divf %676, %677 : vector<2x1xf32>
    %679 = vector.broadcast %678 : vector<2x1xf32> to vector<2x32xf32>
    %680 = arith.subf %670, %679 : vector<2x32xf32>
    %681 = arith.mulf %680, %680 : vector<2x32xf32>
    %cst_365 = arith.constant dense<0.000000e+00> : vector<2xf32>
    %682 = vector.multi_reduction <add>, %681, %cst_365 [1] : vector<2x32xf32> to vector<2xf32>
    %683 = vector.shape_cast %682 : vector<2xf32> to vector<2x1xf32>
    %cst_366 = arith.constant 3.200000e+01 : f32
    %684 = vector.broadcast %cst_366 : f32 to vector<2x1xf32>
    %685 = arith.divf %683, %684 : vector<2x1xf32>
    %686 = vector.broadcast %678 : vector<2x1xf32> to vector<2x32xf32>
    %687 = arith.subf %670, %686 : vector<2x32xf32>
    %cst_367 = arith.constant 9.99999974E-6 : f32
    %688 = vector.broadcast %cst_367 : f32 to vector<2x1xf32>
    %689 = arith.addf %685, %688 : vector<2x1xf32>
    %690 = math.rsqrt %689 : vector<2x1xf32>
    %691 = vector.broadcast %690 : vector<2x1xf32> to vector<2x32xf32>
    %692 = arith.mulf %687, %691 : vector<2x32xf32>
    %693 = vector.broadcast %672 : vector<1x32xf32> to vector<2x32xf32>
    %694 = arith.mulf %692, %693 : vector<2x32xf32>
    %695 = vector.broadcast %674 : vector<1x32xf32> to vector<2x32xf32>
    %696 = arith.addf %694, %695 : vector<2x32xf32>
    %c2_368 = arith.constant 2 : index
    %c0_369 = arith.constant 0 : index
    %c0_370 = arith.constant 0 : index
    %697 = vector.load %arg16[%c2_368, %c0_369, %c0_370] : memref<5x32x64xf32, #tpu.memory_space<vmem>>, vector<1x32x64xf32>
    %698 = vector.shape_cast %697 : vector<1x32x64xf32> to vector<32x64xf32>
    %cst_371 = arith.constant dense<0.000000e+00> : vector<2x64xf32>
    %699 = tpu.matmul %696, %698, %cst_371 {dimension_numbers = #tpu.dot_dimension_numbers<[1], [0], [0], [1], [0, 0, 1, 1], [], []>} : vector<2x32xf32>, vector<32x64xf32>, vector<2x64xf32> -> vector<2x64xf32>
    %700 = arith.addf %467, %699 : vector<2x64xf32>
    %701 = vector.extract_strided_slice %0 {offsets = [0, 3, 0], sizes = [2, 1, 15], strides = [1, 1, 1]} : vector<2x5x15xf32> to vector<2x1x15xf32>
    %702 = vector.shape_cast %701 : vector<2x1x15xf32> to vector<2x15xf32>
    %c0_372 = arith.constant 0 : index
    %c0_373 = arith.constant 0 : index
    %703 = vector.load %arg2[%c0_372, %c0_373] : memref<15x32xf32, #tpu.memory_space<vmem>>, vector<15x32xf32>
    %cst_374 = arith.constant dense<0.000000e+00> : vector<2x32xf32>
    %704 = tpu.matmul %702, %703, %cst_374 {dimension_numbers = #tpu.dot_dimension_numbers<[1], [0], [0], [1], [0, 0, 1, 1], [], []>} : vector<2x15xf32>, vector<15x32xf32>, vector<2x32xf32> -> vector<2x32xf32>
    %c0_375 = arith.constant 0 : index
    %c0_376 = arith.constant 0 : index
    %705 = vector.load %arg3[%c0_375, %c0_376] : memref<1x32xf32, #tpu.memory_space<vmem>>, vector<1x32xf32>
    %706 = vector.broadcast %705 : vector<1x32xf32> to vector<2x32xf32>
    %707 = arith.addf %704, %706 : vector<2x32xf32>
    %c3 = arith.constant 3 : index
    %c0_377 = arith.constant 0 : index
    %c0_378 = arith.constant 0 : index
    %708 = vector.load %arg1[%c3, %c0_377, %c0_378] : memref<5x1x32xf32, #tpu.memory_space<vmem>>, vector<1x1x32xf32>
    %709 = vector.shape_cast %708 : vector<1x1x32xf32> to vector<1x32xf32>
    %710 = vector.broadcast %709 : vector<1x32xf32> to vector<2x32xf32>
    %711 = arith.addf %707, %710 : vector<2x32xf32>
    %c0_379 = arith.constant 0 : index
    %c0_380 = arith.constant 0 : index
    %c0_381 = arith.constant 0 : index
    %712 = vector.load %arg4[%c0_379, %c0_380, %c0_381] : memref<2x32x96xf32, #tpu.memory_space<vmem>>, vector<1x32x96xf32>
    %713 = vector.shape_cast %712 : vector<1x32x96xf32> to vector<32x96xf32>
    %cst_382 = arith.constant dense<0.000000e+00> : vector<2x96xf32>
    %714 = tpu.matmul %711, %713, %cst_382 {dimension_numbers = #tpu.dot_dimension_numbers<[1], [0], [0], [1], [0, 0, 1, 1], [], []>} : vector<2x32xf32>, vector<32x96xf32>, vector<2x96xf32> -> vector<2x96xf32>
    %c0_383 = arith.constant 0 : index
    %c0_384 = arith.constant 0 : index
    %c0_385 = arith.constant 0 : index
    %715 = vector.load %arg5[%c0_383, %c0_384, %c0_385] : memref<2x1x96xf32, #tpu.memory_space<vmem>>, vector<1x1x96xf32>
    %716 = vector.shape_cast %715 : vector<1x1x96xf32> to vector<1x96xf32>
    %717 = vector.broadcast %716 : vector<1x96xf32> to vector<2x96xf32>
    %718 = arith.addf %714, %717 : vector<2x96xf32>
    %719 = vector.extract_strided_slice %718 {offsets = [0, 0], sizes = [2, 32], strides = [1, 1]} : vector<2x96xf32> to vector<2x32xf32>
    %720 = vector.shape_cast %719 : vector<2x32xf32> to vector<2x4x8xf32>
    %721 = tpu.transpose %720, [1, 0, 2] : vector<2x4x8xf32> -> vector<4x2x8xf32>
    %722 = vector.extract_strided_slice %718 {offsets = [0, 32], sizes = [2, 32], strides = [1, 1]} : vector<2x96xf32> to vector<2x32xf32>
    %723 = vector.shape_cast %722 : vector<2x32xf32> to vector<2x4x8xf32>
    %724 = tpu.transpose %723, [1, 0, 2] : vector<2x4x8xf32> -> vector<4x2x8xf32>
    %725 = vector.extract_strided_slice %718 {offsets = [0, 64], sizes = [2, 32], strides = [1, 1]} : vector<2x96xf32> to vector<2x32xf32>
    %726 = vector.shape_cast %725 : vector<2x32xf32> to vector<2x4x8xf32>
    %727 = tpu.transpose %726, [1, 0, 2] : vector<2x4x8xf32> -> vector<4x2x8xf32>
    "tpu.trace_start"() <{level = 10 : i32, message = "hbd,hcd->hbc"}> : () -> ()
    %cst_386 = arith.constant dense<0.000000e+00> : vector<4x2x2xf32>
    %728 = tpu.matmul %721, %724, %cst_386 {dimension_numbers = #tpu.dot_dimension_numbers<[2], [2], [1], [1], [0, 0, 0, 1, 1, 1], [0], [0]>} : vector<4x2x8xf32>, vector<4x2x8xf32>, vector<4x2x2xf32> -> vector<4x2x2xf32>
    "tpu.trace_stop"() : () -> ()
    %cst_387 = arith.constant 0.353553385 : f32
    %729 = vector.broadcast %cst_387 : f32 to vector<4x2x2xf32>
    %730 = arith.mulf %728, %729 : vector<4x2x2xf32>
    %cst_388 = arith.constant dense<0xFF800000> : vector<4x2xf32>
    %731 = vector.multi_reduction <maximumf>, %730, %cst_388 [2] : vector<4x2x2xf32> to vector<4x2xf32>
    %732 = vector.shape_cast %731 : vector<4x2xf32> to vector<4x2x1xf32>
    %733 = vector.broadcast %732 : vector<4x2x1xf32> to vector<4x2x2xf32>
    %734 = arith.subf %730, %733 : vector<4x2x2xf32>
    %735 = math.exp %734 : vector<4x2x2xf32>
    %cst_389 = arith.constant dense<0.000000e+00> : vector<4x2xf32>
    %736 = vector.multi_reduction <add>, %735, %cst_389 [2] : vector<4x2x2xf32> to vector<4x2xf32>
    %737 = vector.shape_cast %736 : vector<4x2xf32> to vector<4x2x1xf32>
    %738 = tpu.reciprocal %737 {approx = true} : vector<4x2x1xf32> -> vector<4x2x1xf32>
    %739 = vector.broadcast %738 : vector<4x2x1xf32> to vector<4x2x2xf32>
    %740 = arith.mulf %735, %739 : vector<4x2x2xf32>
    "tpu.trace_start"() <{level = 10 : i32, message = "hbc,hcd->hbd"}> : () -> ()
    %cst_390 = arith.constant dense<0.000000e+00> : vector<4x2x8xf32>
    %741 = tpu.matmul %740, %727, %cst_390 {dimension_numbers = #tpu.dot_dimension_numbers<[2], [1], [1], [2], [0, 0, 0, 1, 1, 2], [0], [0]>} : vector<4x2x2xf32>, vector<4x2x8xf32>, vector<4x2x8xf32> -> vector<4x2x8xf32>
    "tpu.trace_stop"() : () -> ()
    %742 = tpu.transpose %741, [1, 0, 2] : vector<4x2x8xf32> -> vector<2x4x8xf32>
    %743 = vector.shape_cast %742 : vector<2x4x8xf32> to vector<2x32xf32>
    %c0_391 = arith.constant 0 : index
    %c0_392 = arith.constant 0 : index
    %c0_393 = arith.constant 0 : index
    %744 = vector.load %arg6[%c0_391, %c0_392, %c0_393] : memref<2x32x32xf32, #tpu.memory_space<vmem>>, vector<1x32x32xf32>
    %745 = vector.shape_cast %744 : vector<1x32x32xf32> to vector<32x32xf32>
    %cst_394 = arith.constant dense<0.000000e+00> : vector<2x32xf32>
    %746 = tpu.matmul %743, %745, %cst_394 {dimension_numbers = #tpu.dot_dimension_numbers<[1], [0], [0], [1], [0, 0, 1, 1], [], []>} : vector<2x32xf32>, vector<32x32xf32>, vector<2x32xf32> -> vector<2x32xf32>
    %c0_395 = arith.constant 0 : index
    %c0_396 = arith.constant 0 : index
    %c0_397 = arith.constant 0 : index
    %747 = vector.load %arg7[%c0_395, %c0_396, %c0_397] : memref<2x1x32xf32, #tpu.memory_space<vmem>>, vector<1x1x32xf32>
    %748 = vector.shape_cast %747 : vector<1x1x32xf32> to vector<1x32xf32>
    %749 = vector.broadcast %748 : vector<1x32xf32> to vector<2x32xf32>
    %750 = arith.addf %746, %749 : vector<2x32xf32>
    %751 = arith.addf %711, %750 : vector<2x32xf32>
    %c0_398 = arith.constant 0 : index
    %c0_399 = arith.constant 0 : index
    %c0_400 = arith.constant 0 : index
    %752 = vector.load %arg12[%c0_398, %c0_399, %c0_400] : memref<2x1x32xf32, #tpu.memory_space<vmem>>, vector<1x1x32xf32>
    %753 = vector.shape_cast %752 : vector<1x1x32xf32> to vector<1x32xf32>
    %c0_401 = arith.constant 0 : index
    %c0_402 = arith.constant 0 : index
    %c0_403 = arith.constant 0 : index
    %754 = vector.load %arg13[%c0_401, %c0_402, %c0_403] : memref<2x1x32xf32, #tpu.memory_space<vmem>>, vector<1x1x32xf32>
    %755 = vector.shape_cast %754 : vector<1x1x32xf32> to vector<1x32xf32>
    %cst_404 = arith.constant dense<0.000000e+00> : vector<2xf32>
    %756 = vector.multi_reduction <add>, %751, %cst_404 [1] : vector<2x32xf32> to vector<2xf32>
    %757 = vector.shape_cast %756 : vector<2xf32> to vector<2x1xf32>
    %cst_405 = arith.constant 3.200000e+01 : f32
    %758 = vector.broadcast %cst_405 : f32 to vector<2x1xf32>
    %759 = arith.divf %757, %758 : vector<2x1xf32>
    %760 = vector.broadcast %759 : vector<2x1xf32> to vector<2x32xf32>
    %761 = arith.subf %751, %760 : vector<2x32xf32>
    %762 = arith.mulf %761, %761 : vector<2x32xf32>
    %cst_406 = arith.constant dense<0.000000e+00> : vector<2xf32>
    %763 = vector.multi_reduction <add>, %762, %cst_406 [1] : vector<2x32xf32> to vector<2xf32>
    %764 = vector.shape_cast %763 : vector<2xf32> to vector<2x1xf32>
    %cst_407 = arith.constant 3.200000e+01 : f32
    %765 = vector.broadcast %cst_407 : f32 to vector<2x1xf32>
    %766 = arith.divf %764, %765 : vector<2x1xf32>
    %767 = vector.broadcast %759 : vector<2x1xf32> to vector<2x32xf32>
    %768 = arith.subf %751, %767 : vector<2x32xf32>
    %cst_408 = arith.constant 9.99999974E-6 : f32
    %769 = vector.broadcast %cst_408 : f32 to vector<2x1xf32>
    %770 = arith.addf %766, %769 : vector<2x1xf32>
    %771 = math.rsqrt %770 : vector<2x1xf32>
    %772 = vector.broadcast %771 : vector<2x1xf32> to vector<2x32xf32>
    %773 = arith.mulf %768, %772 : vector<2x32xf32>
    %774 = vector.broadcast %753 : vector<1x32xf32> to vector<2x32xf32>
    %775 = arith.mulf %773, %774 : vector<2x32xf32>
    %776 = vector.broadcast %755 : vector<1x32xf32> to vector<2x32xf32>
    %777 = arith.addf %775, %776 : vector<2x32xf32>
    %c0_409 = arith.constant 0 : index
    %c0_410 = arith.constant 0 : index
    %c0_411 = arith.constant 0 : index
    %778 = vector.load %arg8[%c0_409, %c0_410, %c0_411] : memref<2x32x64xf32, #tpu.memory_space<vmem>>, vector<1x32x64xf32>
    %779 = vector.shape_cast %778 : vector<1x32x64xf32> to vector<32x64xf32>
    %cst_412 = arith.constant dense<0.000000e+00> : vector<2x64xf32>
    %780 = tpu.matmul %777, %779, %cst_412 {dimension_numbers = #tpu.dot_dimension_numbers<[1], [0], [0], [1], [0, 0, 1, 1], [], []>} : vector<2x32xf32>, vector<32x64xf32>, vector<2x64xf32> -> vector<2x64xf32>
    %c0_413 = arith.constant 0 : index
    %c0_414 = arith.constant 0 : index
    %c0_415 = arith.constant 0 : index
    %781 = vector.load %arg9[%c0_413, %c0_414, %c0_415] : memref<2x1x64xf32, #tpu.memory_space<vmem>>, vector<1x1x64xf32>
    %782 = vector.shape_cast %781 : vector<1x1x64xf32> to vector<1x64xf32>
    %783 = vector.broadcast %782 : vector<1x64xf32> to vector<2x64xf32>
    %784 = arith.addf %780, %783 : vector<2x64xf32>
    %cst_416 = arith.constant 0.000000e+00 : f32
    %785 = vector.broadcast %cst_416 : f32 to vector<2x64xf32>
    %786 = arith.maximumf %784, %785 : vector<2x64xf32>
    %c0_417 = arith.constant 0 : index
    %c0_418 = arith.constant 0 : index
    %c0_419 = arith.constant 0 : index
    %787 = vector.load %arg10[%c0_417, %c0_418, %c0_419] : memref<2x64x32xf32, #tpu.memory_space<vmem>>, vector<1x64x32xf32>
    %788 = vector.shape_cast %787 : vector<1x64x32xf32> to vector<64x32xf32>
    %cst_420 = arith.constant dense<0.000000e+00> : vector<2x32xf32>
    %789 = tpu.matmul %786, %788, %cst_420 {dimension_numbers = #tpu.dot_dimension_numbers<[1], [0], [0], [1], [0, 0, 1, 1], [], []>} : vector<2x64xf32>, vector<64x32xf32>, vector<2x32xf32> -> vector<2x32xf32>
    %c0_421 = arith.constant 0 : index
    %c0_422 = arith.constant 0 : index
    %c0_423 = arith.constant 0 : index
    %790 = vector.load %arg11[%c0_421, %c0_422, %c0_423] : memref<2x1x32xf32, #tpu.memory_space<vmem>>, vector<1x1x32xf32>
    %791 = vector.shape_cast %790 : vector<1x1x32xf32> to vector<1x32xf32>
    %792 = vector.broadcast %791 : vector<1x32xf32> to vector<2x32xf32>
    %793 = arith.addf %789, %792 : vector<2x32xf32>
    %794 = arith.addf %777, %793 : vector<2x32xf32>
    %c0_424 = arith.constant 0 : index
    %c0_425 = arith.constant 0 : index
    %c0_426 = arith.constant 0 : index
    %795 = vector.load %arg14[%c0_424, %c0_425, %c0_426] : memref<2x1x32xf32, #tpu.memory_space<vmem>>, vector<1x1x32xf32>
    %796 = vector.shape_cast %795 : vector<1x1x32xf32> to vector<1x32xf32>
    %c0_427 = arith.constant 0 : index
    %c0_428 = arith.constant 0 : index
    %c0_429 = arith.constant 0 : index
    %797 = vector.load %arg15[%c0_427, %c0_428, %c0_429] : memref<2x1x32xf32, #tpu.memory_space<vmem>>, vector<1x1x32xf32>
    %798 = vector.shape_cast %797 : vector<1x1x32xf32> to vector<1x32xf32>
    %cst_430 = arith.constant dense<0.000000e+00> : vector<2xf32>
    %799 = vector.multi_reduction <add>, %794, %cst_430 [1] : vector<2x32xf32> to vector<2xf32>
    %800 = vector.shape_cast %799 : vector<2xf32> to vector<2x1xf32>
    %cst_431 = arith.constant 3.200000e+01 : f32
    %801 = vector.broadcast %cst_431 : f32 to vector<2x1xf32>
    %802 = arith.divf %800, %801 : vector<2x1xf32>
    %803 = vector.broadcast %802 : vector<2x1xf32> to vector<2x32xf32>
    %804 = arith.subf %794, %803 : vector<2x32xf32>
    %805 = arith.mulf %804, %804 : vector<2x32xf32>
    %cst_432 = arith.constant dense<0.000000e+00> : vector<2xf32>
    %806 = vector.multi_reduction <add>, %805, %cst_432 [1] : vector<2x32xf32> to vector<2xf32>
    %807 = vector.shape_cast %806 : vector<2xf32> to vector<2x1xf32>
    %cst_433 = arith.constant 3.200000e+01 : f32
    %808 = vector.broadcast %cst_433 : f32 to vector<2x1xf32>
    %809 = arith.divf %807, %808 : vector<2x1xf32>
    %810 = vector.broadcast %802 : vector<2x1xf32> to vector<2x32xf32>
    %811 = arith.subf %794, %810 : vector<2x32xf32>
    %cst_434 = arith.constant 9.99999974E-6 : f32
    %812 = vector.broadcast %cst_434 : f32 to vector<2x1xf32>
    %813 = arith.addf %809, %812 : vector<2x1xf32>
    %814 = math.rsqrt %813 : vector<2x1xf32>
    %815 = vector.broadcast %814 : vector<2x1xf32> to vector<2x32xf32>
    %816 = arith.mulf %811, %815 : vector<2x32xf32>
    %817 = vector.broadcast %796 : vector<1x32xf32> to vector<2x32xf32>
    %818 = arith.mulf %816, %817 : vector<2x32xf32>
    %819 = vector.broadcast %798 : vector<1x32xf32> to vector<2x32xf32>
    %820 = arith.addf %818, %819 : vector<2x32xf32>
    %c1_435 = arith.constant 1 : index
    %c0_436 = arith.constant 0 : index
    %c0_437 = arith.constant 0 : index
    %821 = vector.load %arg4[%c1_435, %c0_436, %c0_437] : memref<2x32x96xf32, #tpu.memory_space<vmem>>, vector<1x32x96xf32>
    %822 = vector.shape_cast %821 : vector<1x32x96xf32> to vector<32x96xf32>
    %cst_438 = arith.constant dense<0.000000e+00> : vector<2x96xf32>
    %823 = tpu.matmul %820, %822, %cst_438 {dimension_numbers = #tpu.dot_dimension_numbers<[1], [0], [0], [1], [0, 0, 1, 1], [], []>} : vector<2x32xf32>, vector<32x96xf32>, vector<2x96xf32> -> vector<2x96xf32>
    %c1_439 = arith.constant 1 : index
    %c0_440 = arith.constant 0 : index
    %c0_441 = arith.constant 0 : index
    %824 = vector.load %arg5[%c1_439, %c0_440, %c0_441] : memref<2x1x96xf32, #tpu.memory_space<vmem>>, vector<1x1x96xf32>
    %825 = vector.shape_cast %824 : vector<1x1x96xf32> to vector<1x96xf32>
    %826 = vector.broadcast %825 : vector<1x96xf32> to vector<2x96xf32>
    %827 = arith.addf %823, %826 : vector<2x96xf32>
    %828 = vector.extract_strided_slice %827 {offsets = [0, 0], sizes = [2, 32], strides = [1, 1]} : vector<2x96xf32> to vector<2x32xf32>
    %829 = vector.shape_cast %828 : vector<2x32xf32> to vector<2x4x8xf32>
    %830 = tpu.transpose %829, [1, 0, 2] : vector<2x4x8xf32> -> vector<4x2x8xf32>
    %831 = vector.extract_strided_slice %827 {offsets = [0, 32], sizes = [2, 32], strides = [1, 1]} : vector<2x96xf32> to vector<2x32xf32>
    %832 = vector.shape_cast %831 : vector<2x32xf32> to vector<2x4x8xf32>
    %833 = tpu.transpose %832, [1, 0, 2] : vector<2x4x8xf32> -> vector<4x2x8xf32>
    %834 = vector.extract_strided_slice %827 {offsets = [0, 64], sizes = [2, 32], strides = [1, 1]} : vector<2x96xf32> to vector<2x32xf32>
    %835 = vector.shape_cast %834 : vector<2x32xf32> to vector<2x4x8xf32>
    %836 = tpu.transpose %835, [1, 0, 2] : vector<2x4x8xf32> -> vector<4x2x8xf32>
    "tpu.trace_start"() <{level = 10 : i32, message = "hbd,hcd->hbc"}> : () -> ()
    %cst_442 = arith.constant dense<0.000000e+00> : vector<4x2x2xf32>
    %837 = tpu.matmul %830, %833, %cst_442 {dimension_numbers = #tpu.dot_dimension_numbers<[2], [2], [1], [1], [0, 0, 0, 1, 1, 1], [0], [0]>} : vector<4x2x8xf32>, vector<4x2x8xf32>, vector<4x2x2xf32> -> vector<4x2x2xf32>
    "tpu.trace_stop"() : () -> ()
    %cst_443 = arith.constant 0.353553385 : f32
    %838 = vector.broadcast %cst_443 : f32 to vector<4x2x2xf32>
    %839 = arith.mulf %837, %838 : vector<4x2x2xf32>
    %cst_444 = arith.constant dense<0xFF800000> : vector<4x2xf32>
    %840 = vector.multi_reduction <maximumf>, %839, %cst_444 [2] : vector<4x2x2xf32> to vector<4x2xf32>
    %841 = vector.shape_cast %840 : vector<4x2xf32> to vector<4x2x1xf32>
    %842 = vector.broadcast %841 : vector<4x2x1xf32> to vector<4x2x2xf32>
    %843 = arith.subf %839, %842 : vector<4x2x2xf32>
    %844 = math.exp %843 : vector<4x2x2xf32>
    %cst_445 = arith.constant dense<0.000000e+00> : vector<4x2xf32>
    %845 = vector.multi_reduction <add>, %844, %cst_445 [2] : vector<4x2x2xf32> to vector<4x2xf32>
    %846 = vector.shape_cast %845 : vector<4x2xf32> to vector<4x2x1xf32>
    %847 = tpu.reciprocal %846 {approx = true} : vector<4x2x1xf32> -> vector<4x2x1xf32>
    %848 = vector.broadcast %847 : vector<4x2x1xf32> to vector<4x2x2xf32>
    %849 = arith.mulf %844, %848 : vector<4x2x2xf32>
    "tpu.trace_start"() <{level = 10 : i32, message = "hbc,hcd->hbd"}> : () -> ()
    %cst_446 = arith.constant dense<0.000000e+00> : vector<4x2x8xf32>
    %850 = tpu.matmul %849, %836, %cst_446 {dimension_numbers = #tpu.dot_dimension_numbers<[2], [1], [1], [2], [0, 0, 0, 1, 1, 2], [0], [0]>} : vector<4x2x2xf32>, vector<4x2x8xf32>, vector<4x2x8xf32> -> vector<4x2x8xf32>
    "tpu.trace_stop"() : () -> ()
    %851 = tpu.transpose %850, [1, 0, 2] : vector<4x2x8xf32> -> vector<2x4x8xf32>
    %852 = vector.shape_cast %851 : vector<2x4x8xf32> to vector<2x32xf32>
    %c1_447 = arith.constant 1 : index
    %c0_448 = arith.constant 0 : index
    %c0_449 = arith.constant 0 : index
    %853 = vector.load %arg6[%c1_447, %c0_448, %c0_449] : memref<2x32x32xf32, #tpu.memory_space<vmem>>, vector<1x32x32xf32>
    %854 = vector.shape_cast %853 : vector<1x32x32xf32> to vector<32x32xf32>
    %cst_450 = arith.constant dense<0.000000e+00> : vector<2x32xf32>
    %855 = tpu.matmul %852, %854, %cst_450 {dimension_numbers = #tpu.dot_dimension_numbers<[1], [0], [0], [1], [0, 0, 1, 1], [], []>} : vector<2x32xf32>, vector<32x32xf32>, vector<2x32xf32> -> vector<2x32xf32>
    %c1_451 = arith.constant 1 : index
    %c0_452 = arith.constant 0 : index
    %c0_453 = arith.constant 0 : index
    %856 = vector.load %arg7[%c1_451, %c0_452, %c0_453] : memref<2x1x32xf32, #tpu.memory_space<vmem>>, vector<1x1x32xf32>
    %857 = vector.shape_cast %856 : vector<1x1x32xf32> to vector<1x32xf32>
    %858 = vector.broadcast %857 : vector<1x32xf32> to vector<2x32xf32>
    %859 = arith.addf %855, %858 : vector<2x32xf32>
    %860 = arith.addf %820, %859 : vector<2x32xf32>
    %c1_454 = arith.constant 1 : index
    %c0_455 = arith.constant 0 : index
    %c0_456 = arith.constant 0 : index
    %861 = vector.load %arg12[%c1_454, %c0_455, %c0_456] : memref<2x1x32xf32, #tpu.memory_space<vmem>>, vector<1x1x32xf32>
    %862 = vector.shape_cast %861 : vector<1x1x32xf32> to vector<1x32xf32>
    %c1_457 = arith.constant 1 : index
    %c0_458 = arith.constant 0 : index
    %c0_459 = arith.constant 0 : index
    %863 = vector.load %arg13[%c1_457, %c0_458, %c0_459] : memref<2x1x32xf32, #tpu.memory_space<vmem>>, vector<1x1x32xf32>
    %864 = vector.shape_cast %863 : vector<1x1x32xf32> to vector<1x32xf32>
    %cst_460 = arith.constant dense<0.000000e+00> : vector<2xf32>
    %865 = vector.multi_reduction <add>, %860, %cst_460 [1] : vector<2x32xf32> to vector<2xf32>
    %866 = vector.shape_cast %865 : vector<2xf32> to vector<2x1xf32>
    %cst_461 = arith.constant 3.200000e+01 : f32
    %867 = vector.broadcast %cst_461 : f32 to vector<2x1xf32>
    %868 = arith.divf %866, %867 : vector<2x1xf32>
    %869 = vector.broadcast %868 : vector<2x1xf32> to vector<2x32xf32>
    %870 = arith.subf %860, %869 : vector<2x32xf32>
    %871 = arith.mulf %870, %870 : vector<2x32xf32>
    %cst_462 = arith.constant dense<0.000000e+00> : vector<2xf32>
    %872 = vector.multi_reduction <add>, %871, %cst_462 [1] : vector<2x32xf32> to vector<2xf32>
    %873 = vector.shape_cast %872 : vector<2xf32> to vector<2x1xf32>
    %cst_463 = arith.constant 3.200000e+01 : f32
    %874 = vector.broadcast %cst_463 : f32 to vector<2x1xf32>
    %875 = arith.divf %873, %874 : vector<2x1xf32>
    %876 = vector.broadcast %868 : vector<2x1xf32> to vector<2x32xf32>
    %877 = arith.subf %860, %876 : vector<2x32xf32>
    %cst_464 = arith.constant 9.99999974E-6 : f32
    %878 = vector.broadcast %cst_464 : f32 to vector<2x1xf32>
    %879 = arith.addf %875, %878 : vector<2x1xf32>
    %880 = math.rsqrt %879 : vector<2x1xf32>
    %881 = vector.broadcast %880 : vector<2x1xf32> to vector<2x32xf32>
    %882 = arith.mulf %877, %881 : vector<2x32xf32>
    %883 = vector.broadcast %862 : vector<1x32xf32> to vector<2x32xf32>
    %884 = arith.mulf %882, %883 : vector<2x32xf32>
    %885 = vector.broadcast %864 : vector<1x32xf32> to vector<2x32xf32>
    %886 = arith.addf %884, %885 : vector<2x32xf32>
    %c1_465 = arith.constant 1 : index
    %c0_466 = arith.constant 0 : index
    %c0_467 = arith.constant 0 : index
    %887 = vector.load %arg8[%c1_465, %c0_466, %c0_467] : memref<2x32x64xf32, #tpu.memory_space<vmem>>, vector<1x32x64xf32>
    %888 = vector.shape_cast %887 : vector<1x32x64xf32> to vector<32x64xf32>
    %cst_468 = arith.constant dense<0.000000e+00> : vector<2x64xf32>
    %889 = tpu.matmul %886, %888, %cst_468 {dimension_numbers = #tpu.dot_dimension_numbers<[1], [0], [0], [1], [0, 0, 1, 1], [], []>} : vector<2x32xf32>, vector<32x64xf32>, vector<2x64xf32> -> vector<2x64xf32>
    %c1_469 = arith.constant 1 : index
    %c0_470 = arith.constant 0 : index
    %c0_471 = arith.constant 0 : index
    %890 = vector.load %arg9[%c1_469, %c0_470, %c0_471] : memref<2x1x64xf32, #tpu.memory_space<vmem>>, vector<1x1x64xf32>
    %891 = vector.shape_cast %890 : vector<1x1x64xf32> to vector<1x64xf32>
    %892 = vector.broadcast %891 : vector<1x64xf32> to vector<2x64xf32>
    %893 = arith.addf %889, %892 : vector<2x64xf32>
    %cst_472 = arith.constant 0.000000e+00 : f32
    %894 = vector.broadcast %cst_472 : f32 to vector<2x64xf32>
    %895 = arith.maximumf %893, %894 : vector<2x64xf32>
    %c1_473 = arith.constant 1 : index
    %c0_474 = arith.constant 0 : index
    %c0_475 = arith.constant 0 : index
    %896 = vector.load %arg10[%c1_473, %c0_474, %c0_475] : memref<2x64x32xf32, #tpu.memory_space<vmem>>, vector<1x64x32xf32>
    %897 = vector.shape_cast %896 : vector<1x64x32xf32> to vector<64x32xf32>
    %cst_476 = arith.constant dense<0.000000e+00> : vector<2x32xf32>
    %898 = tpu.matmul %895, %897, %cst_476 {dimension_numbers = #tpu.dot_dimension_numbers<[1], [0], [0], [1], [0, 0, 1, 1], [], []>} : vector<2x64xf32>, vector<64x32xf32>, vector<2x32xf32> -> vector<2x32xf32>
    %c1_477 = arith.constant 1 : index
    %c0_478 = arith.constant 0 : index
    %c0_479 = arith.constant 0 : index
    %899 = vector.load %arg11[%c1_477, %c0_478, %c0_479] : memref<2x1x32xf32, #tpu.memory_space<vmem>>, vector<1x1x32xf32>
    %900 = vector.shape_cast %899 : vector<1x1x32xf32> to vector<1x32xf32>
    %901 = vector.broadcast %900 : vector<1x32xf32> to vector<2x32xf32>
    %902 = arith.addf %898, %901 : vector<2x32xf32>
    %903 = arith.addf %886, %902 : vector<2x32xf32>
    %c1_480 = arith.constant 1 : index
    %c0_481 = arith.constant 0 : index
    %c0_482 = arith.constant 0 : index
    %904 = vector.load %arg14[%c1_480, %c0_481, %c0_482] : memref<2x1x32xf32, #tpu.memory_space<vmem>>, vector<1x1x32xf32>
    %905 = vector.shape_cast %904 : vector<1x1x32xf32> to vector<1x32xf32>
    %c1_483 = arith.constant 1 : index
    %c0_484 = arith.constant 0 : index
    %c0_485 = arith.constant 0 : index
    %906 = vector.load %arg15[%c1_483, %c0_484, %c0_485] : memref<2x1x32xf32, #tpu.memory_space<vmem>>, vector<1x1x32xf32>
    %907 = vector.shape_cast %906 : vector<1x1x32xf32> to vector<1x32xf32>
    %cst_486 = arith.constant dense<0.000000e+00> : vector<2xf32>
    %908 = vector.multi_reduction <add>, %903, %cst_486 [1] : vector<2x32xf32> to vector<2xf32>
    %909 = vector.shape_cast %908 : vector<2xf32> to vector<2x1xf32>
    %cst_487 = arith.constant 3.200000e+01 : f32
    %910 = vector.broadcast %cst_487 : f32 to vector<2x1xf32>
    %911 = arith.divf %909, %910 : vector<2x1xf32>
    %912 = vector.broadcast %911 : vector<2x1xf32> to vector<2x32xf32>
    %913 = arith.subf %903, %912 : vector<2x32xf32>
    %914 = arith.mulf %913, %913 : vector<2x32xf32>
    %cst_488 = arith.constant dense<0.000000e+00> : vector<2xf32>
    %915 = vector.multi_reduction <add>, %914, %cst_488 [1] : vector<2x32xf32> to vector<2xf32>
    %916 = vector.shape_cast %915 : vector<2xf32> to vector<2x1xf32>
    %cst_489 = arith.constant 3.200000e+01 : f32
    %917 = vector.broadcast %cst_489 : f32 to vector<2x1xf32>
    %918 = arith.divf %916, %917 : vector<2x1xf32>
    %919 = vector.broadcast %911 : vector<2x1xf32> to vector<2x32xf32>
    %920 = arith.subf %903, %919 : vector<2x32xf32>
    %cst_490 = arith.constant 9.99999974E-6 : f32
    %921 = vector.broadcast %cst_490 : f32 to vector<2x1xf32>
    %922 = arith.addf %918, %921 : vector<2x1xf32>
    %923 = math.rsqrt %922 : vector<2x1xf32>
    %924 = vector.broadcast %923 : vector<2x1xf32> to vector<2x32xf32>
    %925 = arith.mulf %920, %924 : vector<2x32xf32>
    %926 = vector.broadcast %905 : vector<1x32xf32> to vector<2x32xf32>
    %927 = arith.mulf %925, %926 : vector<2x32xf32>
    %928 = vector.broadcast %907 : vector<1x32xf32> to vector<2x32xf32>
    %929 = arith.addf %927, %928 : vector<2x32xf32>
    %c3_491 = arith.constant 3 : index
    %c0_492 = arith.constant 0 : index
    %c0_493 = arith.constant 0 : index
    %930 = vector.load %arg16[%c3_491, %c0_492, %c0_493] : memref<5x32x64xf32, #tpu.memory_space<vmem>>, vector<1x32x64xf32>
    %931 = vector.shape_cast %930 : vector<1x32x64xf32> to vector<32x64xf32>
    %cst_494 = arith.constant dense<0.000000e+00> : vector<2x64xf32>
    %932 = tpu.matmul %929, %931, %cst_494 {dimension_numbers = #tpu.dot_dimension_numbers<[1], [0], [0], [1], [0, 0, 1, 1], [], []>} : vector<2x32xf32>, vector<32x64xf32>, vector<2x64xf32> -> vector<2x64xf32>
    %933 = arith.addf %700, %932 : vector<2x64xf32>
    %934 = vector.extract_strided_slice %0 {offsets = [0, 4, 0], sizes = [2, 1, 15], strides = [1, 1, 1]} : vector<2x5x15xf32> to vector<2x1x15xf32>
    %935 = vector.shape_cast %934 : vector<2x1x15xf32> to vector<2x15xf32>
    %c0_495 = arith.constant 0 : index
    %c0_496 = arith.constant 0 : index
    %936 = vector.load %arg2[%c0_495, %c0_496] : memref<15x32xf32, #tpu.memory_space<vmem>>, vector<15x32xf32>
    %cst_497 = arith.constant dense<0.000000e+00> : vector<2x32xf32>
    %937 = tpu.matmul %935, %936, %cst_497 {dimension_numbers = #tpu.dot_dimension_numbers<[1], [0], [0], [1], [0, 0, 1, 1], [], []>} : vector<2x15xf32>, vector<15x32xf32>, vector<2x32xf32> -> vector<2x32xf32>
    %c0_498 = arith.constant 0 : index
    %c0_499 = arith.constant 0 : index
    %938 = vector.load %arg3[%c0_498, %c0_499] : memref<1x32xf32, #tpu.memory_space<vmem>>, vector<1x32xf32>
    %939 = vector.broadcast %938 : vector<1x32xf32> to vector<2x32xf32>
    %940 = arith.addf %937, %939 : vector<2x32xf32>
    %c4 = arith.constant 4 : index
    %c0_500 = arith.constant 0 : index
    %c0_501 = arith.constant 0 : index
    %941 = vector.load %arg1[%c4, %c0_500, %c0_501] : memref<5x1x32xf32, #tpu.memory_space<vmem>>, vector<1x1x32xf32>
    %942 = vector.shape_cast %941 : vector<1x1x32xf32> to vector<1x32xf32>
    %943 = vector.broadcast %942 : vector<1x32xf32> to vector<2x32xf32>
    %944 = arith.addf %940, %943 : vector<2x32xf32>
    %c0_502 = arith.constant 0 : index
    %c0_503 = arith.constant 0 : index
    %c0_504 = arith.constant 0 : index
    %945 = vector.load %arg4[%c0_502, %c0_503, %c0_504] : memref<2x32x96xf32, #tpu.memory_space<vmem>>, vector<1x32x96xf32>
    %946 = vector.shape_cast %945 : vector<1x32x96xf32> to vector<32x96xf32>
    %cst_505 = arith.constant dense<0.000000e+00> : vector<2x96xf32>
    %947 = tpu.matmul %944, %946, %cst_505 {dimension_numbers = #tpu.dot_dimension_numbers<[1], [0], [0], [1], [0, 0, 1, 1], [], []>} : vector<2x32xf32>, vector<32x96xf32>, vector<2x96xf32> -> vector<2x96xf32>
    %c0_506 = arith.constant 0 : index
    %c0_507 = arith.constant 0 : index
    %c0_508 = arith.constant 0 : index
    %948 = vector.load %arg5[%c0_506, %c0_507, %c0_508] : memref<2x1x96xf32, #tpu.memory_space<vmem>>, vector<1x1x96xf32>
    %949 = vector.shape_cast %948 : vector<1x1x96xf32> to vector<1x96xf32>
    %950 = vector.broadcast %949 : vector<1x96xf32> to vector<2x96xf32>
    %951 = arith.addf %947, %950 : vector<2x96xf32>
    %952 = vector.extract_strided_slice %951 {offsets = [0, 0], sizes = [2, 32], strides = [1, 1]} : vector<2x96xf32> to vector<2x32xf32>
    %953 = vector.shape_cast %952 : vector<2x32xf32> to vector<2x4x8xf32>
    %954 = tpu.transpose %953, [1, 0, 2] : vector<2x4x8xf32> -> vector<4x2x8xf32>
    %955 = vector.extract_strided_slice %951 {offsets = [0, 32], sizes = [2, 32], strides = [1, 1]} : vector<2x96xf32> to vector<2x32xf32>
    %956 = vector.shape_cast %955 : vector<2x32xf32> to vector<2x4x8xf32>
    %957 = tpu.transpose %956, [1, 0, 2] : vector<2x4x8xf32> -> vector<4x2x8xf32>
    %958 = vector.extract_strided_slice %951 {offsets = [0, 64], sizes = [2, 32], strides = [1, 1]} : vector<2x96xf32> to vector<2x32xf32>
    %959 = vector.shape_cast %958 : vector<2x32xf32> to vector<2x4x8xf32>
    %960 = tpu.transpose %959, [1, 0, 2] : vector<2x4x8xf32> -> vector<4x2x8xf32>
    "tpu.trace_start"() <{level = 10 : i32, message = "hbd,hcd->hbc"}> : () -> ()
    %cst_509 = arith.constant dense<0.000000e+00> : vector<4x2x2xf32>
    %961 = tpu.matmul %954, %957, %cst_509 {dimension_numbers = #tpu.dot_dimension_numbers<[2], [2], [1], [1], [0, 0, 0, 1, 1, 1], [0], [0]>} : vector<4x2x8xf32>, vector<4x2x8xf32>, vector<4x2x2xf32> -> vector<4x2x2xf32>
    "tpu.trace_stop"() : () -> ()
    %cst_510 = arith.constant 0.353553385 : f32
    %962 = vector.broadcast %cst_510 : f32 to vector<4x2x2xf32>
    %963 = arith.mulf %961, %962 : vector<4x2x2xf32>
    %cst_511 = arith.constant dense<0xFF800000> : vector<4x2xf32>
    %964 = vector.multi_reduction <maximumf>, %963, %cst_511 [2] : vector<4x2x2xf32> to vector<4x2xf32>
    %965 = vector.shape_cast %964 : vector<4x2xf32> to vector<4x2x1xf32>
    %966 = vector.broadcast %965 : vector<4x2x1xf32> to vector<4x2x2xf32>
    %967 = arith.subf %963, %966 : vector<4x2x2xf32>
    %968 = math.exp %967 : vector<4x2x2xf32>
    %cst_512 = arith.constant dense<0.000000e+00> : vector<4x2xf32>
    %969 = vector.multi_reduction <add>, %968, %cst_512 [2] : vector<4x2x2xf32> to vector<4x2xf32>
    %970 = vector.shape_cast %969 : vector<4x2xf32> to vector<4x2x1xf32>
    %971 = tpu.reciprocal %970 {approx = true} : vector<4x2x1xf32> -> vector<4x2x1xf32>
    %972 = vector.broadcast %971 : vector<4x2x1xf32> to vector<4x2x2xf32>
    %973 = arith.mulf %968, %972 : vector<4x2x2xf32>
    "tpu.trace_start"() <{level = 10 : i32, message = "hbc,hcd->hbd"}> : () -> ()
    %cst_513 = arith.constant dense<0.000000e+00> : vector<4x2x8xf32>
    %974 = tpu.matmul %973, %960, %cst_513 {dimension_numbers = #tpu.dot_dimension_numbers<[2], [1], [1], [2], [0, 0, 0, 1, 1, 2], [0], [0]>} : vector<4x2x2xf32>, vector<4x2x8xf32>, vector<4x2x8xf32> -> vector<4x2x8xf32>
    "tpu.trace_stop"() : () -> ()
    %975 = tpu.transpose %974, [1, 0, 2] : vector<4x2x8xf32> -> vector<2x4x8xf32>
    %976 = vector.shape_cast %975 : vector<2x4x8xf32> to vector<2x32xf32>
    %c0_514 = arith.constant 0 : index
    %c0_515 = arith.constant 0 : index
    %c0_516 = arith.constant 0 : index
    %977 = vector.load %arg6[%c0_514, %c0_515, %c0_516] : memref<2x32x32xf32, #tpu.memory_space<vmem>>, vector<1x32x32xf32>
    %978 = vector.shape_cast %977 : vector<1x32x32xf32> to vector<32x32xf32>
    %cst_517 = arith.constant dense<0.000000e+00> : vector<2x32xf32>
    %979 = tpu.matmul %976, %978, %cst_517 {dimension_numbers = #tpu.dot_dimension_numbers<[1], [0], [0], [1], [0, 0, 1, 1], [], []>} : vector<2x32xf32>, vector<32x32xf32>, vector<2x32xf32> -> vector<2x32xf32>
    %c0_518 = arith.constant 0 : index
    %c0_519 = arith.constant 0 : index
    %c0_520 = arith.constant 0 : index
    %980 = vector.load %arg7[%c0_518, %c0_519, %c0_520] : memref<2x1x32xf32, #tpu.memory_space<vmem>>, vector<1x1x32xf32>
    %981 = vector.shape_cast %980 : vector<1x1x32xf32> to vector<1x32xf32>
    %982 = vector.broadcast %981 : vector<1x32xf32> to vector<2x32xf32>
    %983 = arith.addf %979, %982 : vector<2x32xf32>
    %984 = arith.addf %944, %983 : vector<2x32xf32>
    %c0_521 = arith.constant 0 : index
    %c0_522 = arith.constant 0 : index
    %c0_523 = arith.constant 0 : index
    %985 = vector.load %arg12[%c0_521, %c0_522, %c0_523] : memref<2x1x32xf32, #tpu.memory_space<vmem>>, vector<1x1x32xf32>
    %986 = vector.shape_cast %985 : vector<1x1x32xf32> to vector<1x32xf32>
    %c0_524 = arith.constant 0 : index
    %c0_525 = arith.constant 0 : index
    %c0_526 = arith.constant 0 : index
    %987 = vector.load %arg13[%c0_524, %c0_525, %c0_526] : memref<2x1x32xf32, #tpu.memory_space<vmem>>, vector<1x1x32xf32>
    %988 = vector.shape_cast %987 : vector<1x1x32xf32> to vector<1x32xf32>
    %cst_527 = arith.constant dense<0.000000e+00> : vector<2xf32>
    %989 = vector.multi_reduction <add>, %984, %cst_527 [1] : vector<2x32xf32> to vector<2xf32>
    %990 = vector.shape_cast %989 : vector<2xf32> to vector<2x1xf32>
    %cst_528 = arith.constant 3.200000e+01 : f32
    %991 = vector.broadcast %cst_528 : f32 to vector<2x1xf32>
    %992 = arith.divf %990, %991 : vector<2x1xf32>
    %993 = vector.broadcast %992 : vector<2x1xf32> to vector<2x32xf32>
    %994 = arith.subf %984, %993 : vector<2x32xf32>
    %995 = arith.mulf %994, %994 : vector<2x32xf32>
    %cst_529 = arith.constant dense<0.000000e+00> : vector<2xf32>
    %996 = vector.multi_reduction <add>, %995, %cst_529 [1] : vector<2x32xf32> to vector<2xf32>
    %997 = vector.shape_cast %996 : vector<2xf32> to vector<2x1xf32>
    %cst_530 = arith.constant 3.200000e+01 : f32
    %998 = vector.broadcast %cst_530 : f32 to vector<2x1xf32>
    %999 = arith.divf %997, %998 : vector<2x1xf32>
    %1000 = vector.broadcast %992 : vector<2x1xf32> to vector<2x32xf32>
    %1001 = arith.subf %984, %1000 : vector<2x32xf32>
    %cst_531 = arith.constant 9.99999974E-6 : f32
    %1002 = vector.broadcast %cst_531 : f32 to vector<2x1xf32>
    %1003 = arith.addf %999, %1002 : vector<2x1xf32>
    %1004 = math.rsqrt %1003 : vector<2x1xf32>
    %1005 = vector.broadcast %1004 : vector<2x1xf32> to vector<2x32xf32>
    %1006 = arith.mulf %1001, %1005 : vector<2x32xf32>
    %1007 = vector.broadcast %986 : vector<1x32xf32> to vector<2x32xf32>
    %1008 = arith.mulf %1006, %1007 : vector<2x32xf32>
    %1009 = vector.broadcast %988 : vector<1x32xf32> to vector<2x32xf32>
    %1010 = arith.addf %1008, %1009 : vector<2x32xf32>
    %c0_532 = arith.constant 0 : index
    %c0_533 = arith.constant 0 : index
    %c0_534 = arith.constant 0 : index
    %1011 = vector.load %arg8[%c0_532, %c0_533, %c0_534] : memref<2x32x64xf32, #tpu.memory_space<vmem>>, vector<1x32x64xf32>
    %1012 = vector.shape_cast %1011 : vector<1x32x64xf32> to vector<32x64xf32>
    %cst_535 = arith.constant dense<0.000000e+00> : vector<2x64xf32>
    %1013 = tpu.matmul %1010, %1012, %cst_535 {dimension_numbers = #tpu.dot_dimension_numbers<[1], [0], [0], [1], [0, 0, 1, 1], [], []>} : vector<2x32xf32>, vector<32x64xf32>, vector<2x64xf32> -> vector<2x64xf32>
    %c0_536 = arith.constant 0 : index
    %c0_537 = arith.constant 0 : index
    %c0_538 = arith.constant 0 : index
    %1014 = vector.load %arg9[%c0_536, %c0_537, %c0_538] : memref<2x1x64xf32, #tpu.memory_space<vmem>>, vector<1x1x64xf32>
    %1015 = vector.shape_cast %1014 : vector<1x1x64xf32> to vector<1x64xf32>
    %1016 = vector.broadcast %1015 : vector<1x64xf32> to vector<2x64xf32>
    %1017 = arith.addf %1013, %1016 : vector<2x64xf32>
    %cst_539 = arith.constant 0.000000e+00 : f32
    %1018 = vector.broadcast %cst_539 : f32 to vector<2x64xf32>
    %1019 = arith.maximumf %1017, %1018 : vector<2x64xf32>
    %c0_540 = arith.constant 0 : index
    %c0_541 = arith.constant 0 : index
    %c0_542 = arith.constant 0 : index
    %1020 = vector.load %arg10[%c0_540, %c0_541, %c0_542] : memref<2x64x32xf32, #tpu.memory_space<vmem>>, vector<1x64x32xf32>
    %1021 = vector.shape_cast %1020 : vector<1x64x32xf32> to vector<64x32xf32>
    %cst_543 = arith.constant dense<0.000000e+00> : vector<2x32xf32>
    %1022 = tpu.matmul %1019, %1021, %cst_543 {dimension_numbers = #tpu.dot_dimension_numbers<[1], [0], [0], [1], [0, 0, 1, 1], [], []>} : vector<2x64xf32>, vector<64x32xf32>, vector<2x32xf32> -> vector<2x32xf32>
    %c0_544 = arith.constant 0 : index
    %c0_545 = arith.constant 0 : index
    %c0_546 = arith.constant 0 : index
    %1023 = vector.load %arg11[%c0_544, %c0_545, %c0_546] : memref<2x1x32xf32, #tpu.memory_space<vmem>>, vector<1x1x32xf32>
    %1024 = vector.shape_cast %1023 : vector<1x1x32xf32> to vector<1x32xf32>
    %1025 = vector.broadcast %1024 : vector<1x32xf32> to vector<2x32xf32>
    %1026 = arith.addf %1022, %1025 : vector<2x32xf32>
    %1027 = arith.addf %1010, %1026 : vector<2x32xf32>
    %c0_547 = arith.constant 0 : index
    %c0_548 = arith.constant 0 : index
    %c0_549 = arith.constant 0 : index
    %1028 = vector.load %arg14[%c0_547, %c0_548, %c0_549] : memref<2x1x32xf32, #tpu.memory_space<vmem>>, vector<1x1x32xf32>
    %1029 = vector.shape_cast %1028 : vector<1x1x32xf32> to vector<1x32xf32>
    %c0_550 = arith.constant 0 : index
    %c0_551 = arith.constant 0 : index
    %c0_552 = arith.constant 0 : index
    %1030 = vector.load %arg15[%c0_550, %c0_551, %c0_552] : memref<2x1x32xf32, #tpu.memory_space<vmem>>, vector<1x1x32xf32>
    %1031 = vector.shape_cast %1030 : vector<1x1x32xf32> to vector<1x32xf32>
    %cst_553 = arith.constant dense<0.000000e+00> : vector<2xf32>
    %1032 = vector.multi_reduction <add>, %1027, %cst_553 [1] : vector<2x32xf32> to vector<2xf32>
    %1033 = vector.shape_cast %1032 : vector<2xf32> to vector<2x1xf32>
    %cst_554 = arith.constant 3.200000e+01 : f32
    %1034 = vector.broadcast %cst_554 : f32 to vector<2x1xf32>
    %1035 = arith.divf %1033, %1034 : vector<2x1xf32>
    %1036 = vector.broadcast %1035 : vector<2x1xf32> to vector<2x32xf32>
    %1037 = arith.subf %1027, %1036 : vector<2x32xf32>
    %1038 = arith.mulf %1037, %1037 : vector<2x32xf32>
    %cst_555 = arith.constant dense<0.000000e+00> : vector<2xf32>
    %1039 = vector.multi_reduction <add>, %1038, %cst_555 [1] : vector<2x32xf32> to vector<2xf32>
    %1040 = vector.shape_cast %1039 : vector<2xf32> to vector<2x1xf32>
    %cst_556 = arith.constant 3.200000e+01 : f32
    %1041 = vector.broadcast %cst_556 : f32 to vector<2x1xf32>
    %1042 = arith.divf %1040, %1041 : vector<2x1xf32>
    %1043 = vector.broadcast %1035 : vector<2x1xf32> to vector<2x32xf32>
    %1044 = arith.subf %1027, %1043 : vector<2x32xf32>
    %cst_557 = arith.constant 9.99999974E-6 : f32
    %1045 = vector.broadcast %cst_557 : f32 to vector<2x1xf32>
    %1046 = arith.addf %1042, %1045 : vector<2x1xf32>
    %1047 = math.rsqrt %1046 : vector<2x1xf32>
    %1048 = vector.broadcast %1047 : vector<2x1xf32> to vector<2x32xf32>
    %1049 = arith.mulf %1044, %1048 : vector<2x32xf32>
    %1050 = vector.broadcast %1029 : vector<1x32xf32> to vector<2x32xf32>
    %1051 = arith.mulf %1049, %1050 : vector<2x32xf32>
    %1052 = vector.broadcast %1031 : vector<1x32xf32> to vector<2x32xf32>
    %1053 = arith.addf %1051, %1052 : vector<2x32xf32>
    %c1_558 = arith.constant 1 : index
    %c0_559 = arith.constant 0 : index
    %c0_560 = arith.constant 0 : index
    %1054 = vector.load %arg4[%c1_558, %c0_559, %c0_560] : memref<2x32x96xf32, #tpu.memory_space<vmem>>, vector<1x32x96xf32>
    %1055 = vector.shape_cast %1054 : vector<1x32x96xf32> to vector<32x96xf32>
    %cst_561 = arith.constant dense<0.000000e+00> : vector<2x96xf32>
    %1056 = tpu.matmul %1053, %1055, %cst_561 {dimension_numbers = #tpu.dot_dimension_numbers<[1], [0], [0], [1], [0, 0, 1, 1], [], []>} : vector<2x32xf32>, vector<32x96xf32>, vector<2x96xf32> -> vector<2x96xf32>
    %c1_562 = arith.constant 1 : index
    %c0_563 = arith.constant 0 : index
    %c0_564 = arith.constant 0 : index
    %1057 = vector.load %arg5[%c1_562, %c0_563, %c0_564] : memref<2x1x96xf32, #tpu.memory_space<vmem>>, vector<1x1x96xf32>
    %1058 = vector.shape_cast %1057 : vector<1x1x96xf32> to vector<1x96xf32>
    %1059 = vector.broadcast %1058 : vector<1x96xf32> to vector<2x96xf32>
    %1060 = arith.addf %1056, %1059 : vector<2x96xf32>
    %1061 = vector.extract_strided_slice %1060 {offsets = [0, 0], sizes = [2, 32], strides = [1, 1]} : vector<2x96xf32> to vector<2x32xf32>
    %1062 = vector.shape_cast %1061 : vector<2x32xf32> to vector<2x4x8xf32>
    %1063 = tpu.transpose %1062, [1, 0, 2] : vector<2x4x8xf32> -> vector<4x2x8xf32>
    %1064 = vector.extract_strided_slice %1060 {offsets = [0, 32], sizes = [2, 32], strides = [1, 1]} : vector<2x96xf32> to vector<2x32xf32>
    %1065 = vector.shape_cast %1064 : vector<2x32xf32> to vector<2x4x8xf32>
    %1066 = tpu.transpose %1065, [1, 0, 2] : vector<2x4x8xf32> -> vector<4x2x8xf32>
    %1067 = vector.extract_strided_slice %1060 {offsets = [0, 64], sizes = [2, 32], strides = [1, 1]} : vector<2x96xf32> to vector<2x32xf32>
    %1068 = vector.shape_cast %1067 : vector<2x32xf32> to vector<2x4x8xf32>
    %1069 = tpu.transpose %1068, [1, 0, 2] : vector<2x4x8xf32> -> vector<4x2x8xf32>
    "tpu.trace_start"() <{level = 10 : i32, message = "hbd,hcd->hbc"}> : () -> ()
    %cst_565 = arith.constant dense<0.000000e+00> : vector<4x2x2xf32>
    %1070 = tpu.matmul %1063, %1066, %cst_565 {dimension_numbers = #tpu.dot_dimension_numbers<[2], [2], [1], [1], [0, 0, 0, 1, 1, 1], [0], [0]>} : vector<4x2x8xf32>, vector<4x2x8xf32>, vector<4x2x2xf32> -> vector<4x2x2xf32>
    "tpu.trace_stop"() : () -> ()
    %cst_566 = arith.constant 0.353553385 : f32
    %1071 = vector.broadcast %cst_566 : f32 to vector<4x2x2xf32>
    %1072 = arith.mulf %1070, %1071 : vector<4x2x2xf32>
    %cst_567 = arith.constant dense<0xFF800000> : vector<4x2xf32>
    %1073 = vector.multi_reduction <maximumf>, %1072, %cst_567 [2] : vector<4x2x2xf32> to vector<4x2xf32>
    %1074 = vector.shape_cast %1073 : vector<4x2xf32> to vector<4x2x1xf32>
    %1075 = vector.broadcast %1074 : vector<4x2x1xf32> to vector<4x2x2xf32>
    %1076 = arith.subf %1072, %1075 : vector<4x2x2xf32>
    %1077 = math.exp %1076 : vector<4x2x2xf32>
    %cst_568 = arith.constant dense<0.000000e+00> : vector<4x2xf32>
    %1078 = vector.multi_reduction <add>, %1077, %cst_568 [2] : vector<4x2x2xf32> to vector<4x2xf32>
    %1079 = vector.shape_cast %1078 : vector<4x2xf32> to vector<4x2x1xf32>
    %1080 = tpu.reciprocal %1079 {approx = true} : vector<4x2x1xf32> -> vector<4x2x1xf32>
    %1081 = vector.broadcast %1080 : vector<4x2x1xf32> to vector<4x2x2xf32>
    %1082 = arith.mulf %1077, %1081 : vector<4x2x2xf32>
    "tpu.trace_start"() <{level = 10 : i32, message = "hbc,hcd->hbd"}> : () -> ()
    %cst_569 = arith.constant dense<0.000000e+00> : vector<4x2x8xf32>
    %1083 = tpu.matmul %1082, %1069, %cst_569 {dimension_numbers = #tpu.dot_dimension_numbers<[2], [1], [1], [2], [0, 0, 0, 1, 1, 2], [0], [0]>} : vector<4x2x2xf32>, vector<4x2x8xf32>, vector<4x2x8xf32> -> vector<4x2x8xf32>
    "tpu.trace_stop"() : () -> ()
    %1084 = tpu.transpose %1083, [1, 0, 2] : vector<4x2x8xf32> -> vector<2x4x8xf32>
    %1085 = vector.shape_cast %1084 : vector<2x4x8xf32> to vector<2x32xf32>
    %c1_570 = arith.constant 1 : index
    %c0_571 = arith.constant 0 : index
    %c0_572 = arith.constant 0 : index
    %1086 = vector.load %arg6[%c1_570, %c0_571, %c0_572] : memref<2x32x32xf32, #tpu.memory_space<vmem>>, vector<1x32x32xf32>
    %1087 = vector.shape_cast %1086 : vector<1x32x32xf32> to vector<32x32xf32>
    %cst_573 = arith.constant dense<0.000000e+00> : vector<2x32xf32>
    %1088 = tpu.matmul %1085, %1087, %cst_573 {dimension_numbers = #tpu.dot_dimension_numbers<[1], [0], [0], [1], [0, 0, 1, 1], [], []>} : vector<2x32xf32>, vector<32x32xf32>, vector<2x32xf32> -> vector<2x32xf32>
    %c1_574 = arith.constant 1 : index
    %c0_575 = arith.constant 0 : index
    %c0_576 = arith.constant 0 : index
    %1089 = vector.load %arg7[%c1_574, %c0_575, %c0_576] : memref<2x1x32xf32, #tpu.memory_space<vmem>>, vector<1x1x32xf32>
    %1090 = vector.shape_cast %1089 : vector<1x1x32xf32> to vector<1x32xf32>
    %1091 = vector.broadcast %1090 : vector<1x32xf32> to vector<2x32xf32>
    %1092 = arith.addf %1088, %1091 : vector<2x32xf32>
    %1093 = arith.addf %1053, %1092 : vector<2x32xf32>
    %c1_577 = arith.constant 1 : index
    %c0_578 = arith.constant 0 : index
    %c0_579 = arith.constant 0 : index
    %1094 = vector.load %arg12[%c1_577, %c0_578, %c0_579] : memref<2x1x32xf32, #tpu.memory_space<vmem>>, vector<1x1x32xf32>
    %1095 = vector.shape_cast %1094 : vector<1x1x32xf32> to vector<1x32xf32>
    %c1_580 = arith.constant 1 : index
    %c0_581 = arith.constant 0 : index
    %c0_582 = arith.constant 0 : index
    %1096 = vector.load %arg13[%c1_580, %c0_581, %c0_582] : memref<2x1x32xf32, #tpu.memory_space<vmem>>, vector<1x1x32xf32>
    %1097 = vector.shape_cast %1096 : vector<1x1x32xf32> to vector<1x32xf32>
    %cst_583 = arith.constant dense<0.000000e+00> : vector<2xf32>
    %1098 = vector.multi_reduction <add>, %1093, %cst_583 [1] : vector<2x32xf32> to vector<2xf32>
    %1099 = vector.shape_cast %1098 : vector<2xf32> to vector<2x1xf32>
    %cst_584 = arith.constant 3.200000e+01 : f32
    %1100 = vector.broadcast %cst_584 : f32 to vector<2x1xf32>
    %1101 = arith.divf %1099, %1100 : vector<2x1xf32>
    %1102 = vector.broadcast %1101 : vector<2x1xf32> to vector<2x32xf32>
    %1103 = arith.subf %1093, %1102 : vector<2x32xf32>
    %1104 = arith.mulf %1103, %1103 : vector<2x32xf32>
    %cst_585 = arith.constant dense<0.000000e+00> : vector<2xf32>
    %1105 = vector.multi_reduction <add>, %1104, %cst_585 [1] : vector<2x32xf32> to vector<2xf32>
    %1106 = vector.shape_cast %1105 : vector<2xf32> to vector<2x1xf32>
    %cst_586 = arith.constant 3.200000e+01 : f32
    %1107 = vector.broadcast %cst_586 : f32 to vector<2x1xf32>
    %1108 = arith.divf %1106, %1107 : vector<2x1xf32>
    %1109 = vector.broadcast %1101 : vector<2x1xf32> to vector<2x32xf32>
    %1110 = arith.subf %1093, %1109 : vector<2x32xf32>
    %cst_587 = arith.constant 9.99999974E-6 : f32
    %1111 = vector.broadcast %cst_587 : f32 to vector<2x1xf32>
    %1112 = arith.addf %1108, %1111 : vector<2x1xf32>
    %1113 = math.rsqrt %1112 : vector<2x1xf32>
    %1114 = vector.broadcast %1113 : vector<2x1xf32> to vector<2x32xf32>
    %1115 = arith.mulf %1110, %1114 : vector<2x32xf32>
    %1116 = vector.broadcast %1095 : vector<1x32xf32> to vector<2x32xf32>
    %1117 = arith.mulf %1115, %1116 : vector<2x32xf32>
    %1118 = vector.broadcast %1097 : vector<1x32xf32> to vector<2x32xf32>
    %1119 = arith.addf %1117, %1118 : vector<2x32xf32>
    %c1_588 = arith.constant 1 : index
    %c0_589 = arith.constant 0 : index
    %c0_590 = arith.constant 0 : index
    %1120 = vector.load %arg8[%c1_588, %c0_589, %c0_590] : memref<2x32x64xf32, #tpu.memory_space<vmem>>, vector<1x32x64xf32>
    %1121 = vector.shape_cast %1120 : vector<1x32x64xf32> to vector<32x64xf32>
    %cst_591 = arith.constant dense<0.000000e+00> : vector<2x64xf32>
    %1122 = tpu.matmul %1119, %1121, %cst_591 {dimension_numbers = #tpu.dot_dimension_numbers<[1], [0], [0], [1], [0, 0, 1, 1], [], []>} : vector<2x32xf32>, vector<32x64xf32>, vector<2x64xf32> -> vector<2x64xf32>
    %c1_592 = arith.constant 1 : index
    %c0_593 = arith.constant 0 : index
    %c0_594 = arith.constant 0 : index
    %1123 = vector.load %arg9[%c1_592, %c0_593, %c0_594] : memref<2x1x64xf32, #tpu.memory_space<vmem>>, vector<1x1x64xf32>
    %1124 = vector.shape_cast %1123 : vector<1x1x64xf32> to vector<1x64xf32>
    %1125 = vector.broadcast %1124 : vector<1x64xf32> to vector<2x64xf32>
    %1126 = arith.addf %1122, %1125 : vector<2x64xf32>
    %cst_595 = arith.constant 0.000000e+00 : f32
    %1127 = vector.broadcast %cst_595 : f32 to vector<2x64xf32>
    %1128 = arith.maximumf %1126, %1127 : vector<2x64xf32>
    %c1_596 = arith.constant 1 : index
    %c0_597 = arith.constant 0 : index
    %c0_598 = arith.constant 0 : index
    %1129 = vector.load %arg10[%c1_596, %c0_597, %c0_598] : memref<2x64x32xf32, #tpu.memory_space<vmem>>, vector<1x64x32xf32>
    %1130 = vector.shape_cast %1129 : vector<1x64x32xf32> to vector<64x32xf32>
    %cst_599 = arith.constant dense<0.000000e+00> : vector<2x32xf32>
    %1131 = tpu.matmul %1128, %1130, %cst_599 {dimension_numbers = #tpu.dot_dimension_numbers<[1], [0], [0], [1], [0, 0, 1, 1], [], []>} : vector<2x64xf32>, vector<64x32xf32>, vector<2x32xf32> -> vector<2x32xf32>
    %c1_600 = arith.constant 1 : index
    %c0_601 = arith.constant 0 : index
    %c0_602 = arith.constant 0 : index
    %1132 = vector.load %arg11[%c1_600, %c0_601, %c0_602] : memref<2x1x32xf32, #tpu.memory_space<vmem>>, vector<1x1x32xf32>
    %1133 = vector.shape_cast %1132 : vector<1x1x32xf32> to vector<1x32xf32>
    %1134 = vector.broadcast %1133 : vector<1x32xf32> to vector<2x32xf32>
    %1135 = arith.addf %1131, %1134 : vector<2x32xf32>
    %1136 = arith.addf %1119, %1135 : vector<2x32xf32>
    %c1_603 = arith.constant 1 : index
    %c0_604 = arith.constant 0 : index
    %c0_605 = arith.constant 0 : index
    %1137 = vector.load %arg14[%c1_603, %c0_604, %c0_605] : memref<2x1x32xf32, #tpu.memory_space<vmem>>, vector<1x1x32xf32>
    %1138 = vector.shape_cast %1137 : vector<1x1x32xf32> to vector<1x32xf32>
    %c1_606 = arith.constant 1 : index
    %c0_607 = arith.constant 0 : index
    %c0_608 = arith.constant 0 : index
    %1139 = vector.load %arg15[%c1_606, %c0_607, %c0_608] : memref<2x1x32xf32, #tpu.memory_space<vmem>>, vector<1x1x32xf32>
    %1140 = vector.shape_cast %1139 : vector<1x1x32xf32> to vector<1x32xf32>
    %cst_609 = arith.constant dense<0.000000e+00> : vector<2xf32>
    %1141 = vector.multi_reduction <add>, %1136, %cst_609 [1] : vector<2x32xf32> to vector<2xf32>
    %1142 = vector.shape_cast %1141 : vector<2xf32> to vector<2x1xf32>
    %cst_610 = arith.constant 3.200000e+01 : f32
    %1143 = vector.broadcast %cst_610 : f32 to vector<2x1xf32>
    %1144 = arith.divf %1142, %1143 : vector<2x1xf32>
    %1145 = vector.broadcast %1144 : vector<2x1xf32> to vector<2x32xf32>
    %1146 = arith.subf %1136, %1145 : vector<2x32xf32>
    %1147 = arith.mulf %1146, %1146 : vector<2x32xf32>
    %cst_611 = arith.constant dense<0.000000e+00> : vector<2xf32>
    %1148 = vector.multi_reduction <add>, %1147, %cst_611 [1] : vector<2x32xf32> to vector<2xf32>
    %1149 = vector.shape_cast %1148 : vector<2xf32> to vector<2x1xf32>
    %cst_612 = arith.constant 3.200000e+01 : f32
    %1150 = vector.broadcast %cst_612 : f32 to vector<2x1xf32>
    %1151 = arith.divf %1149, %1150 : vector<2x1xf32>
    %1152 = vector.broadcast %1144 : vector<2x1xf32> to vector<2x32xf32>
    %1153 = arith.subf %1136, %1152 : vector<2x32xf32>
    %cst_613 = arith.constant 9.99999974E-6 : f32
    %1154 = vector.broadcast %cst_613 : f32 to vector<2x1xf32>
    %1155 = arith.addf %1151, %1154 : vector<2x1xf32>
    %1156 = math.rsqrt %1155 : vector<2x1xf32>
    %1157 = vector.broadcast %1156 : vector<2x1xf32> to vector<2x32xf32>
    %1158 = arith.mulf %1153, %1157 : vector<2x32xf32>
    %1159 = vector.broadcast %1138 : vector<1x32xf32> to vector<2x32xf32>
    %1160 = arith.mulf %1158, %1159 : vector<2x32xf32>
    %1161 = vector.broadcast %1140 : vector<1x32xf32> to vector<2x32xf32>
    %1162 = arith.addf %1160, %1161 : vector<2x32xf32>
    %c4_614 = arith.constant 4 : index
    %c0_615 = arith.constant 0 : index
    %c0_616 = arith.constant 0 : index
    %1163 = vector.load %arg16[%c4_614, %c0_615, %c0_616] : memref<5x32x64xf32, #tpu.memory_space<vmem>>, vector<1x32x64xf32>
    %1164 = vector.shape_cast %1163 : vector<1x32x64xf32> to vector<32x64xf32>
    %cst_617 = arith.constant dense<0.000000e+00> : vector<2x64xf32>
    %1165 = tpu.matmul %1162, %1164, %cst_617 {dimension_numbers = #tpu.dot_dimension_numbers<[1], [0], [0], [1], [0, 0, 1, 1], [], []>} : vector<2x32xf32>, vector<32x64xf32>, vector<2x64xf32> -> vector<2x64xf32>
    %1166 = arith.addf %933, %1165 : vector<2x64xf32>
    %c0_618 = arith.constant 0 : index
    %c0_619 = arith.constant 0 : index
    %1167 = vector.load %arg17[%c0_618, %c0_619] : memref<1x64xf32, #tpu.memory_space<vmem>>, vector<1x64xf32>
    %1168 = vector.broadcast %1167 : vector<1x64xf32> to vector<2x64xf32>
    %1169 = arith.addf %1166, %1168 : vector<2x64xf32>
    %cst_620 = arith.constant 0.000000e+00 : f32
    %1170 = vector.broadcast %cst_620 : f32 to vector<2x64xf32>
    %1171 = arith.maximumf %1169, %1170 : vector<2x64xf32>
    %c0_621 = arith.constant 0 : index
    %c0_622 = arith.constant 0 : index
    %1172 = vector.load %arg18[%c0_621, %c0_622] : memref<64x128xf32, #tpu.memory_space<vmem>>, vector<64x128xf32>
    %cst_623 = arith.constant dense<0.000000e+00> : vector<2x128xf32>
    %1173 = tpu.matmul %1171, %1172, %cst_623 {dimension_numbers = #tpu.dot_dimension_numbers<[1], [0], [0], [1], [0, 0, 1, 1], [], []>} : vector<2x64xf32>, vector<64x128xf32>, vector<2x128xf32> -> vector<2x128xf32>
    %c0_624 = arith.constant 0 : index
    %c0_625 = arith.constant 0 : index
    %1174 = vector.load %arg19[%c0_624, %c0_625] : memref<1x128xf32, #tpu.memory_space<vmem>>, vector<1x128xf32>
    %1175 = vector.broadcast %1174 : vector<1x128xf32> to vector<2x128xf32>
    %1176 = arith.addf %1173, %1175 : vector<2x128xf32>
    %c0_626 = arith.constant 0 : index
    %c0_627 = arith.constant 0 : index
    %1177 = vector.load %arg20[%c0_626, %c0_627] : memref<2x128xf32, #tpu.memory_space<vmem>>, vector<2x128xf32>
    tpu.vector_store %arg20[%c0_626, %c0_627], %1176 {strides = array<i32>} : memref<2x128xf32, #tpu.memory_space<vmem>>, vector<2x128xf32>,
    return
  }
}

</mosaic_0001>

<bundles_post_ra>
// kernel: forward.1
= control target key start
LH: loop header
LB: loop body
LE: loop exit
PB: predicated region body
PF: predicated region fallthrough
CT: control target
= control target key end

     0   :  { %s19624_s0 = inlined_call_operand.vmem [shape: f32[2,5,15], index: 0, kind: input, shape index: {}]   ;;  %s19625_s1 = inlined_call_operand.vmem [shape: f32[5,1,32], index: 1, kind: input, shape index: {}]   ;;  %s19626_s2 = inlined_call_operand.vmem [shape: f32[15,32], index: 2, kind: input, shape index: {}]   ;;  %s19627_s3 = inlined_call_operand.vmem [shape: f32[1,32], index: 3, kind: input, shape index: {}]   ;;  %s19628_s4 = inlined_call_operand.hbm [shape: f32[2,32,96], index: 4, kind: input, shape index: {}]   ;;  %s19629_s5 = inlined_call_operand.vmem [shape: f32[2,1,96], index: 5, kind: input, shape index: {}]   ;;  %s19630_s6 = inlined_call_operand.hbm [shape: f32[2,32,32], index: 6, kind: input, shape index: {}]   ;;  %s19631_s7 = inlined_call_operand.vmem [shape: f32[2,1,32], index: 7, kind: input, shape index: {}]   ;;  %s19632_s8 = inlined_call_operand.hbm [shape: f32[2,32,64], index: 8, kind: input, shape index: {}]   ;;  %s19633_s9 = inlined_call_operand.vmem [shape: f32[2,1,64], index: 9, kind: input, shape index: {}]   ;;  %s19634_s10 = inlined_call_operand.vmem [shape: f32[2,64,32], index: 10, kind: input, shape index: {}]   ;;  %s19635_s11 = inlined_call_operand.vmem [shape: f32[2,1,32], index: 11, kind: input, shape index: {}]   ;;  %s19636_s12 = inlined_call_operand.vmem [shape: f32[2,1,32], index: 12, kind: input, shape index: {}]   ;;  %s19637_s13 = inlined_call_operand.vmem [shape: f32[2,1,32], index: 13, kind: input, shape index: {}]   ;;  %s19638_s14 = inlined_call_operand.vmem [shape: f32[2,1,32], index: 14, kind: input, shape index: {}]   ;;  %s19639_s15 = inlined_call_operand.vmem [shape: f32[2,1,32], index: 15, kind: input, shape index: {}]   ;;  %s19640_s16 = inlined_call_operand.vmem [shape: f32[5,32,64], index: 16, kind: input, shape index: {}]   ;;  %s19641_s17 = inlined_call_operand.vmem [shape: f32[1,64], index: 17, kind: input, shape index: {}]   ;;  %s19642_s18 = inlined_call_operand.hbm [shape: f32[64,128], index: 18, kind: input, shape index: {}]   ;;  %s19643_s19 = inlined_call_operand.hbm [shape: f32[1,128], index: 19, kind: input, shape index: {}]   ;;  %s19644_s20 = inlined_call_operand.hbm [shape: f32[2,128], index: 20, kind: output, shape index: {}]  }
   0x1   :  { %19669 = sst [smem:[#allocation16_spill]] %s19624_s0 }
   0x2   :  { %19670 = sst [smem:[#allocation17_spill]] %s19625_s1 }
   0x3   :  { %19671 = sst [smem:[#allocation18_spill]] %s19626_s2 }
   0x4   :  { %19672 = sst [smem:[#allocation19_spill]] %s19627_s3 }
   0x5   :  { %19673 = sst [smem:[#allocation20_spill]] %s19628_s4 }
   0x6   :  { %19674 = sst [smem:[#allocation21_spill]] %s19640_s16 }
   0x7   :  { %19675 = sst [smem:[#allocation22_spill]] %s19641_s17 }
   0x8   :  { %19676 = sst [smem:[#allocation23_spill]] %s19644_s20 }
   0x9   :  { %25 = vsyncpa [#allocation3], 0 }
   0xa   :  { %26 = vsyncpa [#allocation6], 0 }
   0xb   :  { %27 = vsyncpa [#allocation9], 0 }
   0xc   :  { %28 = vsyncpa [#allocation4], 0  ;;  %s17102_s1 = smov [#allocation5]   ;;  %s17103_s23 = smov [#allocation8]  }
   0xd   :  { %s56_s22 = sshll.u32 %s17102_s1, 4  ;;  %s100_s24 = sshll.u32 %s17103_s23, 4  ;;  %s57_s22 = int_to_ptr.vmem [resolvable:$true] %s56_s22  ;;  %s17228_s24 = int_to_ptr.vmem [resolvable:$true] %s100_s24 }
   0xe   :  { %s16962_s3 = scalar_lea.hbm %s19630_s6, 1024 }
   0xf   :  { %p16963_p0 = scmp.ne.s32.totalorder %s19630_s6, %s16962_s3  ;;  %p16966_p1 = scmp.lt.u32.totalorder %s16962_s3, %s19630_s6 }
  0x11   :  { %p16968_p2 = pnand %p16966_p1, %p16963_p0 }
  0x13   :  { %16971 = shalt.err (!%p16968_p2)
}
  0x14   :  { %s16972_s29 = scalar_lea.vmem %s57_s22, 1024  ;;  %p16977_p4 = scmp.lt.s32.totalorder %s57_s22, %s57_s22 }
  0x15   :  { %p16973_p3 = scmp.ne.s32.totalorder %s57_s22, %s16972_s29  ;;  %p16978_p5 = scmp.lt.s32.totalorder %s16972_s29, %s16972_s29 }
  0x17   :  { %p16979_p6 = por %p16978_p5, %p16977_p4 }
  0x19   :  { %p16980_p7 = pnand %p16979_p6, %p16973_p3 }
  0x1b   :  { %16983 = shalt.err (!%p16980_p7)
}
  0x1c   :  { %s17104_s30 = smov 128   ;;  %s19653_s0 = smov 8  }
  0x1d   :  { %62 = dma.hbm_to_vmem [thread:$0]  %s19630_s6, 1024, %s57_s22, [#allocation6], %s17104_s30, %s17104_s30, %s19653_s0  }
  0x1e   :  { %s16984_s25 = scalar_lea.hbm %s19642_s18, 1024 }
  0x1f   :  { %p16985_p8 = scmp.ne.s32.totalorder %s19642_s18, %s16984_s25  ;;  %p16988_p9 = scmp.lt.u32.totalorder %s16984_s25, %s19642_s18 }
  0x21   :  { %p16990_p10 = pnand %p16988_p9, %p16985_p8 }
  0x23   :  { %16993 = shalt.err (!%p16990_p10)
}
  0x24   :  { %s16994_s4 = scalar_lea.vmem %s17228_s24, 1024  ;;  %p16999_p12 = scmp.lt.s32.totalorder %s17228_s24, %s17228_s24 }
  0x25   :  { %p16995_p11 = scmp.ne.s32.totalorder %s17228_s24, %s16994_s4  ;;  %p17000_p13 = scmp.lt.s32.totalorder %s16994_s4, %s16994_s4 }
  0x27   :  { %p17001_p0 = por %p17000_p13, %p16999_p12 }
  0x29   :  { %p17002_p1 = pnand %p17001_p0, %p16995_p11 }
  0x2b   :  { %17005 = shalt.err (!%p17002_p1)
}
  0x2c   :  { %106 = dma.hbm_to_vmem [thread:$0]  %s19642_s18, 1024, %s17228_s24, [#allocation9], %s17104_s30, %s17104_s30, %s19653_s0  }
  0x2d   :  { %s17106_s29 = smov [#allocation2]   ;;  %s17107_s1 = smov [#allocation7]  }
  0x2e   :  { %s42_s21 = sshll.u32 %s17106_s29, 4  ;;  %s70_s23 = sshll.u32 %s17107_s1, 4  ;;  %s43_s21 = int_to_ptr.vmem [resolvable:$true] %s42_s21  ;;  %s17265_s23 = int_to_ptr.vmem [resolvable:$true] %s70_s23 }
  0x2f   :  { %s19677_s3 = sld [smem:[#allocation20_spill]] }
  0x35   :  { %s17006_s26 = scalar_lea.hbm %s19677_s3, 1024 }
  0x36   :  { %p17007_p2 = scmp.ne.s32.totalorder %s19677_s3, %s17006_s26  ;;  %p17010_p3 = scmp.lt.u32.totalorder %s17006_s26, %s19677_s3 }
  0x38   :  { %p17012_p4 = pnand %p17010_p3, %p17007_p2 }
  0x3a   :  { %17015 = shalt.err (!%p17012_p4)
}
  0x3b   :  { %s17016_s18 = scalar_lea.vmem %s43_s21, 1024  ;;  %p17021_p6 = scmp.lt.s32.totalorder %s43_s21, %s43_s21 }
  0x3c   :  { %p17017_p5 = scmp.ne.s32.totalorder %s43_s21, %s17016_s18  ;;  %p17022_p7 = scmp.lt.s32.totalorder %s17016_s18, %s17016_s18 }
  0x3e   :  { %p17023_p8 = por %p17022_p7, %p17021_p6 }
  0x40   :  { %p17024_p9 = pnand %p17023_p8, %p17017_p5 }
  0x42   :  { %17027 = shalt.err (!%p17024_p9)
}
  0x43   :  { %48 = dma.hbm_to_vmem [thread:$0]  %s19677_s3, 1024, %s43_s21, [#allocation3], %s17104_s30, %s17104_s30, %s19653_s0  }
  0x44   :  { %s17028_s20 = scalar_lea.hbm %s19632_s8, 1024 }
  0x45   :  { %p17029_p10 = scmp.ne.s32.totalorder %s19632_s8, %s17028_s20  ;;  %p17032_p11 = scmp.lt.u32.totalorder %s17028_s20, %s19632_s8 }
  0x47   :  { %p17034_p12 = pnand %p17032_p11, %p17029_p10 }
  0x49   :  { %17037 = shalt.err (!%p17034_p12)
}
  0x4a   :  { %s17038_s27 = scalar_lea.vmem %s17265_s23, 1024  ;;  %p17043_p0 = scmp.lt.s32.totalorder %s17265_s23, %s17265_s23 }
  0x4b   :  { %p17039_p13 = scmp.ne.s32.totalorder %s17265_s23, %s17038_s27  ;;  %p17044_p1 = scmp.lt.s32.totalorder %s17038_s27, %s17038_s27 }
  0x4d   :  { %p17045_p2 = por %p17044_p1, %p17043_p0 }
  0x4f   :  { %p17046_p3 = pnand %p17045_p2, %p17039_p13 }
  0x51   :  { %17049 = shalt.err (!%p17046_p3)
}
  0x52   :  { %76 = dma.hbm_to_vmem [thread:$0]  %s19632_s8, 1024, %s17265_s23, [#allocation6], %s17104_s30, %s17104_s30, %s19653_s0  }
  0x53   :  { %s17108_s28 = smov [#allocation10]   ;;  %s17050_s6 = scalar_lea.hbm %s19643_s19, 16 }
  0x54   :  { %s113_s4 = sshll.u32 %s17108_s28, 4  ;;  %p17051_p4 = scmp.ne.s32.totalorder %s19643_s19, %s17050_s6  ;;  %s114_s4 = int_to_ptr.vmem [resolvable:$true] %s113_s4 }
  0x55   :  { %p17054_p5 = scmp.lt.u32.totalorder %s17050_s6, %s19643_s19 }
  0x57   :  { %p17056_p6 = pnand %p17054_p5, %p17051_p4 }
  0x59   :  { %17059 = shalt.err (!%p17056_p6)
}
  0x5a   :  { %s17060_s2 = scalar_lea.vmem %s114_s4, 16  ;;  %s17064_s8 = scalar_lea.vmem %s114_s4, 32 }
  0x5b   :  { %p17061_p7 = scmp.ne.s32.totalorder %s114_s4, %s17060_s2  ;;  %p17065_p8 = scmp.lt.s32.totalorder %s114_s4, %s114_s4 }
  0x5c   :  { %p17066_p9 = scmp.lt.s32.totalorder %s17064_s8, %s17060_s2 }
  0x5e   :  { %p17067_p10 = por %p17066_p9, %p17065_p8 }
  0x60   :  { %p17068_p11 = pnand %p17067_p10, %p17061_p7 }
  0x62   :  { %17071 = shalt.err (!%p17068_p11)
}
  0x63   :  { %116 = dma.hbm_to_vmem [thread:$0]  %s19643_s19, 16, %s114_s4, [#allocation9]  }
  0x64   :  { %17094 = dma.done.wait [#allocation3], 1024  }
  0x65   :  { %17095 = vsyncadd [#allocation3], 4294966272 }
  0x66   :  { %17096 = dma.done.wait [#allocation6], 2048  }
  0x67   :  { %17097 = vsyncadd [#allocation6], 4294965248 }
  0x68   :  { %17098 = dma.done.wait [#allocation9], 1040  }
  0x69   :  { %17099 = vsyncadd [#allocation9], 4294966256  ;;  %v17109_v0 = vmov 0.0|0.0   ;;  %vm17110_vm0 = vmmov 0   ;;  %v17111_v1 = vmov 0.0   ;;  %vm151_vm1 = vcmask 1046528  }
  0x6a   :  { %16371 = vmatprep.subr.bf16.mxu1 %v17109_v0  ;;  %15346 = vmatprep.mubr.msk.f32.mxu1 %vm17110_vm0, %v17111_v1  ;;  %vm17112_vm2 = vmmov 1   ;;  %s19680_s26 = sld [smem:[#allocation18_spill]]  ;;  %s19681_s4 = sld [smem:[#allocation16_spill]]  ;;  %vm146_vm4 = vcmask 1041409   ;;  %v233_v8 = vld [vmem:[#allocation2] sm:$0xff]  ;;  %v234_v9 = vld [vmem:[#allocation2 + $0x8] sm:$0xff]  ;;  %v332_v31 = vlaneseq }
  0x6b   :  { %15360 = vmatprep.subr.mxu0 %v17111_v1  ;;  %15362 = vmatprep.mubr.msk.f32.mxu0 %vm17110_vm0, %v17111_v1  ;;  %vm17320_vm3 = vmpackc.low %vm151_vm1, %vm17112_vm2  ;;  %vm148_vm5 = vcmask 121856   ;;  %v16376_v11 = vpack.c.bf16 %v234_v9, %v233_v8  ;;  %v235_v13 = vld [vmem:[#allocation2 + $0x10] sm:$0xff]  ;;  %v236_v14 = vld [vmem:[#allocation2 + $0x18] sm:$0xff]  ;;  %s19682_s29 = sld [smem:[#allocation19_spill]]  ;;  %s19683_s2 = sld [smem:[#allocation17_spill]]  ;;  %vm244_vm6 = vcmask 261120  }
  0x6c   :  { %v16379_v15 = vpack.c.bf16 %v236_v14, %v235_v13  ;;  %v14489_v22 = vld [vmem:[%s19629_s5] ss:$0 sm:$0xff]  ;;  %s19661_s23 = smov 104   ;;  %s19663_s19 = smov 120   ;;  %v17117_v29 = vmov 1983009808  }
  0x6d   :  { %s19659_s25 = smov 96   ;;  %s19665_s27 = smov 112   ;;  %v330_v30 = vunpack.c.l.s4 %v17117_v29  ;;  %v333_v33 = vshrl.u32 %v332_v31, 7  ;;  %v17118_v34 = vmov 1934713408   ;;  %vm523_vm7 = vcmask 64512  }
  0x6e   :  { %v346_v35 = vunpack.c.l.s4 %v17118_v34  ;;  %vm832_vm8 = vcmask 9216   ;;  %s19657_s21 = smov 64   ;;  %vm881_vm9 = vcmask 1041408   ;;  %vm877_vm10 = vcmask 15360   ;;  %s19655_s3 = smov 16   ;;  %v11625_v2 = vld [vmem:[#allocation2 + $0x10] sm:$0xff] }
  0x6f   :  { %v331_v32 = vunpack.c.0.s8 %v330_v30  ;;  %s19651_s28 = smov 24   ;;  %vm1253_vm11 = vcmask 130048   ;;  %vm1255_vm12 = vcmask 195584   ;;  %vm1344_vm13 = vcmask 254976   ;;  %s19684_s1 = smov 24  }
  0x70   :  { %v134_v3 = vld [vmem:[%s19680_s26] sm:$0xff]  ;;  %v135_v4 = vld [vmem:[%s19680_s26 + $0x8] sm:$0x7f]  ;;  %v347_v39 = vunpack.c.0.s8 %v346_v35  ;;  %vm1473_vm14 = vcmask 523264   ;;  %s19685_s20 = smov 16   ;;  %s19686_s8 = smov 8  }
  0x71   :  { %v132_v5 = vld [vmem:[%s19681_s4] sm:$0x1f]  ;;  %v16372_v6 = vpack.c.bf16 %v135_v4, %v134_v3  ;;  %v133_v7 = vld [vmem:[%s19681_s4 + $0x8] sm:$0x1f]  ;;  %v17384_v37 = vsub.s32 %v331_v32, %v333_v33  ;;  %s19687_s22 = smov 64   ;;  %s19688_s6 = smov 96  }
  0x72   :  { %v145_v10 = vrot.slane %v133_v7, 7  ;;  %v14485_v16 = vld [vmem:[%s19682_s29] ss:$0 sm:$0xff]  ;;  %v17390_v44 = vsub.s32 %v347_v39, %v333_v33  ;;  %s19689_s18 = smov 104   ;;  %s19693_s30 = sld [smem:[#allocation22_spill]] }
  0x73   :  { %16374 = vmatpush3.bf16.msk.msra.mxu1 %vm17320_vm3, %v16372_v6  ;;  %v14488_v18 = vld [vmem:[%s19683_s2] ss:$0 sm:$0xff] }
  0x74   :  { %v147_v12 = vsel %vm146_vm4, %v145_v10, %v132_v5  ;;  %16375 = vmatprep.subr.bf16.mxu1 %v17109_v0 }
  0x76   :  { %15347 = vmatmul.mubr.msk.f32.vlgmr.msra.gmra.mrb[0].mxu1 %vm148_vm5, %v147_v12 }
  0x77   :  { %16377 = vmatpush3.bf16.msra.mxu1 %v16376_v11  ;;  %15357 = vmatprep.mubr.msk.f32.mxu1 %vm17110_vm0, %v17111_v1 }
  0x78   :  { %16378 = vmatprep.subr.bf16.mxu1 %v17109_v0 }
  0x7b   :  { %16380 = vmatpush3.bf16.msra.mxu1 %v16379_v15 }
  0x7c   :  { %15370 = vmatprep.subr.mxu1 %v17111_v1 }
 0x149   :  { %v221_v17 = vpop.f32.mrb[0].mxu1 }
 0x14a   :  { %v222_v19 = vadd.f32 %v14485_v16, %v221_v17  ;;  %v15348_v20 = vpop.f32.mrb[1].mxu1 }
 0x14c   :  { %v17351_v21 = vadd.f32 %v14488_v18, %v222_v19 }
 0x14e   :  { %15358 = vmatmul.mubr.msk.f32.vlgmr.msra.gmra.mrb[2].mxu1 %vm244_vm6, %v17351_v21 }
 0x14f   :  { %15372 = vmatprep.mubr.msk.f32.mxu1 %vm17110_vm0, %v17111_v1 }
 0x221   :  { %v314_v23 = vpop.f32.mrb[2].mxu1 }
 0x222   :  { %v17360_v24 = vadd.f32 %v14489_v22, %v314_v23  ;;  %v15359_v25 = vpop.f32.mrb[3].mxu1 }
 0x224   :  { %325 = vrot.lane.b32.xlu1 %v17360_v24, %s19661_s23  ;;  %319 = vrot.lane.b32.xlu0 %v17360_v24, %s19663_s19 }
 0x228   :  { %385 = vrot.lane.b32.xlu1 %v17360_v24, %s19659_s25  ;;  %322 = vrot.lane.b32.xlu0 %v17360_v24, %s19665_s27 }
 0x296   :  { %v17370_v26 = vpop.permute.xlu0 %319  ;;  %v17374_v27 = vpop.permute.xlu1 %325 }
 0x297   :  { %387 = vrot.lane.b32.xlu0 %v17370_v26, %s19659_s25  ;;  %v336_v38 = vcombine.low %v17370_v26, %v17374_v27 }
 0x299   :  { %v343_v41 = vrot.slane %v336_v38, %v17384_v37 }
 0x29a   :  { %v17376_v28 = vpop.permute.xlu0 %322  ;;  %v386_v42 = vpop.permute.xlu1 %385 }
 0x29b   :  { %391 = vrot.lane.b32.xlu0 %v17374_v27, %s19659_s25  ;;  %389 = vrot.lane.b32.xlu1 %v17376_v28, %s19659_s25  ;;  %v328_v36 = vcombine.low %v17360_v24, %v17376_v28 }
 0x29d   :  { %v335_v40 = vrot.slane %v328_v36, %v17384_v37 }
 0x29f   :  { %v344_v45 = vcombine.low %v335_v40, %v343_v41 }
 0x2a1   :  { %v351_v50 = vrot.slane %v344_v45, %v17390_v44 }
 0x2a3   :  { %v359_v54 = vcombine.high %v351_v50, %v17111_v1  ;;  %v358_v60 = vrot.slane %v351_v50, %v17384_v37 }
 0x2a5   :  { %v366_v57 = vrot.slane %v359_v54, %v17384_v37 }
 0x2a7   :  { %v367_v63 = vcombine.low %v358_v60, %v366_v57  ;;  %v368_v3 = vcombine.high %v358_v60, %v366_v57 }
 0x2a9   :  { %v375_v6 = vrot.slane %v367_v63, %v17390_v44  ;;  %v382_v7 = vrot.slane %v368_v3, %v17390_v44 }
 0x2ab   :  { %v383_v9 = vcombine.high %v375_v6, %v17111_v1  ;;  %v384_v11 = vcombine.high %v382_v7, %v17111_v1 }
 0x309   :  { %v388_v43 = vpop.permute.xlu0 %387 }
 0x30d   :  { %v390_v46 = vpop.permute.xlu1 %389  ;;  %v392_v47 = vpop.permute.xlu0 %391 }
 0x30e   :  { %v397_v48 = vcombine.low %v386_v42, %v390_v46  ;;  %v405_v49 = vcombine.low %v388_v43, %v392_v47 }
 0x310   :  { %v404_v51 = vrot.slane %v397_v48, %v17384_v37  ;;  %v412_v52 = vrot.slane %v405_v49, %v17384_v37 }
 0x312   :  { %v413_v53 = vcombine.low %v404_v51, %v412_v52 }
 0x314   :  { %v420_v55 = vrot.slane %v413_v53, %v17390_v44 }
 0x316   :  { %v428_v56 = vcombine.high %v420_v55, %v17111_v1  ;;  %v427_v58 = vrot.slane %v420_v55, %v17384_v37 }
 0x318   :  { %v435_v59 = vrot.slane %v428_v56, %v17384_v37 }
 0x31a   :  { %v436_v61 = vcombine.low %v427_v58, %v435_v59  ;;  %v437_v62 = vcombine.high %v427_v58, %v435_v59 }
 0x31c   :  { %v444_v4 = vrot.slane %v436_v61, %v17390_v44  ;;  %v451_v5 = vrot.slane %v437_v62, %v17390_v44 }
 0x31e   :  { %15361 = vmatpush3.xpose.msk.msra.mxu0 %vm523_vm7, %v444_v4  ;;  %15371 = vmatpush3.xpose.msk.msra.mxu1 %vm523_vm7, %v451_v5  ;;  %v452_v8 = vcombine.high %v444_v4, %v17111_v1  ;;  %v453_v10 = vcombine.high %v451_v5, %v17111_v1 }
 0x31f   :  { %15365 = vmatprep.subr.mxu0 %v17111_v1  ;;  %15380 = vmatprep.subr.mxu1 %v17111_v1 }
 0x321   :  { %15363 = vmatmul.mubr.msk.f32.vlgmr.msra.gmra.mrb[0].mxu0 %vm523_vm7, %v375_v6  ;;  %15373 = vmatmul.mubr.msk.f32.vlgmr.msra.gmra.mrb[4].mxu1 %vm523_vm7, %v382_v7 }
 0x322   :  { %15366 = vmatpush3.xpose.msk.msra.mxu0 %vm523_vm7, %v452_v8  ;;  %15367 = vmatprep.mubr.msk.f32.mxu0 %vm17110_vm0, %v17111_v1 }
 0x323   :  { %15375 = vmatprep.subr.mxu0 %v17111_v1  ;;  %15382 = vmatprep.mubr.msk.f32.mxu1 %vm17110_vm0, %v17111_v1 }
 0x325   :  { %15368 = vmatmul.mubr.msk.f32.vlgmr.msra.gmra.mrb[2].mxu0 %vm523_vm7, %v383_v9 }
 0x326   :  { %15376 = vmatpush3.xpose.msk.msra.mxu0 %vm523_vm7, %v453_v10  ;;  %15377 = vmatprep.mubr.msk.f32.mxu0 %vm17110_vm0, %v17111_v1 }
 0x327   :  { %15385 = vmatprep.subr.mxu0 %v17111_v1 }
 0x329   :  { %15378 = vmatmul.mubr.msk.f32.vlgmr.msra.gmra.mrb[4].mxu0 %vm523_vm7, %v384_v11 }
 0x32a   :  { %15387 = vmatprep.mubr.msk.f32.mxu0 %vm17110_vm0, %v17111_v1 }
 0x3f4   :  { %v596_v12 = vpop.f32.mrb[0].mxu0  ;;  %v748_v13 = vpop.f32.mrb[4].mxu1 }
 0x3f5   :  { %v828_v14 = vmul.f32 0.35355338, %v596_v12  ;;  %v15364_v15 = vpop.f32.mrb[1].mxu0  ;;  %v15374_v16 = vpop.f32.mrb[5].mxu1  ;;  %v830_v22 = vmul.f32 0.35355338, %v748_v13 }
 0x3f7   :  { %v833_v17 = vsel %vm832_vm8, %v828_v14, -inf  ;;  %v839_v32 = vsel %vm832_vm8, %v830_v22, -inf }
 0x3f8   :  { %834 = vmax.xlane.f32.xlu1 %v833_v17  ;;  %v672_v18 = vpop.f32.mrb[2].mxu0 }
 0x3f9   :  { %v829_v19 = vmul.f32 0.35355338, %v672_v18  ;;  %v15369_v20 = vpop.f32.mrb[3].mxu0 }
 0x3fb   :  { %v836_v23 = vsel %vm832_vm8, %v829_v19, -inf }
 0x3fc   :  { %837 = vmax.xlane.f32.xlu0 %v836_v23  ;;  %v824_v25 = vpop.f32.mrb[4].mxu0 }
 0x3fd   :  { %v831_v29 = vmul.f32 0.35355338, %v824_v25  ;;  %v15379_v30 = vpop.f32.mrb[5].mxu0 }
 0x3ff   :  { %v842_v31 = vsel %vm832_vm8, %v831_v29, -inf }
 0x400   :  { %843 = vmax.xlane.f32.xlu1 %v842_v31  ;;  %840 = vmax.xlane.f32.xlu0 %v839_v32 }
 0x411   :  { %456 = vrot.lane.b32.xlu1 %v17370_v26, %s19657_s21 }
 0x416   :  { %454 = vrot.lane.b32.xlu0 %v17360_v24, %s19657_s21 }
 0x485   :  { %v835_v33 = vpop.xlane.xlu1 %834 }
 0x486   :  { %v845_v34 = vsub.f32 %v828_v14, %v835_v33 }
 0x488   :  { %v849_v35 = vmul.f32 1.442695, %v845_v34 }
 0x489   :  { %v838_v36 = vpop.xlane.xlu0 %837 }
 0x48a   :  { %16754 = vpow2.f32 %v849_v35  ;;  %v846_v38 = vsub.f32 %v829_v19, %v838_v36  ;;  %v1257_v36 = vld [vmem:[#allocation5] sm:$0xff] }
 0x48c   :  { %v851_v39 = vmul.f32 1.442695, %v846_v38  ;;  %v1258_v38 = vld [vmem:[#allocation5 + $0x8] sm:$0xff] }
 0x48d   :  { %v844_v40 = vpop.xlane.xlu1 %843  ;;  %v841_v41 = vpop.xlane.xlu0 %840 }
 0x48e   :  { %16756 = vpow2.f32 %v851_v39  ;;  %v848_v42 = vsub.f32 %v831_v29, %v844_v40  ;;  %v847_v43 = vsub.f32 %v830_v22, %v841_v41  ;;  %v16382_v39 = vpack.c.bf16 %v1258_v38, %v1257_v36  ;;  %v1464_v38 = vld [vmem:[%s19634_s10 + $0x30] sm:$0xff] }
 0x490   :  { %v855_v45 = vmul.f32 1.442695, %v848_v42  ;;  %v853_v46 = vmul.f32 1.442695, %v847_v43  ;;  %v1259_v43 = vld [vmem:[#allocation5 + $0x10] sm:$0xff] }
 0x491   :  { %v457_v53 = vpop.permute.xlu1 %456  ;;  %v455_v54 = vpop.permute.xlu0 %454 }
 0x492   :  { %16758 = vpow2.f32 %v855_v45  ;;  %v1260_v45 = vld [vmem:[#allocation5 + $0x18] sm:$0xff] }
 0x493   :  { %16760 = vpow2.f32 %v853_v46  ;;  %v16385_v46 = vpack.c.bf16 %v1260_v45, %v1259_v43 }
 0x494   :  { %v16755_v26 = vpop.eup %16754 }
 0x495   :  { %v857_v47 = vsel %vm832_vm8, %v16755_v26, 0.0 }
 0x496   :  { %858 = vadd.xlane.f32.xlu0 %v857_v47 }
 0x498   :  { %v16757_v24 = vpop.eup %16756 }
 0x499   :  { %v860_v48 = vsel %vm832_vm8, %v16757_v24, 0.0 }
 0x49a   :  { %861 = vadd.xlane.f32.xlu1 %v860_v48 }
 0x49c   :  { %v16759_v49 = vpop.eup %16758 }
 0x49d   :  { %v16761_v50 = vpop.eup %16760  ;;  %v866_v51 = vsel %vm832_vm8, %v16759_v49, 0.0 }
 0x49e   :  { %867 = vadd.xlane.f32.xlu1 %v866_v51  ;;  %v863_v52 = vsel %vm832_vm8, %v16761_v50, 0.0 }
 0x49f   :  { %864 = vadd.xlane.f32.xlu0 %v863_v52 }
 0x4af   :  { %458 = vrot.lane.b32.xlu1 %v17376_v28, %s19657_s21 }
 0x4b5   :  { %460 = vrot.lane.b32.xlu0 %v17374_v27, %s19657_s21 }
 0x523   :  { %v859_v56 = vpop.xlane.xlu0 %858 }
 0x524   :  { %16762 = vrcp.f32 %v859_v56 }
 0x527   :  { %v862_v55 = vpop.xlane.xlu1 %861 }
 0x528   :  { %16764 = vrcp.f32 %v862_v55 }
 0x52b   :  { %v868_v57 = vpop.xlane.xlu1 %867 }
 0x52c   :  { %v865_v58 = vpop.xlane.xlu0 %864 }
 0x52d   :  { %16766 = vrcp.f32 %v865_v58 }
 0x52e   :  { %16768 = vrcp.f32 %v868_v57  ;;  %v16763_v7 = vpop.eup %16762 }
 0x52f   :  { %v459_v59 = vpop.permute.xlu1 %458  ;;  %v873_v13 = vmul.f32 %v16763_v7, %v16755_v26 }
 0x530   :  { %v466_v60 = vcombine.low %v455_v54, %v459_v59  ;;  %v461_v61 = vpop.permute.xlu0 %460 }
 0x531   :  { %v474_v62 = vcombine.low %v457_v53, %v461_v61  ;;  %v14507_v61 = vld [vmem:[%s19631_s7] ss:$0 sm:$0xff] }
 0x532   :  { %v473_v63 = vrot.slane %v466_v60, %v17384_v37  ;;  %v16765_v10 = vpop.eup %16764 }
 0x533   :  { %v481_v3 = vrot.slane %v474_v62, %v17384_v37  ;;  %v874_v16 = vmul.f32 %v16765_v10, %v16757_v24  ;;  %v1374_v10 = vld [vmem:[#allocation7 + $0x8] sm:$0xff] }
 0x535   :  { %v482_v28 = vcombine.low %v473_v63, %v481_v3 }
 0x537   :  { %v489_v27 = vrot.slane %v482_v28, %v17390_v44  ;;  %v16767_v14 = vpop.eup %16766 }
 0x538   :  { %v16769_v17 = vpop.eup %16768  ;;  %v875_v19 = vmul.f32 %v16767_v14, %v16761_v50 }
 0x539   :  { %v497_v4 = vcombine.high %v489_v27, %v17111_v1  ;;  %v496_v5 = vrot.slane %v489_v27, %v17384_v37  ;;  %v876_v20 = vmul.f32 %v16769_v17, %v16759_v49 }
 0x53b   :  { %v504_v6 = vrot.slane %v497_v4, %v17384_v37 }
 0x53d   :  { %v505_v8 = vcombine.low %v496_v5, %v504_v6  ;;  %v506_v9 = vcombine.high %v496_v5, %v504_v6 }
 0x53f   :  { %v513_v11 = vrot.slane %v505_v8, %v17390_v44  ;;  %v520_v12 = vrot.slane %v506_v9, %v17390_v44  ;;  %v1373_v9 = vld [vmem:[#allocation7] sm:$0xff] }
 0x541   :  { %15381 = vmatpush3.msk.msra.mxu1 %vm881_vm9, %v513_v11  ;;  %v521_v15 = vcombine.high %v513_v11, %v17111_v1  ;;  %v522_v18 = vcombine.high %v520_v12, %v17111_v1  ;;  %v16388_v11 = vpack.c.bf16 %v1374_v10, %v1373_v9 }
 0x542   :  { %15383 = vmatmul.mubr.msk.f32.vlgmr.msra.gmra.mrb[6].mxu1 %vm877_vm10, %v873_v13  ;;  %15390 = vmatprep.subr.mxu1 %v17111_v1  ;;  %v1376_v13 = vld [vmem:[#allocation7 + $0x18] sm:$0xff] }
 0x543   :  { %15386 = vmatpush3.msk.msra.mxu0 %vm881_vm9, %v521_v15  ;;  %15391 = vmatpush3.msk.msra.mxu1 %vm881_vm9, %v520_v12  ;;  %v1375_v12 = vld [vmem:[#allocation7 + $0x10] sm:$0xff]  ;;  %v1459_v15 = vld [vmem:[%s19634_s10 + $0x8] sm:$0xff] }
 0x544   :  { %15388 = vmatmul.mubr.msk.f32.vlgmr.msra.gmra.mrb[6].mxu0 %vm877_vm10, %v874_v16  ;;  %15395 = vmatprep.subr.mxu0 %v17111_v1  ;;  %v16391_v14 = vpack.c.bf16 %v1376_v13, %v1375_v12  ;;  %v1460_v16 = vld [vmem:[%s19634_s10 + $0x10] sm:$0xff] }
 0x545   :  { %15392 = vmatprep.mubr.msk.f32.mxu1 %vm17110_vm0, %v17111_v1  ;;  %15396 = vmatpush3.msk.msra.mxu0 %vm881_vm9, %v522_v18  ;;  %v1461_v18 = vld [vmem:[%s19634_s10 + $0x18] sm:$0xff] }
 0x546   :  { %15393 = vmatmul.mubr.msk.f32.vlgmr.msra.gmra.mrb[8].mxu1 %vm877_vm10, %v875_v19  ;;  %15397 = vmatprep.mubr.msk.f32.mxu0 %vm17110_vm0, %v17111_v1  ;;  %v16397_v19 = vpack.c.bf16 %v1461_v18, %v1460_v16 }
 0x547   :  { %16381 = vmatprep.subr.bf16.mxu1 %v17109_v0  ;;  %15408 = vmatprep.mubr.msk.f32.mxu1 %vm17110_vm0, %v17111_v1 }
 0x548   :  { %15398 = vmatmul.mubr.msk.f32.vlgmr.msra.gmra.mrb[8].mxu0 %vm877_vm10, %v876_v20  ;;  %16387 = vmatprep.subr.bf16.mxu0 %v17109_v0  ;;  %v1462_v20 = vld [vmem:[%s19634_s10 + $0x20] sm:$0xff] }
 0x549   :  { %15419 = vmatprep.mubr.msk.f32.mxu0 %vm17110_vm0, %v17111_v1  ;;  %16383 = vmatpush3.bf16.msra.mxu1 %v16382_v39  ;;  %v1465_v39 = vld [vmem:[%s19634_s10 + $0x38] sm:$0xff] }
 0x54a   :  { %16384 = vmatprep.subr.bf16.mxu1 %v17109_v0  ;;  %16389 = vmatpush3.bf16.msra.mxu0 %v16388_v11 }
 0x54b   :  { %16390 = vmatprep.subr.bf16.mxu0 %v17109_v0 }
 0x54d   :  { %16386 = vmatpush3.bf16.msra.mxu1 %v16385_v46 }
 0x54e   :  { %16393 = vmatprep.subr.bf16.mxu1 %v17109_v0  ;;  %16392 = vmatpush3.bf16.msra.mxu0 %v16391_v14 }
 0x54f   :  { %16405 = vmatprep.subr.bf16.mxu0 %v17109_v0 }
 0x615   :  { %v951_v22 = vpop.f32.mrb[6].mxu1 }
 0x616   :  { %v15384_v23 = vpop.f32.mrb[7].mxu1 }
 0x617   :  { %v1027_v25 = vpop.f32.mrb[6].mxu0 }
 0x618   :  { %v15389_v29 = vpop.f32.mrb[7].mxu0 }
 0x619   :  { %v1103_v30 = vpop.f32.mrb[8].mxu1 }
 0x61a   :  { %v1183_v31 = vcombine.low %v951_v22, %v1103_v30  ;;  %v15394_v32 = vpop.f32.mrb[9].mxu1  ;;  %v1463_v22 = vld [vmem:[%s19634_s10 + $0x28] sm:$0xff] }
 0x61b   :  { %v1179_v33 = vpop.f32.mrb[8].mxu0  ;;  %v16400_v23 = vpack.c.bf16 %v1463_v22, %v1462_v20  ;;  %v14509_v32 = vld [vmem:[%s19636_s12] ss:$0 sm:$0xff] }
 0x61c   :  { %v1191_v34 = vcombine.low %v1027_v25, %v1179_v33  ;;  %v15399_v35 = vpop.f32.mrb[9].mxu0  ;;  %v1190_v40 = vrot.slane %v1183_v31, %v17384_v37 }
 0x61e   :  { %v1198_v41 = vrot.slane %v1191_v34, %v17384_v37  ;;  %v14510_v34 = vld [vmem:[%s19637_s13] ss:$0 sm:$0xff] }
 0x620   :  { %v1199_v42 = vcombine.low %v1190_v40, %v1198_v41  ;;  %v16403_v40 = vpack.c.bf16 %v1465_v39, %v1464_v38  ;;  %v14511_v41 = vld [vmem:[%s19633_s9] ss:$0 sm:$0xff] }
 0x622   :  { %v1206_v26 = vrot.slane %v1199_v42, %v17390_v44 }
 0x624   :  { %v1214_v47 = vcombine.high %v1206_v26, %v17111_v1  ;;  %v1213_v24 = vrot.slane %v1206_v26, %v17384_v37  ;;  %v14513_v26 = vld [vmem:[%s19635_s11] ss:$0 sm:$0xff] }
 0x626   :  { %v1221_v48 = vrot.slane %v1214_v47, %v17384_v37 }
 0x628   :  { %v1223_v49 = vcombine.high %v1213_v24, %v1221_v48  ;;  %v1222_v50 = vcombine.low %v1213_v24, %v1221_v48 }
 0x62a   :  { %v1237_v51 = vrot.slane %v1223_v49, %v17390_v44  ;;  %v1230_v52 = vrot.slane %v1222_v50, %v17390_v44 }
 0x62c   :  { %1245 = vrot.lane.b32.xlu0 %v1237_v51, %s19655_s3  ;;  %v1238_v53 = vcombine.high %v1230_v52, %v17111_v1  ;;  %v1239_v54 = vcombine.high %v1237_v51, %v17111_v1 }
 0x62e   :  { %1241 = vrot.lane.b32.xlu1 %v1238_v53, %s19653_s0 }
 0x632   :  { %1249 = vrot.lane.b32.xlu1 %v1239_v54, %s19651_s28  ;;  %s19691_s28 = smov 120  }
 0x69e   :  { %v1246_v57 = vpop.permute.xlu0 %1245 }
 0x6a0   :  { %v1242_v55 = vpop.permute.xlu1 %1241 }
 0x6a1   :  { %v1252_v56 = vsel %vm523_vm7, %v1230_v52, %v1242_v55 }
 0x6a2   :  { %v1254_v58 = vsel %vm1253_vm11, %v1252_v56, %v1246_v57  ;;  %v1578_v56 = vld [vmem:[#allocation2 + $0x20] sm:$0xff]  ;;  %v1579_v57 = vld [vmem:[#allocation2 + $0x28] sm:$0xff] }
 0x6a4   :  { %v1250_v59 = vpop.permute.xlu1 %1249 }
 0x6a5   :  { %v1256_v60 = vsel %vm1255_vm12, %v1254_v58, %v1250_v59  ;;  %v16406_v58 = vpack.c.bf16 %v1579_v57, %v1578_v56  ;;  %v1580_v59 = vld [vmem:[#allocation2 + $0x30] sm:$0xff] }
 0x6a6   :  { %15409 = vmatmul.mubr.msk.f32.vlgmr.msra.gmra.mrb[10].mxu1 %vm244_vm6, %v1256_v60  ;;  %v1581_v60 = vld [vmem:[#allocation2 + $0x38] sm:$0xff] }
 0x6a7   :  { %15438 = vmatprep.mubr.msk.f32.mxu1 %vm17110_vm0, %v17111_v1 }
 0x779   :  { %v1337_v62 = vpop.f32.mrb[10].mxu1 }
 0x77a   :  { %v1338_v63 = vadd.f32 %v14507_v61, %v1337_v62  ;;  %v15410_v3 = vpop.f32.mrb[11].mxu1  ;;  %v16409_v61 = vpack.c.bf16 %v1581_v60, %v1580_v59 }
 0x77c   :  { %v1341_v28 = vadd.f32 %v1338_v63, %v17351_v21  ;;  %v1458_v21 = vld [vmem:[%s19634_s10] sm:$0xff] }
 0x77d   :  { %v16394_v17 = vpack.c.bf16 %v1459_v15, %v1458_v21 }
 0x77e   :  { %v1345_v27 = vsel %vm1344_vm13, %v1341_v28, 0.0 }
 0x77f   :  { %1346 = vadd.xlane.f32.xlu0 %v1345_v27  ;;  %16395 = vmatpush3.bf16.msra.mxu1 %v16394_v17  ;;  %v14515_v27 = vld [vmem:[%s19638_s14] ss:$0 sm:$0xff] }
 0x780   :  { %16396 = vmatprep.subr.bf16.mxu1 %v17109_v0 }
 0x783   :  { %16398 = vmatpush3.bf16.msra.mxu1 %v16397_v19 }
 0x784   :  { %16399 = vmatprep.subr.bf16.mxu1 %v17109_v0 }
 0x787   :  { %16401 = vmatpush3.bf16.msra.mxu1 %v16400_v23 }
 0x788   :  { %16402 = vmatprep.subr.bf16.mxu1 %v17109_v0 }
 0x78b   :  { %16404 = vmatpush3.bf16.msra.mxu1 %v16403_v40 }
 0x78c   :  { %15462 = vmatprep.subr.mxu1 %v17111_v1 }
 0x80c   :  { %v1347_v4 = vpop.xlane.xlu0 %1346 }
 0x80d   :  { %v1349_v5 = vmul.f32 0.03125, %v1347_v4 }
 0x80f   :  { %v1350_v6 = vsub.f32 %v1341_v28, %v1349_v5  ;;  %v14516_v5 = vld [vmem:[%s19639_s15] ss:$0 sm:$0xff] }
 0x811   :  { %v1351_v7 = vmul.f32 %v1350_v6, %v1350_v6 }
 0x813   :  { %v1352_v8 = vsel %vm1344_vm13, %v1351_v7, 0.0 }
 0x814   :  { %1353 = vadd.xlane.f32.xlu1 %v1352_v8  ;;  %v14518_v8 = vld [vmem:[%s19629_s5 + $0x1] ss:$0 sm:$0xff] }
 0x8a1   :  { %v1354_v25 = vpop.xlane.xlu1 %1353 }
 0x8a2   :  { %v1355_v29 = vmul.f32 0.03125, %v1354_v25 }
 0x8a4   :  { %v1356_v30 = vadd.f32 1e-05, %v1355_v29 }
 0x8a6   :  { %16770 = vrsqrt.f32 %v1356_v30 }
 0x8b0   :  { %v16771_v31 = vpop.eup %16770 }
 0x8b1   :  { %v1358_v33 = vmul.f32 %v16771_v31, %v1350_v6 }
 0x8b3   :  { %v1365_v35 = vmul.f32 %v14509_v32, %v1358_v33 }
 0x8b5   :  { %v1372_v36 = vadd.f32 %v14510_v34, %v1365_v35 }
 0x8b7   :  { %15420 = vmatmul.mubr.msk.f32.vlgmr.msra.gmra.mrb[10].mxu0 %vm244_vm6, %v1372_v36 }
 0x8b8   :  { %15449 = vmatprep.mubr.msk.f32.mxu0 %vm17110_vm0, %v17111_v1  ;;  %16407 = vmatpush3.bf16.msra.mxu0 %v16406_v58 }
 0x8b9   :  { %16408 = vmatprep.subr.bf16.mxu0 %v17109_v0 }
 0x8bc   :  { %16410 = vmatpush3.bf16.msra.mxu0 %v16409_v61 }
 0x8bd   :  { %15452 = vmatprep.subr.mxu0 %v17111_v1 }
 0x98a   :  { %v1453_v42 = vpop.f32.mrb[10].mxu0 }
 0x98b   :  { %v1454_v43 = vadd.f32 %v14511_v41, %v1453_v42  ;;  %v15421_v45 = vpop.f32.mrb[11].mxu0 }
 0x98d   :  { %v1457_v46 = vmax.f32 %v1454_v43, 0.0 }
 0x98f   :  { %15439 = vmatmul.mubr.msk.f32.vlgmr.msra.gmra.mrb[12].mxu1 %vm1473_vm14, %v1457_v46 }
 0x990   :  { %15464 = vmatprep.mubr.msk.f32.mxu1 %vm17110_vm0, %v17111_v1 }
 0xa62   :  { %v1543_v47 = vpop.f32.mrb[12].mxu1 }
 0xa63   :  { %v1544_v24 = vadd.f32 %v14513_v26, %v1543_v47  ;;  %v15440_v48 = vpop.f32.mrb[13].mxu1 }
 0xa65   :  { %v1547_v49 = vadd.f32 %v1544_v24, %v1372_v36 }
 0xa67   :  { %v1550_v50 = vsel %vm1344_vm13, %v1547_v49, 0.0 }
 0xa68   :  { %1551 = vadd.xlane.f32.xlu0 %v1550_v50 }
 0xaf5   :  { %v1552_v51 = vpop.xlane.xlu0 %1551 }
 0xaf6   :  { %v1553_v52 = vmul.f32 0.03125, %v1552_v51 }
 0xaf8   :  { %v1554_v53 = vsub.f32 %v1547_v49, %v1553_v52 }
 0xafa   :  { %v1555_v54 = vmul.f32 %v1554_v53, %v1554_v53 }
 0xafc   :  { %v1556_v55 = vsel %vm1344_vm13, %v1555_v54, 0.0 }
 0xafd   :  { %1557 = vadd.xlane.f32.xlu0 %v1556_v55 }
 0xb8a   :  { %v1558_v62 = vpop.xlane.xlu0 %1557 }
 0xb8b   :  { %v1559_v63 = vmul.f32 0.03125, %v1558_v62 }
 0xb8d   :  { %v1560_v3 = vadd.f32 1e-05, %v1559_v63 }
 0xb8f   :  { %16772 = vrsqrt.f32 %v1560_v3 }
 0xb99   :  { %v16773_v28 = vpop.eup %16772 }
 0xb9a   :  { %v1562_v4 = vmul.f32 %v16773_v28, %v1554_v53 }
 0xb9c   :  { %v1569_v6 = vmul.f32 %v14515_v27, %v1562_v4 }
 0xb9e   :  { %v17561_v7 = vadd.f32 %v14516_v5, %v1569_v6 }
 0xba0   :  { %15450 = vmatmul.mubr.msk.f32.vlgmr.msra.gmra.mrb[12].mxu0 %vm244_vm6, %v17561_v7 }
 0xba1   :  { %15454 = vmatprep.mubr.msk.f32.mxu0 %vm17110_vm0, %v17111_v1 }
 0xc73   :  { %v1659_v9 = vpop.f32.mrb[12].mxu0 }
 0xc74   :  { %v17570_v10 = vadd.f32 %v14518_v8, %v1659_v9  ;;  %v15451_v11 = vpop.f32.mrb[13].mxu0 }
 0xc76   :  { %1667 = vrot.lane.b32.xlu0 %v17570_v10, %s19665_s27  ;;  %1664 = vrot.lane.b32.xlu1 %v17570_v10, %s19663_s19 }
 0xc7a   :  { %1670 = vrot.lane.b32.xlu1 %v17570_v10, %s19661_s23 }
 0xc7e   :  { %1730 = vrot.lane.b32.xlu1 %v17570_v10, %s19659_s25 }
 0xce8   :  { %v17580_v12 = vpop.permute.xlu0 %1667  ;;  %v17582_v13 = vpop.permute.xlu1 %1664 }
 0xce9   :  { %1734 = vrot.lane.b32.xlu1 %v17580_v12, %s19659_s25  ;;  %1732 = vrot.lane.b32.xlu0 %v17582_v13, %s19659_s25  ;;  %v1673_v15 = vcombine.low %v17570_v10, %v17580_v12 }
 0xceb   :  { %v1680_v18 = vrot.slane %v1673_v15, %v17384_v37 }
 0xcec   :  { %v17588_v14 = vpop.permute.xlu1 %1670 }
 0xced   :  { %1736 = vrot.lane.b32.xlu0 %v17588_v14, %s19659_s25  ;;  %v1681_v21 = vcombine.low %v17582_v13, %v17588_v14 }
 0xcef   :  { %v1688_v17 = vrot.slane %v1681_v21, %v17384_v37 }
 0xcf0   :  { %v1731_v16 = vpop.permute.xlu1 %1730 }
 0xcf1   :  { %v1689_v22 = vcombine.low %v1680_v18, %v1688_v17 }
 0xcf3   :  { %v1696_v30 = vrot.slane %v1689_v22, %v17390_v44 }
 0xcf5   :  { %v1704_v34 = vcombine.high %v1696_v30, %v17111_v1  ;;  %v1703_v41 = vrot.slane %v1696_v30, %v17384_v37 }
 0xcf7   :  { %v1711_v38 = vrot.slane %v1704_v34, %v17384_v37 }
 0xcf9   :  { %v1712_v45 = vcombine.low %v1703_v41, %v1711_v38  ;;  %v1713_v46 = vcombine.high %v1703_v41, %v1711_v38 }
 0xcfb   :  { %v1720_v24 = vrot.slane %v1712_v45, %v17390_v44  ;;  %v1727_v48 = vrot.slane %v1713_v46, %v17390_v44 }
 0xcfd   :  { %v1728_v50 = vcombine.high %v1720_v24, %v17111_v1  ;;  %v1729_v52 = vcombine.high %v1727_v48, %v17111_v1 }
 0xd5b   :  { %v1733_v19 = vpop.permute.xlu0 %1732  ;;  %v1735_v20 = vpop.permute.xlu1 %1734 }
 0xd5c   :  { %v1742_v23 = vcombine.low %v1731_v16, %v1735_v20 }
 0xd5e   :  { %v1749_v31 = vrot.slane %v1742_v23, %v17384_v37 }
 0xd5f   :  { %v1737_v25 = vpop.permute.xlu0 %1736 }
 0xd60   :  { %v1750_v29 = vcombine.low %v1733_v19, %v1737_v25 }
 0xd62   :  { %v1757_v32 = vrot.slane %v1750_v29, %v17384_v37 }
 0xd64   :  { %v1758_v33 = vcombine.low %v1749_v31, %v1757_v32 }
 0xd66   :  { %v1765_v35 = vrot.slane %v1758_v33, %v17390_v44 }
 0xd68   :  { %v1773_v36 = vcombine.high %v1765_v35, %v17111_v1  ;;  %v1772_v39 = vrot.slane %v1765_v35, %v17384_v37 }
 0xd6a   :  { %v1780_v40 = vrot.slane %v1773_v36, %v17384_v37 }
 0xd6c   :  { %v1781_v42 = vcombine.low %v1772_v39, %v1780_v40  ;;  %v1782_v43 = vcombine.high %v1772_v39, %v1780_v40 }
 0xd6e   :  { %v1789_v26 = vrot.slane %v1781_v42, %v17390_v44  ;;  %v1796_v47 = vrot.slane %v1782_v43, %v17390_v44 }
 0xd70   :  { %15453 = vmatpush3.xpose.msk.msra.mxu0 %vm523_vm7, %v1789_v26  ;;  %15463 = vmatpush3.xpose.msk.msra.mxu1 %vm523_vm7, %v1796_v47  ;;  %v1797_v49 = vcombine.high %v1789_v26, %v17111_v1  ;;  %v1798_v51 = vcombine.high %v1796_v47, %v17111_v1 }
 0xd71   :  { %15457 = vmatprep.subr.mxu0 %v17111_v1  ;;  %15472 = vmatprep.subr.mxu1 %v17111_v1 }
 0xd73   :  { %15455 = vmatmul.mubr.msk.f32.vlgmr.msra.gmra.mrb[14].mxu0 %vm523_vm7, %v1720_v24  ;;  %15465 = vmatmul.mubr.msk.f32.vlgmr.msra.gmra.mrb[14].mxu1 %vm523_vm7, %v1727_v48 }
 0xd74   :  { %15458 = vmatpush3.xpose.msk.msra.mxu0 %vm523_vm7, %v1797_v49  ;;  %15459 = vmatprep.mubr.msk.f32.mxu0 %vm17110_vm0, %v17111_v1 }
 0xd75   :  { %15467 = vmatprep.subr.mxu0 %v17111_v1  ;;  %15474 = vmatprep.mubr.msk.f32.mxu1 %vm17110_vm0, %v17111_v1 }
 0xd77   :  { %15460 = vmatmul.mubr.msk.f32.vlgmr.msra.gmra.mrb[16].mxu0 %vm523_vm7, %v1728_v50 }
 0xd78   :  { %15468 = vmatpush3.xpose.msk.msra.mxu0 %vm523_vm7, %v1798_v51  ;;  %15469 = vmatprep.mubr.msk.f32.mxu0 %vm17110_vm0, %v17111_v1 }
 0xd79   :  { %15477 = vmatprep.subr.mxu0 %v17111_v1 }
 0xd7b   :  { %15470 = vmatmul.mubr.msk.f32.vlgmr.msra.gmra.mrb[18].mxu0 %vm523_vm7, %v1729_v52 }
 0xd7c   :  { %15479 = vmatprep.mubr.msk.f32.mxu0 %vm17110_vm0, %v17111_v1 }
 0xe46   :  { %v1940_v53 = vpop.f32.mrb[14].mxu0  ;;  %v2092_v54 = vpop.f32.mrb[14].mxu1 }
 0xe47   :  { %v2172_v55 = vmul.f32 0.35355338, %v1940_v53  ;;  %v15456_v56 = vpop.f32.mrb[15].mxu0  ;;  %v15466_v57 = vpop.f32.mrb[15].mxu1  ;;  %v2174_v62 = vmul.f32 0.35355338, %v2092_v54 }
 0xe49   :  { %v2176_v58 = vsel %vm832_vm8, %v2172_v55, -inf  ;;  %v2182_v5 = vsel %vm832_vm8, %v2174_v62, -inf }
 0xe4a   :  { %2177 = vmax.xlane.f32.xlu1 %v2176_v58  ;;  %v2016_v59 = vpop.f32.mrb[16].mxu0 }
 0xe4b   :  { %v2173_v60 = vmul.f32 0.35355338, %v2016_v59  ;;  %v15461_v61 = vpop.f32.mrb[17].mxu0 }
 0xe4d   :  { %v2179_v63 = vsel %vm832_vm8, %v2173_v60, -inf }
 0xe4e   :  { %2180 = vmax.xlane.f32.xlu0 %v2179_v63  ;;  %v2168_v3 = vpop.f32.mrb[18].mxu0 }
 0xe4f   :  { %v2175_v28 = vmul.f32 0.35355338, %v2168_v3  ;;  %v15471_v27 = vpop.f32.mrb[19].mxu0 }
 0xe51   :  { %v2185_v4 = vsel %vm832_vm8, %v2175_v28, -inf }
 0xe52   :  { %2186 = vmax.xlane.f32.xlu1 %v2185_v4  ;;  %2183 = vmax.xlane.f32.xlu0 %v2182_v5 }
 0xe63   :  { %1801 = vrot.lane.b32.xlu1 %v17582_v13, %s19657_s21 }
 0xe68   :  { %1799 = vrot.lane.b32.xlu0 %v17570_v10, %s19657_s21 }
 0xed7   :  { %v2178_v6 = vpop.xlane.xlu1 %2177 }
 0xed8   :  { %v2188_v8 = vsub.f32 %v2172_v55, %v2178_v6 }
 0xeda   :  { %v2192_v9 = vmul.f32 1.442695, %v2188_v8 }
 0xedb   :  { %v2181_v11 = vpop.xlane.xlu0 %2180 }
 0xedc   :  { %16774 = vpow2.f32 %v2192_v9  ;;  %v2189_v21 = vsub.f32 %v2173_v60, %v2181_v11  ;;  %v2597_v11 = vld [vmem:[#allocation5 + $0x20] sm:$0xff] }
 0xede   :  { %v2194_v15 = vmul.f32 1.442695, %v2189_v21  ;;  %v2598_v21 = vld [vmem:[#allocation5 + $0x28] sm:$0xff] }
 0xedf   :  { %v2187_v16 = vpop.xlane.xlu1 %2186  ;;  %v2184_v17 = vpop.xlane.xlu0 %2183 }
 0xee0   :  { %16776 = vpow2.f32 %v2194_v15  ;;  %v2191_v18 = vsub.f32 %v2175_v28, %v2187_v16  ;;  %v2190_v19 = vsub.f32 %v2174_v62, %v2184_v17  ;;  %v16412_v15 = vpack.c.bf16 %v2598_v21, %v2597_v11  ;;  %v14542_v11 = vld [vmem:[%s19637_s13 + $0x1] ss:$0 sm:$0xff] }
 0xee2   :  { %v2198_v20 = vmul.f32 1.442695, %v2191_v18  ;;  %v2196_v22 = vmul.f32 1.442695, %v2190_v19  ;;  %v2599_v19 = vld [vmem:[#allocation5 + $0x30] sm:$0xff] }
 0xee3   :  { %v1802_v33 = vpop.permute.xlu1 %1801  ;;  %v1800_v34 = vpop.permute.xlu0 %1799 }
 0xee4   :  { %16778 = vpow2.f32 %v2198_v20  ;;  %v2600_v20 = vld [vmem:[#allocation5 + $0x38] sm:$0xff] }
 0xee5   :  { %16780 = vpow2.f32 %v2196_v22  ;;  %v16415_v22 = vpack.c.bf16 %v2600_v20, %v2599_v19  ;;  %v16955_v19 = vld [vmem:[%s19681_s4 + $0x8] sm:$0x1f] }
 0xee6   :  { %v16775_v13 = vpop.eup %16774 }
 0xee7   :  { %v2200_v23 = vsel %vm832_vm8, %v16775_v13, 0.0 }
 0xee8   :  { %2201 = vadd.xlane.f32.xlu0 %v2200_v23 }
 0xeea   :  { %v16777_v10 = vpop.eup %16776 }
 0xeeb   :  { %v2203_v25 = vsel %vm832_vm8, %v16777_v10, 0.0 }
 0xeec   :  { %2204 = vadd.xlane.f32.xlu1 %v2203_v25 }
 0xeee   :  { %v16779_v29 = vpop.eup %16778 }
 0xeef   :  { %v16781_v30 = vpop.eup %16780  ;;  %v2209_v31 = vsel %vm832_vm8, %v16779_v29, 0.0 }
 0xef0   :  { %2210 = vadd.xlane.f32.xlu1 %v2209_v31  ;;  %v2206_v32 = vsel %vm832_vm8, %v16781_v30, 0.0 }
 0xef1   :  { %2207 = vadd.xlane.f32.xlu0 %v2206_v32 }
 0xf01   :  { %1803 = vrot.lane.b32.xlu1 %v17580_v12, %s19657_s21 }
 0xf07   :  { %1805 = vrot.lane.b32.xlu0 %v17588_v14, %s19657_s21 }
 0xf75   :  { %v2202_v36 = vpop.xlane.xlu0 %2201 }
 0xf76   :  { %16782 = vrcp.f32 %v2202_v36 }
 0xf79   :  { %v2205_v35 = vpop.xlane.xlu1 %2204 }
 0xf7a   :  { %16784 = vrcp.f32 %v2205_v35 }
 0xf7d   :  { %v2211_v38 = vpop.xlane.xlu1 %2210 }
 0xf7e   :  { %v2208_v39 = vpop.xlane.xlu0 %2207 }
 0xf7f   :  { %16786 = vrcp.f32 %v2208_v39 }
 0xf80   :  { %16788 = vrcp.f32 %v2211_v38  ;;  %v16783_v48 = vpop.eup %16782 }
 0xf81   :  { %v1804_v40 = vpop.permute.xlu1 %1803  ;;  %v2216_v54 = vmul.f32 %v16783_v48, %v16775_v13 }
 0xf82   :  { %v1811_v41 = vcombine.low %v1800_v34, %v1804_v40  ;;  %v1806_v42 = vpop.permute.xlu0 %1805 }
 0xf83   :  { %v1819_v43 = vcombine.low %v1802_v33, %v1806_v42  ;;  %v14537_v42 = vld [vmem:[%s19631_s7 + $0x1] ss:$0 sm:$0xff] }
 0xf84   :  { %v1818_v45 = vrot.slane %v1811_v41, %v17384_v37  ;;  %v16785_v51 = vpop.eup %16784 }
 0xf85   :  { %v1826_v46 = vrot.slane %v1819_v43, %v17384_v37  ;;  %v2217_v57 = vmul.f32 %v16785_v51, %v16777_v10  ;;  %v2716_v51 = vld [vmem:[#allocation7 + $0x28] sm:$0xff] }
 0xf87   :  { %v1827_v12 = vcombine.low %v1818_v45, %v1826_v46 }
 0xf89   :  { %v1834_v14 = vrot.slane %v1827_v12, %v17390_v44  ;;  %v16787_v55 = vpop.eup %16786 }
 0xf8a   :  { %v16789_v58 = vpop.eup %16788  ;;  %v2218_v60 = vmul.f32 %v16787_v55, %v16781_v30 }
 0xf8b   :  { %v1842_v26 = vcombine.high %v1834_v14, %v17111_v1  ;;  %v1841_v47 = vrot.slane %v1834_v14, %v17384_v37  ;;  %v2219_v61 = vmul.f32 %v16789_v58, %v16779_v29 }
 0xf8d   :  { %v1849_v24 = vrot.slane %v1842_v26, %v17384_v37 }
 0xf8f   :  { %v1850_v49 = vcombine.low %v1841_v47, %v1849_v24  ;;  %v1851_v50 = vcombine.high %v1841_v47, %v1849_v24 }
 0xf91   :  { %v1858_v52 = vrot.slane %v1850_v49, %v17390_v44  ;;  %v1865_v53 = vrot.slane %v1851_v50, %v17390_v44  ;;  %v2715_v50 = vld [vmem:[#allocation7 + $0x20] sm:$0xff] }
 0xf93   :  { %15473 = vmatpush3.msk.msra.mxu1 %vm881_vm9, %v1858_v52  ;;  %v1866_v56 = vcombine.high %v1858_v52, %v17111_v1  ;;  %v1867_v59 = vcombine.high %v1865_v53, %v17111_v1  ;;  %v16418_v52 = vpack.c.bf16 %v2716_v51, %v2715_v50 }
 0xf94   :  { %15475 = vmatmul.mubr.msk.f32.vlgmr.msra.gmra.mrb[16].mxu1 %vm877_vm10, %v2216_v54  ;;  %15482 = vmatprep.subr.mxu1 %v17111_v1  ;;  %v2718_v54 = vld [vmem:[#allocation7 + $0x38] sm:$0xff] }
 0xf95   :  { %15478 = vmatpush3.msk.msra.mxu0 %vm881_vm9, %v1866_v56  ;;  %15483 = vmatpush3.msk.msra.mxu1 %vm881_vm9, %v1865_v53  ;;  %v2717_v53 = vld [vmem:[#allocation7 + $0x30] sm:$0xff]  ;;  %v14547_v56 = vld [vmem:[%s19634_s10 + $0x48] sm:$0xff] }
 0xf96   :  { %15480 = vmatmul.mubr.msk.f32.vlgmr.msra.gmra.mrb[20].mxu0 %vm877_vm10, %v2217_v57  ;;  %15487 = vmatprep.subr.mxu0 %v17111_v1  ;;  %v16421_v55 = vpack.c.bf16 %v2718_v54, %v2717_v53  ;;  %v14548_v57 = vld [vmem:[%s19634_s10 + $0x50] sm:$0xff] }
 0xf97   :  { %15484 = vmatprep.mubr.msk.f32.mxu1 %vm17110_vm0, %v17111_v1  ;;  %15488 = vmatpush3.msk.msra.mxu0 %vm881_vm9, %v1867_v59  ;;  %v14549_v59 = vld [vmem:[%s19634_s10 + $0x58] sm:$0xff] }
 0xf98   :  { %15485 = vmatmul.mubr.msk.f32.vlgmr.msra.gmra.mrb[18].mxu1 %vm877_vm10, %v2218_v60  ;;  %15489 = vmatprep.mubr.msk.f32.mxu0 %vm17110_vm0, %v17111_v1  ;;  %v16427_v60 = vpack.c.bf16 %v14549_v59, %v14548_v57 }
 0xf99   :  { %16411 = vmatprep.subr.bf16.mxu1 %v17109_v0  ;;  %15500 = vmatprep.mubr.msk.f32.mxu1 %vm17110_vm0, %v17111_v1 }
 0xf9a   :  { %15490 = vmatmul.mubr.msk.f32.vlgmr.msra.gmra.mrb[22].mxu0 %vm877_vm10, %v2219_v61  ;;  %16417 = vmatprep.subr.bf16.mxu0 %v17109_v0  ;;  %v14550_v61 = vld [vmem:[%s19634_s10 + $0x60] sm:$0xff] }
 0xf9b   :  { %15511 = vmatprep.mubr.msk.f32.mxu0 %vm17110_vm0, %v17111_v1  ;;  %16413 = vmatpush3.bf16.msra.mxu1 %v16412_v15 }
 0xf9c   :  { %16414 = vmatprep.subr.bf16.mxu1 %v17109_v0  ;;  %16419 = vmatpush3.bf16.msra.mxu0 %v16418_v52 }
 0xf9d   :  { %16420 = vmatprep.subr.bf16.mxu0 %v17109_v0 }
 0xf9f   :  { %16416 = vmatpush3.bf16.msra.mxu1 %v16415_v22  ;;  %v14552_v22 = vld [vmem:[%s19634_s10 + $0x70] sm:$0xff] }
 0xfa0   :  { %16423 = vmatprep.subr.bf16.mxu1 %v17109_v0  ;;  %16422 = vmatpush3.bf16.msra.mxu0 %v16421_v55 }
 0xfa1   :  { %16435 = vmatprep.subr.bf16.mxu0 %v17109_v0 }
0x1067   :  { %v2292_v62 = vpop.f32.mrb[16].mxu1 }
0x1068   :  { %v15476_v63 = vpop.f32.mrb[17].mxu1 }
0x1069   :  { %v2368_v3 = vpop.f32.mrb[20].mxu0 }
0x106a   :  { %v15481_v28 = vpop.f32.mrb[21].mxu0 }
0x106b   :  { %v2444_v27 = vpop.f32.mrb[18].mxu1 }
0x106c   :  { %v2524_v4 = vcombine.low %v2292_v62, %v2444_v27  ;;  %v15486_v5 = vpop.f32.mrb[19].mxu1  ;;  %v14551_v62 = vld [vmem:[%s19634_s10 + $0x68] sm:$0xff] }
0x106d   :  { %v2520_v6 = vpop.f32.mrb[22].mxu0  ;;  %v16430_v63 = vpack.c.bf16 %v14551_v62, %v14550_v61  ;;  %v14541_v5 = vld [vmem:[%s19636_s12 + $0x1] ss:$0 sm:$0xff] }
0x106e   :  { %v2532_v8 = vcombine.low %v2368_v3, %v2520_v6  ;;  %v15491_v9 = vpop.f32.mrb[23].mxu0  ;;  %v2531_v16 = vrot.slane %v2524_v4, %v17384_v37 }
0x106f   :  { %v2928_v9 = vld [vmem:[%s19680_s26 + $0x8] sm:$0x7f] }
0x1070   :  { %v2539_v17 = vrot.slane %v2532_v8, %v17384_v37  ;;  %v2927_v8 = vld [vmem:[%s19680_s26] sm:$0xff] }
0x1071   :  { %v16436_v15 = vpack.c.bf16 %v2928_v9, %v2927_v8 }
0x1072   :  { %v2540_v18 = vcombine.low %v2531_v16, %v2539_v17  ;;  %v16954_v16 = vld [vmem:[%s19681_s4] sm:$0x1f] }
0x1073   :  { %v2936_v17 = vrot.slane %v16954_v16, 1 }
0x1074   :  { %v2547_v13 = vrot.slane %v2540_v18, %v17390_v44 }
0x1075   :  { %v2937_v20 = vsel %vm146_vm4, %v16955_v19, %v2936_v17 }
0x1076   :  { %v2555_v23 = vcombine.high %v2547_v13, %v17111_v1  ;;  %v2554_v10 = vrot.slane %v2547_v13, %v17384_v37  ;;  %v14553_v13 = vld [vmem:[%s19634_s10 + $0x78] sm:$0xff] }
0x1078   :  { %v2562_v25 = vrot.slane %v2555_v23, %v17384_v37  ;;  %v3022_v23 = vld [vmem:[#allocation2] sm:$0xff] }
0x107a   :  { %v2564_v29 = vcombine.high %v2554_v10, %v2562_v25  ;;  %v2563_v30 = vcombine.low %v2554_v10, %v2562_v25  ;;  %v16433_v10 = vpack.c.bf16 %v14553_v13, %v14552_v22  ;;  %v3023_v25 = vld [vmem:[#allocation2 + $0x8] sm:$0xff] }
0x107c   :  { %v2578_v31 = vrot.slane %v2564_v29, %v17390_v44  ;;  %v2571_v32 = vrot.slane %v2563_v30, %v17390_v44  ;;  %v16440_v29 = vpack.c.bf16 %v3023_v25, %v3022_v23  ;;  %v3024_v30 = vld [vmem:[#allocation2 + $0x10] sm:$0xff] }
0x107e   :  { %2586 = vrot.lane.b32.xlu0 %v2578_v31, %s19655_s3  ;;  %v2579_v33 = vcombine.high %v2571_v32, %v17111_v1  ;;  %v2580_v34 = vcombine.high %v2578_v31, %v17111_v1  ;;  %v3025_v31 = vld [vmem:[#allocation2 + $0x18] sm:$0xff] }
0x1080   :  { %2582 = vrot.lane.b32.xlu1 %v2579_v33, %s19653_s0  ;;  %v14544_v33 = vld [vmem:[%s19633_s9 + $0x1] ss:$0 sm:$0xff]  ;;  %s19690_s0 = smov 112  }
0x1084   :  { %2590 = vrot.lane.b32.xlu1 %v2580_v34, %s19684_s1 }
0x10f0   :  { %v2587_v38 = vpop.permute.xlu0 %2586 }
0x10f2   :  { %v2583_v35 = vpop.permute.xlu1 %2582 }
0x10f3   :  { %v2593_v36 = vsel %vm523_vm7, %v2571_v32, %v2583_v35  ;;  %v16443_v32 = vpack.c.bf16 %v3025_v31, %v3024_v30 }
0x10f4   :  { %v2594_v39 = vsel %vm1253_vm11, %v2593_v36, %v2587_v38  ;;  %v14561_v38 = vld [vmem:[%s19682_s29] ss:$0 sm:$0xff] }
0x10f6   :  { %v2591_v40 = vpop.permute.xlu1 %2590 }
0x10f7   :  { %v2595_v41 = vsel %vm1255_vm12, %v2594_v39, %v2591_v40 }
0x10f8   :  { %15501 = vmatmul.mubr.msk.f32.vlgmr.msra.gmra.mrb[20].mxu1 %vm244_vm6, %v2595_v41  ;;  %v14565_v41 = vld [vmem:[%s19683_s2 + $0x1] ss:$0 sm:$0xff] }
0x10f9   :  { %15530 = vmatprep.mubr.msk.f32.mxu1 %vm17110_vm0, %v17111_v1 }
0x11cb   :  { %v2678_v43 = vpop.f32.mrb[20].mxu1 }
0x11cc   :  { %v2679_v45 = vadd.f32 %v14537_v42, %v2678_v43  ;;  %v15502_v46 = vpop.f32.mrb[21].mxu1 }
0x11ce   :  { %v2682_v12 = vadd.f32 %v2679_v45, %v17561_v7  ;;  %v14546_v7 = vld [vmem:[%s19634_s10 + $0x40] sm:$0xff] }
0x11cf   :  { %v16424_v58 = vpack.c.bf16 %v14547_v56, %v14546_v7 }
0x11d0   :  { %v2687_v14 = vsel %vm1344_vm13, %v2682_v12, 0.0 }
0x11d1   :  { %2688 = vadd.xlane.f32.xlu0 %v2687_v14  ;;  %16425 = vmatpush3.bf16.msra.mxu1 %v16424_v58  ;;  %v14566_v14 = vld [vmem:[%s19629_s5] ss:$0 sm:$0xff] }
0x11d2   :  { %16426 = vmatprep.subr.bf16.mxu1 %v17109_v0 }
0x11d5   :  { %16428 = vmatpush3.bf16.msra.mxu1 %v16427_v60 }
0x11d6   :  { %16429 = vmatprep.subr.bf16.mxu1 %v17109_v0 }
0x11d9   :  { %16431 = vmatpush3.bf16.msra.mxu1 %v16430_v63 }
0x11da   :  { %16432 = vmatprep.subr.bf16.mxu1 %v17109_v0 }
0x11dd   :  { %16434 = vmatpush3.bf16.msra.mxu1 %v16433_v10 }
0x11de   :  { %15556 = vmatprep.subr.mxu1 %v17111_v1 }
0x125e   :  { %v2689_v26 = vpop.xlane.xlu0 %2688 }
0x125f   :  { %v2690_v47 = vmul.f32 0.03125, %v2689_v26 }
0x1261   :  { %v2691_v24 = vsub.f32 %v2682_v12, %v2690_v47 }
0x1263   :  { %v2692_v48 = vmul.f32 %v2691_v24, %v2691_v24 }
0x1265   :  { %v2693_v49 = vsel %vm1344_vm13, %v2692_v48, 0.0 }
0x1266   :  { %2694 = vadd.xlane.f32.xlu1 %v2693_v49 }
0x12f3   :  { %v2695_v3 = vpop.xlane.xlu1 %2694 }
0x12f4   :  { %v2696_v28 = vmul.f32 0.03125, %v2695_v3 }
0x12f6   :  { %v2697_v27 = vadd.f32 1e-05, %v2696_v28 }
0x12f8   :  { %16790 = vrsqrt.f32 %v2697_v27 }
0x1302   :  { %v16791_v4 = vpop.eup %16790 }
0x1303   :  { %v2699_v6 = vmul.f32 %v16791_v4, %v2691_v24 }
0x1305   :  { %v2706_v21 = vmul.f32 %v14541_v5, %v2699_v6 }
0x1307   :  { %v17747_v18 = vadd.f32 %v14542_v11, %v2706_v21 }
0x1309   :  { %15512 = vmatmul.mubr.msk.f32.vlgmr.msra.gmra.mrb[24].mxu0 %vm244_vm6, %v17747_v18 }
0x130a   :  { %16438 = vmatpush3.bf16.msk.msra.mxu0 %vm17320_vm3, %v16436_v15  ;;  %15537 = vmatprep.mubr.msk.f32.mxu0 %vm17110_vm0, %v17111_v1 }
0x130b   :  { %16439 = vmatprep.subr.bf16.mxu0 %v17109_v0 }
0x130d   :  { %15538 = vmatmul.mubr.msk.f32.vlgmr.msra.gmra.mrb[26].mxu0 %vm148_vm5, %v2937_v20 }
0x130e   :  { %15548 = vmatprep.mubr.msk.f32.mxu0 %vm17110_vm0, %v17111_v1  ;;  %16441 = vmatpush3.bf16.msra.mxu0 %v16440_v29 }
0x130f   :  { %16442 = vmatprep.subr.bf16.mxu0 %v17109_v0 }
0x1312   :  { %16444 = vmatpush3.bf16.msra.mxu0 %v16443_v32 }
0x1313   :  { %15551 = vmatprep.subr.mxu0 %v17111_v1 }
0x13dc   :  { %v2796_v34 = vpop.f32.mrb[24].mxu0 }
0x13dd   :  { %v2797_v35 = vadd.f32 %v14544_v33, %v2796_v34  ;;  %v15513_v36 = vpop.f32.mrb[25].mxu0 }
0x13df   :  { %v2800_v39 = vmax.f32 %v2797_v35, 0.0 }
0x13e0   :  { %v3009_v40 = vpop.f32.mrb[26].mxu0 }
0x13e1   :  { %v3010_v42 = vadd.f32 %v14561_v38, %v3009_v40  ;;  %15531 = vmatmul.mubr.msk.f32.vlgmr.msra.gmra.mrb[22].mxu1 %vm1473_vm14, %v2800_v39  ;;  %v15539_v43 = vpop.f32.mrb[27].mxu0 }
0x13e2   :  { %15558 = vmatprep.mubr.msk.f32.mxu1 %vm17110_vm0, %v17111_v1 }
0x13e3   :  { %v17784_v45 = vadd.f32 %v14565_v41, %v3010_v42 }
0x13e5   :  { %15549 = vmatmul.mubr.msk.f32.vlgmr.msra.gmra.mrb[28].mxu0 %vm244_vm6, %v17784_v45 }
0x13e6   :  { %15553 = vmatprep.mubr.msk.f32.mxu0 %vm17110_vm0, %v17111_v1 }
0x14b4   :  { %v17790_v46 = vpop.f32.mrb[22].mxu1 }
0x14b5   :  { %v15532_v12 = vpop.f32.mrb[23].mxu1 }
0x14b8   :  { %v3102_v26 = vpop.f32.mrb[28].mxu0 }
0x14b9   :  { %v17795_v47 = vadd.f32 %v14566_v14, %v3102_v26  ;;  %v15550_v24 = vpop.f32.mrb[29].mxu0 }
0x14bb   :  { %3110 = vrot.lane.b32.xlu1 %v17795_v47, %s19665_s27  ;;  %3107 = vrot.lane.b32.xlu0 %v17795_v47, %s19663_s19 }
0x14bf   :  { %3173 = vrot.lane.b32.xlu1 %v17795_v47, %s19659_s25  ;;  %3113 = vrot.lane.b32.xlu0 %v17795_v47, %s19661_s23 }
0x152d   :  { %v17805_v48 = vpop.permute.xlu1 %3110  ;;  %v17807_v49 = vpop.permute.xlu0 %3107 }
0x152e   :  { %3177 = vrot.lane.b32.xlu1 %v17805_v48, %s19659_s25  ;;  %3175 = vrot.lane.b32.xlu0 %v17807_v49, %s19659_s25  ;;  %v3116_v52 = vcombine.low %v17795_v47, %v17805_v48 }
0x1530   :  { %v3123_v55 = vrot.slane %v3116_v52, %v17384_v37 }
0x1531   :  { %v17813_v50 = vpop.permute.xlu0 %3113  ;;  %v3174_v53 = vpop.permute.xlu1 %3173 }
0x1532   :  { %3179 = vrot.lane.b32.xlu0 %v17813_v50, %s19659_s25  ;;  %v3124_v51 = vcombine.low %v17807_v49, %v17813_v50 }
0x1534   :  { %v3131_v54 = vrot.slane %v3124_v51, %v17384_v37 }
0x1536   :  { %v3132_v7 = vcombine.low %v3123_v55, %v3131_v54 }
0x1538   :  { %v3139_v59 = vrot.slane %v3132_v7, %v17390_v44 }
0x153a   :  { %v3147_v3 = vcombine.high %v3139_v59, %v17111_v1  ;;  %v3146_v6 = vrot.slane %v3139_v59, %v17384_v37 }
0x153c   :  { %v3154_v4 = vrot.slane %v3147_v3, %v17384_v37 }
0x153e   :  { %v3155_v11 = vcombine.low %v3146_v6, %v3154_v4  ;;  %v3156_v19 = vcombine.high %v3146_v6, %v3154_v4 }
0x1540   :  { %v3163_v17 = vrot.slane %v3155_v11, %v17390_v44  ;;  %v3170_v23 = vrot.slane %v3156_v19, %v17390_v44 }
0x1542   :  { %v3171_v13 = vcombine.high %v3163_v17, %v17111_v1  ;;  %v3172_v25 = vcombine.high %v3170_v23, %v17111_v1 }
0x15a0   :  { %v3178_v56 = vpop.permute.xlu1 %3177  ;;  %v3176_v57 = vpop.permute.xlu0 %3175 }
0x15a1   :  { %v3185_v58 = vcombine.low %v3174_v53, %v3178_v56 }
0x15a3   :  { %v3192_v62 = vrot.slane %v3185_v58, %v17384_v37 }
0x15a4   :  { %v3180_v60 = vpop.permute.xlu0 %3179 }
0x15a5   :  { %v3193_v61 = vcombine.low %v3176_v57, %v3180_v60 }
0x15a7   :  { %v3200_v63 = vrot.slane %v3193_v61, %v17384_v37 }
0x15a9   :  { %v3201_v28 = vcombine.low %v3192_v62, %v3200_v63 }
0x15ab   :  { %v3208_v27 = vrot.slane %v3201_v28, %v17390_v44 }
0x15ad   :  { %v3216_v5 = vcombine.high %v3208_v27, %v17111_v1  ;;  %v3215_v8 = vrot.slane %v3208_v27, %v17384_v37 }
0x15af   :  { %v3223_v9 = vrot.slane %v3216_v5, %v17384_v37 }
0x15b1   :  { %v3224_v21 = vcombine.low %v3215_v8, %v3223_v9  ;;  %v3225_v15 = vcombine.high %v3215_v8, %v3223_v9 }
0x15b3   :  { %v3232_v16 = vrot.slane %v3224_v21, %v17390_v44  ;;  %v3239_v22 = vrot.slane %v3225_v15, %v17390_v44 }
0x15b5   :  { %15552 = vmatpush3.xpose.msk.msra.mxu0 %vm523_vm7, %v3232_v16  ;;  %v3240_v20 = vcombine.high %v3232_v16, %v17111_v1  ;;  %v3241_v10 = vcombine.high %v3239_v22, %v17111_v1 }
0x15b6   :  { %15561 = vmatprep.subr.mxu0 %v17111_v1 }
0x15b7   :  { %15557 = vmatpush3.xpose.msk.msra.mxu1 %vm523_vm7, %v3240_v20 }
0x15b8   :  { %15554 = vmatmul.mubr.msk.f32.vlgmr.msra.gmra.mrb[30].mxu0 %vm523_vm7, %v3163_v17  ;;  %15566 = vmatprep.subr.mxu1 %v17111_v1 }
0x15b9   :  { %15562 = vmatpush3.xpose.msk.msra.mxu0 %vm523_vm7, %v3239_v22  ;;  %15563 = vmatprep.mubr.msk.f32.mxu0 %vm17110_vm0, %v17111_v1 }
0x15ba   :  { %15559 = vmatmul.mubr.msk.f32.vlgmr.msra.gmra.mrb[24].mxu1 %vm523_vm7, %v3171_v13  ;;  %15571 = vmatprep.subr.mxu0 %v17111_v1 }
0x15bb   :  { %15567 = vmatpush3.xpose.msk.msra.mxu1 %vm523_vm7, %v3241_v10  ;;  %15568 = vmatprep.mubr.msk.f32.mxu1 %vm17110_vm0, %v17111_v1 }
0x15bc   :  { %15564 = vmatmul.mubr.msk.f32.vlgmr.msra.gmra.mrb[32].mxu0 %vm523_vm7, %v3170_v23  ;;  %15576 = vmatprep.subr.mxu1 %v17111_v1 }
0x15bd   :  { %15573 = vmatprep.mubr.msk.f32.mxu0 %vm17110_vm0, %v17111_v1 }
0x15be   :  { %15569 = vmatmul.mubr.msk.f32.vlgmr.msra.gmra.mrb[26].mxu1 %vm523_vm7, %v3172_v25 }
0x15bf   :  { %15578 = vmatprep.mubr.msk.f32.mxu1 %vm17110_vm0, %v17111_v1 }
0x168b   :  { %v3383_v29 = vpop.f32.mrb[30].mxu0 }
0x168c   :  { %v3615_v30 = vmul.f32 0.35355338, %v3383_v29  ;;  %v15555_v31 = vpop.f32.mrb[31].mxu0 }
0x168d   :  { %v3459_v32 = vpop.f32.mrb[24].mxu1 }
0x168e   :  { %v3616_v33 = vmul.f32 0.35355338, %v3459_v32  ;;  %v15560_v34 = vpop.f32.mrb[25].mxu1  ;;  %v3619_v35 = vsel %vm832_vm8, %v3615_v30, -inf }
0x168f   :  { %3620 = vmax.xlane.f32.xlu1 %v3619_v35  ;;  %v3535_v36 = vpop.f32.mrb[32].mxu0 }
0x1690   :  { %v3617_v38 = vmul.f32 0.35355338, %v3535_v36  ;;  %v15565_v39 = vpop.f32.mrb[33].mxu0  ;;  %v3622_v40 = vsel %vm832_vm8, %v3616_v33, -inf }
0x1691   :  { %3623 = vmax.xlane.f32.xlu0 %v3622_v40  ;;  %v3611_v41 = vpop.f32.mrb[26].mxu1 }
0x1692   :  { %v3618_v42 = vmul.f32 0.35355338, %v3611_v41  ;;  %v15570_v43 = vpop.f32.mrb[27].mxu1  ;;  %v3625_v12 = vsel %vm832_vm8, %v3617_v38, -inf }
0x1694   :  { %v3628_v14 = vsel %vm832_vm8, %v3618_v42, -inf }
0x1695   :  { %3626 = vmax.xlane.f32.xlu0 %v3625_v12  ;;  %3629 = vmax.xlane.f32.xlu1 %v3628_v14 }
0x16a6   :  { %3244 = vrot.lane.b32.xlu1 %v17807_v49, %s19657_s21 }
0x16ab   :  { %3242 = vrot.lane.b32.xlu0 %v17795_v47, %s19657_s21 }
0x171c   :  { %v3621_v26 = vpop.xlane.xlu1 %3620 }
0x171d   :  { %v3631_v24 = vsub.f32 %v3615_v30, %v3621_v26 }
0x171e   :  { %v3624_v51 = vpop.xlane.xlu0 %3623 }
0x171f   :  { %v3635_v52 = vmul.f32 1.442695, %v3631_v24  ;;  %v3632_v53 = vsub.f32 %v3616_v33, %v3624_v51 }
0x1721   :  { %16792 = vpow2.f32 %v3635_v52  ;;  %v3637_v54 = vmul.f32 1.442695, %v3632_v53 }
0x1722   :  { %v3627_v55 = vpop.xlane.xlu0 %3626  ;;  %v3630_v7 = vpop.xlane.xlu1 %3629 }
0x1723   :  { %16794 = vpow2.f32 %v3637_v54  ;;  %v3633_v56 = vsub.f32 %v3617_v38, %v3627_v55  ;;  %v3634_v57 = vsub.f32 %v3618_v42, %v3630_v7  ;;  %v4039_v54 = vld [vmem:[#allocation5] sm:$0xff]  ;;  %v4040_v55 = vld [vmem:[#allocation5 + $0x8] sm:$0xff] }
0x1724   :  { %v16446_v7 = vpack.c.bf16 %v4040_v55, %v4039_v54  ;;  %v14587_v54 = vld [vmem:[%s19637_s13] ss:$0 sm:$0xff] }
0x1725   :  { %v3639_v58 = vmul.f32 1.442695, %v3633_v56  ;;  %v3641_v59 = vmul.f32 1.442695, %v3634_v57 }
0x1726   :  { %v3243_v27 = vpop.permute.xlu0 %3242  ;;  %v3245_v4 = vpop.permute.xlu1 %3244 }
0x1727   :  { %16796 = vpow2.f32 %v3639_v58 }
0x1728   :  { %16798 = vpow2.f32 %v3641_v59  ;;  %v4041_v59 = vld [vmem:[#allocation5 + $0x10] sm:$0xff] }
0x172b   :  { %v16793_v49 = vpop.eup %16792 }
0x172c   :  { %v3643_v60 = vsel %vm832_vm8, %v16793_v49, 0.0 }
0x172d   :  { %v16795_v47 = vpop.eup %16794  ;;  %3644 = vadd.xlane.f32.xlu0 %v3643_v60 }
0x172e   :  { %v3646_v61 = vsel %vm832_vm8, %v16795_v47, 0.0 }
0x172f   :  { %3647 = vadd.xlane.f32.xlu1 %v3646_v61 }
0x1731   :  { %v16797_v62 = vpop.eup %16796 }
0x1732   :  { %v16799_v63 = vpop.eup %16798  ;;  %v3649_v3 = vsel %vm832_vm8, %v16797_v62, 0.0 }
0x1733   :  { %3650 = vadd.xlane.f32.xlu0 %v3649_v3  ;;  %v3652_v28 = vsel %vm832_vm8, %v16799_v63, 0.0 }
0x1734   :  { %3653 = vadd.xlane.f32.xlu1 %v3652_v28 }
0x1745   :  { %3246 = vrot.lane.b32.xlu1 %v17805_v48, %s19657_s21 }
0x1749   :  { %3248 = vrot.lane.b32.xlu0 %v17813_v50, %s19657_s21 }
0x17ba   :  { %v3645_v5 = vpop.xlane.xlu0 %3644 }
0x17bb   :  { %16800 = vrcp.f32 %v3645_v5 }
0x17bc   :  { %v3648_v6 = vpop.xlane.xlu1 %3647 }
0x17bd   :  { %16802 = vrcp.f32 %v3648_v6 }
0x17c0   :  { %v3651_v8 = vpop.xlane.xlu0 %3650 }
0x17c1   :  { %v3654_v9 = vpop.xlane.xlu1 %3653  ;;  %16804 = vrcp.f32 %v3651_v8 }
0x17c2   :  { %16806 = vrcp.f32 %v3654_v9 }
0x17c4   :  { %v3249_v11 = vpop.permute.xlu0 %3248 }
0x17c5   :  { %v3262_v21 = vcombine.low %v3245_v4, %v3249_v11  ;;  %v3247_v15 = vpop.permute.xlu1 %3246  ;;  %v16801_v23 = vpop.eup %16800 }
0x17c6   :  { %v3254_v16 = vcombine.low %v3243_v27, %v3247_v15  ;;  %v3659_v32 = vmul.f32 %v16801_v23, %v16793_v49  ;;  %v4042_v49 = vld [vmem:[#allocation5 + $0x18] sm:$0xff] }
0x17c7   :  { %v3269_v17 = vrot.slane %v3262_v21, %v17384_v37  ;;  %v16803_v29 = vpop.eup %16802  ;;  %v16449_v60 = vpack.c.bf16 %v4042_v49, %v4041_v59  ;;  %v14588_v59 = vld [vmem:[%s19633_s9] ss:$0 sm:$0xff] }
0x17c8   :  { %v3261_v19 = vrot.slane %v3254_v16, %v17384_v37  ;;  %v3660_v35 = vmul.f32 %v16803_v29, %v16795_v47 }
0x17ca   :  { %v3270_v48 = vcombine.low %v3261_v19, %v3269_v17  ;;  %v14584_v17 = vld [vmem:[%s19631_s7] ss:$0 sm:$0xff] }
0x17cb   :  { %v16805_v33 = vpop.eup %16804 }
0x17cc   :  { %v3277_v50 = vrot.slane %v3270_v48, %v17390_v44  ;;  %v16807_v36 = vpop.eup %16806  ;;  %v3661_v39 = vmul.f32 %v16805_v33, %v16797_v62  ;;  %v4155_v33 = vld [vmem:[#allocation7 + $0x10] sm:$0xff] }
0x17cd   :  { %v3662_v40 = vmul.f32 %v16807_v36, %v16799_v63  ;;  %v4239_v36 = vld [vmem:[%s19634_s10 + $0x8] sm:$0xff] }
0x17ce   :  { %v3285_v20 = vcombine.high %v3277_v50, %v17111_v1  ;;  %v3284_v22 = vrot.slane %v3277_v50, %v17384_v37 }
0x17d0   :  { %v3292_v13 = vrot.slane %v3285_v20, %v17384_v37 }
0x17d2   :  { %v3293_v10 = vcombine.low %v3284_v22, %v3292_v13  ;;  %v3294_v25 = vcombine.high %v3284_v22, %v3292_v13 }
0x17d4   :  { %v3301_v30 = vrot.slane %v3293_v10, %v17390_v44  ;;  %v3308_v31 = vrot.slane %v3294_v25, %v17390_v44 }
0x17d6   :  { %15572 = vmatpush3.msk.msra.mxu0 %vm881_vm9, %v3301_v30  ;;  %v3309_v34 = vcombine.high %v3301_v30, %v17111_v1  ;;  %v3310_v38 = vcombine.high %v3308_v31, %v17111_v1  ;;  %v4153_v30 = vld [vmem:[#allocation7] sm:$0xff] }
0x17d7   :  { %15574 = vmatmul.mubr.msk.f32.vlgmr.msra.gmra.mrb[34].mxu0 %vm877_vm10, %v3659_v32  ;;  %15581 = vmatprep.subr.mxu0 %v17111_v1 }
0x17d8   :  { %15577 = vmatpush3.msk.msra.mxu1 %vm881_vm9, %v3309_v34  ;;  %15582 = vmatpush3.msk.msra.mxu0 %vm881_vm9, %v3308_v31  ;;  %v4154_v31 = vld [vmem:[#allocation7 + $0x8] sm:$0xff]  ;;  %v4156_v34 = vld [vmem:[#allocation7 + $0x18] sm:$0xff] }
0x17d9   :  { %15579 = vmatmul.mubr.msk.f32.vlgmr.msra.gmra.mrb[28].mxu1 %vm877_vm10, %v3660_v35  ;;  %15586 = vmatprep.subr.mxu1 %v17111_v1  ;;  %v16452_v32 = vpack.c.bf16 %v4154_v31, %v4153_v30  ;;  %v16455_v35 = vpack.c.bf16 %v4156_v34, %v4155_v33  ;;  %v14595_v31 = vld [vmem:[%s19629_s5 + $0x1] ss:$0 sm:$0xff] }
0x17da   :  { %15583 = vmatprep.mubr.msk.f32.mxu0 %vm17110_vm0, %v17111_v1  ;;  %15587 = vmatpush3.msk.msra.mxu1 %vm881_vm9, %v3310_v38  ;;  %v4240_v38 = vld [vmem:[%s19634_s10 + $0x10] sm:$0xff] }
0x17db   :  { %15584 = vmatmul.mubr.msk.f32.vlgmr.msra.gmra.mrb[36].mxu0 %vm877_vm10, %v3661_v39  ;;  %15588 = vmatprep.mubr.msk.f32.mxu1 %vm17110_vm0, %v17111_v1 }
0x17dc   :  { %16445 = vmatprep.subr.bf16.mxu0 %v17109_v0  ;;  %15599 = vmatprep.mubr.msk.f32.mxu0 %vm17110_vm0, %v17111_v1 }
0x17dd   :  { %15589 = vmatmul.mubr.msk.f32.vlgmr.msra.gmra.mrb[30].mxu1 %vm877_vm10, %v3662_v40  ;;  %16451 = vmatprep.subr.bf16.mxu1 %v17109_v0  ;;  %v4241_v40 = vld [vmem:[%s19634_s10 + $0x18] sm:$0xff] }
0x17de   :  { %15610 = vmatprep.mubr.msk.f32.mxu1 %vm17110_vm0, %v17111_v1  ;;  %16447 = vmatpush3.bf16.msra.mxu0 %v16446_v7 }
0x17df   :  { %16448 = vmatprep.subr.bf16.mxu0 %v17109_v0  ;;  %16453 = vmatpush3.bf16.msra.mxu1 %v16452_v32 }
0x17e0   :  { %16454 = vmatprep.subr.bf16.mxu1 %v17109_v0 }
0x17e2   :  { %16450 = vmatpush3.bf16.msra.mxu0 %v16449_v60 }
0x17e3   :  { %16457 = vmatprep.subr.bf16.mxu0 %v17109_v0  ;;  %16456 = vmatpush3.bf16.msra.mxu1 %v16455_v35 }
0x17e4   :  { %16469 = vmatprep.subr.bf16.mxu1 %v17109_v0 }
0x18aa   :  { %v3735_v41 = vpop.f32.mrb[34].mxu0 }
0x18ab   :  { %v15575_v42 = vpop.f32.mrb[35].mxu0 }
0x18ac   :  { %v3811_v43 = vpop.f32.mrb[28].mxu1  ;;  %v4242_v42 = vld [vmem:[%s19634_s10 + $0x20] sm:$0xff] }
0x18ad   :  { %v15580_v12 = vpop.f32.mrb[29].mxu1 }
0x18ae   :  { %v3887_v14 = vpop.f32.mrb[36].mxu0 }
0x18af   :  { %v3967_v26 = vcombine.low %v3735_v41, %v3887_v14  ;;  %v15585_v24 = vpop.f32.mrb[37].mxu0  ;;  %v16461_v41 = vpack.c.bf16 %v4241_v40, %v4240_v38 }
0x18b0   :  { %v3963_v51 = vpop.f32.mrb[30].mxu1 }
0x18b1   :  { %v3975_v52 = vcombine.low %v3811_v43, %v3963_v51  ;;  %v15590_v53 = vpop.f32.mrb[31].mxu1  ;;  %v3974_v56 = vrot.slane %v3967_v26, %v17384_v37  ;;  %v4243_v43 = vld [vmem:[%s19634_s10 + $0x28] sm:$0xff] }
0x18b2   :  { %v16464_v12 = vpack.c.bf16 %v4243_v43, %v4242_v42 }
0x18b3   :  { %v3982_v57 = vrot.slane %v3975_v52, %v17384_v37  ;;  %v14586_v52 = vld [vmem:[%s19636_s12] ss:$0 sm:$0xff] }
0x18b5   :  { %v3983_v58 = vcombine.low %v3974_v56, %v3982_v57  ;;  %v4244_v56 = vld [vmem:[%s19634_s10 + $0x30] sm:$0xff]  ;;  %v4245_v57 = vld [vmem:[%s19634_s10 + $0x38] sm:$0xff] }
0x18b7   :  { %v3990_v47 = vrot.slane %v3983_v58, %v17390_v44  ;;  %v16467_v58 = vpack.c.bf16 %v4245_v57, %v4244_v56 }
0x18b9   :  { %v3998_v61 = vcombine.high %v3990_v47, %v17111_v1  ;;  %v3997_v62 = vrot.slane %v3990_v47, %v17384_v37 }
0x18bb   :  { %v4005_v63 = vrot.slane %v3998_v61, %v17384_v37 }
0x18bd   :  { %v4007_v3 = vcombine.high %v3997_v62, %v4005_v63  ;;  %v4006_v28 = vcombine.low %v3997_v62, %v4005_v63  ;;  %v14590_v62 = vld [vmem:[%s19635_s11] ss:$0 sm:$0xff] }
0x18bf   :  { %v4021_v27 = vrot.slane %v4007_v3, %v17390_v44  ;;  %v4014_v4 = vrot.slane %v4006_v28, %v17390_v44 }
0x18c1   :  { %4029 = vrot.lane.b32.xlu0 %v4021_v27, %s19685_s20  ;;  %v4022_v5 = vcombine.high %v4014_v4, %v17111_v1  ;;  %v4023_v6 = vcombine.high %v4021_v27, %v17111_v1 }
0x18c3   :  { %4025 = vrot.lane.b32.xlu1 %v4022_v5, %s19686_s8 }
0x18c7   :  { %4033 = vrot.lane.b32.xlu1 %v4023_v6, %s19684_s1 }
0x1933   :  { %v4030_v11 = vpop.permute.xlu0 %4029 }
0x1935   :  { %v4026_v8 = vpop.permute.xlu1 %4025 }
0x1936   :  { %v4036_v9 = vsel %vm523_vm7, %v4014_v4, %v4026_v8 }
0x1937   :  { %v4037_v21 = vsel %vm1253_vm11, %v4036_v9, %v4030_v11 }
0x1939   :  { %v4034_v15 = vpop.permute.xlu1 %4033 }
0x193a   :  { %v4038_v16 = vsel %vm1255_vm12, %v4037_v21, %v4034_v15  ;;  %v4356_v21 = vld [vmem:[#allocation2 + $0x20] sm:$0xff]  ;;  %v4357_v15 = vld [vmem:[#allocation2 + $0x28] sm:$0xff] }
0x193b   :  { %15600 = vmatmul.mubr.msk.f32.vlgmr.msra.gmra.mrb[38].mxu0 %vm244_vm6, %v4038_v16  ;;  %v16470_v16 = vpack.c.bf16 %v4357_v15, %v4356_v21 }
0x193c   :  { %15629 = vmatprep.mubr.msk.f32.mxu0 %vm17110_vm0, %v17111_v1 }
0x1a0e   :  { %v4119_v19 = vpop.f32.mrb[38].mxu0 }
0x1a0f   :  { %v4120_v48 = vadd.f32 %v14584_v17, %v4119_v19  ;;  %v15601_v50 = vpop.f32.mrb[39].mxu0  ;;  %v4358_v17 = vld [vmem:[#allocation2 + $0x30] sm:$0xff]  ;;  %v4359_v19 = vld [vmem:[#allocation2 + $0x38] sm:$0xff] }
0x1a11   :  { %v4123_v20 = vadd.f32 %v4120_v48, %v17784_v45  ;;  %v4238_v45 = vld [vmem:[%s19634_s10] sm:$0xff]  ;;  %v16473_v48 = vpack.c.bf16 %v4359_v19, %v4358_v17 }
0x1a12   :  { %v16458_v39 = vpack.c.bf16 %v4239_v36, %v4238_v45 }
0x1a13   :  { %v4126_v22 = vsel %vm1344_vm13, %v4123_v20, 0.0 }
0x1a14   :  { %4127 = vadd.xlane.f32.xlu0 %v4126_v22  ;;  %16459 = vmatpush3.bf16.msra.mxu0 %v16458_v39 }
0x1a15   :  { %16460 = vmatprep.subr.bf16.mxu0 %v17109_v0 }
0x1a18   :  { %16462 = vmatpush3.bf16.msra.mxu0 %v16461_v41 }
0x1a19   :  { %16463 = vmatprep.subr.bf16.mxu0 %v17109_v0 }
0x1a1c   :  { %16465 = vmatpush3.bf16.msra.mxu0 %v16464_v12 }
0x1a1d   :  { %16466 = vmatprep.subr.bf16.mxu0 %v17109_v0 }
0x1a20   :  { %16468 = vmatpush3.bf16.msra.mxu0 %v16467_v58 }
0x1a21   :  { %15653 = vmatprep.subr.mxu0 %v17111_v1 }
0x1aa1   :  { %v4128_v13 = vpop.xlane.xlu0 %4127 }
0x1aa2   :  { %v4129_v23 = vmul.f32 0.03125, %v4128_v13 }
0x1aa4   :  { %v4130_v10 = vsub.f32 %v4123_v20, %v4129_v23  ;;  %v14592_v23 = vld [vmem:[%s19638_s14] ss:$0 sm:$0xff] }
0x1aa6   :  { %v4131_v25 = vmul.f32 %v4130_v10, %v4130_v10 }
0x1aa8   :  { %v4132_v29 = vsel %vm1344_vm13, %v4131_v25, 0.0  ;;  %v14593_v25 = vld [vmem:[%s19639_s15] ss:$0 sm:$0xff] }
0x1aa9   :  { %4133 = vadd.xlane.f32.xlu1 %v4132_v29 }
0x1b36   :  { %v4134_v14 = vpop.xlane.xlu1 %4133 }
0x1b37   :  { %v4135_v26 = vmul.f32 0.03125, %v4134_v14 }
0x1b39   :  { %v4136_v24 = vadd.f32 1e-05, %v4135_v26 }
0x1b3b   :  { %16808 = vrsqrt.f32 %v4136_v24 }
0x1b45   :  { %v16809_v51 = vpop.eup %16808 }
0x1b46   :  { %v4138_v53 = vmul.f32 %v16809_v51, %v4130_v10 }
0x1b48   :  { %v4145_v55 = vmul.f32 %v14586_v52, %v4138_v53 }
0x1b4a   :  { %v4152_v7 = vadd.f32 %v14587_v54, %v4145_v55 }
0x1b4c   :  { %15611 = vmatmul.mubr.msk.f32.vlgmr.msra.gmra.mrb[32].mxu1 %vm244_vm6, %v4152_v7 }
0x1b4d   :  { %15640 = vmatprep.mubr.msk.f32.mxu1 %vm17110_vm0, %v17111_v1  ;;  %16471 = vmatpush3.bf16.msra.mxu1 %v16470_v16 }
0x1b4e   :  { %16472 = vmatprep.subr.bf16.mxu1 %v17109_v0 }
0x1b51   :  { %16474 = vmatpush3.bf16.msra.mxu1 %v16473_v48 }
0x1b52   :  { %15643 = vmatprep.subr.mxu1 %v17111_v1 }
0x1c1f   :  { %v4233_v49 = vpop.f32.mrb[32].mxu1 }
0x1c20   :  { %v4234_v60 = vadd.f32 %v14588_v59, %v4233_v49  ;;  %v15612_v47 = vpop.f32.mrb[33].mxu1 }
0x1c22   :  { %v4237_v61 = vmax.f32 %v4234_v60, 0.0 }
0x1c24   :  { %15630 = vmatmul.mubr.msk.f32.vlgmr.msra.gmra.mrb[40].mxu0 %vm1473_vm14, %v4237_v61 }
0x1c25   :  { %15655 = vmatprep.mubr.msk.f32.mxu0 %vm17110_vm0, %v17111_v1 }
0x1cf7   :  { %v4322_v63 = vpop.f32.mrb[40].mxu0 }
0x1cf8   :  { %v4323_v3 = vadd.f32 %v14590_v62, %v4322_v63  ;;  %v15631_v28 = vpop.f32.mrb[41].mxu0 }
0x1cfa   :  { %v4326_v27 = vadd.f32 %v4323_v3, %v4152_v7 }
0x1cfc   :  { %v4329_v4 = vsel %vm1344_vm13, %v4326_v27, 0.0 }
0x1cfd   :  { %4330 = vadd.xlane.f32.xlu0 %v4329_v4 }
0x1d8a   :  { %v4331_v5 = vpop.xlane.xlu0 %4330 }
0x1d8b   :  { %v4332_v6 = vmul.f32 0.03125, %v4331_v5 }
0x1d8d   :  { %v4333_v8 = vsub.f32 %v4326_v27, %v4332_v6 }
0x1d8f   :  { %v4334_v9 = vmul.f32 %v4333_v8, %v4333_v8 }
0x1d91   :  { %v4335_v11 = vsel %vm1344_vm13, %v4334_v9, 0.0 }
0x1d92   :  { %4336 = vadd.xlane.f32.xlu0 %v4335_v11 }
0x1e1f   :  { %v4337_v50 = vpop.xlane.xlu0 %4336 }
0x1e20   :  { %v4338_v20 = vmul.f32 0.03125, %v4337_v50 }
0x1e22   :  { %v4339_v22 = vadd.f32 1e-05, %v4338_v20 }
0x1e24   :  { %16810 = vrsqrt.f32 %v4339_v22 }
0x1e2e   :  { %v16811_v13 = vpop.eup %16810 }
0x1e2f   :  { %v4341_v10 = vmul.f32 %v16811_v13, %v4333_v8 }
0x1e31   :  { %v4348_v29 = vmul.f32 %v14592_v23, %v4341_v10 }
0x1e33   :  { %v17992_v30 = vadd.f32 %v14593_v25, %v4348_v29 }
0x1e35   :  { %15641 = vmatmul.mubr.msk.f32.vlgmr.msra.gmra.mrb[34].mxu1 %vm244_vm6, %v17992_v30 }
0x1e36   :  { %15645 = vmatprep.mubr.msk.f32.mxu1 %vm17110_vm0, %v17111_v1 }
0x1f08   :  { %v4436_v32 = vpop.f32.mrb[34].mxu1 }
0x1f09   :  { %v18001_v33 = vadd.f32 %v14595_v31, %v4436_v32  ;;  %v15642_v34 = vpop.f32.mrb[35].mxu1 }
0x1f0b   :  { %4444 = vrot.lane.b32.xlu0 %v18001_v33, %s19665_s27  ;;  %4441 = vrot.lane.b32.xlu1 %v18001_v33, %s19663_s19 }
0x1f0f   :  { %4447 = vrot.lane.b32.xlu1 %v18001_v33, %s19661_s23 }
0x1f13   :  { %4507 = vrot.lane.b32.xlu1 %v18001_v33, %s19659_s25 }
0x1f7d   :  { %v18011_v35 = vpop.permute.xlu0 %4444  ;;  %v18013_v45 = vpop.permute.xlu1 %4441 }
0x1f7e   :  { %4511 = vrot.lane.b32.xlu1 %v18011_v35, %s19659_s25  ;;  %4509 = vrot.lane.b32.xlu0 %v18013_v45, %s19659_s25  ;;  %v4450_v39 = vcombine.low %v18001_v33, %v18011_v35 }
0x1f80   :  { %v4457_v42 = vrot.slane %v4450_v39, %v17384_v37 }
0x1f81   :  { %v18019_v36 = vpop.permute.xlu1 %4447 }
0x1f82   :  { %4513 = vrot.lane.b32.xlu0 %v18019_v36, %s19659_s25  ;;  %v4458_v38 = vcombine.low %v18013_v45, %v18019_v36 }
0x1f84   :  { %v4465_v41 = vrot.slane %v4458_v38, %v17384_v37 }
0x1f85   :  { %v4508_v40 = vpop.permute.xlu1 %4507 }
0x1f86   :  { %v4466_v14 = vcombine.low %v4457_v42, %v4465_v41 }
0x1f88   :  { %v4473_v52 = vrot.slane %v4466_v14, %v17390_v44 }
0x1f8a   :  { %v4481_v7 = vcombine.high %v4473_v52, %v17111_v1  ;;  %v4480_v60 = vrot.slane %v4473_v52, %v17384_v37 }
0x1f8c   :  { %v4488_v58 = vrot.slane %v4481_v7, %v17384_v37 }
0x1f8e   :  { %v4489_v62 = vcombine.low %v4480_v60, %v4488_v58  ;;  %v4490_v63 = vcombine.high %v4480_v60, %v4488_v58 }
0x1f90   :  { %v4497_v27 = vrot.slane %v4489_v62, %v17390_v44  ;;  %v4504_v4 = vrot.slane %v4490_v63, %v17390_v44 }
0x1f92   :  { %v4505_v6 = vcombine.high %v4497_v27, %v17111_v1  ;;  %v4506_v9 = vcombine.high %v4504_v4, %v17111_v1 }
0x1ff0   :  { %v4510_v43 = vpop.permute.xlu0 %4509  ;;  %v4512_v12 = vpop.permute.xlu1 %4511 }
0x1ff1   :  { %v4519_v26 = vcombine.low %v4508_v40, %v4512_v12 }
0x1ff3   :  { %v4526_v53 = vrot.slane %v4519_v26, %v17384_v37 }
0x1ff4   :  { %v4514_v24 = vpop.permute.xlu0 %4513 }
0x1ff5   :  { %v4527_v51 = vcombine.low %v4510_v43, %v4514_v24 }
0x1ff7   :  { %v4534_v54 = vrot.slane %v4527_v51, %v17384_v37 }
0x1ff9   :  { %v4535_v55 = vcombine.low %v4526_v53, %v4534_v54 }
0x1ffb   :  { %v4542_v56 = vrot.slane %v4535_v55, %v17390_v44 }
0x1ffd   :  { %v4550_v57 = vcombine.high %v4542_v56, %v17111_v1  ;;  %v4549_v59 = vrot.slane %v4542_v56, %v17384_v37 }
0x1fff   :  { %v4557_v49 = vrot.slane %v4550_v57, %v17384_v37 }
0x2001   :  { %v4558_v47 = vcombine.low %v4549_v59, %v4557_v49  ;;  %v4559_v61 = vcombine.high %v4549_v59, %v4557_v49 }
0x2003   :  { %v4566_v3 = vrot.slane %v4558_v47, %v17390_v44  ;;  %v4573_v28 = vrot.slane %v4559_v61, %v17390_v44 }
0x2005   :  { %15644 = vmatpush3.xpose.msk.msra.mxu1 %vm523_vm7, %v4566_v3  ;;  %15654 = vmatpush3.xpose.msk.msra.mxu0 %vm523_vm7, %v4573_v28  ;;  %v4574_v5 = vcombine.high %v4566_v3, %v17111_v1  ;;  %v4575_v8 = vcombine.high %v4573_v28, %v17111_v1 }
0x2006   :  { %15648 = vmatprep.subr.mxu1 %v17111_v1  ;;  %15663 = vmatprep.subr.mxu0 %v17111_v1 }
0x2008   :  { %15646 = vmatmul.mubr.msk.f32.vlgmr.msra.gmra.mrb[36].mxu1 %vm523_vm7, %v4497_v27  ;;  %15656 = vmatmul.mubr.msk.f32.vlgmr.msra.gmra.mrb[42].mxu0 %vm523_vm7, %v4504_v4 }
0x2009   :  { %15649 = vmatpush3.xpose.msk.msra.mxu1 %vm523_vm7, %v4574_v5  ;;  %15650 = vmatprep.mubr.msk.f32.mxu1 %vm17110_vm0, %v17111_v1 }
0x200a   :  { %15658 = vmatprep.subr.mxu1 %v17111_v1  ;;  %15665 = vmatprep.mubr.msk.f32.mxu0 %vm17110_vm0, %v17111_v1 }
0x200c   :  { %15651 = vmatmul.mubr.msk.f32.vlgmr.msra.gmra.mrb[38].mxu1 %vm523_vm7, %v4505_v6 }
0x200d   :  { %15659 = vmatpush3.xpose.msk.msra.mxu1 %vm523_vm7, %v4575_v8  ;;  %15660 = vmatprep.mubr.msk.f32.mxu1 %vm17110_vm0, %v17111_v1 }
0x200e   :  { %15668 = vmatprep.subr.mxu1 %v17111_v1 }
0x2010   :  { %15661 = vmatmul.mubr.msk.f32.vlgmr.msra.gmra.mrb[40].mxu1 %vm523_vm7, %v4506_v9 }
0x2011   :  { %15670 = vmatprep.mubr.msk.f32.mxu1 %vm17110_vm0, %v17111_v1 }
0x20db   :  { %v4717_v11 = vpop.f32.mrb[36].mxu1  ;;  %v4869_v21 = vpop.f32.mrb[42].mxu0 }
0x20dc   :  { %v4949_v15 = vmul.f32 0.35355338, %v4717_v11  ;;  %v15647_v16 = vpop.f32.mrb[37].mxu1  ;;  %v15657_v17 = vpop.f32.mrb[43].mxu0  ;;  %v4951_v22 = vmul.f32 0.35355338, %v4869_v21 }
0x20de   :  { %v4953_v19 = vsel %vm832_vm8, %v4949_v15, -inf  ;;  %v4959_v29 = vsel %vm832_vm8, %v4951_v22, -inf }
0x20df   :  { %4954 = vmax.xlane.f32.xlu1 %v4953_v19  ;;  %v4793_v48 = vpop.f32.mrb[38].mxu1 }
0x20e0   :  { %v4950_v50 = vmul.f32 0.35355338, %v4793_v48  ;;  %v15652_v20 = vpop.f32.mrb[39].mxu1 }
0x20e2   :  { %v4956_v13 = vsel %vm832_vm8, %v4950_v50, -inf }
0x20e3   :  { %4957 = vmax.xlane.f32.xlu0 %v4956_v13  ;;  %v4945_v23 = vpop.f32.mrb[40].mxu1 }
0x20e4   :  { %v4952_v10 = vmul.f32 0.35355338, %v4945_v23  ;;  %v15662_v25 = vpop.f32.mrb[41].mxu1 }
0x20e6   :  { %v4962_v31 = vsel %vm832_vm8, %v4952_v10, -inf }
0x20e7   :  { %4960 = vmax.xlane.f32.xlu0 %v4959_v29  ;;  %4963 = vmax.xlane.f32.xlu1 %v4962_v31 }
0x20f8   :  { %4578 = vrot.lane.b32.xlu1 %v18013_v45, %s19687_s22 }
0x20fd   :  { %4576 = vrot.lane.b32.xlu0 %v18001_v33, %s19687_s22 }
0x216c   :  { %v4955_v32 = vpop.xlane.xlu1 %4954 }
0x216d   :  { %v4965_v34 = vsub.f32 %v4949_v15, %v4955_v32 }
0x216f   :  { %v4969_v38 = vmul.f32 1.442695, %v4965_v34 }
0x2170   :  { %v4958_v39 = vpop.xlane.xlu0 %4957 }
0x2171   :  { %16812 = vpow2.f32 %v4969_v38  ;;  %v4966_v40 = vsub.f32 %v4950_v50, %v4958_v39 }
0x2173   :  { %v4971_v41 = vmul.f32 1.442695, %v4966_v40 }
0x2174   :  { %v4961_v42 = vpop.xlane.xlu0 %4960  ;;  %v4964_v43 = vpop.xlane.xlu1 %4963 }
0x2175   :  { %16814 = vpow2.f32 %v4971_v41  ;;  %v4967_v12 = vsub.f32 %v4951_v22, %v4961_v42  ;;  %v4968_v14 = vsub.f32 %v4952_v10, %v4964_v43  ;;  %v5373_v41 = vld [vmem:[#allocation5 + $0x20] sm:$0xff]  ;;  %v5374_v42 = vld [vmem:[#allocation5 + $0x28] sm:$0xff] }
0x2176   :  { %v16476_v43 = vpack.c.bf16 %v5374_v42, %v5373_v41  ;;  %v14619_v41 = vld [vmem:[%s19637_s13 + $0x1] ss:$0 sm:$0xff] }
0x2177   :  { %v4973_v26 = vmul.f32 1.442695, %v4967_v12  ;;  %v4975_v24 = vmul.f32 1.442695, %v4968_v14 }
0x2178   :  { %v4577_v56 = vpop.permute.xlu0 %4576  ;;  %v4579_v57 = vpop.permute.xlu1 %4578 }
0x2179   :  { %16816 = vpow2.f32 %v4973_v26 }
0x217a   :  { %16818 = vpow2.f32 %v4975_v24  ;;  %v5375_v24 = vld [vmem:[#allocation5 + $0x30] sm:$0xff] }
0x217b   :  { %v16813_v45 = vpop.eup %16812 }
0x217c   :  { %v4977_v51 = vsel %vm832_vm8, %v16813_v45, 0.0 }
0x217d   :  { %4978 = vadd.xlane.f32.xlu0 %v4977_v51 }
0x217f   :  { %v16815_v33 = vpop.eup %16814 }
0x2180   :  { %v4980_v52 = vsel %vm832_vm8, %v16815_v33, 0.0 }
0x2181   :  { %4981 = vadd.xlane.f32.xlu1 %v4980_v52 }
0x2183   :  { %v16817_v53 = vpop.eup %16816 }
0x2184   :  { %v16819_v54 = vpop.eup %16818  ;;  %v4983_v55 = vsel %vm832_vm8, %v16817_v53, 0.0 }
0x2185   :  { %4984 = vadd.xlane.f32.xlu0 %v4983_v55  ;;  %v4986_v7 = vsel %vm832_vm8, %v16819_v54, 0.0 }
0x2186   :  { %4987 = vadd.xlane.f32.xlu1 %v4986_v7 }
0x2197   :  { %4580 = vrot.lane.b32.xlu1 %v18011_v35, %s19687_s22 }
0x219b   :  { %4582 = vrot.lane.b32.xlu0 %v18019_v36, %s19687_s22 }
0x220a   :  { %v4979_v58 = vpop.xlane.xlu0 %4978 }
0x220b   :  { %16820 = vrcp.f32 %v4979_v58 }
0x220e   :  { %v4982_v59 = vpop.xlane.xlu1 %4981 }
0x220f   :  { %16822 = vrcp.f32 %v4982_v59 }
0x2212   :  { %v4985_v49 = vpop.xlane.xlu0 %4984 }
0x2213   :  { %v4988_v60 = vpop.xlane.xlu1 %4987  ;;  %16824 = vrcp.f32 %v4985_v49 }
0x2214   :  { %16826 = vrcp.f32 %v4988_v60 }
0x2215   :  { %v16821_v6 = vpop.eup %16820 }
0x2216   :  { %v4583_v47 = vpop.permute.xlu0 %4582  ;;  %v4993_v16 = vmul.f32 %v16821_v6, %v16813_v45  ;;  %v5376_v45 = vld [vmem:[#allocation5 + $0x38] sm:$0xff] }
0x2217   :  { %v4596_v61 = vcombine.low %v4579_v57, %v4583_v47  ;;  %v4581_v62 = vpop.permute.xlu1 %4580  ;;  %v16479_v51 = vpack.c.bf16 %v5376_v45, %v5375_v24  ;;  %v14621_v24 = vld [vmem:[%s19633_s9 + $0x1] ss:$0 sm:$0xff] }
0x2218   :  { %v4588_v63 = vcombine.low %v4577_v56, %v4581_v62 }
0x2219   :  { %v4603_v3 = vrot.slane %v4596_v61, %v17384_v37  ;;  %v16823_v11 = vpop.eup %16822 }
0x221a   :  { %v4595_v28 = vrot.slane %v4588_v63, %v17384_v37  ;;  %v4994_v48 = vmul.f32 %v16823_v11, %v16815_v33 }
0x221c   :  { %v4604_v35 = vcombine.low %v4595_v28, %v4603_v3  ;;  %v14614_v3 = vld [vmem:[%s19631_s7 + $0x1] ss:$0 sm:$0xff] }
0x221d   :  { %v16825_v17 = vpop.eup %16824 }
0x221e   :  { %v4611_v36 = vrot.slane %v4604_v35, %v17390_v44  ;;  %v16827_v50 = vpop.eup %16826  ;;  %v4995_v22 = vmul.f32 %v16825_v17, %v16817_v53  ;;  %v5489_v17 = vld [vmem:[#allocation7 + $0x30] sm:$0xff] }
0x221f   :  { %v4996_v13 = vmul.f32 %v16827_v50, %v16819_v54  ;;  %v14624_v50 = vld [vmem:[%s19634_s10 + $0x48] sm:$0xff] }
0x2220   :  { %v4619_v27 = vcombine.high %v4611_v36, %v17111_v1  ;;  %v4618_v4 = vrot.slane %v4611_v36, %v17384_v37 }
0x2222   :  { %v4626_v5 = vrot.slane %v4619_v27, %v17384_v37 }
0x2224   :  { %v4627_v8 = vcombine.low %v4618_v4, %v4626_v5  ;;  %v4628_v9 = vcombine.high %v4618_v4, %v4626_v5 }
0x2226   :  { %v4635_v21 = vrot.slane %v4627_v8, %v17390_v44  ;;  %v4642_v15 = vrot.slane %v4628_v9, %v17390_v44 }
0x2228   :  { %15664 = vmatpush3.msk.msra.mxu0 %vm881_vm9, %v4635_v21  ;;  %v4643_v19 = vcombine.high %v4635_v21, %v17111_v1  ;;  %v4644_v20 = vcombine.high %v4642_v15, %v17111_v1  ;;  %v5487_v21 = vld [vmem:[#allocation7 + $0x20] sm:$0xff] }
0x2229   :  { %15666 = vmatmul.mubr.msk.f32.vlgmr.msra.gmra.mrb[44].mxu0 %vm877_vm10, %v4993_v16  ;;  %15673 = vmatprep.subr.mxu0 %v17111_v1 }
0x222a   :  { %15669 = vmatpush3.msk.msra.mxu1 %vm881_vm9, %v4643_v19  ;;  %15674 = vmatpush3.msk.msra.mxu0 %vm881_vm9, %v4642_v15  ;;  %v5488_v15 = vld [vmem:[#allocation7 + $0x28] sm:$0xff]  ;;  %v5490_v19 = vld [vmem:[#allocation7 + $0x38] sm:$0xff] }
0x222b   :  { %15671 = vmatmul.mubr.msk.f32.vlgmr.msra.gmra.mrb[42].mxu1 %vm877_vm10, %v4994_v48  ;;  %15678 = vmatprep.subr.mxu1 %v17111_v1  ;;  %v16482_v16 = vpack.c.bf16 %v5488_v15, %v5487_v21  ;;  %v16485_v48 = vpack.c.bf16 %v5490_v19, %v5489_v17  ;;  %v14640_v19 = vld [vmem:[%s19640_s16 + $0x30] sm:$0xff] }
0x222c   :  { %15675 = vmatprep.mubr.msk.f32.mxu0 %vm17110_vm0, %v17111_v1  ;;  %15679 = vmatpush3.msk.msra.mxu1 %vm881_vm9, %v4644_v20  ;;  %v14625_v20 = vld [vmem:[%s19634_s10 + $0x50] sm:$0xff] }
0x222d   :  { %15676 = vmatmul.mubr.msk.f32.vlgmr.msra.gmra.mrb[46].mxu0 %vm877_vm10, %v4995_v22  ;;  %15680 = vmatprep.mubr.msk.f32.mxu1 %vm17110_vm0, %v17111_v1 }
0x222e   :  { %16475 = vmatprep.subr.bf16.mxu0 %v17109_v0  ;;  %15691 = vmatprep.mubr.msk.f32.mxu0 %vm17110_vm0, %v17111_v1 }
0x222f   :  { %15681 = vmatmul.mubr.msk.f32.vlgmr.msra.gmra.mrb[44].mxu1 %vm877_vm10, %v4996_v13  ;;  %16481 = vmatprep.subr.bf16.mxu1 %v17109_v0  ;;  %v14626_v13 = vld [vmem:[%s19634_s10 + $0x58] sm:$0xff] }
0x2230   :  { %15702 = vmatprep.mubr.msk.f32.mxu1 %vm17110_vm0, %v17111_v1  ;;  %16477 = vmatpush3.bf16.msra.mxu0 %v16476_v43 }
0x2231   :  { %16478 = vmatprep.subr.bf16.mxu0 %v17109_v0  ;;  %16483 = vmatpush3.bf16.msra.mxu1 %v16482_v16  ;;  %v14639_v16 = vld [vmem:[%s19640_s16 + $0x28] sm:$0xff] }
0x2232   :  { %16484 = vmatprep.subr.bf16.mxu1 %v17109_v0 }
0x2234   :  { %16480 = vmatpush3.bf16.msra.mxu0 %v16479_v51 }
0x2235   :  { %16487 = vmatprep.subr.bf16.mxu0 %v17109_v0  ;;  %16486 = vmatpush3.bf16.msra.mxu1 %v16485_v48  ;;  %v14641_v48 = vld [vmem:[%s19640_s16 + $0x38] sm:$0xff] }
0x2236   :  { %16499 = vmatprep.subr.bf16.mxu1 %v17109_v0 }
0x22fc   :  { %v5069_v23 = vpop.f32.mrb[44].mxu0 }
0x22fd   :  { %v15667_v10 = vpop.f32.mrb[45].mxu0 }
0x22fe   :  { %v5145_v25 = vpop.f32.mrb[42].mxu1  ;;  %v14627_v10 = vld [vmem:[%s19634_s10 + $0x60] sm:$0xff] }
0x22ff   :  { %v15672_v29 = vpop.f32.mrb[43].mxu1 }
0x2300   :  { %v5221_v31 = vpop.f32.mrb[46].mxu0 }
0x2301   :  { %v5301_v32 = vcombine.low %v5069_v23, %v5221_v31  ;;  %v15677_v34 = vpop.f32.mrb[47].mxu0  ;;  %v16491_v23 = vpack.c.bf16 %v14626_v13, %v14625_v20 }
0x2302   :  { %v5297_v38 = vpop.f32.mrb[44].mxu1 }
0x2303   :  { %v5309_v39 = vcombine.low %v5145_v25, %v5297_v38  ;;  %v15682_v40 = vpop.f32.mrb[45].mxu1  ;;  %v5308_v12 = vrot.slane %v5301_v32, %v17384_v37  ;;  %v14628_v25 = vld [vmem:[%s19634_s10 + $0x68] sm:$0xff] }
0x2304   :  { %v16494_v29 = vpack.c.bf16 %v14628_v25, %v14627_v10 }
0x2305   :  { %v5316_v14 = vrot.slane %v5309_v39, %v17384_v37  ;;  %v14618_v39 = vld [vmem:[%s19636_s12 + $0x1] ss:$0 sm:$0xff] }
0x2307   :  { %v5317_v26 = vcombine.low %v5308_v12, %v5316_v14  ;;  %v14629_v12 = vld [vmem:[%s19634_s10 + $0x70] sm:$0xff]  ;;  %v14630_v14 = vld [vmem:[%s19634_s10 + $0x78] sm:$0xff] }
0x2309   :  { %v5324_v33 = vrot.slane %v5317_v26, %v17390_v44  ;;  %v16497_v26 = vpack.c.bf16 %v14630_v14, %v14629_v12 }
0x230b   :  { %v5332_v52 = vcombine.high %v5324_v33, %v17111_v1  ;;  %v5331_v53 = vrot.slane %v5324_v33, %v17384_v37 }
0x230d   :  { %v5339_v54 = vrot.slane %v5332_v52, %v17384_v37 }
0x230f   :  { %v5341_v55 = vcombine.high %v5331_v53, %v5339_v54  ;;  %v5340_v7 = vcombine.low %v5331_v53, %v5339_v54  ;;  %v5841_v53 = vld [vmem:[%s19680_s26] sm:$0xff]  ;;  %v5842_v54 = vld [vmem:[%s19680_s26 + $0x8] sm:$0x7f] }
0x2311   :  { %v5355_v56 = vrot.slane %v5341_v55, %v17390_v44  ;;  %v5348_v57 = vrot.slane %v5340_v7, %v17390_v44  ;;  %v16956_v55 = vld [vmem:[%s19681_s4] sm:$0x1f] }
0x2312   :  { %v5850_v7 = vrot.slane %v16956_v55, 2 }
0x2313   :  { %5363 = vrot.lane.b32.xlu0 %v5355_v56, %s19685_s20  ;;  %v5356_v58 = vcombine.high %v5348_v57, %v17111_v1  ;;  %v5357_v59 = vcombine.high %v5355_v56, %v17111_v1  ;;  %v16957_v56 = vld [vmem:[%s19681_s4 + $0x8] sm:$0x1f] }
0x2315   :  { %5359 = vrot.lane.b32.xlu1 %v5356_v58, %s19686_s8  ;;  %v16512_v58 = vpack.c.bf16 %v5842_v54, %v5841_v53  ;;  %v14644_v54 = vld [vmem:[%s19682_s29] ss:$0 sm:$0xff] }
0x2319   :  { %5367 = vrot.lane.b32.xlu1 %v5357_v59, %s19684_s1 }
0x2385   :  { %v5364_v47 = vpop.permute.xlu0 %5363 }
0x2387   :  { %v5360_v49 = vpop.permute.xlu1 %5359 }
0x2388   :  { %v5370_v60 = vsel %vm523_vm7, %v5348_v57, %v5360_v49  ;;  %v5851_v57 = vrot.slane %v16957_v56, 1  ;;  %v14555_v49 = vld [vmem:[%s19635_s11 + $0x1] ss:$0 sm:$0xff]  ;;  %v5940_v56 = vld [vmem:[#allocation2 + $0x18] sm:$0xff] }
0x2389   :  { %v5371_v61 = vsel %vm1253_vm11, %v5370_v60, %v5364_v47  ;;  %v14632_v60 = vld [vmem:[%s19635_s11 + $0x1] ss:$0 sm:$0xff] }
0x238a   :  { %v5852_v59 = vsel %vm146_vm4, %v5851_v57, %v5850_v7  ;;  %v5939_v7 = vld [vmem:[#allocation2 + $0x10] sm:$0xff] }
0x238b   :  { %v5368_v62 = vpop.permute.xlu1 %5367 }
0x238c   :  { %v5372_v63 = vsel %vm1255_vm12, %v5371_v61, %v5368_v62  ;;  %v2888_v61 = vadd.f32 %v14555_v49, %v17790_v46 }
0x238d   :  { %15692 = vmatmul.mubr.msk.f32.vlgmr.msra.gmra.mrb[48].mxu0 %vm244_vm6, %v5372_v63 }
0x238e   :  { %15721 = vmatprep.mubr.msk.f32.mxu0 %vm17110_vm0, %v17111_v1 }
0x2460   :  { %v5453_v28 = vpop.f32.mrb[48].mxu0 }
0x2461   :  { %v5454_v35 = vadd.f32 %v14614_v3, %v5453_v28  ;;  %v15693_v36 = vpop.f32.mrb[49].mxu0  ;;  %v2891_v28 = vadd.f32 %v2888_v61, %v17747_v18  ;;  %v14638_v18 = vld [vmem:[%s19640_s16 + $0x20] sm:$0xff] }
0x2462   :  { %v16500_v17 = vpack.c.bf16 %v14639_v16, %v14638_v18 }
0x2463   :  { %v5457_v27 = vadd.f32 %v5454_v35, %v17992_v30  ;;  %v14623_v30 = vld [vmem:[%s19634_s10 + $0x40] sm:$0xff]  ;;  %v2896_v36 = vsel %vm1344_vm13, %v2891_v28, 0.0 }
0x2464   :  { %v16488_v22 = vpack.c.bf16 %v14624_v50, %v14623_v30  ;;  %v16503_v30 = vpack.c.bf16 %v14641_v48, %v14640_v19 }
0x2465   :  { %v5460_v4 = vsel %vm1344_vm13, %v5457_v27, 0.0 }
0x2466   :  { %5461 = vadd.xlane.f32.xlu0 %v5460_v4  ;;  %16489 = vmatpush3.bf16.msra.mxu0 %v16488_v22 }
0x2467   :  { %16490 = vmatprep.subr.bf16.mxu0 %v17109_v0 }
0x246a   :  { %16492 = vmatpush3.bf16.msra.mxu0 %v16491_v23 }
0x246b   :  { %16493 = vmatprep.subr.bf16.mxu0 %v17109_v0 }
0x246e   :  { %16495 = vmatpush3.bf16.msra.mxu0 %v16494_v29 }
0x246f   :  { %16496 = vmatprep.subr.bf16.mxu0 %v17109_v0 }
0x2472   :  { %16498 = vmatpush3.bf16.msra.mxu0 %v16497_v26  ;;  %v2925_v26 = vld [vmem:[%s19640_s16 + $0x10] sm:$0xff] }
0x2473   :  { %16511 = vmatprep.subr.bf16.mxu0 %v17109_v0 }
0x24f3   :  { %v5462_v5 = vpop.xlane.xlu0 %5461 }
0x24f4   :  { %v5463_v6 = vmul.f32 0.03125, %v5462_v5 }
0x24f6   :  { %v5464_v8 = vsub.f32 %v5457_v27, %v5463_v6 }
0x24f8   :  { %v5465_v9 = vmul.f32 %v5464_v8, %v5464_v8 }
0x24fa   :  { %v5466_v11 = vsel %vm1344_vm13, %v5465_v9, 0.0 }
0x24fb   :  { %5467 = vadd.xlane.f32.xlu1 %v5466_v11 }
0x2588   :  { %v5468_v31 = vpop.xlane.xlu1 %5467 }
0x2589   :  { %v5469_v32 = vmul.f32 0.03125, %v5468_v31 }
0x258b   :  { %v5470_v34 = vadd.f32 1e-05, %v5469_v32  ;;  %v14636_v32 = vld [vmem:[%s19638_s14 + $0x1] ss:$0 sm:$0xff] }
0x258d   :  { %16828 = vrsqrt.f32 %v5470_v34 }
0x2597   :  { %v16829_v38 = vpop.eup %16828 }
0x2598   :  { %v5472_v40 = vmul.f32 %v16829_v38, %v5464_v8  ;;  %v2923_v38 = vld [vmem:[%s19640_s16] sm:$0xff] }
0x259a   :  { %v5479_v42 = vmul.f32 %v14618_v39, %v5472_v40  ;;  %v2924_v39 = vld [vmem:[%s19640_s16 + $0x8] sm:$0xff]  ;;  %v14637_v40 = vld [vmem:[%s19639_s15 + $0x1] ss:$0 sm:$0xff] }
0x259c   :  { %v5486_v43 = vadd.f32 %v14619_v41, %v5479_v42 }
0x259e   :  { %15703 = vmatmul.mubr.msk.f32.vlgmr.msra.gmra.mrb[46].mxu1 %vm244_vm6, %v5486_v43 }
0x259f   :  { %15732 = vmatprep.mubr.msk.f32.mxu1 %vm17110_vm0, %v17111_v1  ;;  %16501 = vmatpush3.bf16.msra.mxu1 %v16500_v17 }
0x25a0   :  { %16502 = vmatprep.subr.bf16.mxu1 %v17109_v0 }
0x25a3   :  { %16504 = vmatpush3.bf16.msra.mxu1 %v16503_v30 }
0x25a4   :  { %16505 = vmatprep.subr.bf16.mxu1 %v17109_v0 }
0x2671   :  { %v5567_v45 = vpop.f32.mrb[46].mxu1 }
0x2672   :  { %v5568_v51 = vadd.f32 %v14621_v24, %v5567_v45  ;;  %v15704_v33 = vpop.f32.mrb[47].mxu1  ;;  %v2926_v24 = vld [vmem:[%s19640_s16 + $0x18] sm:$0xff] }
0x2673   :  { %v16509_v45 = vpack.c.bf16 %v2926_v24, %v2925_v26  ;;  %v5937_v33 = vld [vmem:[#allocation2] sm:$0xff] }
0x2674   :  { %v5571_v52 = vmax.f32 %v5568_v51, 0.0 }
0x2676   :  { %15722 = vmatmul.mubr.msk.f32.vlgmr.msra.gmra.mrb[50].mxu0 %vm1473_vm14, %v5571_v52  ;;  %v5938_v52 = vld [vmem:[#allocation2 + $0x8] sm:$0xff] }
0x2677   :  { %15750 = vmatprep.mubr.msk.f32.mxu0 %vm17110_vm0, %v17111_v1  ;;  %16514 = vmatpush3.bf16.msk.msra.mxu0 %vm17320_vm3, %v16512_v58  ;;  %v16516_v53 = vpack.c.bf16 %v5938_v52, %v5937_v33  ;;  %v14648_v58 = vld [vmem:[%s19683_s2 + $0x2] ss:$0 sm:$0xff] }
0x2678   :  { %15764 = vmatprep.subr.mxu0 %v17111_v1 }
0x267a   :  { %15751 = vmatmul.mubr.msk.f32.vlgmr.msra.gmra.mrb[52].mxu0 %vm148_vm5, %v5852_v59  ;;  %v16519_v59 = vpack.c.bf16 %v5940_v56, %v5939_v7 }
0x267b   :  { %15766 = vmatprep.mubr.msk.f32.mxu0 %vm17110_vm0, %v17111_v1 }
0x2749   :  { %v5656_v47 = vpop.f32.mrb[50].mxu0 }
0x274a   :  { %v5657_v62 = vadd.f32 %v14632_v60, %v5656_v47  ;;  %v15723_v63 = vpop.f32.mrb[51].mxu0 }
0x274c   :  { %v5660_v3 = vadd.f32 %v5657_v62, %v5486_v43  ;;  %v16506_v43 = vpack.c.bf16 %v2924_v39, %v2923_v38 }
0x274d   :  { %v5924_v50 = vpop.f32.mrb[52].mxu0 }
0x274e   :  { %v5663_v35 = vsel %vm1344_vm13, %v5660_v3, 0.0  ;;  %v15752_v20 = vpop.f32.mrb[53].mxu0  ;;  %v5925_v57 = vadd.f32 %v14644_v54, %v5924_v50 }
0x274f   :  { %5664 = vadd.xlane.f32.xlu0 %v5663_v35 }
0x2750   :  { %v18263_v49 = vadd.f32 %v14648_v58, %v5925_v57 }
0x2753   :  { %2897 = vadd.xlane.f32.xlu0 %v2896_v36 }
0x27dc   :  { %v5665_v27 = vpop.xlane.xlu0 %5664 }
0x27dd   :  { %v5666_v4 = vmul.f32 0.03125, %v5665_v27 }
0x27df   :  { %v5667_v5 = vsub.f32 %v5660_v3, %v5666_v4  ;;  %v14649_v3 = vld [vmem:[%s19629_s5] ss:$0 sm:$0xff] }
0x27e0   :  { %v2898_v6 = vpop.xlane.xlu0 %2897 }
0x27e1   :  { %v2899_v8 = vmul.f32 0.03125, %v2898_v6  ;;  %v5668_v9 = vmul.f32 %v5667_v5, %v5667_v5 }
0x27e3   :  { %v2900_v11 = vsub.f32 %v2891_v28, %v2899_v8  ;;  %v5669_v46 = vsel %vm1344_vm13, %v5668_v9, 0.0 }
0x27e4   :  { %5670 = vadd.xlane.f32.xlu1 %v5669_v46 }
0x27e5   :  { %v2901_v21 = vmul.f32 %v2900_v11, %v2900_v11 }
0x27e7   :  { %v2902_v15 = vsel %vm1344_vm13, %v2901_v21, 0.0 }
0x27e8   :  { %2903 = vadd.xlane.f32.xlu0 %v2902_v15 }
0x2871   :  { %v5671_v22 = vpop.xlane.xlu1 %5670 }
0x2872   :  { %v5672_v13 = vmul.f32 0.03125, %v5671_v22 }
0x2874   :  { %v5673_v23 = vadd.f32 1e-05, %v5672_v13 }
0x2875   :  { %v2904_v10 = vpop.xlane.xlu0 %2903 }
0x2876   :  { %16830 = vrsqrt.f32 %v5673_v23  ;;  %v2905_v25 = vmul.f32 0.03125, %v2904_v10 }
0x2878   :  { %v2906_v29 = vadd.f32 1e-05, %v2905_v25 }
0x287a   :  { %16832 = vrsqrt.f32 %v2906_v29 }
0x2880   :  { %v16831_v31 = vpop.eup %16830 }
0x2881   :  { %v5675_v34 = vmul.f32 %v16831_v31, %v5667_v5 }
0x2883   :  { %v5682_v41 = vmul.f32 %v14636_v32, %v5675_v34 }
0x2884   :  { %v16833_v42 = vpop.eup %16832 }
0x2885   :  { %v2908_v12 = vmul.f32 %v16833_v42, %v2900_v11  ;;  %v5689_v14 = vadd.f32 %v14637_v40, %v5682_v41 }
0x2887   :  { %15733 = vmatmul.mubr.msk.f32.vlgmr.msra.gmra.mrb[48].mxu1 %vm244_vm6, %v5689_v14  ;;  %v2915_v51 = vmul.f32 %v14636_v32, %v2908_v12 }
0x2888   :  { %16507 = vmatpush3.bf16.msra.mxu1 %v16506_v43  ;;  %15743 = vmatprep.mubr.msk.f32.mxu1 %vm17110_vm0, %v17111_v1 }
0x2889   :  { %16508 = vmatprep.subr.bf16.mxu1 %v17109_v0  ;;  %v2922_v55 = vadd.f32 %v14637_v40, %v2915_v51 }
0x288c   :  { %16510 = vmatpush3.bf16.msra.mxu1 %v16509_v45 }
0x288d   :  { %16515 = vmatprep.subr.bf16.mxu1 %v17109_v0 }
0x288f   :  { %15744 = vmatmul.mubr.msk.f32.vlgmr.msra.gmra.mrb[50].mxu1 %vm244_vm6, %v2922_v55 }
0x2890   :  { %16517 = vmatpush3.bf16.msra.mxu1 %v16516_v53  ;;  %15761 = vmatprep.mubr.msk.f32.mxu1 %vm17110_vm0, %v17111_v1 }
0x2891   :  { %16518 = vmatprep.subr.bf16.mxu1 %v17109_v0 }
0x2894   :  { %16520 = vmatpush3.bf16.msra.mxu1 %v16519_v59 }
0x2895   :  { %15774 = vmatprep.subr.mxu1 %v17111_v1 }
0x2897   :  { %15762 = vmatmul.mubr.msk.f32.vlgmr.msra.gmra.mrb[52].mxu1 %vm244_vm6, %v18263_v49 }
0x2898   :  { %15776 = vmatprep.mubr.msk.f32.mxu1 %vm17110_vm0, %v17111_v1 }
0x295a   :  { %v5764_v60 = vpop.f32.mrb[48].mxu1 }
0x295b   :  { %v15734_v47 = vpop.f32.mrb[49].mxu1 }
0x2962   :  { %v5837_v61 = vpop.f32.mrb[50].mxu1 }
0x2963   :  { %v18270_v62 = vadd.f32 %v5837_v61, %v5764_v60  ;;  %v15745_v63 = vpop.f32.mrb[51].mxu1 }
0x296a   :  { %v6017_v28 = vpop.f32.mrb[52].mxu1 }
0x296b   :  { %v18275_v35 = vadd.f32 %v14649_v3, %v6017_v28  ;;  %v15763_v36 = vpop.f32.mrb[53].mxu1 }
0x296d   :  { %6025 = vrot.lane.b32.xlu0 %v18275_v35, %s19665_s27  ;;  %6022 = vrot.lane.b32.xlu1 %v18275_v35, %s19663_s19 }
0x2971   :  { %6028 = vrot.lane.b32.xlu1 %v18275_v35, %s19661_s23 }
0x2975   :  { %6088 = vrot.lane.b32.xlu1 %v18275_v35, %s19688_s6 }
0x29df   :  { %v18285_v27 = vpop.permute.xlu0 %6025  ;;  %v18287_v4 = vpop.permute.xlu1 %6022 }
0x29e0   :  { %6092 = vrot.lane.b32.xlu1 %v18285_v27, %s19688_s6  ;;  %6090 = vrot.lane.b32.xlu0 %v18287_v4, %s19688_s6  ;;  %v6031_v8 = vcombine.low %v18275_v35, %v18285_v27 }
0x29e2   :  { %v6038_v46 = vrot.slane %v6031_v8, %v17384_v37 }
0x29e3   :  { %v18293_v5 = vpop.permute.xlu1 %6028 }
0x29e4   :  { %6094 = vrot.lane.b32.xlu0 %v18293_v5, %s19688_s6  ;;  %v6039_v6 = vcombine.low %v18287_v4, %v18293_v5 }
0x29e6   :  { %v6046_v11 = vrot.slane %v6039_v6, %v17384_v37 }
0x29e7   :  { %v6089_v9 = vpop.permute.xlu1 %6088 }
0x29e8   :  { %v6047_v18 = vcombine.low %v6038_v46, %v6046_v11 }
0x29ea   :  { %v6054_v48 = vrot.slane %v6047_v18, %v17390_v44 }
0x29ec   :  { %v6062_v22 = vcombine.high %v6054_v48, %v17111_v1  ;;  %v6061_v31 = vrot.slane %v6054_v48, %v17384_v37 }
0x29ee   :  { %v6069_v10 = vrot.slane %v6062_v22, %v17384_v37 }
0x29f0   :  { %v6070_v38 = vcombine.low %v6061_v31, %v6069_v10  ;;  %v6071_v39 = vcombine.high %v6061_v31, %v6069_v10 }
0x29f2   :  { %v6078_v42 = vrot.slane %v6070_v38, %v17390_v44  ;;  %v6085_v43 = vrot.slane %v6071_v39, %v17390_v44 }
0x29f4   :  { %v6086_v14 = vcombine.high %v6078_v42, %v17111_v1  ;;  %v6087_v24 = vcombine.high %v6085_v43, %v17111_v1 }
0x2a52   :  { %v6091_v21 = vpop.permute.xlu0 %6090  ;;  %v6093_v15 = vpop.permute.xlu1 %6092 }
0x2a53   :  { %v6100_v16 = vcombine.low %v6089_v9, %v6093_v15 }
0x2a55   :  { %v6107_v30 = vrot.slane %v6100_v16, %v17384_v37 }
0x2a56   :  { %v6095_v17 = vpop.permute.xlu0 %6094 }
0x2a57   :  { %v6108_v19 = vcombine.low %v6091_v21, %v6095_v17 }
0x2a59   :  { %v6115_v50 = vrot.slane %v6108_v19, %v17384_v37 }
0x2a5b   :  { %v6116_v20 = vcombine.low %v6107_v30, %v6115_v50 }
0x2a5d   :  { %v6123_v13 = vrot.slane %v6116_v20, %v17390_v44 }
0x2a5f   :  { %v6131_v23 = vcombine.high %v6123_v13, %v17111_v1  ;;  %v6130_v25 = vrot.slane %v6123_v13, %v17384_v37 }
0x2a61   :  { %v6138_v29 = vrot.slane %v6131_v23, %v17384_v37 }
0x2a63   :  { %v6139_v32 = vcombine.low %v6130_v25, %v6138_v29  ;;  %v6140_v34 = vcombine.high %v6130_v25, %v6138_v29 }
0x2a65   :  { %v6147_v40 = vrot.slane %v6139_v32, %v17390_v44  ;;  %v6154_v41 = vrot.slane %v6140_v34, %v17390_v44 }
0x2a67   :  { %15765 = vmatpush3.xpose.msk.msra.mxu0 %vm523_vm7, %v6147_v40  ;;  %15775 = vmatpush3.xpose.msk.msra.mxu1 %vm523_vm7, %v6154_v41  ;;  %v6155_v12 = vcombine.high %v6147_v40, %v17111_v1  ;;  %v6156_v26 = vcombine.high %v6154_v41, %v17111_v1 }
0x2a68   :  { %15769 = vmatprep.subr.mxu0 %v17111_v1  ;;  %15784 = vmatprep.subr.mxu1 %v17111_v1 }
0x2a6a   :  { %15767 = vmatmul.mubr.msk.f32.vlgmr.msra.gmra.mrb[54].mxu0 %vm523_vm7, %v6078_v42  ;;  %15777 = vmatmul.mubr.msk.f32.vlgmr.msra.gmra.mrb[54].mxu1 %vm523_vm7, %v6085_v43 }
0x2a6b   :  { %15770 = vmatpush3.xpose.msk.msra.mxu0 %vm523_vm7, %v6155_v12  ;;  %15771 = vmatprep.mubr.msk.f32.mxu0 %vm17110_vm0, %v17111_v1 }
0x2a6c   :  { %15779 = vmatprep.subr.mxu0 %v17111_v1  ;;  %15786 = vmatprep.mubr.msk.f32.mxu1 %vm17110_vm0, %v17111_v1 }
0x2a6e   :  { %15772 = vmatmul.mubr.msk.f32.vlgmr.msra.gmra.mrb[56].mxu0 %vm523_vm7, %v6086_v14 }
0x2a6f   :  { %15780 = vmatpush3.xpose.msk.msra.mxu0 %vm523_vm7, %v6156_v26  ;;  %15781 = vmatprep.mubr.msk.f32.mxu0 %vm17110_vm0, %v17111_v1 }
0x2a70   :  { %15789 = vmatprep.subr.mxu0 %v17111_v1 }
0x2a72   :  { %15782 = vmatmul.mubr.msk.f32.vlgmr.msra.gmra.mrb[58].mxu0 %vm523_vm7, %v6087_v24 }
0x2a73   :  { %15791 = vmatprep.mubr.msk.f32.mxu0 %vm17110_vm0, %v17111_v1 }
0x2b3d   :  { %v6298_v45 = vpop.f32.mrb[54].mxu0  ;;  %v6450_v51 = vpop.f32.mrb[54].mxu1 }
0x2b3e   :  { %v6530_v33 = vmul.f32 0.35355338, %v6298_v45  ;;  %v15768_v52 = vpop.f32.mrb[55].mxu0  ;;  %v15778_v53 = vpop.f32.mrb[55].mxu1  ;;  %v6532_v57 = vmul.f32 0.35355338, %v6450_v51 }
0x2b40   :  { %v6534_v54 = vsel %vm832_vm8, %v6530_v33, -inf  ;;  %v6540_v63 = vsel %vm832_vm8, %v6532_v57, -inf }
0x2b41   :  { %6535 = vmax.xlane.f32.xlu1 %v6534_v54  ;;  %v6374_v55 = vpop.f32.mrb[56].mxu0 }
0x2b42   :  { %v6531_v7 = vmul.f32 0.35355338, %v6374_v55  ;;  %v15773_v56 = vpop.f32.mrb[57].mxu0 }
0x2b44   :  { %v6537_v58 = vsel %vm832_vm8, %v6531_v7, -inf }
0x2b45   :  { %6538 = vmax.xlane.f32.xlu0 %v6537_v58  ;;  %v6526_v59 = vpop.f32.mrb[58].mxu0 }
0x2b46   :  { %v6533_v60 = vmul.f32 0.35355338, %v6526_v59  ;;  %v15783_v47 = vpop.f32.mrb[59].mxu0 }
0x2b48   :  { %v6543_v61 = vsel %vm832_vm8, %v6533_v60, -inf }
0x2b49   :  { %6544 = vmax.xlane.f32.xlu1 %v6543_v61  ;;  %6541 = vmax.xlane.f32.xlu0 %v6540_v63 }
0x2b5a   :  { %6159 = vrot.lane.b32.xlu1 %v18287_v4, %s19687_s22 }
0x2b5f   :  { %6157 = vrot.lane.b32.xlu0 %v18275_v35, %s19687_s22 }
0x2bce   :  { %v6536_v3 = vpop.xlane.xlu1 %6535 }
0x2bcf   :  { %v6546_v28 = vsub.f32 %v6530_v33, %v6536_v3 }
0x2bd1   :  { %v6550_v36 = vmul.f32 1.442695, %v6546_v28 }
0x2bd2   :  { %v6539_v6 = vpop.xlane.xlu0 %6538 }
0x2bd3   :  { %16834 = vpow2.f32 %v6550_v36  ;;  %v6547_v8 = vsub.f32 %v6531_v7, %v6539_v6 }
0x2bd5   :  { %v6552_v9 = vmul.f32 1.442695, %v6547_v8  ;;  %v6954_v8 = vld [vmem:[#allocation5] sm:$0xff] }
0x2bd6   :  { %v6545_v11 = vpop.xlane.xlu1 %6544  ;;  %v6542_v46 = vpop.xlane.xlu0 %6541 }
0x2bd7   :  { %16836 = vpow2.f32 %v6552_v9  ;;  %v6549_v21 = vsub.f32 %v6533_v60, %v6545_v11  ;;  %v6548_v15 = vsub.f32 %v6532_v57, %v6542_v46  ;;  %v6955_v9 = vld [vmem:[#allocation5 + $0x8] sm:$0xff] }
0x2bd8   :  { %v16522_v11 = vpack.c.bf16 %v6955_v9, %v6954_v8 }
0x2bd9   :  { %v6556_v18 = vmul.f32 1.442695, %v6549_v21  ;;  %v6554_v16 = vmul.f32 1.442695, %v6548_v15 }
0x2bda   :  { %v6160_v22 = vpop.permute.xlu1 %6159  ;;  %v6158_v13 = vpop.permute.xlu0 %6157 }
0x2bdb   :  { %16838 = vpow2.f32 %v6556_v18  ;;  %v6956_v18 = vld [vmem:[#allocation5 + $0x10] sm:$0xff] }
0x2bdc   :  { %16840 = vpow2.f32 %v6554_v16  ;;  %v6957_v16 = vld [vmem:[#allocation5 + $0x18] sm:$0xff] }
0x2bdd   :  { %v16835_v4 = vpop.eup %16834 }
0x2bde   :  { %v6558_v17 = vsel %vm832_vm8, %v16835_v4, 0.0 }
0x2bdf   :  { %6559 = vadd.xlane.f32.xlu0 %v6558_v17 }
0x2be1   :  { %v16837_v35 = vpop.eup %16836 }
0x2be2   :  { %v6561_v19 = vsel %vm832_vm8, %v16837_v35, 0.0 }
0x2be3   :  { %6562 = vadd.xlane.f32.xlu1 %v6561_v19 }
0x2be5   :  { %v16839_v48 = vpop.eup %16838 }
0x2be6   :  { %v16841_v30 = vpop.eup %16840  ;;  %v6567_v50 = vsel %vm832_vm8, %v16839_v48, 0.0 }
0x2be7   :  { %6568 = vadd.xlane.f32.xlu1 %v6567_v50  ;;  %v6564_v20 = vsel %vm832_vm8, %v16841_v30, 0.0 }
0x2be8   :  { %6565 = vadd.xlane.f32.xlu0 %v6564_v20 }
0x2bf8   :  { %6161 = vrot.lane.b32.xlu1 %v18285_v27, %s19687_s22 }
0x2bfe   :  { %6163 = vrot.lane.b32.xlu0 %v18293_v5, %s19687_s22 }
0x2c6c   :  { %v6560_v10 = vpop.xlane.xlu0 %6559 }
0x2c6d   :  { %16842 = vrcp.f32 %v6560_v10 }
0x2c70   :  { %v6563_v23 = vpop.xlane.xlu1 %6562 }
0x2c71   :  { %16844 = vrcp.f32 %v6563_v23 }
0x2c74   :  { %v6569_v25 = vpop.xlane.xlu1 %6568 }
0x2c75   :  { %v6566_v29 = vpop.xlane.xlu0 %6565 }
0x2c76   :  { %16846 = vrcp.f32 %v6566_v29 }
0x2c77   :  { %16848 = vrcp.f32 %v6569_v25  ;;  %v16843_v12 = vpop.eup %16842 }
0x2c78   :  { %v6162_v31 = vpop.permute.xlu1 %6161  ;;  %v6574_v33 = vmul.f32 %v16843_v12, %v16835_v4  ;;  %v16525_v4 = vpack.c.bf16 %v6957_v16, %v6956_v18 }
0x2c79   :  { %v6169_v32 = vcombine.low %v6158_v13, %v6162_v31  ;;  %v6164_v34 = vpop.permute.xlu0 %6163 }
0x2c7a   :  { %v6177_v38 = vcombine.low %v6160_v22, %v6164_v34 }
0x2c7b   :  { %v6176_v39 = vrot.slane %v6169_v32, %v17384_v37  ;;  %v16845_v24 = vpop.eup %16844 }
0x2c7c   :  { %v6184_v40 = vrot.slane %v6177_v38, %v17384_v37  ;;  %v6575_v54 = vmul.f32 %v16845_v24, %v16837_v35  ;;  %v14667_v38 = vld [vmem:[%s19631_s7] ss:$0 sm:$0xff]  ;;  %v7068_v24 = vld [vmem:[#allocation7] sm:$0xff] }
0x2c7e   :  { %v6185_v27 = vcombine.low %v6176_v39, %v6184_v40 }
0x2c80   :  { %v6192_v5 = vrot.slane %v6185_v27, %v17390_v44  ;;  %v16847_v52 = vpop.eup %16846 }
0x2c81   :  { %v16849_v55 = vpop.eup %16848  ;;  %v6576_v56 = vmul.f32 %v16847_v52, %v16841_v30  ;;  %v7071_v52 = vld [vmem:[#allocation7 + $0x18] sm:$0xff] }
0x2c82   :  { %v6200_v41 = vcombine.high %v6192_v5, %v17111_v1  ;;  %v6199_v42 = vrot.slane %v6192_v5, %v17384_v37  ;;  %v6577_v57 = vmul.f32 %v16849_v55, %v16839_v48  ;;  %v7155_v55 = vld [vmem:[%s19634_s10 + $0x10] sm:$0xff] }
0x2c84   :  { %v6207_v43 = vrot.slane %v6200_v41, %v17384_v37 }
0x2c86   :  { %v6208_v14 = vcombine.low %v6199_v42, %v6207_v43  ;;  %v6209_v26 = vcombine.high %v6199_v42, %v6207_v43 }
0x2c88   :  { %v6216_v45 = vrot.slane %v6208_v14, %v17390_v44  ;;  %v6223_v51 = vrot.slane %v6209_v26, %v17390_v44 }
0x2c8a   :  { %15785 = vmatpush3.msk.msra.mxu1 %vm881_vm9, %v6216_v45  ;;  %v6224_v53 = vcombine.high %v6216_v45, %v17111_v1  ;;  %v6225_v7 = vcombine.high %v6223_v51, %v17111_v1  ;;  %v7069_v45 = vld [vmem:[#allocation7 + $0x8] sm:$0xff] }
0x2c8b   :  { %15787 = vmatmul.mubr.msk.f32.vlgmr.msra.gmra.mrb[56].mxu1 %vm877_vm10, %v6574_v33  ;;  %15794 = vmatprep.subr.mxu1 %v17111_v1  ;;  %v7070_v33 = vld [vmem:[#allocation7 + $0x10] sm:$0xff] }
0x2c8c   :  { %15790 = vmatpush3.msk.msra.mxu0 %vm881_vm9, %v6224_v53  ;;  %15795 = vmatpush3.msk.msra.mxu1 %vm881_vm9, %v6223_v51  ;;  %v16528_v51 = vpack.c.bf16 %v7069_v45, %v7068_v24  ;;  %v16531_v53 = vpack.c.bf16 %v7071_v52, %v7070_v33  ;;  %v14678_v24 = vld [vmem:[%s19629_s5 + $0x1] ss:$0 sm:$0xff] }
0x2c8d   :  { %15792 = vmatmul.mubr.msk.f32.vlgmr.msra.gmra.mrb[60].mxu0 %vm877_vm10, %v6575_v54  ;;  %15799 = vmatprep.subr.mxu0 %v17111_v1  ;;  %v7154_v54 = vld [vmem:[%s19634_s10 + $0x8] sm:$0xff] }
0x2c8e   :  { %15796 = vmatprep.mubr.msk.f32.mxu1 %vm17110_vm0, %v17111_v1  ;;  %15800 = vmatpush3.msk.msra.mxu0 %vm881_vm9, %v6225_v7 }
0x2c8f   :  { %15797 = vmatmul.mubr.msk.f32.vlgmr.msra.gmra.mrb[58].mxu1 %vm877_vm10, %v6576_v56  ;;  %15801 = vmatprep.mubr.msk.f32.mxu0 %vm17110_vm0, %v17111_v1  ;;  %v7156_v56 = vld [vmem:[%s19634_s10 + $0x18] sm:$0xff] }
0x2c90   :  { %16521 = vmatprep.subr.bf16.mxu1 %v17109_v0  ;;  %15812 = vmatprep.mubr.msk.f32.mxu1 %vm17110_vm0, %v17111_v1 }
0x2c91   :  { %15802 = vmatmul.mubr.msk.f32.vlgmr.msra.gmra.mrb[62].mxu0 %vm877_vm10, %v6577_v57  ;;  %16527 = vmatprep.subr.bf16.mxu0 %v17109_v0  ;;  %v16537_v57 = vpack.c.bf16 %v7156_v56, %v7155_v55 }
0x2c92   :  { %15823 = vmatprep.mubr.msk.f32.mxu0 %vm17110_vm0, %v17111_v1  ;;  %16523 = vmatpush3.bf16.msra.mxu1 %v16522_v11  ;;  %v7159_v11 = vld [vmem:[%s19634_s10 + $0x30] sm:$0xff] }
0x2c93   :  { %16524 = vmatprep.subr.bf16.mxu1 %v17109_v0  ;;  %16529 = vmatpush3.bf16.msra.mxu0 %v16528_v51 }
0x2c94   :  { %16530 = vmatprep.subr.bf16.mxu0 %v17109_v0 }
0x2c96   :  { %16526 = vmatpush3.bf16.msra.mxu1 %v16525_v4 }
0x2c97   :  { %16533 = vmatprep.subr.bf16.mxu1 %v17109_v0  ;;  %16532 = vmatpush3.bf16.msra.mxu0 %v16531_v53 }
0x2c98   :  { %16545 = vmatprep.subr.bf16.mxu0 %v17109_v0 }
0x2d5e   :  { %v6650_v58 = vpop.f32.mrb[56].mxu1 }
0x2d5f   :  { %v15788_v59 = vpop.f32.mrb[57].mxu1 }
0x2d60   :  { %v6726_v60 = vpop.f32.mrb[60].mxu0  ;;  %v7158_v59 = vld [vmem:[%s19634_s10 + $0x28] sm:$0xff] }
0x2d61   :  { %v15793_v47 = vpop.f32.mrb[61].mxu0 }
0x2d62   :  { %v6802_v61 = vpop.f32.mrb[58].mxu1 }
0x2d63   :  { %v6882_v63 = vcombine.low %v6650_v58, %v6802_v61  ;;  %v15798_v3 = vpop.f32.mrb[59].mxu1  ;;  %v7157_v58 = vld [vmem:[%s19634_s10 + $0x20] sm:$0xff] }
0x2d64   :  { %v6878_v28 = vpop.f32.mrb[62].mxu0 }
0x2d65   :  { %v6890_v36 = vcombine.low %v6726_v60, %v6878_v28  ;;  %v15803_v6 = vpop.f32.mrb[63].mxu0  ;;  %v6889_v46 = vrot.slane %v6882_v63, %v17384_v37  ;;  %v16540_v60 = vpack.c.bf16 %v7158_v59, %v7157_v58  ;;  %v14669_v28 = vld [vmem:[%s19636_s12] ss:$0 sm:$0xff] }
0x2d66   :  { %v14670_v6 = vld [vmem:[%s19637_s13] ss:$0 sm:$0xff] }
0x2d67   :  { %v6897_v21 = vrot.slane %v6890_v36, %v17384_v37 }
0x2d69   :  { %v6898_v15 = vcombine.low %v6889_v46, %v6897_v21  ;;  %v7160_v46 = vld [vmem:[%s19634_s10 + $0x38] sm:$0xff] }
0x2d6a   :  { %v16543_v21 = vpack.c.bf16 %v7160_v46, %v7159_v11 }
0x2d6b   :  { %v6905_v17 = vrot.slane %v6898_v15, %v17390_v44  ;;  %v14671_v15 = vld [vmem:[%s19633_s9] ss:$0 sm:$0xff] }
0x2d6d   :  { %v6913_v35 = vcombine.high %v6905_v17, %v17111_v1  ;;  %v6912_v19 = vrot.slane %v6905_v17, %v17384_v37 }
0x2d6f   :  { %v6920_v48 = vrot.slane %v6913_v35, %v17384_v37  ;;  %v14673_v35 = vld [vmem:[%s19635_s11] ss:$0 sm:$0xff] }
0x2d71   :  { %v6922_v30 = vcombine.high %v6912_v19, %v6920_v48  ;;  %v6921_v50 = vcombine.low %v6912_v19, %v6920_v48 }
0x2d73   :  { %v6936_v20 = vrot.slane %v6922_v30, %v17390_v44  ;;  %v6929_v22 = vrot.slane %v6921_v50, %v17390_v44 }
0x2d75   :  { %6944 = vrot.lane.b32.xlu0 %v6936_v20, %s19685_s20  ;;  %v6937_v13 = vcombine.high %v6929_v22, %v17111_v1  ;;  %v6938_v23 = vcombine.high %v6936_v20, %v17111_v1 }
0x2d77   :  { %6940 = vrot.lane.b32.xlu1 %v6937_v13, %s19686_s8 }
0x2d7b   :  { %6948 = vrot.lane.b32.xlu1 %v6938_v23, %s19684_s1 }
0x2de7   :  { %v6945_v29 = vpop.permute.xlu0 %6944 }
0x2de9   :  { %v6941_v10 = vpop.permute.xlu1 %6940 }
0x2dea   :  { %v6951_v25 = vsel %vm523_vm7, %v6929_v22, %v6941_v10 }
0x2deb   :  { %v6952_v31 = vsel %vm1253_vm11, %v6951_v25, %v6945_v29  ;;  %v7271_v29 = vld [vmem:[#allocation2 + $0x20] sm:$0xff] }
0x2ded   :  { %v6949_v32 = vpop.permute.xlu1 %6948 }
0x2dee   :  { %v6953_v34 = vsel %vm1255_vm12, %v6952_v31, %v6949_v32  ;;  %v7272_v31 = vld [vmem:[#allocation2 + $0x28] sm:$0xff] }
0x2def   :  { %15813 = vmatmul.mubr.msk.f32.vlgmr.msra.gmra.mrb[60].mxu1 %vm244_vm6, %v6953_v34  ;;  %v16546_v32 = vpack.c.bf16 %v7272_v31, %v7271_v29  ;;  %v7273_v34 = vld [vmem:[#allocation2 + $0x30] sm:$0xff] }
0x2df0   :  { %15842 = vmatprep.mubr.msk.f32.mxu1 %vm17110_vm0, %v17111_v1 }
0x2ec2   :  { %v7034_v39 = vpop.f32.mrb[60].mxu1 }
0x2ec3   :  { %v7035_v40 = vadd.f32 %v14667_v38, %v7034_v39  ;;  %v15814_v27 = vpop.f32.mrb[61].mxu1  ;;  %v7274_v38 = vld [vmem:[#allocation2 + $0x38] sm:$0xff] }
0x2ec4   :  { %v16549_v39 = vpack.c.bf16 %v7274_v38, %v7273_v34 }
0x2ec5   :  { %v7038_v5 = vadd.f32 %v7035_v40, %v18263_v49  ;;  %v7153_v49 = vld [vmem:[%s19634_s10] sm:$0xff] }
0x2ec6   :  { %v16534_v7 = vpack.c.bf16 %v7154_v54, %v7153_v49 }
0x2ec7   :  { %v7041_v41 = vsel %vm1344_vm13, %v7038_v5, 0.0 }
0x2ec8   :  { %7042 = vadd.xlane.f32.xlu0 %v7041_v41  ;;  %16535 = vmatpush3.bf16.msra.mxu1 %v16534_v7 }
0x2ec9   :  { %16536 = vmatprep.subr.bf16.mxu1 %v17109_v0 }
0x2ecc   :  { %16538 = vmatpush3.bf16.msra.mxu1 %v16537_v57 }
0x2ecd   :  { %16539 = vmatprep.subr.bf16.mxu1 %v17109_v0 }
0x2ed0   :  { %16541 = vmatpush3.bf16.msra.mxu1 %v16540_v60 }
0x2ed1   :  { %16542 = vmatprep.subr.bf16.mxu1 %v17109_v0 }
0x2ed4   :  { %16544 = vmatpush3.bf16.msra.mxu1 %v16543_v21 }
0x2ed5   :  { %15866 = vmatprep.subr.mxu1 %v17111_v1 }
0x2f55   :  { %v7043_v42 = vpop.xlane.xlu0 %7042 }
0x2f56   :  { %v7044_v43 = vmul.f32 0.03125, %v7043_v42  ;;  %v14675_v42 = vld [vmem:[%s19638_s14] ss:$0 sm:$0xff] }
0x2f58   :  { %v7045_v12 = vsub.f32 %v7038_v5, %v7044_v43 }
0x2f5a   :  { %v7046_v14 = vmul.f32 %v7045_v12, %v7045_v12 }
0x2f5c   :  { %v7047_v26 = vsel %vm1344_vm13, %v7046_v14, 0.0 }
0x2f5d   :  { %7048 = vadd.xlane.f32.xlu1 %v7047_v26 }
0x2fea   :  { %v7049_v47 = vpop.xlane.xlu1 %7048 }
0x2feb   :  { %v7050_v61 = vmul.f32 0.03125, %v7049_v47 }
0x2fed   :  { %v7051_v63 = vadd.f32 1e-05, %v7050_v61 }
0x2fef   :  { %16850 = vrsqrt.f32 %v7051_v63 }
0x2ff9   :  { %v16851_v3 = vpop.eup %16850 }
0x2ffa   :  { %v7053_v36 = vmul.f32 %v16851_v3, %v7045_v12  ;;  %v14676_v12 = vld [vmem:[%s19639_s15] ss:$0 sm:$0xff] }
0x2ffc   :  { %v7060_v8 = vmul.f32 %v14669_v28, %v7053_v36 }
0x2ffe   :  { %v7067_v9 = vadd.f32 %v14670_v6, %v7060_v8 }
0x3000   :  { %15824 = vmatmul.mubr.msk.f32.vlgmr.msra.gmra.mrb[64].mxu0 %vm244_vm6, %v7067_v9 }
0x3001   :  { %15853 = vmatprep.mubr.msk.f32.mxu0 %vm17110_vm0, %v17111_v1  ;;  %16547 = vmatpush3.bf16.msra.mxu0 %v16546_v32 }
0x3002   :  { %16548 = vmatprep.subr.bf16.mxu0 %v17109_v0 }
0x3005   :  { %16550 = vmatpush3.bf16.msra.mxu0 %v16549_v39 }
0x3006   :  { %15856 = vmatprep.subr.mxu0 %v17111_v1 }
0x30d3   :  { %v7148_v18 = vpop.f32.mrb[64].mxu0 }
0x30d4   :  { %v7149_v16 = vadd.f32 %v14671_v15, %v7148_v18  ;;  %v15825_v4 = vpop.f32.mrb[65].mxu0 }
0x30d6   :  { %v7152_v17 = vmax.f32 %v7149_v16, 0.0 }
0x30d8   :  { %15843 = vmatmul.mubr.msk.f32.vlgmr.msra.gmra.mrb[62].mxu1 %vm1473_vm14, %v7152_v17 }
0x30d9   :  { %15868 = vmatprep.mubr.msk.f32.mxu1 %vm17110_vm0, %v17111_v1 }
0x31ab   :  { %v7237_v19 = vpop.f32.mrb[62].mxu1 }
0x31ac   :  { %v7238_v48 = vadd.f32 %v14673_v35, %v7237_v19  ;;  %v15844_v30 = vpop.f32.mrb[63].mxu1 }
0x31ae   :  { %v7241_v50 = vadd.f32 %v7238_v48, %v7067_v9 }
0x31b0   :  { %v7244_v20 = vsel %vm1344_vm13, %v7241_v50, 0.0 }
0x31b1   :  { %7245 = vadd.xlane.f32.xlu0 %v7244_v20 }
0x323e   :  { %v7246_v22 = vpop.xlane.xlu0 %7245 }
0x323f   :  { %v7247_v13 = vmul.f32 0.03125, %v7246_v22 }
0x3241   :  { %v7248_v23 = vsub.f32 %v7241_v50, %v7247_v13 }
0x3243   :  { %v7249_v10 = vmul.f32 %v7248_v23, %v7248_v23 }
0x3245   :  { %v7250_v25 = vsel %vm1344_vm13, %v7249_v10, 0.0 }
0x3246   :  { %7251 = vadd.xlane.f32.xlu0 %v7250_v25 }
0x32d3   :  { %v7252_v40 = vpop.xlane.xlu0 %7251 }
0x32d4   :  { %v7253_v27 = vmul.f32 0.03125, %v7252_v40 }
0x32d6   :  { %v7254_v5 = vadd.f32 1e-05, %v7253_v27 }
0x32d8   :  { %16852 = vrsqrt.f32 %v7254_v5 }
0x32e2   :  { %v16853_v41 = vpop.eup %16852 }
0x32e3   :  { %v7256_v43 = vmul.f32 %v16853_v41, %v7248_v23 }
0x32e5   :  { %v7263_v14 = vmul.f32 %v14675_v42, %v7256_v43 }
0x32e7   :  { %v18472_v26 = vadd.f32 %v14676_v12, %v7263_v14 }
0x32e9   :  { %15854 = vmatmul.mubr.msk.f32.vlgmr.msra.gmra.mrb[66].mxu0 %vm244_vm6, %v18472_v26 }
0x32ea   :  { %15858 = vmatprep.mubr.msk.f32.mxu0 %vm17110_vm0, %v17111_v1 }
0x33bc   :  { %v7351_v45 = vpop.f32.mrb[66].mxu0 }
0x33bd   :  { %v18481_v51 = vadd.f32 %v14678_v24, %v7351_v45  ;;  %v15855_v33 = vpop.f32.mrb[67].mxu0 }
0x33bf   :  { %7359 = vrot.lane.b32.xlu0 %v18481_v51, %s19665_s27  ;;  %7356 = vrot.lane.b32.xlu1 %v18481_v51, %s19663_s19  ;;  %s17122_s27 = smov [#allocation11]  }
0x33c0   :  { %s14474_s24 = sshll.u32 %s17122_s27, 4  ;;  %s14475_s24 = int_to_ptr.vmem [resolvable:$true] %s14474_s24 }
0x33c1   :  { %s17072_s23 = scalar_lea.vmem %s14475_s24, 32  ;;  %p17077_p13 = scmp.lt.s32.totalorder %s14475_s24, %s14475_s24 }
0x33c2   :  { %p17073_p12 = scmp.ne.s32.totalorder %s14475_s24, %s17072_s23  ;;  %p17078_p0 = scmp.lt.s32.totalorder %s17072_s23, %s17072_s23 }
0x33c3   :  { %7362 = vrot.lane.b32.xlu1 %v18481_v51, %s19689_s18 }
0x33c4   :  { %p17079_p1 = por %p17078_p0, %p17077_p13 }
0x33c6   :  { %p17080_p2 = pnand %p17079_p1, %p17073_p12 }
0x33c7   :  { %7422 = vrot.lane.b32.xlu1 %v18481_v51, %s19688_s6 }
0x3431   :  { %v18491_v52 = vpop.permute.xlu0 %7359  ;;  %v18493_v53 = vpop.permute.xlu1 %7356 }
0x3432   :  { %7426 = vrot.lane.b32.xlu1 %v18491_v52, %s19688_s6  ;;  %7424 = vrot.lane.b32.xlu0 %v18493_v53, %s19688_s6  ;;  %v7365_v55 = vcombine.low %v18481_v51, %v18491_v52 }
0x3434   :  { %v7372_v57 = vrot.slane %v7365_v55, %v17384_v37 }
0x3435   :  { %v18499_v49 = vpop.permute.xlu1 %7362 }
0x3436   :  { %7428 = vrot.lane.b32.xlu0 %v18499_v49, %s19688_s6  ;;  %v7373_v54 = vcombine.low %v18493_v53, %v18499_v49 }
0x3438   :  { %v7380_v56 = vrot.slane %v7373_v54, %v17384_v37 }
0x3439   :  { %v7423_v7 = vpop.permute.xlu1 %7422 }
0x343a   :  { %v7381_v60 = vcombine.low %v7372_v57, %v7380_v56 }
0x343c   :  { %v7388_v3 = vrot.slane %v7381_v60, %v17390_v44 }
0x343e   :  { %v7396_v8 = vcombine.high %v7388_v3, %v17111_v1  ;;  %v7395_v18 = vrot.slane %v7388_v3, %v17384_v37 }
0x3440   :  { %v7403_v46 = vrot.slane %v7396_v8, %v17384_v37 }
0x3442   :  { %v7404_v17 = vcombine.low %v7395_v18, %v7403_v46  ;;  %v7405_v35 = vcombine.high %v7395_v18, %v7403_v46 }
0x3444   :  { %v7412_v30 = vrot.slane %v7404_v17, %v17390_v44  ;;  %v7419_v50 = vrot.slane %v7405_v35, %v17390_v44 }
0x3446   :  { %v7420_v22 = vcombine.high %v7412_v30, %v17111_v1  ;;  %v7421_v23 = vcombine.high %v7419_v50, %v17111_v1 }
0x34a4   :  { %v7425_v58 = vpop.permute.xlu0 %7424  ;;  %v7427_v59 = vpop.permute.xlu1 %7426 }
0x34a5   :  { %v7434_v47 = vcombine.low %v7423_v7, %v7427_v59 }
0x34a7   :  { %v7441_v28 = vrot.slane %v7434_v47, %v17384_v37 }
0x34a8   :  { %v7429_v61 = vpop.permute.xlu0 %7428 }
0x34a9   :  { %v7442_v63 = vcombine.low %v7425_v58, %v7429_v61 }
0x34ab   :  { %v7449_v36 = vrot.slane %v7442_v63, %v17384_v37 }
0x34ad   :  { %v7450_v6 = vcombine.low %v7441_v28, %v7449_v36 }
0x34af   :  { %v7457_v9 = vrot.slane %v7450_v6, %v17390_v44 }
0x34b1   :  { %v7465_v11 = vcombine.high %v7457_v9, %v17111_v1  ;;  %v7464_v21 = vrot.slane %v7457_v9, %v17384_v37 }
0x34b3   :  { %v7472_v15 = vrot.slane %v7465_v11, %v17384_v37 }
0x34b5   :  { %v7473_v16 = vcombine.low %v7464_v21, %v7472_v15  ;;  %v7474_v4 = vcombine.high %v7464_v21, %v7472_v15 }
0x34b7   :  { %v7481_v19 = vrot.slane %v7473_v16, %v17390_v44  ;;  %v7488_v48 = vrot.slane %v7474_v4, %v17390_v44 }
0x34b9   :  { %15857 = vmatpush3.xpose.msk.msra.mxu0 %vm523_vm7, %v7481_v19  ;;  %15867 = vmatpush3.xpose.msk.msra.mxu1 %vm523_vm7, %v7488_v48  ;;  %v7489_v20 = vcombine.high %v7481_v19, %v17111_v1  ;;  %v7490_v13 = vcombine.high %v7488_v48, %v17111_v1 }
0x34ba   :  { %15861 = vmatprep.subr.mxu0 %v17111_v1  ;;  %15876 = vmatprep.subr.mxu1 %v17111_v1 }
0x34bc   :  { %15859 = vmatmul.mubr.msk.f32.vlgmr.msra.gmra.mrb[68].mxu0 %vm523_vm7, %v7412_v30  ;;  %15869 = vmatmul.mubr.msk.f32.vlgmr.msra.gmra.mrb[64].mxu1 %vm523_vm7, %v7419_v50 }
0x34bd   :  { %15862 = vmatpush3.xpose.msk.msra.mxu0 %vm523_vm7, %v7489_v20  ;;  %15863 = vmatprep.mubr.msk.f32.mxu0 %vm17110_vm0, %v17111_v1 }
0x34be   :  { %15871 = vmatprep.subr.mxu0 %v17111_v1  ;;  %15878 = vmatprep.mubr.msk.f32.mxu1 %vm17110_vm0, %v17111_v1 }
0x34c0   :  { %15864 = vmatmul.mubr.msk.f32.vlgmr.msra.gmra.mrb[70].mxu0 %vm523_vm7, %v7420_v22 }
0x34c1   :  { %15872 = vmatpush3.xpose.msk.msra.mxu0 %vm523_vm7, %v7490_v13  ;;  %15873 = vmatprep.mubr.msk.f32.mxu0 %vm17110_vm0, %v17111_v1 }
0x34c2   :  { %15881 = vmatprep.subr.mxu0 %v17111_v1 }
0x34c4   :  { %15874 = vmatmul.mubr.msk.f32.vlgmr.msra.gmra.mrb[72].mxu0 %vm523_vm7, %v7421_v23 }
0x34c5   :  { %15883 = vmatprep.mubr.msk.f32.mxu0 %vm17110_vm0, %v17111_v1 }
0x358f   :  { %v7632_v10 = vpop.f32.mrb[68].mxu0  ;;  %v7784_v25 = vpop.f32.mrb[64].mxu1 }
0x3590   :  { %v7864_v29 = vmul.f32 0.35355338, %v7632_v10  ;;  %v15860_v31 = vpop.f32.mrb[69].mxu0  ;;  %v15870_v32 = vpop.f32.mrb[65].mxu1  ;;  %v7866_v27 = vmul.f32 0.35355338, %v7784_v25 }
0x3592   :  { %v7868_v34 = vsel %vm832_vm8, %v7864_v29, -inf  ;;  %v7874_v14 = vsel %vm832_vm8, %v7866_v27, -inf }
0x3593   :  { %7869 = vmax.xlane.f32.xlu1 %v7868_v34  ;;  %v7708_v38 = vpop.f32.mrb[70].mxu0 }
0x3594   :  { %v7865_v39 = vmul.f32 0.35355338, %v7708_v38  ;;  %v15865_v40 = vpop.f32.mrb[71].mxu0 }
0x3596   :  { %v7871_v5 = vsel %vm832_vm8, %v7865_v39, -inf }
0x3597   :  { %7872 = vmax.xlane.f32.xlu0 %v7871_v5  ;;  %v7860_v41 = vpop.f32.mrb[72].mxu0 }
0x3598   :  { %v7867_v42 = vmul.f32 0.35355338, %v7860_v41  ;;  %v15875_v43 = vpop.f32.mrb[73].mxu0 }
0x359a   :  { %v7877_v12 = vsel %vm832_vm8, %v7867_v42, -inf }
0x359b   :  { %7878 = vmax.xlane.f32.xlu1 %v7877_v12  ;;  %7875 = vmax.xlane.f32.xlu0 %v7874_v14 }
0x35ac   :  { %7493 = vrot.lane.b32.xlu1 %v18493_v53, %s19687_s22 }
0x35b1   :  { %7491 = vrot.lane.b32.xlu0 %v18481_v51, %s19687_s22 }
0x3620   :  { %v7870_v24 = vpop.xlane.xlu1 %7869 }
0x3621   :  { %v7880_v45 = vsub.f32 %v7864_v29, %v7870_v24 }
0x3623   :  { %v7884_v33 = vmul.f32 1.442695, %v7880_v45 }
0x3624   :  { %v7873_v54 = vpop.xlane.xlu0 %7872 }
0x3625   :  { %16854 = vpow2.f32 %v7884_v33  ;;  %v7881_v55 = vsub.f32 %v7865_v39, %v7873_v54 }
0x3627   :  { %v7886_v7 = vmul.f32 1.442695, %v7881_v55  ;;  %v8288_v55 = vld [vmem:[#allocation5 + $0x20] sm:$0xff] }
0x3628   :  { %v7879_v56 = vpop.xlane.xlu1 %7878  ;;  %v7876_v57 = vpop.xlane.xlu0 %7875 }
0x3629   :  { %16856 = vpow2.f32 %v7886_v7  ;;  %v7883_v58 = vsub.f32 %v7867_v42, %v7879_v56  ;;  %v7882_v59 = vsub.f32 %v7866_v27, %v7876_v57  ;;  %v8289_v7 = vld [vmem:[#allocation5 + $0x28] sm:$0xff] }
0x362a   :  { %v16552_v56 = vpack.c.bf16 %v8289_v7, %v8288_v55 }
0x362b   :  { %v7890_v60 = vmul.f32 1.442695, %v7883_v58  ;;  %v7888_v47 = vmul.f32 1.442695, %v7882_v59 }
0x362c   :  { %v7494_v8 = vpop.permute.xlu1 %7493  ;;  %v7492_v9 = vpop.permute.xlu0 %7491 }
0x362d   :  { %16858 = vpow2.f32 %v7890_v60  ;;  %v8290_v60 = vld [vmem:[#allocation5 + $0x30] sm:$0xff] }
0x362e   :  { %16860 = vpow2.f32 %v7888_v47  ;;  %v8291_v47 = vld [vmem:[#allocation5 + $0x38] sm:$0xff] }
0x362f   :  { %v16855_v53 = vpop.eup %16854 }
0x3630   :  { %v7892_v61 = vsel %vm832_vm8, %v16855_v53, 0.0 }
0x3631   :  { %7893 = vadd.xlane.f32.xlu0 %v7892_v61 }
0x3633   :  { %v16857_v51 = vpop.eup %16856 }
0x3634   :  { %v7895_v63 = vsel %vm832_vm8, %v16857_v51, 0.0 }
0x3635   :  { %7896 = vadd.xlane.f32.xlu1 %v7895_v63 }
0x3637   :  { %v16859_v3 = vpop.eup %16858 }
0x3638   :  { %v16861_v28 = vpop.eup %16860  ;;  %v7901_v36 = vsel %vm832_vm8, %v16859_v3, 0.0 }
0x3639   :  { %7902 = vadd.xlane.f32.xlu1 %v7901_v36  ;;  %v7898_v6 = vsel %vm832_vm8, %v16861_v28, 0.0 }
0x363a   :  { %7899 = vadd.xlane.f32.xlu0 %v7898_v6 }
0x364a   :  { %7495 = vrot.lane.b32.xlu1 %v18491_v52, %s19687_s22 }
0x3650   :  { %7497 = vrot.lane.b32.xlu0 %v18499_v49, %s19687_s22 }
0x36be   :  { %v7894_v46 = vpop.xlane.xlu0 %7893 }
0x36bf   :  { %16862 = vrcp.f32 %v7894_v46 }
0x36c2   :  { %v7897_v11 = vpop.xlane.xlu1 %7896 }
0x36c3   :  { %16864 = vrcp.f32 %v7897_v11 }
0x36c6   :  { %v7903_v21 = vpop.xlane.xlu1 %7902 }
0x36c7   :  { %v7900_v15 = vpop.xlane.xlu0 %7899 }
0x36c8   :  { %16866 = vrcp.f32 %v7900_v15 }
0x36c9   :  { %16868 = vrcp.f32 %v7903_v21  ;;  %v16863_v20 = vpop.eup %16862 }
0x36ca   :  { %v7496_v18 = vpop.permute.xlu1 %7495  ;;  %v7908_v29 = vmul.f32 %v16863_v20, %v16855_v53  ;;  %v16555_v53 = vpack.c.bf16 %v8291_v47, %v8290_v60 }
0x36cb   :  { %v7503_v16 = vcombine.low %v7492_v9, %v7496_v18  ;;  %v7498_v4 = vpop.permute.xlu0 %7497 }
0x36cc   :  { %v7511_v17 = vcombine.low %v7494_v8, %v7498_v4 }
0x36cd   :  { %v7510_v35 = vrot.slane %v7503_v16, %v17384_v37  ;;  %v16865_v23 = vpop.eup %16864 }
0x36ce   :  { %v7518_v19 = vrot.slane %v7511_v17, %v17384_v37  ;;  %v7909_v34 = vmul.f32 %v16865_v23, %v16857_v51  ;;  %v14697_v17 = vld [vmem:[%s19631_s7 + $0x1] ss:$0 sm:$0xff]  ;;  %v8402_v23 = vld [vmem:[#allocation7 + $0x20] sm:$0xff] }
0x36d0   :  { %v7519_v52 = vcombine.low %v7510_v35, %v7518_v19 }
0x36d2   :  { %v7526_v49 = vrot.slane %v7519_v52, %v17390_v44  ;;  %v16867_v31 = vpop.eup %16866 }
0x36d3   :  { %v16869_v38 = vpop.eup %16868  ;;  %v7910_v40 = vmul.f32 %v16867_v31, %v16861_v28  ;;  %v8405_v31 = vld [vmem:[#allocation7 + $0x38] sm:$0xff] }
0x36d4   :  { %v7534_v48 = vcombine.high %v7526_v49, %v17111_v1  ;;  %v7533_v30 = vrot.slane %v7526_v49, %v17384_v37  ;;  %v7911_v27 = vmul.f32 %v16869_v38, %v16859_v3  ;;  %v14708_v38 = vld [vmem:[%s19634_s10 + $0x50] sm:$0xff] }
0x36d6   :  { %v7541_v50 = vrot.slane %v7534_v48, %v17384_v37 }
0x36d8   :  { %v7542_v22 = vcombine.low %v7533_v30, %v7541_v50  ;;  %v7543_v13 = vcombine.high %v7533_v30, %v7541_v50 }
0x36da   :  { %v7550_v10 = vrot.slane %v7542_v22, %v17390_v44  ;;  %v7557_v25 = vrot.slane %v7543_v13, %v17390_v44 }
0x36dc   :  { %15877 = vmatpush3.msk.msra.mxu1 %vm881_vm9, %v7550_v10  ;;  %v7558_v32 = vcombine.high %v7550_v10, %v17111_v1  ;;  %v7559_v39 = vcombine.high %v7557_v25, %v17111_v1  ;;  %v8403_v10 = vld [vmem:[#allocation7 + $0x28] sm:$0xff] }
0x36dd   :  { %15879 = vmatmul.mubr.msk.f32.vlgmr.msra.gmra.mrb[66].mxu1 %vm877_vm10, %v7908_v29  ;;  %15886 = vmatprep.subr.mxu1 %v17111_v1  ;;  %v8404_v29 = vld [vmem:[#allocation7 + $0x30] sm:$0xff] }
0x36de   :  { %15882 = vmatpush3.msk.msra.mxu0 %vm881_vm9, %v7558_v32  ;;  %15887 = vmatpush3.msk.msra.mxu1 %vm881_vm9, %v7557_v25  ;;  %v16558_v25 = vpack.c.bf16 %v8403_v10, %v8402_v23  ;;  %v16561_v32 = vpack.c.bf16 %v8405_v31, %v8404_v29  ;;  %v16959_v31 = vld [vmem:[%s19681_s4 + $0x8] sm:$0x1f] }
0x36df   :  { %15884 = vmatmul.mubr.msk.f32.vlgmr.msra.gmra.mrb[74].mxu0 %vm877_vm10, %v7909_v34  ;;  %15891 = vmatprep.subr.mxu0 %v17111_v1  ;;  %v14707_v34 = vld [vmem:[%s19634_s10 + $0x48] sm:$0xff] }
0x36e0   :  { %15888 = vmatprep.mubr.msk.f32.mxu1 %vm17110_vm0, %v17111_v1  ;;  %15892 = vmatpush3.msk.msra.mxu0 %vm881_vm9, %v7559_v39 }
0x36e1   :  { %15889 = vmatmul.mubr.msk.f32.vlgmr.msra.gmra.mrb[68].mxu1 %vm877_vm10, %v7910_v40  ;;  %15893 = vmatprep.mubr.msk.f32.mxu0 %vm17110_vm0, %v17111_v1  ;;  %v14709_v40 = vld [vmem:[%s19634_s10 + $0x58] sm:$0xff] }
0x36e2   :  { %16551 = vmatprep.subr.bf16.mxu1 %v17109_v0  ;;  %15904 = vmatprep.mubr.msk.f32.mxu1 %vm17110_vm0, %v17111_v1 }
0x36e3   :  { %15894 = vmatmul.mubr.msk.f32.vlgmr.msra.gmra.mrb[76].mxu0 %vm877_vm10, %v7911_v27  ;;  %16557 = vmatprep.subr.bf16.mxu0 %v17109_v0  ;;  %v16567_v27 = vpack.c.bf16 %v14709_v40, %v14708_v38  ;;  %v8780_v38 = vld [vmem:[#allocation2] sm:$0xff] }
0x36e4   :  { %15915 = vmatprep.mubr.msk.f32.mxu0 %vm17110_vm0, %v17111_v1  ;;  %16553 = vmatpush3.bf16.msra.mxu1 %v16552_v56  ;;  %v14712_v56 = vld [vmem:[%s19634_s10 + $0x70] sm:$0xff] }
0x36e5   :  { %16554 = vmatprep.subr.bf16.mxu1 %v17109_v0  ;;  %16559 = vmatpush3.bf16.msra.mxu0 %v16558_v25  ;;  %v16958_v25 = vld [vmem:[%s19681_s4] sm:$0x1f] }
0x36e6   :  { %16560 = vmatprep.subr.bf16.mxu0 %v17109_v0  ;;  %v8693_v29 = vrot.slane %v16958_v25, 3 }
0x36e8   :  { %16556 = vmatpush3.bf16.msra.mxu1 %v16555_v53 }
0x36e9   :  { %16563 = vmatprep.subr.bf16.mxu1 %v17109_v0  ;;  %16562 = vmatpush3.bf16.msra.mxu0 %v16561_v32  ;;  %v8694_v32 = vrot.slane %v16959_v31, 2 }
0x36ea   :  { %16575 = vmatprep.subr.bf16.mxu0 %v17109_v0 }
0x37b0   :  { %v7984_v5 = vpop.f32.mrb[66].mxu1 }
0x37b1   :  { %v15880_v41 = vpop.f32.mrb[67].mxu1 }
0x37b2   :  { %v8060_v42 = vpop.f32.mrb[74].mxu0  ;;  %v14711_v41 = vld [vmem:[%s19634_s10 + $0x68] sm:$0xff] }
0x37b3   :  { %v15885_v43 = vpop.f32.mrb[75].mxu0 }
0x37b4   :  { %v8136_v12 = vpop.f32.mrb[68].mxu1 }
0x37b5   :  { %v8216_v14 = vcombine.low %v7984_v5, %v8136_v12  ;;  %v15890_v24 = vpop.f32.mrb[69].mxu1  ;;  %v14710_v5 = vld [vmem:[%s19634_s10 + $0x60] sm:$0xff] }
0x37b6   :  { %v8212_v45 = vpop.f32.mrb[76].mxu0 }
0x37b7   :  { %v8224_v33 = vcombine.low %v8060_v42, %v8212_v45  ;;  %v15895_v54 = vpop.f32.mrb[77].mxu0  ;;  %v8223_v57 = vrot.slane %v8216_v14, %v17384_v37  ;;  %v16570_v42 = vpack.c.bf16 %v14711_v41, %v14710_v5  ;;  %v14701_v45 = vld [vmem:[%s19636_s12 + $0x1] ss:$0 sm:$0xff]  ;;  %v8783_v5 = vld [vmem:[#allocation2 + $0x18] sm:$0xff] }
0x37b8   :  { %v14702_v54 = vld [vmem:[%s19637_s13 + $0x1] ss:$0 sm:$0xff] }
0x37b9   :  { %v8231_v58 = vrot.slane %v8224_v33, %v17384_v37 }
0x37bb   :  { %v8232_v59 = vcombine.low %v8223_v57, %v8231_v58  ;;  %v14713_v57 = vld [vmem:[%s19634_s10 + $0x78] sm:$0xff] }
0x37bc   :  { %v16573_v58 = vpack.c.bf16 %v14713_v57, %v14712_v56 }
0x37bd   :  { %v8239_v61 = vrot.slane %v8232_v59, %v17390_v44  ;;  %v14704_v59 = vld [vmem:[%s19633_s9 + $0x1] ss:$0 sm:$0xff] }
0x37bf   :  { %v8247_v51 = vcombine.high %v8239_v61, %v17111_v1  ;;  %v8246_v63 = vrot.slane %v8239_v61, %v17384_v37 }
0x37c1   :  { %v8254_v3 = vrot.slane %v8247_v51, %v17384_v37  ;;  %v14715_v51 = vld [vmem:[%s19635_s11 + $0x1] ss:$0 sm:$0xff] }
0x37c3   :  { %v8256_v28 = vcombine.high %v8246_v63, %v8254_v3  ;;  %v8255_v36 = vcombine.low %v8246_v63, %v8254_v3 }
0x37c5   :  { %v8270_v6 = vrot.slane %v8256_v28, %v17390_v44  ;;  %v8263_v8 = vrot.slane %v8255_v36, %v17390_v44 }
0x37c7   :  { %8278 = vrot.lane.b32.xlu0 %v8270_v6, %s19685_s20  ;;  %v8271_v9 = vcombine.high %v8263_v8, %v17111_v1  ;;  %v8272_v11 = vcombine.high %v8270_v6, %v17111_v1 }
0x37c9   :  { %8274 = vrot.lane.b32.xlu1 %v8271_v9, %s19686_s8 }
0x37cd   :  { %8282 = vrot.lane.b32.xlu1 %v8272_v11, %s19684_s1 }
0x3839   :  { %v8279_v15 = vpop.permute.xlu0 %8278 }
0x383b   :  { %v8275_v46 = vpop.permute.xlu1 %8274 }
0x383c   :  { %v8285_v21 = vsel %vm523_vm7, %v8263_v8, %v8275_v46 }
0x383d   :  { %v8286_v18 = vsel %vm1253_vm11, %v8285_v21, %v8279_v15  ;;  %v14721_v15 = vld [vmem:[%s19640_s16 + $0x40] sm:$0xff] }
0x383f   :  { %v8283_v16 = vpop.permute.xlu1 %8282 }
0x3840   :  { %v8287_v4 = vsel %vm1255_vm12, %v8286_v18, %v8283_v16  ;;  %v14722_v18 = vld [vmem:[%s19640_s16 + $0x48] sm:$0xff] }
0x3841   :  { %15905 = vmatmul.mubr.msk.f32.vlgmr.msra.gmra.mrb[70].mxu1 %vm244_vm6, %v8287_v4  ;;  %v16576_v16 = vpack.c.bf16 %v14722_v18, %v14721_v15  ;;  %v14723_v4 = vld [vmem:[%s19640_s16 + $0x50] sm:$0xff] }
0x3842   :  { %15934 = vmatprep.mubr.msk.f32.mxu1 %vm17110_vm0, %v17111_v1 }
0x3914   :  { %v8368_v35 = vpop.f32.mrb[70].mxu1 }
0x3915   :  { %v8369_v19 = vadd.f32 %v14697_v17, %v8368_v35  ;;  %v15906_v52 = vpop.f32.mrb[71].mxu1  ;;  %v14724_v17 = vld [vmem:[%s19640_s16 + $0x58] sm:$0xff] }
0x3916   :  { %v16579_v35 = vpack.c.bf16 %v14724_v17, %v14723_v4 }
0x3917   :  { %v8372_v49 = vadd.f32 %v8369_v19, %v18472_v26  ;;  %v14706_v26 = vld [vmem:[%s19634_s10 + $0x40] sm:$0xff] }
0x3918   :  { %v16564_v39 = vpack.c.bf16 %v14707_v34, %v14706_v26  ;;  %v8695_v34 = vsel %vm146_vm4, %v8694_v32, %v8693_v29 }
0x3919   :  { %v8375_v48 = vsel %vm1344_vm13, %v8372_v49, 0.0 }
0x391a   :  { %8376 = vadd.xlane.f32.xlu0 %v8375_v48  ;;  %16565 = vmatpush3.bf16.msra.mxu1 %v16564_v39  ;;  %v8781_v39 = vld [vmem:[#allocation2 + $0x8] sm:$0xff] }
0x391b   :  { %16566 = vmatprep.subr.bf16.mxu1 %v17109_v0  ;;  %v16586_v40 = vpack.c.bf16 %v8781_v39, %v8780_v38 }
0x391e   :  { %16568 = vmatpush3.bf16.msra.mxu1 %v16567_v27  ;;  %v8782_v27 = vld [vmem:[#allocation2 + $0x10] sm:$0xff] }
0x391f   :  { %16569 = vmatprep.subr.bf16.mxu1 %v17109_v0  ;;  %v16589_v41 = vpack.c.bf16 %v8783_v5, %v8782_v27 }
0x3922   :  { %16571 = vmatpush3.bf16.msra.mxu1 %v16570_v42 }
0x3923   :  { %16572 = vmatprep.subr.bf16.mxu1 %v17109_v0 }
0x3926   :  { %16574 = vmatpush3.bf16.msra.mxu1 %v16573_v58 }
0x3927   :  { %15966 = vmatprep.subr.mxu1 %v17111_v1 }
0x39a7   :  { %v8377_v30 = vpop.xlane.xlu0 %8376 }
0x39a8   :  { %v8378_v50 = vmul.f32 0.03125, %v8377_v30  ;;  %v14719_v30 = vld [vmem:[%s19638_s14 + $0x1] ss:$0 sm:$0xff] }
0x39aa   :  { %v8379_v20 = vsub.f32 %v8372_v49, %v8378_v50 }
0x39ac   :  { %v8380_v22 = vmul.f32 %v8379_v20, %v8379_v20 }
0x39ae   :  { %v8381_v13 = vsel %vm1344_vm13, %v8380_v22, 0.0  ;;  %v8685_v22 = vld [vmem:[%s19680_s26 + $0x8] sm:$0x7f] }
0x39af   :  { %8382 = vadd.xlane.f32.xlu1 %v8381_v13  ;;  %v14720_v13 = vld [vmem:[%s19639_s15 + $0x1] ss:$0 sm:$0xff] }
0x3a3c   :  { %v8383_v43 = vpop.xlane.xlu1 %8382 }
0x3a3d   :  { %v8384_v12 = vmul.f32 0.03125, %v8383_v43 }
0x3a3f   :  { %v8385_v14 = vadd.f32 1e-05, %v8384_v12 }
0x3a41   :  { %16870 = vrsqrt.f32 %v8385_v14  ;;  %v14726_v14 = vld [vmem:[%s19682_s29] ss:$0 sm:$0xff] }
0x3a4b   :  { %v16871_v24 = vpop.eup %16870 }
0x3a4c   :  { %v8387_v33 = vmul.f32 %v16871_v24, %v8379_v20  ;;  %v8684_v20 = vld [vmem:[%s19680_s26] sm:$0xff] }
0x3a4d   :  { %v16582_v10 = vpack.c.bf16 %v8685_v22, %v8684_v20 }
0x3a4e   :  { %v8394_v55 = vmul.f32 %v14701_v45, %v8387_v33  ;;  %v14730_v45 = vld [vmem:[%s19683_s2 + $0x3] ss:$0 sm:$0xff] }
0x3a50   :  { %v8401_v7 = vadd.f32 %v14702_v54, %v8394_v55 }
0x3a52   :  { %15916 = vmatmul.mubr.msk.f32.vlgmr.msra.gmra.mrb[78].mxu0 %vm244_vm6, %v8401_v7 }
0x3a53   :  { %15945 = vmatprep.mubr.msk.f32.mxu0 %vm17110_vm0, %v17111_v1  ;;  %16577 = vmatpush3.bf16.msra.mxu0 %v16576_v16 }
0x3a54   :  { %16578 = vmatprep.subr.bf16.mxu0 %v17109_v0 }
0x3a57   :  { %16580 = vmatpush3.bf16.msra.mxu0 %v16579_v35 }
0x3a58   :  { %16581 = vmatprep.subr.bf16.mxu0 %v17109_v0 }
0x3b25   :  { %v8482_v60 = vpop.f32.mrb[78].mxu0 }
0x3b26   :  { %v8483_v47 = vadd.f32 %v14704_v59, %v8482_v60  ;;  %v15917_v53 = vpop.f32.mrb[79].mxu0 }
0x3b28   :  { %v8486_v61 = vmax.f32 %v8483_v47, 0.0 }
0x3b2a   :  { %15935 = vmatmul.mubr.msk.f32.vlgmr.msra.gmra.mrb[72].mxu1 %vm1473_vm14, %v8486_v61 }
0x3b2b   :  { %15968 = vmatprep.mubr.msk.f32.mxu1 %vm17110_vm0, %v17111_v1 }
0x3bfd   :  { %v8571_v63 = vpop.f32.mrb[72].mxu1 }
0x3bfe   :  { %v8572_v3 = vadd.f32 %v14715_v51, %v8571_v63  ;;  %v15936_v28 = vpop.f32.mrb[73].mxu1 }
0x3c00   :  { %v8575_v36 = vadd.f32 %v8572_v3, %v8401_v7 }
0x3c02   :  { %v8578_v6 = vsel %vm1344_vm13, %v8575_v36, 0.0 }
0x3c03   :  { %8579 = vadd.xlane.f32.xlu0 %v8578_v6 }
0x3c90   :  { %v8580_v8 = vpop.xlane.xlu0 %8579 }
0x3c91   :  { %v8581_v9 = vmul.f32 0.03125, %v8580_v8 }
0x3c93   :  { %v8582_v11 = vsub.f32 %v8575_v36, %v8581_v9 }
0x3c95   :  { %v8583_v46 = vmul.f32 %v8582_v11, %v8582_v11 }
0x3c97   :  { %v8584_v21 = vsel %vm1344_vm13, %v8583_v46, 0.0 }
0x3c98   :  { %8585 = vadd.xlane.f32.xlu0 %v8584_v21 }
0x3d25   :  { %v8586_v19 = vpop.xlane.xlu0 %8585 }
0x3d26   :  { %v8587_v52 = vmul.f32 0.03125, %v8586_v19 }
0x3d28   :  { %v8588_v49 = vadd.f32 1e-05, %v8587_v52 }
0x3d2a   :  { %16872 = vrsqrt.f32 %v8588_v49 }
0x3d34   :  { %v16873_v48 = vpop.eup %16872 }
0x3d35   :  { %v8590_v50 = vmul.f32 %v16873_v48, %v8582_v11 }
0x3d37   :  { %v8597_v23 = vmul.f32 %v14719_v30, %v8590_v50 }
0x3d39   :  { %v8604_v26 = vadd.f32 %v14720_v13, %v8597_v23 }
0x3d3b   :  { %15946 = vmatmul.mubr.msk.f32.vlgmr.msra.gmra.mrb[80].mxu0 %vm244_vm6, %v8604_v26 }
0x3d3c   :  { %16584 = vmatpush3.bf16.msk.msra.mxu0 %vm17320_vm3, %v16582_v10  ;;  %15952 = vmatprep.mubr.msk.f32.mxu0 %vm17110_vm0, %v17111_v1 }
0x3d3d   :  { %16585 = vmatprep.subr.bf16.mxu0 %v17109_v0 }
0x3d3f   :  { %15953 = vmatmul.mubr.msk.f32.vlgmr.msra.gmra.mrb[82].mxu0 %vm148_vm5, %v8695_v34 }
0x3d40   :  { %15963 = vmatprep.mubr.msk.f32.mxu0 %vm17110_vm0, %v17111_v1  ;;  %16587 = vmatpush3.bf16.msra.mxu0 %v16586_v40 }
0x3d41   :  { %16588 = vmatprep.subr.bf16.mxu0 %v17109_v0 }
0x3d44   :  { %16590 = vmatpush3.bf16.msra.mxu0 %v16589_v41 }
0x3d45   :  { %15976 = vmatprep.subr.mxu0 %v17111_v1 }
0x3e0e   :  { %v8679_v42 = vpop.f32.mrb[80].mxu0 }
0x3e0f   :  { %v18715_v43 = vadd.f32 %v8679_v42, %v18270_v62  ;;  %v15947_v12 = vpop.f32.mrb[81].mxu0  ;;  %v14731_v62 = vld [vmem:[%s19629_s5] ss:$0 sm:$0xff] }
0x3e12   :  { %v8767_v24 = vpop.f32.mrb[82].mxu0 }
0x3e13   :  { %v8768_v33 = vadd.f32 %v14726_v14, %v8767_v24  ;;  %v15954_v54 = vpop.f32.mrb[83].mxu0 }
0x3e15   :  { %v18723_v55 = vadd.f32 %v14730_v45, %v8768_v33 }
0x3e17   :  { %15964 = vmatmul.mubr.msk.f32.vlgmr.msra.gmra.mrb[84].mxu0 %vm244_vm6, %v18723_v55 }
0x3e18   :  { %15978 = vmatprep.mubr.msk.f32.mxu0 %vm17110_vm0, %v17111_v1 }
0x3eea   :  { %v8860_v7 = vpop.f32.mrb[84].mxu0 }
0x3eeb   :  { %v18732_v56 = vadd.f32 %v14731_v62, %v8860_v7  ;;  %v15965_v57 = vpop.f32.mrb[85].mxu0 }
0x3eed   :  { %8868 = vrot.lane.b32.xlu0 %v18732_v56, %s19690_s0  ;;  %8865 = vrot.lane.b32.xlu1 %v18732_v56, %s19691_s28 }
0x3ef1   :  { %8871 = vrot.lane.b32.xlu1 %v18732_v56, %s19689_s18 }
0x3ef5   :  { %8931 = vrot.lane.b32.xlu1 %v18732_v56, %s19688_s6 }
0x3f5f   :  { %v18742_v58 = vpop.permute.xlu0 %8868  ;;  %v18744_v59 = vpop.permute.xlu1 %8865 }
0x3f60   :  { %8935 = vrot.lane.b32.xlu1 %v18742_v58, %s19688_s6  ;;  %8933 = vrot.lane.b32.xlu0 %v18744_v59, %s19688_s6  ;;  %v8874_v53 = vcombine.low %v18732_v56, %v18742_v58 }
0x3f62   :  { %v8881_v63 = vrot.slane %v8874_v53, %v17384_v37 }
0x3f63   :  { %v18750_v60 = vpop.permute.xlu1 %8871 }
0x3f64   :  { %8937 = vrot.lane.b32.xlu0 %v18750_v60, %s19688_s6  ;;  %v8882_v47 = vcombine.low %v18744_v59, %v18750_v60 }
0x3f66   :  { %v8889_v51 = vrot.slane %v8882_v47, %v17384_v37 }
0x3f67   :  { %v8932_v61 = vpop.permute.xlu1 %8931 }
0x3f68   :  { %v8890_v36 = vcombine.low %v8881_v63, %v8889_v51 }
0x3f6a   :  { %v8897_v11 = vrot.slane %v8890_v36, %v17390_v44 }
0x3f6c   :  { %v8905_v18 = vcombine.high %v8897_v11, %v17111_v1  ;;  %v8904_v52 = vrot.slane %v8897_v11, %v17384_v37 }
0x3f6e   :  { %v8912_v17 = vrot.slane %v8905_v18, %v17384_v37 }
0x3f70   :  { %v8913_v30 = vcombine.low %v8904_v52, %v8912_v17  ;;  %v8914_v50 = vcombine.high %v8904_v52, %v8912_v17 }
0x3f72   :  { %v8921_v13 = vrot.slane %v8913_v30, %v17390_v44  ;;  %v8928_v23 = vrot.slane %v8914_v50, %v17390_v44 }
0x3f74   :  { %v8929_v25 = vcombine.high %v8921_v13, %v17111_v1  ;;  %v8930_v31 = vcombine.high %v8928_v23, %v17111_v1 }
0x3fd2   :  { %v8934_v3 = vpop.permute.xlu0 %8933  ;;  %v8936_v28 = vpop.permute.xlu1 %8935 }
0x3fd3   :  { %v8943_v6 = vcombine.low %v8932_v61, %v8936_v28 }
0x3fd5   :  { %v8950_v46 = vrot.slane %v8943_v6, %v17384_v37 }
0x3fd6   :  { %v8938_v8 = vpop.permute.xlu0 %8937 }
0x3fd7   :  { %v8951_v9 = vcombine.low %v8934_v3, %v8938_v8 }
0x3fd9   :  { %v8958_v21 = vrot.slane %v8951_v9, %v17384_v37 }
0x3fdb   :  { %v8959_v15 = vcombine.low %v8950_v46, %v8958_v21 }
0x3fdd   :  { %v8966_v16 = vrot.slane %v8959_v15, %v17390_v44 }
0x3fdf   :  { %v8974_v4 = vcombine.high %v8966_v16, %v17111_v1  ;;  %v8973_v35 = vrot.slane %v8966_v16, %v17384_v37 }
0x3fe1   :  { %v8981_v19 = vrot.slane %v8974_v4, %v17384_v37 }
0x3fe3   :  { %v8982_v49 = vcombine.low %v8973_v35, %v8981_v19  ;;  %v8983_v48 = vcombine.high %v8973_v35, %v8981_v19 }
0x3fe5   :  { %v8990_v20 = vrot.slane %v8982_v49, %v17390_v44  ;;  %v8997_v22 = vrot.slane %v8983_v48, %v17390_v44 }
0x3fe7   :  { %15967 = vmatpush3.xpose.msk.msra.mxu1 %vm523_vm7, %v8990_v20  ;;  %15977 = vmatpush3.xpose.msk.msra.mxu0 %vm523_vm7, %v8997_v22  ;;  %v8998_v10 = vcombine.high %v8990_v20, %v17111_v1  ;;  %v8999_v29 = vcombine.high %v8997_v22, %v17111_v1 }
0x3fe8   :  { %15971 = vmatprep.subr.mxu1 %v17111_v1  ;;  %15986 = vmatprep.subr.mxu0 %v17111_v1 }
0x3fea   :  { %15969 = vmatmul.mubr.msk.f32.vlgmr.msra.gmra.mrb[74].mxu1 %vm523_vm7, %v8921_v13  ;;  %15979 = vmatmul.mubr.msk.f32.vlgmr.msra.gmra.mrb[86].mxu0 %vm523_vm7, %v8928_v23 }
0x3feb   :  { %15972 = vmatpush3.xpose.msk.msra.mxu1 %vm523_vm7, %v8998_v10  ;;  %15973 = vmatprep.mubr.msk.f32.mxu1 %vm17110_vm0, %v17111_v1 }
0x3fec   :  { %15981 = vmatprep.subr.mxu1 %v17111_v1  ;;  %15988 = vmatprep.mubr.msk.f32.mxu0 %vm17110_vm0, %v17111_v1 }
0x3fee   :  { %15974 = vmatmul.mubr.msk.f32.vlgmr.msra.gmra.mrb[76].mxu1 %vm523_vm7, %v8929_v25 }
0x3fef   :  { %15982 = vmatpush3.xpose.msk.msra.mxu1 %vm523_vm7, %v8999_v29  ;;  %15983 = vmatprep.mubr.msk.f32.mxu1 %vm17110_vm0, %v17111_v1 }
0x3ff0   :  { %15991 = vmatprep.subr.mxu1 %v17111_v1 }
0x3ff2   :  { %15984 = vmatmul.mubr.msk.f32.vlgmr.msra.gmra.mrb[78].mxu1 %vm523_vm7, %v8930_v31 }
0x3ff3   :  { %15993 = vmatprep.mubr.msk.f32.mxu1 %vm17110_vm0, %v17111_v1 }
0x40bd   :  { %v9141_v32 = vpop.f32.mrb[74].mxu1  ;;  %v9293_v26 = vpop.f32.mrb[86].mxu0 }
0x40be   :  { %v9373_v34 = vmul.f32 0.35355338, %v9141_v32  ;;  %v15970_v38 = vpop.f32.mrb[75].mxu1  ;;  %v15980_v39 = vpop.f32.mrb[87].mxu0  ;;  %v9375_v42 = vmul.f32 0.35355338, %v9293_v26 }
0x40c0   :  { %v9377_v40 = vsel %vm832_vm8, %v9373_v34, -inf  ;;  %v9383_v33 = vsel %vm832_vm8, %v9375_v42, -inf }
0x40c1   :  { %9378 = vmax.xlane.f32.xlu1 %v9377_v40  ;;  %v9217_v27 = vpop.f32.mrb[76].mxu1 }
0x40c2   :  { %v9374_v5 = vmul.f32 0.35355338, %v9217_v27  ;;  %v15975_v41 = vpop.f32.mrb[77].mxu1 }
0x40c4   :  { %v9380_v12 = vsel %vm832_vm8, %v9374_v5, -inf }
0x40c5   :  { %9381 = vmax.xlane.f32.xlu0 %v9380_v12  ;;  %v9369_v14 = vpop.f32.mrb[78].mxu1 }
0x40c6   :  { %v9376_v24 = vmul.f32 0.35355338, %v9369_v14  ;;  %v15985_v45 = vpop.f32.mrb[79].mxu1 }
0x40c8   :  { %v9386_v54 = vsel %vm832_vm8, %v9376_v24, -inf }
0x40c9   :  { %9384 = vmax.xlane.f32.xlu0 %v9383_v33  ;;  %9387 = vmax.xlane.f32.xlu1 %v9386_v54 }
0x40da   :  { %9002 = vrot.lane.b32.xlu1 %v18744_v59, %s19687_s22 }
0x40df   :  { %9000 = vrot.lane.b32.xlu0 %v18732_v56, %s19687_s22 }
0x414e   :  { %v9379_v62 = vpop.xlane.xlu1 %9378 }
0x414f   :  { %v9389_v7 = vsub.f32 %v9373_v34, %v9379_v62 }
0x4151   :  { %v9393_v57 = vmul.f32 1.442695, %v9389_v7 }
0x4152   :  { %v9382_v47 = vpop.xlane.xlu0 %9381 }
0x4153   :  { %16874 = vpow2.f32 %v9393_v57  ;;  %v9390_v53 = vsub.f32 %v9374_v5, %v9382_v47 }
0x4155   :  { %v9395_v61 = vmul.f32 1.442695, %v9390_v53  ;;  %v9797_v53 = vld [vmem:[#allocation5] sm:$0xff] }
0x4156   :  { %v9385_v51 = vpop.xlane.xlu0 %9384  ;;  %v9388_v63 = vpop.xlane.xlu1 %9387 }
0x4157   :  { %16876 = vpow2.f32 %v9395_v61  ;;  %v9391_v3 = vsub.f32 %v9375_v42, %v9385_v51  ;;  %v9392_v28 = vsub.f32 %v9376_v24, %v9388_v63  ;;  %v9798_v61 = vld [vmem:[#allocation5 + $0x8] sm:$0xff] }
0x4158   :  { %v16592_v51 = vpack.c.bf16 %v9798_v61, %v9797_v53 }
0x4159   :  { %v9397_v36 = vmul.f32 1.442695, %v9391_v3  ;;  %v9399_v6 = vmul.f32 1.442695, %v9392_v28 }
0x415a   :  { %v9001_v18 = vpop.permute.xlu0 %9000  ;;  %v9003_v16 = vpop.permute.xlu1 %9002 }
0x415b   :  { %16878 = vpow2.f32 %v9397_v36  ;;  %v9799_v36 = vld [vmem:[#allocation5 + $0x10] sm:$0xff] }
0x415c   :  { %16880 = vpow2.f32 %v9399_v6  ;;  %v9800_v6 = vld [vmem:[#allocation5 + $0x18] sm:$0xff] }
0x415d   :  { %v16875_v59 = vpop.eup %16874 }
0x415e   :  { %v9401_v8 = vsel %vm832_vm8, %v16875_v59, 0.0 }
0x415f   :  { %9402 = vadd.xlane.f32.xlu0 %v9401_v8 }
0x4161   :  { %v16877_v56 = vpop.eup %16876 }
0x4162   :  { %v9404_v9 = vsel %vm832_vm8, %v16877_v56, 0.0 }
0x4163   :  { %9405 = vadd.xlane.f32.xlu1 %v9404_v9 }
0x4165   :  { %v16879_v11 = vpop.eup %16878 }
0x4166   :  { %v16881_v46 = vpop.eup %16880  ;;  %v9407_v21 = vsel %vm832_vm8, %v16879_v11, 0.0 }
0x4167   :  { %9408 = vadd.xlane.f32.xlu0 %v9407_v21  ;;  %v9410_v15 = vsel %vm832_vm8, %v16881_v46, 0.0 }
0x4168   :  { %9411 = vadd.xlane.f32.xlu1 %v9410_v15 }
0x4179   :  { %9004 = vrot.lane.b32.xlu1 %v18742_v58, %s19687_s22 }
0x417d   :  { %9006 = vrot.lane.b32.xlu0 %v18750_v60, %s19687_s22 }
0x41ec   :  { %v9403_v4 = vpop.xlane.xlu0 %9402 }
0x41ed   :  { %16882 = vrcp.f32 %v9403_v4 }
0x41f0   :  { %v9406_v17 = vpop.xlane.xlu1 %9405 }
0x41f1   :  { %16884 = vrcp.f32 %v9406_v17 }
0x41f4   :  { %v9409_v35 = vpop.xlane.xlu0 %9408 }
0x41f5   :  { %v9412_v19 = vpop.xlane.xlu1 %9411  ;;  %16886 = vrcp.f32 %v9409_v35 }
0x41f6   :  { %16888 = vrcp.f32 %v9412_v19 }
0x41f7   :  { %v16883_v10 = vpop.eup %16882 }
0x41f8   :  { %v9007_v52 = vpop.permute.xlu0 %9006  ;;  %v9417_v34 = vmul.f32 %v16883_v10, %v16875_v59  ;;  %v16595_v59 = vpack.c.bf16 %v9800_v6, %v9799_v36 }
0x41f9   :  { %v9020_v49 = vcombine.low %v9003_v16, %v9007_v52  ;;  %v9005_v48 = vpop.permute.xlu1 %9004 }
0x41fa   :  { %v9012_v30 = vcombine.low %v9001_v18, %v9005_v48 }
0x41fb   :  { %v9027_v50 = vrot.slane %v9020_v49, %v17384_v37  ;;  %v16885_v31 = vpop.eup %16884 }
0x41fc   :  { %v9019_v20 = vrot.slane %v9012_v30, %v17384_v37  ;;  %v9418_v40 = vmul.f32 %v16885_v31, %v16877_v56  ;;  %v14749_v30 = vld [vmem:[%s19631_s7] ss:$0 sm:$0xff]  ;;  %v9911_v31 = vld [vmem:[#allocation7] sm:$0xff] }
0x41fe   :  { %v9028_v58 = vcombine.low %v9019_v20, %v9027_v50 }
0x41ff   :  { %v16887_v38 = vpop.eup %16886 }
0x4200   :  { %v9035_v60 = vrot.slane %v9028_v58, %v17390_v44  ;;  %v16889_v27 = vpop.eup %16888  ;;  %v9419_v41 = vmul.f32 %v16887_v38, %v16879_v11  ;;  %v9914_v38 = vld [vmem:[#allocation7 + $0x18] sm:$0xff] }
0x4201   :  { %v9420_v42 = vmul.f32 %v16889_v27, %v16881_v46  ;;  %v9998_v27 = vld [vmem:[%s19634_s10 + $0x10] sm:$0xff] }
0x4202   :  { %v9043_v22 = vcombine.high %v9035_v60, %v17111_v1  ;;  %v9042_v13 = vrot.slane %v9035_v60, %v17384_v37 }
0x4204   :  { %v9050_v23 = vrot.slane %v9043_v22, %v17384_v37 }
0x4206   :  { %v9051_v25 = vcombine.low %v9042_v13, %v9050_v23  ;;  %v9052_v29 = vcombine.high %v9042_v13, %v9050_v23 }
0x4208   :  { %v9059_v32 = vrot.slane %v9051_v25, %v17390_v44  ;;  %v9066_v26 = vrot.slane %v9052_v29, %v17390_v44 }
0x420a   :  { %15987 = vmatpush3.msk.msra.mxu0 %vm881_vm9, %v9059_v32  ;;  %v9067_v39 = vcombine.high %v9059_v32, %v17111_v1  ;;  %v9068_v5 = vcombine.high %v9066_v26, %v17111_v1  ;;  %v9912_v32 = vld [vmem:[#allocation7 + $0x8] sm:$0xff] }
0x420b   :  { %15989 = vmatmul.mubr.msk.f32.vlgmr.msra.gmra.mrb[88].mxu0 %vm877_vm10, %v9417_v34  ;;  %15996 = vmatprep.subr.mxu0 %v17111_v1  ;;  %v9913_v34 = vld [vmem:[#allocation7 + $0x10] sm:$0xff] }
0x420c   :  { %15992 = vmatpush3.msk.msra.mxu1 %vm881_vm9, %v9067_v39  ;;  %15997 = vmatpush3.msk.msra.mxu0 %vm881_vm9, %v9066_v26  ;;  %v16598_v26 = vpack.c.bf16 %v9912_v32, %v9911_v31  ;;  %v16601_v39 = vpack.c.bf16 %v9914_v38, %v9913_v34  ;;  %v14760_v31 = vld [vmem:[%s19629_s5 + $0x1] ss:$0 sm:$0xff] }
0x420d   :  { %15994 = vmatmul.mubr.msk.f32.vlgmr.msra.gmra.mrb[80].mxu1 %vm877_vm10, %v9418_v40  ;;  %16001 = vmatprep.subr.mxu1 %v17111_v1  ;;  %v9997_v40 = vld [vmem:[%s19634_s10 + $0x8] sm:$0xff] }
0x420e   :  { %15998 = vmatprep.mubr.msk.f32.mxu0 %vm17110_vm0, %v17111_v1  ;;  %16002 = vmatpush3.msk.msra.mxu1 %vm881_vm9, %v9068_v5 }
0x420f   :  { %15999 = vmatmul.mubr.msk.f32.vlgmr.msra.gmra.mrb[90].mxu0 %vm877_vm10, %v9419_v41  ;;  %16003 = vmatprep.mubr.msk.f32.mxu1 %vm17110_vm0, %v17111_v1  ;;  %v9999_v41 = vld [vmem:[%s19634_s10 + $0x18] sm:$0xff] }
0x4210   :  { %16591 = vmatprep.subr.bf16.mxu0 %v17109_v0  ;;  %16014 = vmatprep.mubr.msk.f32.mxu0 %vm17110_vm0, %v17111_v1 }
0x4211   :  { %16004 = vmatmul.mubr.msk.f32.vlgmr.msra.gmra.mrb[82].mxu1 %vm877_vm10, %v9420_v42  ;;  %16597 = vmatprep.subr.bf16.mxu1 %v17109_v0  ;;  %v16607_v42 = vpack.c.bf16 %v9999_v41, %v9998_v27 }
0x4212   :  { %16025 = vmatprep.mubr.msk.f32.mxu1 %vm17110_vm0, %v17111_v1  ;;  %16593 = vmatpush3.bf16.msra.mxu0 %v16592_v51  ;;  %v10002_v51 = vld [vmem:[%s19634_s10 + $0x30] sm:$0xff] }
0x4213   :  { %16594 = vmatprep.subr.bf16.mxu0 %v17109_v0  ;;  %16599 = vmatpush3.bf16.msra.mxu1 %v16598_v26 }
0x4214   :  { %16600 = vmatprep.subr.bf16.mxu1 %v17109_v0 }
0x4216   :  { %16596 = vmatpush3.bf16.msra.mxu0 %v16595_v59 }
0x4217   :  { %16603 = vmatprep.subr.bf16.mxu0 %v17109_v0  ;;  %16602 = vmatpush3.bf16.msra.mxu1 %v16601_v39 }
0x4218   :  { %16615 = vmatprep.subr.bf16.mxu1 %v17109_v0 }
0x42de   :  { %v9493_v12 = vpop.f32.mrb[88].mxu0 }
0x42df   :  { %v15990_v14 = vpop.f32.mrb[89].mxu0 }
0x42e0   :  { %v9569_v24 = vpop.f32.mrb[80].mxu1  ;;  %v10001_v14 = vld [vmem:[%s19634_s10 + $0x28] sm:$0xff] }
0x42e1   :  { %v15995_v45 = vpop.f32.mrb[81].mxu1 }
0x42e2   :  { %v9645_v33 = vpop.f32.mrb[90].mxu0 }
0x42e3   :  { %v9725_v54 = vcombine.low %v9493_v12, %v9645_v33  ;;  %v16000_v62 = vpop.f32.mrb[91].mxu0  ;;  %v10000_v12 = vld [vmem:[%s19634_s10 + $0x20] sm:$0xff] }
0x42e4   :  { %v9721_v7 = vpop.f32.mrb[82].mxu1 }
0x42e5   :  { %v9733_v57 = vcombine.low %v9569_v24, %v9721_v7  ;;  %v16005_v47 = vpop.f32.mrb[83].mxu1  ;;  %v9732_v63 = vrot.slane %v9725_v54, %v17384_v37  ;;  %v16610_v24 = vpack.c.bf16 %v10001_v14, %v10000_v12  ;;  %v14751_v7 = vld [vmem:[%s19636_s12] ss:$0 sm:$0xff] }
0x42e6   :  { %v14752_v47 = vld [vmem:[%s19637_s13] ss:$0 sm:$0xff] }
0x42e7   :  { %v9740_v3 = vrot.slane %v9733_v57, %v17384_v37 }
0x42e9   :  { %v9741_v28 = vcombine.low %v9732_v63, %v9740_v3  ;;  %v10003_v63 = vld [vmem:[%s19634_s10 + $0x38] sm:$0xff] }
0x42ea   :  { %v16613_v3 = vpack.c.bf16 %v10003_v63, %v10002_v51 }
0x42eb   :  { %v9748_v8 = vrot.slane %v9741_v28, %v17390_v44  ;;  %v14753_v28 = vld [vmem:[%s19633_s9] ss:$0 sm:$0xff] }
0x42ed   :  { %v9756_v56 = vcombine.high %v9748_v8, %v17111_v1  ;;  %v9755_v9 = vrot.slane %v9748_v8, %v17384_v37 }
0x42ef   :  { %v9763_v11 = vrot.slane %v9756_v56, %v17384_v37  ;;  %v14755_v56 = vld [vmem:[%s19635_s11] ss:$0 sm:$0xff] }
0x42f1   :  { %v9765_v46 = vcombine.high %v9755_v9, %v9763_v11  ;;  %v9764_v21 = vcombine.low %v9755_v9, %v9763_v11 }
0x42f3   :  { %v9779_v15 = vrot.slane %v9765_v46, %v17390_v44  ;;  %v9772_v18 = vrot.slane %v9764_v21, %v17390_v44 }
0x42f5   :  { %9787 = vrot.lane.b32.xlu0 %v9779_v15, %s19685_s20  ;;  %v9780_v16 = vcombine.high %v9772_v18, %v17111_v1  ;;  %v9781_v4 = vcombine.high %v9779_v15, %v17111_v1 }
0x42f7   :  { %9783 = vrot.lane.b32.xlu1 %v9780_v16, %s19686_s8 }
0x42fb   :  { %9791 = vrot.lane.b32.xlu1 %v9781_v4, %s19684_s1 }
0x4367   :  { %v9788_v19 = vpop.permute.xlu0 %9787 }
0x4369   :  { %v9784_v17 = vpop.permute.xlu1 %9783 }
0x436a   :  { %v9794_v35 = vsel %vm523_vm7, %v9772_v18, %v9784_v17 }
0x436b   :  { %v9795_v52 = vsel %vm1253_vm11, %v9794_v35, %v9788_v19  ;;  %v10114_v19 = vld [vmem:[#allocation2 + $0x20] sm:$0xff] }
0x436d   :  { %v9792_v49 = vpop.permute.xlu1 %9791 }
0x436e   :  { %v9796_v48 = vsel %vm1255_vm12, %v9795_v52, %v9792_v49  ;;  %v10115_v52 = vld [vmem:[#allocation2 + $0x28] sm:$0xff] }
0x436f   :  { %16015 = vmatmul.mubr.msk.f32.vlgmr.msra.gmra.mrb[92].mxu0 %vm244_vm6, %v9796_v48  ;;  %v16616_v49 = vpack.c.bf16 %v10115_v52, %v10114_v19  ;;  %v10116_v48 = vld [vmem:[#allocation2 + $0x30] sm:$0xff] }
0x4370   :  { %16044 = vmatprep.mubr.msk.f32.mxu0 %vm17110_vm0, %v17111_v1 }
0x4442   :  { %v9877_v50 = vpop.f32.mrb[92].mxu0 }
0x4443   :  { %v9878_v20 = vadd.f32 %v14749_v30, %v9877_v50  ;;  %v16016_v58 = vpop.f32.mrb[93].mxu0  ;;  %v10117_v30 = vld [vmem:[#allocation2 + $0x38] sm:$0xff] }
0x4444   :  { %v16619_v50 = vpack.c.bf16 %v10117_v30, %v10116_v48 }
0x4445   :  { %v9881_v60 = vadd.f32 %v9878_v20, %v18723_v55  ;;  %v9996_v55 = vld [vmem:[%s19634_s10] sm:$0xff] }
0x4446   :  { %v16604_v5 = vpack.c.bf16 %v9997_v40, %v9996_v55 }
0x4447   :  { %v9884_v22 = vsel %vm1344_vm13, %v9881_v60, 0.0 }
0x4448   :  { %9885 = vadd.xlane.f32.xlu0 %v9884_v22  ;;  %16605 = vmatpush3.bf16.msra.mxu0 %v16604_v5 }
0x4449   :  { %16606 = vmatprep.subr.bf16.mxu0 %v17109_v0 }
0x444c   :  { %16608 = vmatpush3.bf16.msra.mxu0 %v16607_v42 }
0x444d   :  { %16609 = vmatprep.subr.bf16.mxu0 %v17109_v0 }
0x4450   :  { %16611 = vmatpush3.bf16.msra.mxu0 %v16610_v24 }
0x4451   :  { %16612 = vmatprep.subr.bf16.mxu0 %v17109_v0 }
0x4454   :  { %16614 = vmatpush3.bf16.msra.mxu0 %v16613_v3 }
0x4455   :  { %16068 = vmatprep.subr.mxu0 %v17111_v1 }
0x44d5   :  { %v9886_v13 = vpop.xlane.xlu0 %9885 }
0x44d6   :  { %v9887_v23 = vmul.f32 0.03125, %v9886_v13  ;;  %v14757_v13 = vld [vmem:[%s19638_s14] ss:$0 sm:$0xff] }
0x44d8   :  { %v9888_v10 = vsub.f32 %v9881_v60, %v9887_v23 }
0x44da   :  { %v9889_v25 = vmul.f32 %v9888_v10, %v9888_v10 }
0x44dc   :  { %v9890_v29 = vsel %vm1344_vm13, %v9889_v25, 0.0 }
0x44dd   :  { %9891 = vadd.xlane.f32.xlu1 %v9890_v29 }
0x456a   :  { %v9892_v45 = vpop.xlane.xlu1 %9891 }
0x456b   :  { %v9893_v33 = vmul.f32 0.03125, %v9892_v45 }
0x456d   :  { %v9894_v54 = vadd.f32 1e-05, %v9893_v33 }
0x456f   :  { %16890 = vrsqrt.f32 %v9894_v54 }
0x4579   :  { %v16891_v62 = vpop.eup %16890 }
0x457a   :  { %v9896_v57 = vmul.f32 %v16891_v62, %v9888_v10  ;;  %v14758_v10 = vld [vmem:[%s19639_s15] ss:$0 sm:$0xff] }
0x457c   :  { %v9903_v53 = vmul.f32 %v14751_v7, %v9896_v57 }
0x457e   :  { %v9910_v61 = vadd.f32 %v14752_v47, %v9903_v53 }
0x4580   :  { %16026 = vmatmul.mubr.msk.f32.vlgmr.msra.gmra.mrb[84].mxu1 %vm244_vm6, %v9910_v61 }
0x4581   :  { %16055 = vmatprep.mubr.msk.f32.mxu1 %vm17110_vm0, %v17111_v1  ;;  %16617 = vmatpush3.bf16.msra.mxu1 %v16616_v49 }
0x4582   :  { %16618 = vmatprep.subr.bf16.mxu1 %v17109_v0 }
0x4585   :  { %16620 = vmatpush3.bf16.msra.mxu1 %v16619_v50 }
0x4586   :  { %16058 = vmatprep.subr.mxu1 %v17111_v1 }
0x4653   :  { %v9991_v36 = vpop.f32.mrb[84].mxu1 }
0x4654   :  { %v9992_v6 = vadd.f32 %v14753_v28, %v9991_v36  ;;  %v16027_v59 = vpop.f32.mrb[85].mxu1 }
0x4656   :  { %v9995_v8 = vmax.f32 %v9992_v6, 0.0 }
0x4658   :  { %16045 = vmatmul.mubr.msk.f32.vlgmr.msra.gmra.mrb[94].mxu0 %vm1473_vm14, %v9995_v8 }
0x4659   :  { %16070 = vmatprep.mubr.msk.f32.mxu0 %vm17110_vm0, %v17111_v1 }
0x472b   :  { %v10080_v9 = vpop.f32.mrb[94].mxu0 }
0x472c   :  { %v10081_v11 = vadd.f32 %v14755_v56, %v10080_v9  ;;  %v16046_v46 = vpop.f32.mrb[95].mxu0 }
0x472e   :  { %v10084_v21 = vadd.f32 %v10081_v11, %v9910_v61 }
0x4730   :  { %v10087_v15 = vsel %vm1344_vm13, %v10084_v21, 0.0 }
0x4731   :  { %10088 = vadd.xlane.f32.xlu0 %v10087_v15 }
0x47be   :  { %v10089_v18 = vpop.xlane.xlu0 %10088 }
0x47bf   :  { %v10090_v16 = vmul.f32 0.03125, %v10089_v18 }
0x47c1   :  { %v10091_v4 = vsub.f32 %v10084_v21, %v10090_v16 }
0x47c3   :  { %v10092_v17 = vmul.f32 %v10091_v4, %v10091_v4 }
0x47c5   :  { %v10093_v35 = vsel %vm1344_vm13, %v10092_v17, 0.0 }
0x47c6   :  { %10094 = vadd.xlane.f32.xlu0 %v10093_v35 }
0x4853   :  { %v10095_v20 = vpop.xlane.xlu0 %10094 }
0x4854   :  { %v10096_v58 = vmul.f32 0.03125, %v10095_v20 }
0x4856   :  { %v10097_v60 = vadd.f32 1e-05, %v10096_v58 }
0x4858   :  { %16892 = vrsqrt.f32 %v10097_v60 }
0x4862   :  { %v16893_v22 = vpop.eup %16892 }
0x4863   :  { %v10099_v23 = vmul.f32 %v16893_v22, %v10091_v4 }
0x4865   :  { %v10106_v25 = vmul.f32 %v14757_v13, %v10099_v23 }
0x4867   :  { %v18929_v29 = vadd.f32 %v14758_v10, %v10106_v25 }
0x4869   :  { %16056 = vmatmul.mubr.msk.f32.vlgmr.msra.gmra.mrb[86].mxu1 %vm244_vm6, %v18929_v29 }
0x486a   :  { %16060 = vmatprep.mubr.msk.f32.mxu1 %vm17110_vm0, %v17111_v1 }
0x493c   :  { %v10194_v32 = vpop.f32.mrb[86].mxu1 }
0x493d   :  { %v18938_v26 = vadd.f32 %v14760_v31, %v10194_v32  ;;  %v16057_v34 = vpop.f32.mrb[87].mxu1 }
0x493f   :  { %10202 = vrot.lane.b32.xlu0 %v18938_v26, %s19690_s0  ;;  %10199 = vrot.lane.b32.xlu1 %v18938_v26, %s19691_s28 }
0x4943   :  { %10205 = vrot.lane.b32.xlu1 %v18938_v26, %s19689_s18 }
0x4947   :  { %10265 = vrot.lane.b32.xlu1 %v18938_v26, %s19688_s6 }
0x49b1   :  { %v18948_v38 = vpop.permute.xlu0 %10202  ;;  %v18950_v39 = vpop.permute.xlu1 %10199 }
0x49b2   :  { %10269 = vrot.lane.b32.xlu1 %v18948_v38, %s19688_s6  ;;  %10267 = vrot.lane.b32.xlu0 %v18950_v39, %s19688_s6  ;;  %v10208_v27 = vcombine.low %v18938_v26, %v18948_v38 }
0x49b4   :  { %v10215_v42 = vrot.slane %v10208_v27, %v17384_v37 }
0x49b5   :  { %v18956_v55 = vpop.permute.xlu1 %10205 }
0x49b6   :  { %10271 = vrot.lane.b32.xlu0 %v18956_v55, %s19688_s6  ;;  %v10216_v40 = vcombine.low %v18950_v39, %v18956_v55 }
0x49b8   :  { %v10223_v41 = vrot.slane %v10216_v40, %v17384_v37 }
0x49b9   :  { %v10266_v5 = vpop.permute.xlu1 %10265 }
0x49ba   :  { %v10224_v24 = vcombine.low %v10215_v42, %v10223_v41 }
0x49bc   :  { %v10231_v62 = vrot.slane %v10224_v24, %v17390_v44 }
0x49be   :  { %v10239_v53 = vcombine.high %v10231_v62, %v17111_v1  ;;  %v10238_v36 = vrot.slane %v10231_v62, %v17384_v37 }
0x49c0   :  { %v10246_v63 = vrot.slane %v10239_v53, %v17384_v37 }
0x49c2   :  { %v10247_v8 = vcombine.low %v10238_v36, %v10246_v63  ;;  %v10248_v56 = vcombine.high %v10238_v36, %v10246_v63 }
0x49c4   :  { %v10255_v46 = vrot.slane %v10247_v8, %v17390_v44  ;;  %v10262_v21 = vrot.slane %v10248_v56, %v17390_v44 }
0x49c6   :  { %v10263_v18 = vcombine.high %v10255_v46, %v17111_v1  ;;  %v10264_v4 = vcombine.high %v10262_v21, %v17111_v1 }
0x4a24   :  { %v10268_v12 = vpop.permute.xlu0 %10267  ;;  %v10270_v14 = vpop.permute.xlu1 %10269 }
0x4a25   :  { %v10277_v45 = vcombine.low %v10266_v5, %v10270_v14 }
0x4a27   :  { %v10284_v7 = vrot.slane %v10277_v45, %v17384_v37 }
0x4a28   :  { %v10272_v33 = vpop.permute.xlu0 %10271 }
0x4a29   :  { %v10285_v54 = vcombine.low %v10268_v12, %v10272_v33 }
0x4a2b   :  { %v10292_v57 = vrot.slane %v10285_v54, %v17384_v37 }
0x4a2d   :  { %v10293_v47 = vcombine.low %v10284_v7, %v10292_v57 }
0x4a2f   :  { %v10300_v61 = vrot.slane %v10293_v47, %v17390_v44 }
0x4a31   :  { %v10308_v51 = vcombine.high %v10300_v61, %v17111_v1  ;;  %v10307_v3 = vrot.slane %v10300_v61, %v17384_v37 }
0x4a33   :  { %v10315_v28 = vrot.slane %v10308_v51, %v17384_v37 }
0x4a35   :  { %v10316_v6 = vcombine.low %v10307_v3, %v10315_v28  ;;  %v10317_v59 = vcombine.high %v10307_v3, %v10315_v28 }
0x4a37   :  { %v10324_v9 = vrot.slane %v10316_v6, %v17390_v44  ;;  %v10331_v11 = vrot.slane %v10317_v59, %v17390_v44 }
0x4a39   :  { %16059 = vmatpush3.xpose.msk.msra.mxu1 %vm523_vm7, %v10324_v9  ;;  %16069 = vmatpush3.xpose.msk.msra.mxu0 %vm523_vm7, %v10331_v11  ;;  %v10332_v15 = vcombine.high %v10324_v9, %v17111_v1  ;;  %v10333_v16 = vcombine.high %v10331_v11, %v17111_v1 }
0x4a3a   :  { %16063 = vmatprep.subr.mxu1 %v17111_v1  ;;  %16078 = vmatprep.subr.mxu0 %v17111_v1 }
0x4a3c   :  { %16061 = vmatmul.mubr.msk.f32.vlgmr.msra.gmra.mrb[88].mxu1 %vm523_vm7, %v10255_v46  ;;  %16071 = vmatmul.mubr.msk.f32.vlgmr.msra.gmra.mrb[96].mxu0 %vm523_vm7, %v10262_v21 }
0x4a3d   :  { %16064 = vmatpush3.xpose.msk.msra.mxu1 %vm523_vm7, %v10332_v15  ;;  %16065 = vmatprep.mubr.msk.f32.mxu1 %vm17110_vm0, %v17111_v1 }
0x4a3e   :  { %16073 = vmatprep.subr.mxu1 %v17111_v1  ;;  %16080 = vmatprep.mubr.msk.f32.mxu0 %vm17110_vm0, %v17111_v1 }
0x4a40   :  { %16066 = vmatmul.mubr.msk.f32.vlgmr.msra.gmra.mrb[90].mxu1 %vm523_vm7, %v10263_v18 }
0x4a41   :  { %16074 = vmatpush3.xpose.msk.msra.mxu1 %vm523_vm7, %v10333_v16  ;;  %16075 = vmatprep.mubr.msk.f32.mxu1 %vm17110_vm0, %v17111_v1 }
0x4a42   :  { %16083 = vmatprep.subr.mxu1 %v17111_v1 }
0x4a44   :  { %16076 = vmatmul.mubr.msk.f32.vlgmr.msra.gmra.mrb[92].mxu1 %vm523_vm7, %v10264_v4 }
0x4a45   :  { %16085 = vmatprep.mubr.msk.f32.mxu1 %vm17110_vm0, %v17111_v1 }
0x4b0f   :  { %v10475_v17 = vpop.f32.mrb[88].mxu1  ;;  %v10627_v35 = vpop.f32.mrb[96].mxu0 }
0x4b10   :  { %v10707_v19 = vmul.f32 0.35355338, %v10475_v17  ;;  %v16062_v52 = vpop.f32.mrb[89].mxu1  ;;  %v16072_v49 = vpop.f32.mrb[97].mxu0  ;;  %v10709_v58 = vmul.f32 0.35355338, %v10627_v35 }
0x4b12   :  { %v10711_v48 = vsel %vm832_vm8, %v10707_v19, -inf  ;;  %v10717_v10 = vsel %vm832_vm8, %v10709_v58, -inf }
0x4b13   :  { %10712 = vmax.xlane.f32.xlu1 %v10711_v48  ;;  %v10551_v30 = vpop.f32.mrb[90].mxu1 }
0x4b14   :  { %v10708_v50 = vmul.f32 0.35355338, %v10551_v30  ;;  %v16067_v20 = vpop.f32.mrb[91].mxu1 }
0x4b16   :  { %v10714_v60 = vsel %vm832_vm8, %v10708_v50, -inf }
0x4b17   :  { %10715 = vmax.xlane.f32.xlu0 %v10714_v60  ;;  %v10703_v22 = vpop.f32.mrb[92].mxu1 }
0x4b18   :  { %v10710_v13 = vmul.f32 0.35355338, %v10703_v22  ;;  %v16077_v23 = vpop.f32.mrb[93].mxu1 }
0x4b1a   :  { %v10720_v25 = vsel %vm832_vm8, %v10710_v13, -inf }
0x4b1b   :  { %10718 = vmax.xlane.f32.xlu0 %v10717_v10  ;;  %10721 = vmax.xlane.f32.xlu1 %v10720_v25 }
0x4b2c   :  { %10336 = vrot.lane.b32.xlu1 %v18950_v39, %s19687_s22 }
0x4b31   :  { %10334 = vrot.lane.b32.xlu0 %v18938_v26, %s19687_s22 }
0x4ba0   :  { %v10713_v31 = vpop.xlane.xlu1 %10712 }
0x4ba1   :  { %v10723_v32 = vsub.f32 %v10707_v19, %v10713_v31 }
0x4ba3   :  { %v10727_v34 = vmul.f32 1.442695, %v10723_v32 }
0x4ba4   :  { %v10716_v40 = vpop.xlane.xlu0 %10715 }
0x4ba5   :  { %16894 = vpow2.f32 %v10727_v34  ;;  %v10724_v27 = vsub.f32 %v10708_v50, %v10716_v40 }
0x4ba7   :  { %v10729_v5 = vmul.f32 1.442695, %v10724_v27  ;;  %v11131_v27 = vld [vmem:[#allocation5 + $0x20] sm:$0xff] }
0x4ba8   :  { %v10719_v41 = vpop.xlane.xlu0 %10718  ;;  %v10722_v42 = vpop.xlane.xlu1 %10721 }
0x4ba9   :  { %16896 = vpow2.f32 %v10729_v5  ;;  %v10725_v12 = vsub.f32 %v10709_v58, %v10719_v41  ;;  %v10726_v14 = vsub.f32 %v10710_v13, %v10722_v42  ;;  %v11132_v5 = vld [vmem:[#allocation5 + $0x28] sm:$0xff] }
0x4baa   :  { %v16622_v41 = vpack.c.bf16 %v11132_v5, %v11131_v27 }
0x4bab   :  { %v10731_v24 = vmul.f32 1.442695, %v10725_v12  ;;  %v10733_v45 = vmul.f32 1.442695, %v10726_v14 }
0x4bac   :  { %v10335_v53 = vpop.permute.xlu0 %10334  ;;  %v10337_v61 = vpop.permute.xlu1 %10336 }
0x4bad   :  { %16898 = vpow2.f32 %v10731_v24  ;;  %v11133_v24 = vld [vmem:[#allocation5 + $0x30] sm:$0xff] }
0x4bae   :  { %16900 = vpow2.f32 %v10733_v45  ;;  %v11134_v45 = vld [vmem:[#allocation5 + $0x38] sm:$0xff] }
0x4baf   :  { %v16895_v39 = vpop.eup %16894 }
0x4bb0   :  { %v10735_v33 = vsel %vm832_vm8, %v16895_v39, 0.0 }
0x4bb1   :  { %10736 = vadd.xlane.f32.xlu0 %v10735_v33 }
0x4bb3   :  { %v16897_v26 = vpop.eup %16896 }
0x4bb4   :  { %v10738_v54 = vsel %vm832_vm8, %v16897_v26, 0.0 }
0x4bb5   :  { %10739 = vadd.xlane.f32.xlu1 %v10738_v54 }
0x4bb7   :  { %v16899_v62 = vpop.eup %16898 }
0x4bb8   :  { %v16901_v7 = vpop.eup %16900  ;;  %v10741_v57 = vsel %vm832_vm8, %v16899_v62, 0.0 }
0x4bb9   :  { %10742 = vadd.xlane.f32.xlu0 %v10741_v57  ;;  %v10744_v47 = vsel %vm832_vm8, %v16901_v7, 0.0 }
0x4bba   :  { %10745 = vadd.xlane.f32.xlu1 %v10744_v47 }
0x4bcb   :  { %10338 = vrot.lane.b32.xlu1 %v18948_v38, %s19687_s22 }
0x4bcf   :  { %10340 = vrot.lane.b32.xlu0 %v18956_v55, %s19687_s22 }
0x4c3e   :  { %v10737_v51 = vpop.xlane.xlu0 %10736 }
0x4c3f   :  { %16902 = vrcp.f32 %v10737_v51 }
0x4c42   :  { %v10740_v63 = vpop.xlane.xlu1 %10739 }
0x4c43   :  { %16904 = vrcp.f32 %v10740_v63 }
0x4c46   :  { %v10743_v3 = vpop.xlane.xlu0 %10742 }
0x4c47   :  { %v10746_v28 = vpop.xlane.xlu1 %10745  ;;  %16906 = vrcp.f32 %v10743_v3 }
0x4c48   :  { %16908 = vrcp.f32 %v10746_v28 }
0x4c49   :  { %v16903_v15 = vpop.eup %16902 }
0x4c4a   :  { %v10341_v36 = vpop.permute.xlu0 %10340  ;;  %v10751_v19 = vmul.f32 %v16903_v15, %v16895_v39  ;;  %v16625_v39 = vpack.c.bf16 %v11134_v45, %v11133_v24 }
0x4c4b   :  { %v10354_v6 = vcombine.low %v10337_v61, %v10341_v36  ;;  %v10339_v59 = vpop.permute.xlu1 %10338 }
0x4c4c   :  { %v10346_v8 = vcombine.low %v10335_v53, %v10339_v59 }
0x4c4d   :  { %v10361_v56 = vrot.slane %v10354_v6, %v17384_v37  ;;  %v16905_v4 = vpop.eup %16904 }
0x4c4e   :  { %v10353_v9 = vrot.slane %v10346_v8, %v17384_v37  ;;  %v10752_v48 = vmul.f32 %v16905_v4, %v16897_v26  ;;  %v14779_v8 = vld [vmem:[%s19631_s7 + $0x1] ss:$0 sm:$0xff]  ;;  %v11245_v4 = vld [vmem:[#allocation7 + $0x20] sm:$0xff] }
0x4c50   :  { %v10362_v38 = vcombine.low %v10353_v9, %v10361_v56 }
0x4c51   :  { %v16907_v52 = vpop.eup %16906 }
0x4c52   :  { %v10369_v55 = vrot.slane %v10362_v38, %v17390_v44  ;;  %v16909_v30 = vpop.eup %16908  ;;  %v10753_v20 = vmul.f32 %v16907_v52, %v16899_v62  ;;  %v11248_v52 = vld [vmem:[#allocation7 + $0x38] sm:$0xff] }
0x4c53   :  { %v10754_v58 = vmul.f32 %v16909_v30, %v16901_v7  ;;  %v14790_v30 = vld [vmem:[%s19634_s10 + $0x50] sm:$0xff] }
0x4c54   :  { %v10377_v11 = vcombine.high %v10369_v55, %v17111_v1  ;;  %v10376_v46 = vrot.slane %v10369_v55, %v17384_v37 }
0x4c56   :  { %v10384_v21 = vrot.slane %v10377_v11, %v17384_v37 }
0x4c58   :  { %v10385_v18 = vcombine.low %v10376_v46, %v10384_v21  ;;  %v10386_v16 = vcombine.high %v10376_v46, %v10384_v21 }
0x4c5a   :  { %v10393_v17 = vrot.slane %v10385_v18, %v17390_v44  ;;  %v10400_v35 = vrot.slane %v10386_v16, %v17390_v44 }
0x4c5c   :  { %16079 = vmatpush3.msk.msra.mxu0 %vm881_vm9, %v10393_v17  ;;  %v10401_v49 = vcombine.high %v10393_v17, %v17111_v1  ;;  %v10402_v50 = vcombine.high %v10400_v35, %v17111_v1  ;;  %v11246_v17 = vld [vmem:[#allocation7 + $0x28] sm:$0xff] }
0x4c5d   :  { %16081 = vmatmul.mubr.msk.f32.vlgmr.msra.gmra.mrb[98].mxu0 %vm877_vm10, %v10751_v19  ;;  %16088 = vmatprep.subr.mxu0 %v17111_v1  ;;  %v11247_v19 = vld [vmem:[#allocation7 + $0x30] sm:$0xff] }
0x4c5e   :  { %16084 = vmatpush3.msk.msra.mxu1 %vm881_vm9, %v10401_v49  ;;  %16089 = vmatpush3.msk.msra.mxu0 %vm881_vm9, %v10400_v35  ;;  %v16628_v35 = vpack.c.bf16 %v11246_v17, %v11245_v4  ;;  %v16631_v49 = vpack.c.bf16 %v11248_v52, %v11247_v19  ;;  %v16961_v52 = vld [vmem:[%s19681_s4 + $0x8] sm:$0x1f] }
0x4c5f   :  { %16086 = vmatmul.mubr.msk.f32.vlgmr.msra.gmra.mrb[94].mxu1 %vm877_vm10, %v10752_v48  ;;  %16093 = vmatprep.subr.mxu1 %v17111_v1  ;;  %v14789_v48 = vld [vmem:[%s19634_s10 + $0x48] sm:$0xff] }
0x4c60   :  { %16090 = vmatprep.mubr.msk.f32.mxu0 %vm17110_vm0, %v17111_v1  ;;  %16094 = vmatpush3.msk.msra.mxu1 %vm881_vm9, %v10402_v50 }
0x4c61   :  { %16091 = vmatmul.mubr.msk.f32.vlgmr.msra.gmra.mrb[100].mxu0 %vm877_vm10, %v10753_v20  ;;  %16095 = vmatprep.mubr.msk.f32.mxu1 %vm17110_vm0, %v17111_v1  ;;  %v14791_v20 = vld [vmem:[%s19634_s10 + $0x58] sm:$0xff] }
0x4c62   :  { %16621 = vmatprep.subr.bf16.mxu0 %v17109_v0  ;;  %16106 = vmatprep.mubr.msk.f32.mxu0 %vm17110_vm0, %v17111_v1 }
0x4c63   :  { %16096 = vmatmul.mubr.msk.f32.vlgmr.msra.gmra.mrb[96].mxu1 %vm877_vm10, %v10754_v58  ;;  %16627 = vmatprep.subr.bf16.mxu1 %v17109_v0  ;;  %v16637_v58 = vpack.c.bf16 %v14791_v20, %v14790_v30  ;;  %v11623_v30 = vld [vmem:[#allocation2] sm:$0xff] }
0x4c64   :  { %16117 = vmatprep.mubr.msk.f32.mxu1 %vm17110_vm0, %v17111_v1  ;;  %16623 = vmatpush3.bf16.msra.mxu0 %v16622_v41  ;;  %v14794_v41 = vld [vmem:[%s19634_s10 + $0x70] sm:$0xff] }
0x4c65   :  { %16624 = vmatprep.subr.bf16.mxu0 %v17109_v0  ;;  %16629 = vmatpush3.bf16.msra.mxu1 %v16628_v35  ;;  %v16960_v35 = vld [vmem:[%s19681_s4] sm:$0x1f] }
0x4c66   :  { %16630 = vmatprep.subr.bf16.mxu1 %v17109_v0  ;;  %v11536_v19 = vrot.slane %v16960_v35, 4 }
0x4c68   :  { %16626 = vmatpush3.bf16.msra.mxu0 %v16625_v39 }
0x4c69   :  { %16633 = vmatprep.subr.bf16.mxu0 %v17109_v0  ;;  %16632 = vmatpush3.bf16.msra.mxu1 %v16631_v49  ;;  %v11537_v49 = vrot.slane %v16961_v52, 3 }
0x4c6a   :  { %16645 = vmatprep.subr.bf16.mxu1 %v17109_v0 }
0x4d30   :  { %v10827_v60 = vpop.f32.mrb[98].mxu0 }
0x4d31   :  { %v16082_v22 = vpop.f32.mrb[99].mxu0 }
0x4d32   :  { %v10903_v13 = vpop.f32.mrb[94].mxu1  ;;  %v14793_v22 = vld [vmem:[%s19634_s10 + $0x68] sm:$0xff] }
0x4d33   :  { %v16087_v23 = vpop.f32.mrb[95].mxu1 }
0x4d34   :  { %v10979_v10 = vpop.f32.mrb[100].mxu0 }
0x4d35   :  { %v11059_v25 = vcombine.low %v10827_v60, %v10979_v10  ;;  %v16092_v31 = vpop.f32.mrb[101].mxu0  ;;  %v14792_v60 = vld [vmem:[%s19634_s10 + $0x60] sm:$0xff] }
0x4d36   :  { %v11055_v32 = vpop.f32.mrb[96].mxu1 }
0x4d37   :  { %v11067_v34 = vcombine.low %v10903_v13, %v11055_v32  ;;  %v16097_v40 = vpop.f32.mrb[97].mxu1  ;;  %v11066_v42 = vrot.slane %v11059_v25, %v17384_v37  ;;  %v16640_v13 = vpack.c.bf16 %v14793_v22, %v14792_v60  ;;  %v14783_v32 = vld [vmem:[%s19636_s12 + $0x1] ss:$0 sm:$0xff] }
0x4d38   :  { %v14784_v40 = vld [vmem:[%s19637_s13 + $0x1] ss:$0 sm:$0xff] }
0x4d39   :  { %v11074_v12 = vrot.slane %v11067_v34, %v17384_v37 }
0x4d3b   :  { %v11075_v14 = vcombine.low %v11066_v42, %v11074_v12  ;;  %v14795_v42 = vld [vmem:[%s19634_s10 + $0x78] sm:$0xff] }
0x4d3c   :  { %v16643_v12 = vpack.c.bf16 %v14795_v42, %v14794_v41 }
0x4d3d   :  { %v11082_v33 = vrot.slane %v11075_v14, %v17390_v44  ;;  %v14786_v14 = vld [vmem:[%s19633_s9 + $0x1] ss:$0 sm:$0xff] }
0x4d3f   :  { %v11090_v26 = vcombine.high %v11082_v33, %v17111_v1  ;;  %v11089_v54 = vrot.slane %v11082_v33, %v17384_v37 }
0x4d41   :  { %v11097_v62 = vrot.slane %v11090_v26, %v17384_v37  ;;  %v14797_v26 = vld [vmem:[%s19635_s11 + $0x1] ss:$0 sm:$0xff] }
0x4d43   :  { %v11099_v7 = vcombine.high %v11089_v54, %v11097_v62  ;;  %v11098_v57 = vcombine.low %v11089_v54, %v11097_v62 }
0x4d45   :  { %v11113_v47 = vrot.slane %v11099_v7, %v17390_v44  ;;  %v11106_v53 = vrot.slane %v11098_v57, %v17390_v44 }
0x4d47   :  { %11121 = vrot.lane.b32.xlu0 %v11113_v47, %s19685_s20  ;;  %v11114_v61 = vcombine.high %v11106_v53, %v17111_v1  ;;  %v11115_v51 = vcombine.high %v11113_v47, %v17111_v1 }
0x4d49   :  { %11117 = vrot.lane.b32.xlu1 %v11114_v61, %s19686_s8 }
0x4d4d   :  { %11125 = vrot.lane.b32.xlu1 %v11115_v51, %s19684_s1 }
0x4db9   :  { %v11122_v28 = vpop.permute.xlu0 %11121 }
0x4dbb   :  { %v11118_v63 = vpop.permute.xlu1 %11117 }
0x4dbc   :  { %v11128_v3 = vsel %vm523_vm7, %v11106_v53, %v11118_v63 }
0x4dbd   :  { %v11129_v36 = vsel %vm1253_vm11, %v11128_v3, %v11122_v28  ;;  %v14803_v28 = vld [vmem:[%s19640_s16 + $0x60] sm:$0xff] }
0x4dbf   :  { %v11126_v6 = vpop.permute.xlu1 %11125 }
0x4dc0   :  { %v11130_v59 = vsel %vm1255_vm12, %v11129_v36, %v11126_v6  ;;  %v14804_v36 = vld [vmem:[%s19640_s16 + $0x68] sm:$0xff] }
0x4dc1   :  { %16107 = vmatmul.mubr.msk.f32.vlgmr.msra.gmra.mrb[102].mxu0 %vm244_vm6, %v11130_v59  ;;  %v16646_v6 = vpack.c.bf16 %v14804_v36, %v14803_v28  ;;  %v14805_v59 = vld [vmem:[%s19640_s16 + $0x70] sm:$0xff] }
0x4dc2   :  { %16136 = vmatprep.mubr.msk.f32.mxu0 %vm17110_vm0, %v17111_v1 }
0x4e94   :  { %v11211_v56 = vpop.f32.mrb[102].mxu0 }
0x4e95   :  { %v11212_v9 = vadd.f32 %v14779_v8, %v11211_v56  ;;  %v16108_v38 = vpop.f32.mrb[103].mxu0  ;;  %v14806_v8 = vld [vmem:[%s19640_s16 + $0x78] sm:$0xff] }
0x4e96   :  { %v16649_v56 = vpack.c.bf16 %v14806_v8, %v14805_v59 }
0x4e97   :  { %v11215_v55 = vadd.f32 %v11212_v9, %v18929_v29  ;;  %v14788_v29 = vld [vmem:[%s19634_s10 + $0x40] sm:$0xff] }
0x4e98   :  { %v16634_v50 = vpack.c.bf16 %v14789_v48, %v14788_v29  ;;  %v11538_v48 = vsel %vm146_vm4, %v11537_v49, %v11536_v19 }
0x4e99   :  { %v11218_v11 = vsel %vm1344_vm13, %v11215_v55, 0.0 }
0x4e9a   :  { %11219 = vadd.xlane.f32.xlu0 %v11218_v11  ;;  %16635 = vmatpush3.bf16.msra.mxu0 %v16634_v50  ;;  %v11624_v50 = vld [vmem:[#allocation2 + $0x8] sm:$0xff] }
0x4e9b   :  { %16636 = vmatprep.subr.bf16.mxu0 %v17109_v0  ;;  %v16656_v20 = vpack.c.bf16 %v11624_v50, %v11623_v30 }
0x4e9e   :  { %16638 = vmatpush3.bf16.msra.mxu0 %v16637_v58  ;;  %v11626_v58 = vld [vmem:[#allocation2 + $0x18] sm:$0xff] }
0x4e9f   :  { %16639 = vmatprep.subr.bf16.mxu0 %v17109_v0  ;;  %v16659_v60 = vpack.c.bf16 %v11626_v58, %v11625_v2 }
0x4ea2   :  { %16641 = vmatpush3.bf16.msra.mxu0 %v16640_v13 }
0x4ea3   :  { %16642 = vmatprep.subr.bf16.mxu0 %v17109_v0 }
0x4ea6   :  { %16644 = vmatpush3.bf16.msra.mxu0 %v16643_v12 }
0x4ea7   :  { %16168 = vmatprep.subr.mxu0 %v17111_v1 }
0x4f27   :  { %v11220_v46 = vpop.xlane.xlu0 %11219 }
0x4f28   :  { %v11221_v21 = vmul.f32 0.03125, %v11220_v46  ;;  %v14801_v46 = vld [vmem:[%s19638_s14 + $0x1] ss:$0 sm:$0xff] }
0x4f2a   :  { %v11222_v15 = vsub.f32 %v11215_v55, %v11221_v21 }
0x4f2c   :  { %v11223_v18 = vmul.f32 %v11222_v15, %v11222_v15 }
0x4f2e   :  { %v11224_v16 = vsel %vm1344_vm13, %v11223_v18, 0.0  ;;  %v11528_v18 = vld [vmem:[%s19680_s26 + $0x8] sm:$0x7f] }
0x4f2f   :  { %11225 = vadd.xlane.f32.xlu1 %v11224_v16  ;;  %v14802_v16 = vld [vmem:[%s19639_s15 + $0x1] ss:$0 sm:$0xff] }
0x4fbc   :  { %v11226_v23 = vpop.xlane.xlu1 %11225 }
0x4fbd   :  { %v11227_v10 = vmul.f32 0.03125, %v11226_v23 }
0x4fbf   :  { %v11228_v25 = vadd.f32 1e-05, %v11227_v10  ;;  %v14808_v10 = vld [vmem:[%s19682_s29] ss:$0 sm:$0xff] }
0x4fc1   :  { %16910 = vrsqrt.f32 %v11228_v25 }
0x4fcb   :  { %v16911_v31 = vpop.eup %16910 }
0x4fcc   :  { %v11230_v34 = vmul.f32 %v16911_v31, %v11222_v15  ;;  %v11527_v15 = vld [vmem:[%s19680_s26] sm:$0xff] }
0x4fcd   :  { %v16652_v17 = vpack.c.bf16 %v11528_v18, %v11527_v15  ;;  %v14812_v31 = vld [vmem:[%s19683_s2 + $0x4] ss:$0 sm:$0xff] }
0x4fce   :  { %v11237_v27 = vmul.f32 %v14783_v32, %v11230_v34 }
0x4fd0   :  { %v11244_v5 = vadd.f32 %v14784_v40, %v11237_v27 }
0x4fd2   :  { %16118 = vmatmul.mubr.msk.f32.vlgmr.msra.gmra.mrb[98].mxu1 %vm244_vm6, %v11244_v5 }
0x4fd3   :  { %16147 = vmatprep.mubr.msk.f32.mxu1 %vm17110_vm0, %v17111_v1  ;;  %16647 = vmatpush3.bf16.msra.mxu1 %v16646_v6 }
0x4fd4   :  { %16648 = vmatprep.subr.bf16.mxu1 %v17109_v0 }
0x4fd7   :  { %16650 = vmatpush3.bf16.msra.mxu1 %v16649_v56 }
0x4fd8   :  { %16651 = vmatprep.subr.bf16.mxu1 %v17109_v0 }
0x50a5   :  { %v11325_v24 = vpop.f32.mrb[98].mxu1 }
0x50a6   :  { %v11326_v45 = vadd.f32 %v14786_v14, %v11325_v24  ;;  %v16119_v39 = vpop.f32.mrb[99].mxu1 }
0x50a8   :  { %v11329_v33 = vmax.f32 %v11326_v45, 0.0 }
0x50aa   :  { %16137 = vmatmul.mubr.msk.f32.vlgmr.msra.gmra.mrb[104].mxu0 %vm1473_vm14, %v11329_v33 }
0x50ab   :  { %16170 = vmatprep.mubr.msk.f32.mxu0 %vm17110_vm0, %v17111_v1 }
0x517d   :  { %v11414_v54 = vpop.f32.mrb[104].mxu0 }
0x517e   :  { %v11415_v62 = vadd.f32 %v14797_v26, %v11414_v54  ;;  %v16138_v7 = vpop.f32.mrb[105].mxu0 }
0x5180   :  { %v11418_v57 = vadd.f32 %v11415_v62, %v11244_v5 }
0x5182   :  { %v11421_v47 = vsel %vm1344_vm13, %v11418_v57, 0.0 }
0x5183   :  { %11422 = vadd.xlane.f32.xlu0 %v11421_v47 }
0x5210   :  { %v11423_v53 = vpop.xlane.xlu0 %11422 }
0x5211   :  { %v11424_v61 = vmul.f32 0.03125, %v11423_v53 }
0x5213   :  { %v11425_v51 = vsub.f32 %v11418_v57, %v11424_v61 }
0x5215   :  { %v11426_v63 = vmul.f32 %v11425_v51, %v11425_v51 }
0x5217   :  { %v11427_v3 = vsel %vm1344_vm13, %v11426_v63, 0.0 }
0x5218   :  { %11428 = vadd.xlane.f32.xlu0 %v11427_v3 }
0x52a5   :  { %v11429_v9 = vpop.xlane.xlu0 %11428 }
0x52a6   :  { %v11430_v38 = vmul.f32 0.03125, %v11429_v9 }
0x52a8   :  { %v11431_v55 = vadd.f32 1e-05, %v11430_v38 }
0x52aa   :  { %16912 = vrsqrt.f32 %v11431_v55 }
0x52b4   :  { %v16913_v11 = vpop.eup %16912 }
0x52b5   :  { %v11433_v21 = vmul.f32 %v16913_v11, %v11425_v51 }
0x52b7   :  { %v11440_v4 = vmul.f32 %v14801_v46, %v11433_v21 }
0x52b9   :  { %v11447_v29 = vadd.f32 %v14802_v16, %v11440_v4 }
0x52bb   :  { %16148 = vmatmul.mubr.msk.f32.vlgmr.msra.gmra.mrb[100].mxu1 %vm244_vm6, %v11447_v29 }
0x52bc   :  { %16654 = vmatpush3.bf16.msk.msra.mxu1 %vm17320_vm3, %v16652_v17  ;;  %16154 = vmatprep.mubr.msk.f32.mxu1 %vm17110_vm0, %v17111_v1 }
0x52bd   :  { %16655 = vmatprep.subr.bf16.mxu1 %v17109_v0 }
0x52bf   :  { %16155 = vmatmul.mubr.msk.f32.vlgmr.msra.gmra.mrb[102].mxu1 %vm148_vm5, %v11538_v48 }
0x52c0   :  { %16165 = vmatprep.mubr.msk.f32.mxu1 %vm17110_vm0, %v17111_v1  ;;  %16657 = vmatpush3.bf16.msra.mxu1 %v16656_v20 }
0x52c1   :  { %16658 = vmatprep.subr.bf16.mxu1 %v17109_v0 }
0x52c4   :  { %16660 = vmatpush3.bf16.msra.mxu1 %v16659_v60 }
0x52c5   :  { %16178 = vmatprep.subr.mxu1 %v17111_v1 }
0x538e   :  { %v11522_v22 = vpop.f32.mrb[100].mxu1 }
0x538f   :  { %v19172_v13 = vadd.f32 %v11522_v22, %v18715_v43  ;;  %v16149_v23 = vpop.f32.mrb[101].mxu1  ;;  %v14813_v43 = vld [vmem:[%s19629_s5] ss:$0 sm:$0xff] }
0x5392   :  { %v11610_v25 = vpop.f32.mrb[102].mxu1 }
0x5393   :  { %v11611_v32 = vadd.f32 %v14808_v10, %v11610_v25  ;;  %v16156_v34 = vpop.f32.mrb[103].mxu1 }
0x5395   :  { %v19180_v40 = vadd.f32 %v14812_v31, %v11611_v32 }
0x5397   :  { %16166 = vmatmul.mubr.msk.f32.vlgmr.msra.gmra.mrb[104].mxu1 %vm244_vm6, %v19180_v40 }
0x5398   :  { %16180 = vmatprep.mubr.msk.f32.mxu1 %vm17110_vm0, %v17111_v1 }
0x546a   :  { %v11703_v27 = vpop.f32.mrb[104].mxu1 }
0x546b   :  { %v19189_v5 = vadd.f32 %v14813_v43, %v11703_v27  ;;  %v16167_v41 = vpop.f32.mrb[105].mxu1 }
0x546d   :  { %11711 = vrot.lane.b32.xlu0 %v19189_v5, %s19690_s0  ;;  %11708 = vrot.lane.b32.xlu1 %v19189_v5, %s19691_s28 }
0x5471   :  { %11714 = vrot.lane.b32.xlu1 %v19189_v5, %s19689_s18 }
0x5475   :  { %11774 = vrot.lane.b32.xlu1 %v19189_v5, %s19688_s6 }
0x54df   :  { %v19199_v42 = vpop.permute.xlu0 %11711  ;;  %v19201_v12 = vpop.permute.xlu1 %11708 }
0x54e0   :  { %11778 = vrot.lane.b32.xlu1 %v19199_v42, %s19688_s6  ;;  %11776 = vrot.lane.b32.xlu0 %v19201_v12, %s19688_s6  ;;  %v11717_v45 = vcombine.low %v19189_v5, %v19199_v42 }
0x54e2   :  { %v11724_v26 = vrot.slane %v11717_v45, %v17384_v37 }
0x54e3   :  { %v19207_v14 = vpop.permute.xlu1 %11714 }
0x54e4   :  { %11780 = vrot.lane.b32.xlu0 %v19207_v14, %s19688_s6  ;;  %v11725_v24 = vcombine.low %v19201_v12, %v19207_v14 }
0x54e6   :  { %v11732_v33 = vrot.slane %v11725_v24, %v17384_v37 }
0x54e7   :  { %v11775_v39 = vpop.permute.xlu1 %11774 }
0x54e8   :  { %v11733_v7 = vcombine.low %v11724_v26, %v11732_v33 }
0x54ea   :  { %v11740_v61 = vrot.slane %v11733_v7, %v17390_v44 }
0x54ec   :  { %v11748_v28 = vcombine.high %v11740_v61, %v17111_v1  ;;  %v11747_v9 = vrot.slane %v11740_v61, %v17384_v37 }
0x54ee   :  { %v11755_v59 = vrot.slane %v11748_v28, %v17384_v37 }
0x54f0   :  { %v11756_v11 = vcombine.low %v11747_v9, %v11755_v59  ;;  %v11757_v46 = vcombine.high %v11747_v9, %v11755_v59 }
0x54f2   :  { %v11764_v18 = vrot.slane %v11756_v11, %v17390_v44  ;;  %v11771_v16 = vrot.slane %v11757_v46, %v17390_v44 }
0x54f4   :  { %v11772_v17 = vcombine.high %v11764_v18, %v17111_v1  ;;  %v11773_v19 = vcombine.high %v11771_v16, %v17111_v1 }
0x5552   :  { %v11777_v54 = vpop.permute.xlu0 %11776  ;;  %v11779_v62 = vpop.permute.xlu1 %11778 }
0x5553   :  { %v11786_v57 = vcombine.low %v11775_v39, %v11779_v62 }
0x5555   :  { %v11793_v51 = vrot.slane %v11786_v57, %v17384_v37 }
0x5556   :  { %v11781_v47 = vpop.permute.xlu0 %11780 }
0x5557   :  { %v11794_v53 = vcombine.low %v11777_v54, %v11781_v47 }
0x5559   :  { %v11801_v63 = vrot.slane %v11794_v53, %v17384_v37 }
0x555b   :  { %v11802_v3 = vcombine.low %v11793_v51, %v11801_v63 }
0x555d   :  { %v11809_v36 = vrot.slane %v11802_v3, %v17390_v44 }
0x555f   :  { %v11817_v6 = vcombine.high %v11809_v36, %v17111_v1  ;;  %v11816_v8 = vrot.slane %v11809_v36, %v17384_v37 }
0x5561   :  { %v11824_v56 = vrot.slane %v11817_v6, %v17384_v37 }
0x5563   :  { %v11825_v38 = vcombine.low %v11816_v8, %v11824_v56  ;;  %v11826_v55 = vcombine.high %v11816_v8, %v11824_v56 }
0x5565   :  { %v11833_v21 = vrot.slane %v11825_v38, %v17390_v44  ;;  %v11840_v15 = vrot.slane %v11826_v55, %v17390_v44 }
0x5567   :  { %16169 = vmatpush3.xpose.msk.msra.mxu0 %vm523_vm7, %v11833_v21  ;;  %16179 = vmatpush3.xpose.msk.msra.mxu1 %vm523_vm7, %v11840_v15  ;;  %v11841_v4 = vcombine.high %v11833_v21, %v17111_v1  ;;  %v11842_v35 = vcombine.high %v11840_v15, %v17111_v1 }
0x5568   :  { %16173 = vmatprep.subr.mxu0 %v17111_v1  ;;  %16188 = vmatprep.subr.mxu1 %v17111_v1 }
0x556a   :  { %16171 = vmatmul.mubr.msk.f32.vlgmr.msra.gmra.mrb[106].mxu0 %vm523_vm7, %v11764_v18  ;;  %16181 = vmatmul.mubr.msk.f32.vlgmr.msra.gmra.mrb[106].mxu1 %vm523_vm7, %v11771_v16 }
0x556b   :  { %16174 = vmatpush3.xpose.msk.msra.mxu0 %vm523_vm7, %v11841_v4  ;;  %16175 = vmatprep.mubr.msk.f32.mxu0 %vm17110_vm0, %v17111_v1 }
0x556c   :  { %16183 = vmatprep.subr.mxu0 %v17111_v1  ;;  %16190 = vmatprep.mubr.msk.f32.mxu1 %vm17110_vm0, %v17111_v1 }
0x556e   :  { %16176 = vmatmul.mubr.msk.f32.vlgmr.msra.gmra.mrb[108].mxu0 %vm523_vm7, %v11772_v17 }
0x556f   :  { %16184 = vmatpush3.xpose.msk.msra.mxu0 %vm523_vm7, %v11842_v35  ;;  %16185 = vmatprep.mubr.msk.f32.mxu0 %vm17110_vm0, %v17111_v1 }
0x5570   :  { %16193 = vmatprep.subr.mxu0 %v17111_v1 }
0x5572   :  { %16186 = vmatmul.mubr.msk.f32.vlgmr.msra.gmra.mrb[110].mxu0 %vm523_vm7, %v11773_v19 }
0x5573   :  { %16195 = vmatprep.mubr.msk.f32.mxu0 %vm17110_vm0, %v17111_v1 }
0x563d   :  { %v11984_v52 = vpop.f32.mrb[106].mxu0  ;;  %v12136_v49 = vpop.f32.mrb[106].mxu1 }
0x563e   :  { %v12216_v29 = vmul.f32 0.35355338, %v11984_v52  ;;  %v16172_v48 = vpop.f32.mrb[107].mxu0  ;;  %v16182_v30 = vpop.f32.mrb[107].mxu1  ;;  %v12218_v60 = vmul.f32 0.35355338, %v12136_v49 }
0x5640   :  { %v12220_v50 = vsel %vm832_vm8, %v12216_v29, -inf  ;;  %v12226_v32 = vsel %vm832_vm8, %v12218_v60, -inf }
0x5641   :  { %12221 = vmax.xlane.f32.xlu1 %v12220_v50  ;;  %v12060_v20 = vpop.f32.mrb[108].mxu0 }
0x5642   :  { %v12217_v2 = vmul.f32 0.35355338, %v12060_v20  ;;  %v16177_v58 = vpop.f32.mrb[109].mxu0 }
0x5644   :  { %v12223_v22 = vsel %vm832_vm8, %v12217_v2, -inf }
0x5645   :  { %12224 = vmax.xlane.f32.xlu0 %v12223_v22  ;;  %v12212_v23 = vpop.f32.mrb[110].mxu0 }
0x5646   :  { %v12219_v10 = vmul.f32 0.35355338, %v12212_v23  ;;  %v16187_v25 = vpop.f32.mrb[111].mxu0 }
0x5648   :  { %v12229_v31 = vsel %vm832_vm8, %v12219_v10, -inf }
0x5649   :  { %12230 = vmax.xlane.f32.xlu1 %v12229_v31  ;;  %12227 = vmax.xlane.f32.xlu0 %v12226_v32 }
0x565a   :  { %11845 = vrot.lane.b32.xlu1 %v19201_v12, %s19687_s22 }
0x565f   :  { %11843 = vrot.lane.b32.xlu0 %v19189_v5, %s19687_s22 }
0x56ce   :  { %v12222_v34 = vpop.xlane.xlu1 %12221 }
0x56cf   :  { %v12232_v43 = vsub.f32 %v12216_v29, %v12222_v34 }
0x56d1   :  { %v12236_v27 = vmul.f32 1.442695, %v12232_v43 }
0x56d2   :  { %v12225_v41 = vpop.xlane.xlu0 %12224 }
0x56d3   :  { %16914 = vpow2.f32 %v12236_v27  ;;  %v12233_v24 = vsub.f32 %v12217_v2, %v12225_v41  ;;  %v12640_v41 = vld [vmem:[#allocation5] sm:$0xff] }
0x56d5   :  { %v12238_v45 = vmul.f32 1.442695, %v12233_v24  ;;  %v12641_v24 = vld [vmem:[#allocation5 + $0x8] sm:$0xff] }
0x56d6   :  { %v12231_v39 = vpop.xlane.xlu1 %12230  ;;  %v12228_v33 = vpop.xlane.xlu0 %12227 }
0x56d7   :  { %16916 = vpow2.f32 %v12238_v45  ;;  %v12235_v26 = vsub.f32 %v12219_v10, %v12231_v39  ;;  %v12234_v54 = vsub.f32 %v12218_v60, %v12228_v33  ;;  %v16662_v45 = vpack.c.bf16 %v12641_v24, %v12640_v41  ;;  %v12845_v24 = vld [vmem:[%s19634_s10 + $0x30] sm:$0xff] }
0x56d9   :  { %v12242_v62 = vmul.f32 1.442695, %v12235_v26  ;;  %v12240_v7 = vmul.f32 1.442695, %v12234_v54  ;;  %v12642_v54 = vld [vmem:[#allocation5 + $0x10] sm:$0xff] }
0x56da   :  { %v11846_v3 = vpop.permute.xlu1 %11845  ;;  %v11844_v28 = vpop.permute.xlu0 %11843 }
0x56db   :  { %16918 = vpow2.f32 %v12242_v62  ;;  %v12643_v62 = vld [vmem:[#allocation5 + $0x18] sm:$0xff] }
0x56dc   :  { %16920 = vpow2.f32 %v12240_v7  ;;  %v16665_v7 = vpack.c.bf16 %v12643_v62, %v12642_v54 }
0x56dd   :  { %v16915_v12 = vpop.eup %16914 }
0x56de   :  { %v12244_v57 = vsel %vm832_vm8, %v16915_v12, 0.0 }
0x56df   :  { %12245 = vadd.xlane.f32.xlu0 %v12244_v57 }
0x56e1   :  { %v16917_v5 = vpop.eup %16916 }
0x56e2   :  { %v12247_v47 = vsel %vm832_vm8, %v16917_v5, 0.0 }
0x56e3   :  { %12248 = vadd.xlane.f32.xlu1 %v12247_v47 }
0x56e5   :  { %v16919_v53 = vpop.eup %16918 }
0x56e6   :  { %v16921_v61 = vpop.eup %16920  ;;  %v12253_v51 = vsel %vm832_vm8, %v16919_v53, 0.0 }
0x56e7   :  { %12254 = vadd.xlane.f32.xlu1 %v12253_v51  ;;  %v12250_v63 = vsel %vm832_vm8, %v16921_v61, 0.0 }
0x56e8   :  { %12251 = vadd.xlane.f32.xlu0 %v12250_v63 }
0x56f8   :  { %11847 = vrot.lane.b32.xlu1 %v19199_v42, %s19687_s22 }
0x56fe   :  { %11849 = vrot.lane.b32.xlu0 %v19207_v14, %s19687_s22 }
0x576c   :  { %v12246_v6 = vpop.xlane.xlu0 %12245 }
0x576d   :  { %16922 = vrcp.f32 %v12246_v6 }
0x5770   :  { %v12249_v36 = vpop.xlane.xlu1 %12248 }
0x5771   :  { %16924 = vrcp.f32 %v12249_v36 }
0x5774   :  { %v12255_v59 = vpop.xlane.xlu1 %12254 }
0x5775   :  { %v12252_v8 = vpop.xlane.xlu0 %12251 }
0x5776   :  { %16926 = vrcp.f32 %v12252_v8 }
0x5777   :  { %16928 = vrcp.f32 %v12255_v59  ;;  %v16923_v16 = vpop.eup %16922 }
0x5778   :  { %v11848_v56 = vpop.permute.xlu1 %11847  ;;  %v12260_v49 = vmul.f32 %v16923_v16, %v16915_v12 }
0x5779   :  { %v11855_v9 = vcombine.low %v11844_v28, %v11848_v56  ;;  %v11850_v38 = vpop.permute.xlu0 %11849 }
0x577a   :  { %v11863_v55 = vcombine.low %v11846_v3, %v11850_v38  ;;  %v14831_v38 = vld [vmem:[%s19631_s7] ss:$0 sm:$0xff] }
0x577b   :  { %v11862_v11 = vrot.slane %v11855_v9, %v17384_v37  ;;  %v16925_v35 = vpop.eup %16924 }
0x577c   :  { %v11870_v46 = vrot.slane %v11863_v55, %v17384_v37  ;;  %v12261_v30 = vmul.f32 %v16925_v35, %v16917_v5  ;;  %v12755_v35 = vld [vmem:[#allocation7 + $0x8] sm:$0xff] }
0x577e   :  { %v11871_v42 = vcombine.low %v11862_v11, %v11870_v46 }
0x5780   :  { %v11878_v14 = vrot.slane %v11871_v42, %v17390_v44  ;;  %v16927_v29 = vpop.eup %16926 }
0x5781   :  { %v16929_v50 = vpop.eup %16928  ;;  %v12262_v2 = vmul.f32 %v16927_v29, %v16921_v61 }
0x5782   :  { %v11886_v21 = vcombine.high %v11878_v14, %v17111_v1  ;;  %v11885_v15 = vrot.slane %v11878_v14, %v17384_v37  ;;  %v12263_v58 = vmul.f32 %v16929_v50, %v16919_v53 }
0x5784   :  { %v11893_v18 = vrot.slane %v11886_v21, %v17384_v37 }
0x5786   :  { %v11894_v4 = vcombine.low %v11885_v15, %v11893_v18  ;;  %v11895_v17 = vcombine.high %v11885_v15, %v11893_v18 }
0x5788   :  { %v11902_v19 = vrot.slane %v11894_v4, %v17390_v44  ;;  %v11909_v52 = vrot.slane %v11895_v17, %v17390_v44  ;;  %v12754_v17 = vld [vmem:[#allocation7] sm:$0xff] }
0x578a   :  { %16189 = vmatpush3.msk.msra.mxu1 %vm881_vm9, %v11902_v19  ;;  %v11910_v48 = vcombine.high %v11902_v19, %v17111_v1  ;;  %v11911_v20 = vcombine.high %v11909_v52, %v17111_v1  ;;  %v16668_v19 = vpack.c.bf16 %v12755_v35, %v12754_v17 }
0x578b   :  { %16191 = vmatmul.mubr.msk.f32.vlgmr.msra.gmra.mrb[108].mxu1 %vm877_vm10, %v12260_v49  ;;  %16198 = vmatprep.subr.mxu1 %v17111_v1  ;;  %v12757_v49 = vld [vmem:[#allocation7 + $0x18] sm:$0xff] }
0x578c   :  { %16194 = vmatpush3.msk.msra.mxu0 %vm881_vm9, %v11910_v48  ;;  %16199 = vmatpush3.msk.msra.mxu1 %vm881_vm9, %v11909_v52  ;;  %v12756_v52 = vld [vmem:[#allocation7 + $0x10] sm:$0xff]  ;;  %v12840_v48 = vld [vmem:[%s19634_s10 + $0x8] sm:$0xff] }
0x578d   :  { %16196 = vmatmul.mubr.msk.f32.vlgmr.msra.gmra.mrb[112].mxu0 %vm877_vm10, %v12261_v30  ;;  %16203 = vmatprep.subr.mxu0 %v17111_v1  ;;  %v16671_v29 = vpack.c.bf16 %v12757_v49, %v12756_v52  ;;  %v12841_v30 = vld [vmem:[%s19634_s10 + $0x10] sm:$0xff] }
0x578e   :  { %16200 = vmatprep.mubr.msk.f32.mxu1 %vm17110_vm0, %v17111_v1  ;;  %16204 = vmatpush3.msk.msra.mxu0 %vm881_vm9, %v11911_v20  ;;  %v12842_v20 = vld [vmem:[%s19634_s10 + $0x18] sm:$0xff] }
0x578f   :  { %16201 = vmatmul.mubr.msk.f32.vlgmr.msra.gmra.mrb[110].mxu1 %vm877_vm10, %v12262_v2  ;;  %16205 = vmatprep.mubr.msk.f32.mxu0 %vm17110_vm0, %v17111_v1  ;;  %v16677_v2 = vpack.c.bf16 %v12842_v20, %v12841_v30 }
0x5790   :  { %16661 = vmatprep.subr.bf16.mxu1 %v17109_v0  ;;  %16216 = vmatprep.mubr.msk.f32.mxu1 %vm17110_vm0, %v17111_v1 }
0x5791   :  { %16206 = vmatmul.mubr.msk.f32.vlgmr.msra.gmra.mrb[114].mxu0 %vm877_vm10, %v12263_v58  ;;  %16667 = vmatprep.subr.bf16.mxu0 %v17109_v0  ;;  %v12843_v58 = vld [vmem:[%s19634_s10 + $0x20] sm:$0xff] }
0x5792   :  { %16227 = vmatprep.mubr.msk.f32.mxu0 %vm17110_vm0, %v17111_v1  ;;  %16663 = vmatpush3.bf16.msra.mxu1 %v16662_v45  ;;  %v12846_v45 = vld [vmem:[%s19634_s10 + $0x38] sm:$0xff] }
0x5793   :  { %16664 = vmatprep.subr.bf16.mxu1 %v17109_v0  ;;  %16669 = vmatpush3.bf16.msra.mxu0 %v16668_v19 }
0x5794   :  { %16670 = vmatprep.subr.bf16.mxu0 %v17109_v0 }
0x5796   :  { %16666 = vmatpush3.bf16.msra.mxu1 %v16665_v7 }
0x5797   :  { %16673 = vmatprep.subr.bf16.mxu1 %v17109_v0  ;;  %16672 = vmatpush3.bf16.msra.mxu0 %v16671_v29 }
0x5798   :  { %16685 = vmatprep.subr.bf16.mxu0 %v17109_v0 }
0x585e   :  { %v12336_v60 = vpop.f32.mrb[108].mxu1 }
0x585f   :  { %v16192_v22 = vpop.f32.mrb[109].mxu1 }
0x5860   :  { %v12412_v23 = vpop.f32.mrb[112].mxu0 }
0x5861   :  { %v16197_v10 = vpop.f32.mrb[113].mxu0 }
0x5862   :  { %v12488_v25 = vpop.f32.mrb[110].mxu1 }
0x5863   :  { %v12568_v31 = vcombine.low %v12336_v60, %v12488_v25  ;;  %v16202_v32 = vpop.f32.mrb[111].mxu1  ;;  %v12844_v60 = vld [vmem:[%s19634_s10 + $0x28] sm:$0xff] }
0x5864   :  { %v12564_v34 = vpop.f32.mrb[114].mxu0  ;;  %v16680_v22 = vpack.c.bf16 %v12844_v60, %v12843_v58  ;;  %v14833_v32 = vld [vmem:[%s19636_s12] ss:$0 sm:$0xff] }
0x5865   :  { %v12576_v43 = vcombine.low %v12412_v23, %v12564_v34  ;;  %v16207_v27 = vpop.f32.mrb[115].mxu0  ;;  %v12575_v39 = vrot.slane %v12568_v31, %v17384_v37 }
0x5867   :  { %v12583_v33 = vrot.slane %v12576_v43, %v17384_v37  ;;  %v14834_v43 = vld [vmem:[%s19637_s13] ss:$0 sm:$0xff] }
0x5869   :  { %v12584_v26 = vcombine.low %v12575_v39, %v12583_v33  ;;  %v16683_v39 = vpack.c.bf16 %v12846_v45, %v12845_v24  ;;  %v14835_v33 = vld [vmem:[%s19633_s9] ss:$0 sm:$0xff] }
0x586b   :  { %v12591_v12 = vrot.slane %v12584_v26, %v17390_v44 }
0x586d   :  { %v12599_v57 = vcombine.high %v12591_v12, %v17111_v1  ;;  %v12598_v5 = vrot.slane %v12591_v12, %v17384_v37  ;;  %v14837_v12 = vld [vmem:[%s19635_s11] ss:$0 sm:$0xff] }
0x586f   :  { %v12606_v47 = vrot.slane %v12599_v57, %v17384_v37 }
0x5871   :  { %v12608_v53 = vcombine.high %v12598_v5, %v12606_v47  ;;  %v12607_v61 = vcombine.low %v12598_v5, %v12606_v47 }
0x5873   :  { %v12622_v51 = vrot.slane %v12608_v53, %v17390_v44  ;;  %v12615_v63 = vrot.slane %v12607_v61, %v17390_v44 }
0x5875   :  { %12630 = vrot.lane.b32.xlu0 %v12622_v51, %s19685_s20  ;;  %v12623_v3 = vcombine.high %v12615_v63, %v17111_v1  ;;  %v12624_v28 = vcombine.high %v12622_v51, %v17111_v1 }
0x5877   :  { %12626 = vrot.lane.b32.xlu1 %v12623_v3, %s19686_s8 }
0x587b   :  { %12634 = vrot.lane.b32.xlu1 %v12624_v28, %s19684_s1 }
0x58e7   :  { %v12631_v59 = vpop.permute.xlu0 %12630 }
0x58e9   :  { %v12627_v36 = vpop.permute.xlu1 %12626 }
0x58ea   :  { %v12637_v6 = vsel %vm523_vm7, %v12615_v63, %v12627_v36 }
0x58eb   :  { %v12638_v8 = vsel %vm1253_vm11, %v12637_v6, %v12631_v59  ;;  %v12957_v6 = vld [vmem:[#allocation2 + $0x20] sm:$0xff]  ;;  %v12958_v59 = vld [vmem:[#allocation2 + $0x28] sm:$0xff] }
0x58ed   :  { %v12635_v56 = vpop.permute.xlu1 %12634 }
0x58ee   :  { %v12639_v9 = vsel %vm1255_vm12, %v12638_v8, %v12635_v56  ;;  %v16686_v8 = vpack.c.bf16 %v12958_v59, %v12957_v6  ;;  %v12959_v56 = vld [vmem:[#allocation2 + $0x30] sm:$0xff] }
0x58ef   :  { %16217 = vmatmul.mubr.msk.f32.vlgmr.msra.gmra.mrb[112].mxu1 %vm244_vm6, %v12639_v9  ;;  %v12960_v9 = vld [vmem:[#allocation2 + $0x38] sm:$0xff] }
0x58f0   :  { %16246 = vmatprep.mubr.msk.f32.mxu1 %vm17110_vm0, %v17111_v1 }
0x59c2   :  { %v12720_v55 = vpop.f32.mrb[112].mxu1 }
0x59c3   :  { %v12721_v11 = vadd.f32 %v14831_v38, %v12720_v55  ;;  %v16218_v46 = vpop.f32.mrb[113].mxu1  ;;  %v16689_v38 = vpack.c.bf16 %v12960_v9, %v12959_v56 }
0x59c5   :  { %v12724_v42 = vadd.f32 %v12721_v11, %v19180_v40  ;;  %v12839_v40 = vld [vmem:[%s19634_s10] sm:$0xff] }
0x59c6   :  { %v16674_v50 = vpack.c.bf16 %v12840_v48, %v12839_v40 }
0x59c7   :  { %v12727_v14 = vsel %vm1344_vm13, %v12724_v42, 0.0 }
0x59c8   :  { %12728 = vadd.xlane.f32.xlu0 %v12727_v14  ;;  %16675 = vmatpush3.bf16.msra.mxu1 %v16674_v50  ;;  %v14839_v14 = vld [vmem:[%s19638_s14] ss:$0 sm:$0xff] }
0x59c9   :  { %16676 = vmatprep.subr.bf16.mxu1 %v17109_v0 }
0x59cc   :  { %16678 = vmatpush3.bf16.msra.mxu1 %v16677_v2 }
0x59cd   :  { %16679 = vmatprep.subr.bf16.mxu1 %v17109_v0 }
0x59d0   :  { %16681 = vmatpush3.bf16.msra.mxu1 %v16680_v22 }
0x59d1   :  { %16682 = vmatprep.subr.bf16.mxu1 %v17109_v0 }
0x59d4   :  { %16684 = vmatpush3.bf16.msra.mxu1 %v16683_v39 }
0x59d5   :  { %16270 = vmatprep.subr.mxu1 %v17111_v1 }
0x5a55   :  { %v12729_v21 = vpop.xlane.xlu0 %12728 }
0x5a56   :  { %v12730_v15 = vmul.f32 0.03125, %v12729_v21 }
0x5a58   :  { %v12731_v18 = vsub.f32 %v12724_v42, %v12730_v15  ;;  %v14840_v15 = vld [vmem:[%s19639_s15] ss:$0 sm:$0xff] }
0x5a5a   :  { %v12732_v16 = vmul.f32 %v12731_v18, %v12731_v18 }
0x5a5c   :  { %v12733_v4 = vsel %vm1344_vm13, %v12732_v16, 0.0 }
0x5a5d   :  { %12734 = vadd.xlane.f32.xlu1 %v12733_v4  ;;  %v14842_v4 = vld [vmem:[%s19629_s5 + $0x1] ss:$0 sm:$0xff]  ;;  %s19692_s5 = sld [smem:[#allocation21_spill]] }
0x5aea   :  { %v12735_v23 = vpop.xlane.xlu1 %12734 }
0x5aeb   :  { %v12736_v10 = vmul.f32 0.03125, %v12735_v23 }
0x5aed   :  { %v12737_v25 = vadd.f32 1e-05, %v12736_v10 }
0x5aef   :  { %16930 = vrsqrt.f32 %v12737_v25 }
0x5af9   :  { %v16931_v31 = vpop.eup %16930 }
0x5afa   :  { %v12739_v34 = vmul.f32 %v16931_v31, %v12731_v18 }
0x5afc   :  { %v12746_v27 = vmul.f32 %v14833_v32, %v12739_v34 }
0x5afe   :  { %v12753_v41 = vadd.f32 %v14834_v43, %v12746_v27 }
0x5b00   :  { %16228 = vmatmul.mubr.msk.f32.vlgmr.msra.gmra.mrb[116].mxu0 %vm244_vm6, %v12753_v41 }
0x5b01   :  { %16257 = vmatprep.mubr.msk.f32.mxu0 %vm17110_vm0, %v17111_v1  ;;  %16687 = vmatpush3.bf16.msra.mxu0 %v16686_v8 }
0x5b02   :  { %16688 = vmatprep.subr.bf16.mxu0 %v17109_v0 }
0x5b05   :  { %16690 = vmatpush3.bf16.msra.mxu0 %v16689_v38 }
0x5b06   :  { %16260 = vmatprep.subr.mxu0 %v17111_v1 }
0x5bd3   :  { %v12834_v26 = vpop.f32.mrb[116].mxu0 }
0x5bd4   :  { %v12835_v54 = vadd.f32 %v14835_v33, %v12834_v26  ;;  %v16229_v62 = vpop.f32.mrb[117].mxu0 }
0x5bd6   :  { %v12838_v7 = vmax.f32 %v12835_v54, 0.0 }
0x5bd8   :  { %16247 = vmatmul.mubr.msk.f32.vlgmr.msra.gmra.mrb[114].mxu1 %vm1473_vm14, %v12838_v7 }
0x5bd9   :  { %16272 = vmatprep.mubr.msk.f32.mxu1 %vm17110_vm0, %v17111_v1 }
0x5cab   :  { %v12923_v57 = vpop.f32.mrb[114].mxu1 }
0x5cac   :  { %v12924_v5 = vadd.f32 %v14837_v12, %v12923_v57  ;;  %v16248_v47 = vpop.f32.mrb[115].mxu1 }
0x5cae   :  { %v12927_v53 = vadd.f32 %v12924_v5, %v12753_v41 }
0x5cb0   :  { %v12930_v61 = vsel %vm1344_vm13, %v12927_v53, 0.0 }
0x5cb1   :  { %12931 = vadd.xlane.f32.xlu0 %v12930_v61 }
0x5d3e   :  { %v12932_v51 = vpop.xlane.xlu0 %12931 }
0x5d3f   :  { %v12933_v63 = vmul.f32 0.03125, %v12932_v51 }
0x5d41   :  { %v12934_v3 = vsub.f32 %v12927_v53, %v12933_v63 }
0x5d43   :  { %v12935_v28 = vmul.f32 %v12934_v3, %v12934_v3 }
0x5d45   :  { %v12936_v36 = vsel %vm1344_vm13, %v12935_v28, 0.0 }
0x5d46   :  { %12937 = vadd.xlane.f32.xlu0 %v12936_v36 }
0x5dd3   :  { %v12938_v55 = vpop.xlane.xlu0 %12937 }
0x5dd4   :  { %v12939_v11 = vmul.f32 0.03125, %v12938_v55 }
0x5dd6   :  { %v12940_v46 = vadd.f32 1e-05, %v12939_v11 }
0x5dd8   :  { %16932 = vrsqrt.f32 %v12940_v46 }
0x5de2   :  { %v16933_v42 = vpop.eup %16932 }
0x5de3   :  { %v12942_v21 = vmul.f32 %v16933_v42, %v12934_v3 }
0x5de5   :  { %v12949_v18 = vmul.f32 %v14839_v14, %v12942_v21 }
0x5de7   :  { %v19386_v16 = vadd.f32 %v14840_v15, %v12949_v18 }
0x5de9   :  { %16258 = vmatmul.mubr.msk.f32.vlgmr.msra.gmra.mrb[118].mxu0 %vm244_vm6, %v19386_v16 }
0x5dea   :  { %16262 = vmatprep.mubr.msk.f32.mxu0 %vm17110_vm0, %v17111_v1 }
0x5ebc   :  { %v13037_v17 = vpop.f32.mrb[118].mxu0 }
0x5ebd   :  { %v19395_v35 = vadd.f32 %v14842_v4, %v13037_v17  ;;  %v16259_v19 = vpop.f32.mrb[119].mxu0 }
0x5ebf   :  { %13045 = vrot.lane.b32.xlu0 %v19395_v35, %s19690_s0  ;;  %13042 = vrot.lane.b32.xlu1 %v19395_v35, %s19691_s28 }
0x5ec3   :  { %13048 = vrot.lane.b32.xlu1 %v19395_v35, %s19689_s18 }
0x5ec7   :  { %13108 = vrot.lane.b32.xlu1 %v19395_v35, %s19688_s6 }
0x5f31   :  { %v19405_v52 = vpop.permute.xlu0 %13045  ;;  %v19407_v49 = vpop.permute.xlu1 %13042 }
0x5f32   :  { %13112 = vrot.lane.b32.xlu1 %v19405_v52, %s19688_s6  ;;  %13110 = vrot.lane.b32.xlu0 %v19407_v49, %s19688_s6  ;;  %v13051_v48 = vcombine.low %v19395_v35, %v19405_v52 }
0x5f34   :  { %v13058_v20 = vrot.slane %v13051_v48, %v17384_v37 }
0x5f35   :  { %v19413_v29 = vpop.permute.xlu1 %13048 }
0x5f36   :  { %13114 = vrot.lane.b32.xlu0 %v19413_v29, %s19688_s6  ;;  %v13059_v40 = vcombine.low %v19407_v49, %v19413_v29 }
0x5f38   :  { %v13066_v50 = vrot.slane %v13059_v40, %v17384_v37 }
0x5f39   :  { %v13109_v30 = vpop.permute.xlu1 %13108 }
0x5f3a   :  { %v13067_v60 = vcombine.low %v13058_v20, %v13066_v50 }
0x5f3c   :  { %v13074_v25 = vrot.slane %v13067_v60, %v17390_v44 }
0x5f3e   :  { %v13082_v43 = vcombine.high %v13074_v25, %v17111_v1  ;;  %v13081_v33 = vrot.slane %v13074_v25, %v17384_v37 }
0x5f40   :  { %v13089_v24 = vrot.slane %v13082_v43, %v17384_v37 }
0x5f42   :  { %v13090_v62 = vcombine.low %v13081_v33, %v13089_v24  ;;  %v13091_v7 = vcombine.high %v13081_v33, %v13089_v24 }
0x5f44   :  { %v13098_v5 = vrot.slane %v13090_v62, %v17390_v44  ;;  %v13105_v47 = vrot.slane %v13091_v7, %v17390_v44 }
0x5f46   :  { %v13106_v61 = vcombine.high %v13098_v5, %v17111_v1  ;;  %v13107_v63 = vcombine.high %v13105_v47, %v17111_v1 }
0x5fa4   :  { %v13111_v2 = vpop.permute.xlu0 %13110  ;;  %v13113_v58 = vpop.permute.xlu1 %13112 }
0x5fa5   :  { %v13120_v22 = vcombine.low %v13109_v30, %v13113_v58 }
0x5fa7   :  { %v13127_v31 = vrot.slane %v13120_v22, %v17384_v37 }
0x5fa8   :  { %v13115_v23 = vpop.permute.xlu0 %13114 }
0x5fa9   :  { %v13128_v10 = vcombine.low %v13111_v2, %v13115_v23 }
0x5fab   :  { %v13135_v32 = vrot.slane %v13128_v10, %v17384_v37 }
0x5fad   :  { %v13136_v34 = vcombine.low %v13127_v31, %v13135_v32 }
0x5faf   :  { %v13143_v27 = vrot.slane %v13136_v34, %v17390_v44 }
0x5fb1   :  { %v13151_v41 = vcombine.high %v13143_v27, %v17111_v1  ;;  %v13150_v45 = vrot.slane %v13143_v27, %v17384_v37 }
0x5fb3   :  { %v13158_v39 = vrot.slane %v13151_v41, %v17384_v37 }
0x5fb5   :  { %v13159_v26 = vcombine.low %v13150_v45, %v13158_v39  ;;  %v13160_v54 = vcombine.high %v13150_v45, %v13158_v39 }
0x5fb7   :  { %v13167_v12 = vrot.slane %v13159_v26, %v17390_v44  ;;  %v13174_v57 = vrot.slane %v13160_v54, %v17390_v44 }
0x5fb9   :  { %16261 = vmatpush3.xpose.msk.msra.mxu0 %vm523_vm7, %v13167_v12  ;;  %16271 = vmatpush3.xpose.msk.msra.mxu1 %vm523_vm7, %v13174_v57  ;;  %v13175_v53 = vcombine.high %v13167_v12, %v17111_v1  ;;  %v13176_v51 = vcombine.high %v13174_v57, %v17111_v1 }
0x5fba   :  { %16265 = vmatprep.subr.mxu0 %v17111_v1  ;;  %16280 = vmatprep.subr.mxu1 %v17111_v1 }
0x5fbc   :  { %16263 = vmatmul.mubr.msk.f32.vlgmr.msra.gmra.mrb[120].mxu0 %vm523_vm7, %v13098_v5  ;;  %16273 = vmatmul.mubr.msk.f32.vlgmr.msra.gmra.mrb[116].mxu1 %vm523_vm7, %v13105_v47 }
0x5fbd   :  { %16266 = vmatpush3.xpose.msk.msra.mxu0 %vm523_vm7, %v13175_v53  ;;  %16267 = vmatprep.mubr.msk.f32.mxu0 %vm17110_vm0, %v17111_v1 }
0x5fbe   :  { %16275 = vmatprep.subr.mxu0 %v17111_v1  ;;  %16282 = vmatprep.mubr.msk.f32.mxu1 %vm17110_vm0, %v17111_v1 }
0x5fc0   :  { %16268 = vmatmul.mubr.msk.f32.vlgmr.msra.gmra.mrb[122].mxu0 %vm523_vm7, %v13106_v61 }
0x5fc1   :  { %16276 = vmatpush3.xpose.msk.msra.mxu0 %vm523_vm7, %v13176_v51  ;;  %16277 = vmatprep.mubr.msk.f32.mxu0 %vm17110_vm0, %v17111_v1 }
0x5fc2   :  { %16285 = vmatprep.subr.mxu0 %v17111_v1 }
0x5fc4   :  { %16278 = vmatmul.mubr.msk.f32.vlgmr.msra.gmra.mrb[124].mxu0 %vm523_vm7, %v13107_v63 }
0x5fc5   :  { %16287 = vmatprep.mubr.msk.f32.mxu0 %vm17110_vm0, %v17111_v1 }
0x608f   :  { %v13318_v3 = vpop.f32.mrb[120].mxu0  ;;  %v13470_v28 = vpop.f32.mrb[116].mxu1 }
0x6090   :  { %v13550_v36 = vmul.f32 0.35355338, %v13318_v3  ;;  %v16264_v6 = vpop.f32.mrb[121].mxu0  ;;  %v16274_v59 = vpop.f32.mrb[117].mxu1  ;;  %v13552_v55 = vmul.f32 0.35355338, %v13470_v28 }
0x6092   :  { %v13554_v8 = vsel %vm832_vm8, %v13550_v36, -inf  ;;  %v13560_v15 = vsel %vm832_vm8, %v13552_v55, -inf }
0x6093   :  { %13555 = vmax.xlane.f32.xlu1 %v13554_v8  ;;  %v13394_v56 = vpop.f32.mrb[122].mxu0 }
0x6094   :  { %v13551_v9 = vmul.f32 0.35355338, %v13394_v56  ;;  %v16269_v38 = vpop.f32.mrb[123].mxu0 }
0x6096   :  { %v13557_v11 = vsel %vm832_vm8, %v13551_v9, -inf }
0x6097   :  { %13558 = vmax.xlane.f32.xlu0 %v13557_v11  ;;  %v13546_v46 = vpop.f32.mrb[124].mxu0 }
0x6098   :  { %v13553_v42 = vmul.f32 0.35355338, %v13546_v46  ;;  %v16279_v14 = vpop.f32.mrb[125].mxu0 }
0x609a   :  { %v13563_v21 = vsel %vm832_vm8, %v13553_v42, -inf }
0x609b   :  { %13564 = vmax.xlane.f32.xlu1 %v13563_v21  ;;  %13561 = vmax.xlane.f32.xlu0 %v13560_v15 }
0x60ac   :  { %13179 = vrot.lane.b32.xlu1 %v19407_v49, %s19687_s22 }
0x60b1   :  { %13177 = vrot.lane.b32.xlu0 %v19395_v35, %s19687_s22 }
0x6120   :  { %v13556_v18 = vpop.xlane.xlu1 %13555 }
0x6121   :  { %v13566_v4 = vsub.f32 %v13550_v36, %v13556_v18 }
0x6123   :  { %v13570_v17 = vmul.f32 1.442695, %v13566_v4 }
0x6124   :  { %v13559_v19 = vpop.xlane.xlu0 %13558 }
0x6125   :  { %16934 = vpow2.f32 %v13570_v17  ;;  %v13567_v40 = vsub.f32 %v13551_v9, %v13559_v19  ;;  %v13974_v19 = vld [vmem:[#allocation5 + $0x20] sm:$0xff] }
0x6127   :  { %v13572_v48 = vmul.f32 1.442695, %v13567_v40  ;;  %v13975_v40 = vld [vmem:[#allocation5 + $0x28] sm:$0xff] }
0x6128   :  { %v13565_v30 = vpop.xlane.xlu1 %13564  ;;  %v13562_v50 = vpop.xlane.xlu0 %13561 }
0x6129   :  { %16936 = vpow2.f32 %v13572_v48  ;;  %v13569_v20 = vsub.f32 %v13553_v42, %v13565_v30  ;;  %v13568_v2 = vsub.f32 %v13552_v55, %v13562_v50  ;;  %v16692_v48 = vpack.c.bf16 %v13975_v40, %v13974_v19  ;;  %v14877_v19 = vld [vmem:[%s19634_s10 + $0x78] sm:$0xff] }
0x612b   :  { %v13576_v58 = vmul.f32 1.442695, %v13569_v20  ;;  %v13574_v60 = vmul.f32 1.442695, %v13568_v2  ;;  %v13976_v2 = vld [vmem:[#allocation5 + $0x30] sm:$0xff] }
0x612c   :  { %v13180_v34 = vpop.permute.xlu1 %13179  ;;  %v13178_v43 = vpop.permute.xlu0 %13177 }
0x612d   :  { %16938 = vpow2.f32 %v13576_v58  ;;  %v13977_v58 = vld [vmem:[#allocation5 + $0x38] sm:$0xff] }
0x612e   :  { %16940 = vpow2.f32 %v13574_v60  ;;  %v16695_v60 = vpack.c.bf16 %v13977_v58, %v13976_v2  ;;  %v14879_v58 = vld [vmem:[%s19635_s11 + $0x1] ss:$0 sm:$0xff] }
0x612f   :  { %v16935_v49 = vpop.eup %16934 }
0x6130   :  { %v13578_v22 = vsel %vm832_vm8, %v16935_v49, 0.0 }
0x6131   :  { %13579 = vadd.xlane.f32.xlu0 %v13578_v22 }
0x6133   :  { %v16937_v35 = vpop.eup %16936 }
0x6134   :  { %v13581_v23 = vsel %vm832_vm8, %v16937_v35, 0.0 }
0x6135   :  { %13582 = vadd.xlane.f32.xlu1 %v13581_v23 }
0x6137   :  { %v16939_v10 = vpop.eup %16938 }
0x6138   :  { %v16941_v25 = vpop.eup %16940  ;;  %v13587_v31 = vsel %vm832_vm8, %v16939_v10, 0.0 }
0x6139   :  { %13588 = vadd.xlane.f32.xlu1 %v13587_v31  ;;  %v13584_v32 = vsel %vm832_vm8, %v16941_v25, 0.0 }
0x613a   :  { %13585 = vadd.xlane.f32.xlu0 %v13584_v32 }
0x614a   :  { %13181 = vrot.lane.b32.xlu1 %v19405_v52, %s19687_s22 }
0x6150   :  { %13183 = vrot.lane.b32.xlu0 %v19413_v29, %s19687_s22 }
0x61be   :  { %v13580_v41 = vpop.xlane.xlu0 %13579 }
0x61bf   :  { %16942 = vrcp.f32 %v13580_v41 }
0x61c2   :  { %v13583_v27 = vpop.xlane.xlu1 %13582 }
0x61c3   :  { %16944 = vrcp.f32 %v13583_v27 }
0x61c6   :  { %v13589_v24 = vpop.xlane.xlu1 %13588 }
0x61c7   :  { %v13586_v45 = vpop.xlane.xlu0 %13585 }
0x61c8   :  { %16946 = vrcp.f32 %v13586_v45 }
0x61c9   :  { %16948 = vrcp.f32 %v13589_v24  ;;  %v16943_v47 = vpop.eup %16942 }
0x61ca   :  { %v13182_v39 = vpop.permute.xlu1 %13181  ;;  %v13594_v28 = vmul.f32 %v16943_v47, %v16935_v49  ;;  %v14088_v47 = vld [vmem:[#allocation7 + $0x20] sm:$0xff] }
0x61cb   :  { %v13189_v33 = vcombine.low %v13178_v43, %v13182_v39  ;;  %v13184_v26 = vpop.permute.xlu0 %13183 }
0x61cc   :  { %v13197_v54 = vcombine.low %v13180_v34, %v13184_v26 }
0x61cd   :  { %v13196_v62 = vrot.slane %v13189_v33, %v17384_v37  ;;  %v16945_v51 = vpop.eup %16944 }
0x61ce   :  { %v13204_v7 = vrot.slane %v13197_v54, %v17384_v37  ;;  %v13595_v59 = vmul.f32 %v16945_v51, %v16937_v35  ;;  %v14090_v51 = vld [vmem:[#allocation7 + $0x30] sm:$0xff] }
0x61d0   :  { %v13205_v52 = vcombine.low %v13196_v62, %v13204_v7 }
0x61d2   :  { %v13212_v29 = vrot.slane %v13205_v52, %v17390_v44  ;;  %v16947_v36 = vpop.eup %16946 }
0x61d3   :  { %v16949_v8 = vpop.eup %16948  ;;  %v13596_v9 = vmul.f32 %v16947_v36, %v16941_v25  ;;  %v14872_v36 = vld [vmem:[%s19634_s10 + $0x50] sm:$0xff] }
0x61d4   :  { %v13220_v12 = vcombine.high %v13212_v29, %v17111_v1  ;;  %v13219_v57 = vrot.slane %v13212_v29, %v17384_v37  ;;  %v13597_v38 = vmul.f32 %v16949_v8, %v16939_v10 }
0x61d6   :  { %v13227_v5 = vrot.slane %v13220_v12, %v17384_v37 }
0x61d8   :  { %v13228_v53 = vcombine.low %v13219_v57, %v13227_v5  ;;  %v13229_v61 = vcombine.high %v13219_v57, %v13227_v5 }
0x61da   :  { %v13236_v63 = vrot.slane %v13228_v53, %v17390_v44  ;;  %v13243_v3 = vrot.slane %v13229_v61, %v17390_v44  ;;  %v14089_v53 = vld [vmem:[#allocation7 + $0x28] sm:$0xff] }
0x61db   :  { %v16698_v61 = vpack.c.bf16 %v14089_v53, %v14088_v47  ;;  %v14381_v47 = vld [vmem:[#allocation8 + $0x10] sm:$0xff]  ;;  %v14382_v53 = vld [vmem:[#allocation8 + $0x18] sm:$0xff] }
0x61dc   :  { %16281 = vmatpush3.msk.msra.mxu1 %vm881_vm9, %v13236_v63  ;;  %v13244_v6 = vcombine.high %v13236_v63, %v17111_v1  ;;  %v13245_v56 = vcombine.high %v13243_v3, %v17111_v1  ;;  %v14091_v63 = vld [vmem:[#allocation7 + $0x38] sm:$0xff] }
0x61dd   :  { %16283 = vmatmul.mubr.msk.f32.vlgmr.msra.gmra.mrb[118].mxu1 %vm877_vm10, %v13594_v28  ;;  %16290 = vmatprep.subr.mxu1 %v17111_v1  ;;  %v14871_v28 = vld [vmem:[%s19634_s10 + $0x48] sm:$0xff] }
0x61de   :  { %16286 = vmatpush3.msk.msra.mxu0 %vm881_vm9, %v13244_v6  ;;  %16291 = vmatpush3.msk.msra.mxu1 %vm881_vm9, %v13243_v3  ;;  %v16701_v3 = vpack.c.bf16 %v14091_v63, %v14090_v51  ;;  %v14383_v51 = vld [vmem:[#allocation8 + $0x20] sm:$0xff]  ;;  %v14384_v63 = vld [vmem:[#allocation8 + $0x28] sm:$0xff] }
0x61df   :  { %16288 = vmatmul.mubr.msk.f32.vlgmr.msra.gmra.mrb[126].mxu0 %vm877_vm10, %v13595_v59  ;;  %16295 = vmatprep.subr.mxu0 %v17111_v1  ;;  %v14873_v59 = vld [vmem:[%s19634_s10 + $0x58] sm:$0xff] }
0x61e0   :  { %16292 = vmatprep.mubr.msk.f32.mxu1 %vm17110_vm0, %v17111_v1  ;;  %16296 = vmatpush3.msk.msra.mxu0 %vm881_vm9, %v13245_v56  ;;  %v16707_v8 = vpack.c.bf16 %v14873_v59, %v14872_v36  ;;  %v14874_v56 = vld [vmem:[%s19634_s10 + $0x60] sm:$0xff] }
0x61e1   :  { %16293 = vmatmul.mubr.msk.f32.vlgmr.msra.gmra.mrb[120].mxu1 %vm877_vm10, %v13596_v9  ;;  %16297 = vmatprep.mubr.msk.f32.mxu0 %vm17110_vm0, %v17111_v1  ;;  %v14875_v9 = vld [vmem:[%s19634_s10 + $0x68] sm:$0xff] }
0x61e2   :  { %16691 = vmatprep.subr.bf16.mxu1 %v17109_v0  ;;  %16308 = vmatprep.mubr.msk.f32.mxu1 %vm17110_vm0, %v17111_v1 }
0x61e3   :  { %16298 = vmatmul.mubr.msk.f32.vlgmr.msra.gmra.mrb[128].mxu0 %vm877_vm10, %v13597_v38  ;;  %16697 = vmatprep.subr.bf16.mxu0 %v17109_v0  ;;  %v16710_v38 = vpack.c.bf16 %v14875_v9, %v14874_v56 }
0x61e4   :  { %16319 = vmatprep.mubr.msk.f32.mxu0 %vm17110_vm0, %v17111_v1  ;;  %16693 = vmatpush3.bf16.msra.mxu1 %v16692_v48  ;;  %v14868_v48 = vld [vmem:[%s19633_s9 + $0x1] ss:$0 sm:$0xff] }
0x61e5   :  { %16694 = vmatprep.subr.bf16.mxu1 %v17109_v0  ;;  %16699 = vmatpush3.bf16.msra.mxu0 %v16698_v61  ;;  %v16725_v61 = vpack.c.bf16 %v14382_v53, %v14381_v47 }
0x61e6   :  { %16700 = vmatprep.subr.bf16.mxu0 %v17109_v0 }
0x61e8   :  { %16696 = vmatpush3.bf16.msra.mxu1 %v16695_v60 }
0x61e9   :  { %16703 = vmatprep.subr.bf16.mxu1 %v17109_v0  ;;  %16702 = vmatpush3.bf16.msra.mxu0 %v16701_v3  ;;  %v16728_v3 = vpack.c.bf16 %v14384_v63, %v14383_v51 }
0x61ea   :  { %16715 = vmatprep.subr.bf16.mxu0 %v17109_v0 }
0x62b0   :  { %v13670_v55 = vpop.f32.mrb[118].mxu1 }
0x62b1   :  { %v16284_v11 = vpop.f32.mrb[119].mxu1 }
0x62b2   :  { %v13746_v46 = vpop.f32.mrb[126].mxu0 }
0x62b3   :  { %v16289_v42 = vpop.f32.mrb[127].mxu0 }
0x62b4   :  { %v13822_v14 = vpop.f32.mrb[120].mxu1 }
0x62b5   :  { %v13902_v21 = vcombine.low %v13670_v55, %v13822_v14  ;;  %v16294_v15 = vpop.f32.mrb[121].mxu1  ;;  %v14865_v14 = vld [vmem:[%s19636_s12 + $0x1] ss:$0 sm:$0xff] }
0x62b6   :  { %v13898_v18 = vpop.f32.mrb[128].mxu0  ;;  %v14866_v15 = vld [vmem:[%s19637_s13 + $0x1] ss:$0 sm:$0xff] }
0x62b7   :  { %v13910_v4 = vcombine.low %v13746_v46, %v13898_v18  ;;  %v16299_v17 = vpop.f32.mrb[129].mxu0  ;;  %v13909_v30 = vrot.slane %v13902_v21, %v17384_v37 }
0x62b8   :  { %v14876_v17 = vld [vmem:[%s19634_s10 + $0x70] sm:$0xff] }
0x62b9   :  { %v13917_v50 = vrot.slane %v13910_v4, %v17384_v37  ;;  %v16713_v40 = vpack.c.bf16 %v14877_v19, %v14876_v17 }
0x62bb   :  { %v13918_v20 = vcombine.low %v13909_v30, %v13917_v50 }
0x62bd   :  { %v13925_v49 = vrot.slane %v13918_v20, %v17390_v44 }
0x62bf   :  { %v13933_v22 = vcombine.high %v13925_v49, %v17111_v1  ;;  %v13932_v35 = vrot.slane %v13925_v49, %v17384_v37 }
0x62c1   :  { %v13940_v23 = vrot.slane %v13933_v22, %v17384_v37 }
0x62c3   :  { %v13942_v10 = vcombine.high %v13932_v35, %v13940_v23  ;;  %v13941_v25 = vcombine.low %v13932_v35, %v13940_v23 }
0x62c5   :  { %v13956_v31 = vrot.slane %v13942_v10, %v17390_v44  ;;  %v13949_v32 = vrot.slane %v13941_v25, %v17390_v44  ;;  %v14861_v44 = vld [vmem:[%s19631_s7 + $0x1] ss:$0 sm:$0xff] }
0x62c7   :  { %13964 = vrot.lane.b32.xlu0 %v13956_v31, %s19685_s20  ;;  %v13957_v34 = vcombine.high %v13949_v32, %v17111_v1  ;;  %v13958_v43 = vcombine.high %v13956_v31, %v17111_v1 }
0x62c9   :  { %13960 = vrot.lane.b32.xlu1 %v13957_v34, %s19686_s8 }
0x62cd   :  { %13968 = vrot.lane.b32.xlu1 %v13958_v43, %s19684_s1  ;;  %v14885_v43 = vld [vmem:[%s19692_s5 + $0x80] sm:$0xff] }
0x6339   :  { %v13965_v37 = vpop.permute.xlu0 %13964 }
0x633b   :  { %v13961_v27 = vpop.permute.xlu1 %13960 }
0x633c   :  { %v13971_v41 = vsel %vm523_vm7, %v13949_v32, %v13961_v27  ;;  %v14886_v27 = vld [vmem:[%s19692_s5 + $0x88] sm:$0xff] }
0x633d   :  { %v13972_v24 = vsel %vm1253_vm11, %v13971_v41, %v13965_v37  ;;  %v16716_v41 = vpack.c.bf16 %v14886_v27, %v14885_v43  ;;  %v14887_v37 = vld [vmem:[%s19692_s5 + $0x90] sm:$0xff] }
0x633f   :  { %v13969_v45 = vpop.permute.xlu1 %13968 }
0x6340   :  { %v13973_v39 = vsel %vm1255_vm12, %v13972_v24, %v13969_v45  ;;  %v14888_v24 = vld [vmem:[%s19692_s5 + $0x98] sm:$0xff] }
0x6341   :  { %16309 = vmatmul.mubr.msk.f32.vlgmr.msra.gmra.mrb[122].mxu1 %vm244_vm6, %v13973_v39  ;;  %v16719_v45 = vpack.c.bf16 %v14888_v24, %v14887_v37 }
0x6342   :  { %16338 = vmatprep.mubr.msk.f32.mxu1 %vm17110_vm0, %v17111_v1 }
0x6414   :  { %v14054_v33 = vpop.f32.mrb[122].mxu1 }
0x6415   :  { %v14055_v26 = vadd.f32 %v14861_v44, %v14054_v33  ;;  %v16310_v54 = vpop.f32.mrb[123].mxu1 }
0x6416   :  { %v14883_v54 = vld [vmem:[%s19638_s14 + $0x1] ss:$0 sm:$0xff] }
0x6417   :  { %v14058_v62 = vadd.f32 %v14055_v26, %v19386_v16  ;;  %v14870_v16 = vld [vmem:[%s19634_s10 + $0x40] sm:$0xff] }
0x6418   :  { %v16704_v6 = vpack.c.bf16 %v14871_v28, %v14870_v16  ;;  %v14385_v16 = vld [vmem:[#allocation8 + $0x30] sm:$0xff]  ;;  %v14386_v28 = vld [vmem:[#allocation8 + $0x38] sm:$0xff] }
0x6419   :  { %v14061_v7 = vsel %vm1344_vm13, %v14058_v62, 0.0  ;;  %v16731_v36 = vpack.c.bf16 %v14386_v28, %v14385_v16 }
0x641a   :  { %14062 = vadd.xlane.f32.xlu0 %v14061_v7  ;;  %16705 = vmatpush3.bf16.msra.mxu1 %v16704_v6  ;;  %v14379_v7 = vld [vmem:[#allocation8] sm:$0xff] }
0x641b   :  { %16706 = vmatprep.subr.bf16.mxu1 %v17109_v0 }
0x641e   :  { %16708 = vmatpush3.bf16.msra.mxu1 %v16707_v8 }
0x641f   :  { %16709 = vmatprep.subr.bf16.mxu1 %v17109_v0 }
0x6422   :  { %16711 = vmatpush3.bf16.msra.mxu1 %v16710_v38  ;;  %v14891_v38 = vld [vmem:[#allocation10] ss:$0 sm:$0xff] }
0x6423   :  { %16712 = vmatprep.subr.bf16.mxu1 %v17109_v0 }
0x6426   :  { %16714 = vmatpush3.bf16.msra.mxu1 %v16713_v40 }
0x64a7   :  { %v14063_v52 = vpop.xlane.xlu0 %14062 }
0x64a8   :  { %v14064_v29 = vmul.f32 0.03125, %v14063_v52  ;;  %v14380_v52 = vld [vmem:[#allocation8 + $0x8] sm:$0xff] }
0x64aa   :  { %v14065_v12 = vsub.f32 %v14058_v62, %v14064_v29  ;;  %v14884_v29 = vld [vmem:[%s19639_s15 + $0x1] ss:$0 sm:$0xff] }
0x64ac   :  { %v14066_v57 = vmul.f32 %v14065_v12, %v14065_v12 }
0x64ae   :  { %v14067_v5 = vsel %vm1344_vm13, %v14066_v57, 0.0  ;;  %v16722_v57 = vpack.c.bf16 %v14380_v52, %v14379_v7 }
0x64af   :  { %14068 = vadd.xlane.f32.xlu1 %v14067_v5 }
0x653c   :  { %v14069_v55 = vpop.xlane.xlu1 %14068 }
0x653d   :  { %v14070_v11 = vmul.f32 0.03125, %v14069_v55 }
0x653f   :  { %v14071_v46 = vadd.f32 1e-05, %v14070_v11 }
0x6541   :  { %16950 = vrsqrt.f32 %v14071_v46 }
0x654b   :  { %v16951_v42 = vpop.eup %16950 }
0x654c   :  { %v14073_v21 = vmul.f32 %v16951_v42, %v14065_v12 }
0x654e   :  { %v14080_v18 = vmul.f32 %v14865_v14, %v14073_v21 }
0x6550   :  { %v14087_v4 = vadd.f32 %v14866_v15, %v14080_v18 }
0x6552   :  { %16320 = vmatmul.mubr.msk.f32.vlgmr.msra.gmra.mrb[130].mxu0 %vm244_vm6, %v14087_v4 }
0x6553   :  { %16349 = vmatprep.mubr.msk.f32.mxu0 %vm17110_vm0, %v17111_v1  ;;  %16717 = vmatpush3.bf16.msra.mxu0 %v16716_v41 }
0x6554   :  { %16718 = vmatprep.subr.bf16.mxu0 %v17109_v0 }
0x6557   :  { %16720 = vmatpush3.bf16.msra.mxu0 %v16719_v45 }
0x6558   :  { %16721 = vmatprep.subr.bf16.mxu0 %v17109_v0 }
0x6625   :  { %v14168_v30 = vpop.f32.mrb[130].mxu0 }
0x6626   :  { %v14169_v50 = vadd.f32 %v14868_v48, %v14168_v30  ;;  %v16321_v20 = vpop.f32.mrb[131].mxu0 }
0x6628   :  { %v14172_v2 = vmax.f32 %v14169_v50, 0.0 }
0x662a   :  { %16339 = vmatmul.mubr.msk.f32.vlgmr.msra.gmra.mrb[124].mxu1 %vm1473_vm14, %v14172_v2 }
0x66fd   :  { %v14257_v60 = vpop.f32.mrb[124].mxu1 }
0x66fe   :  { %v14258_v49 = vadd.f32 %v14879_v58, %v14257_v60  ;;  %v16340_v22 = vpop.f32.mrb[125].mxu1 }
0x6700   :  { %v14261_v35 = vadd.f32 %v14258_v49, %v14087_v4 }
0x6702   :  { %v14264_v23 = vsel %vm1344_vm13, %v14261_v35, 0.0 }
0x6703   :  { %14265 = vadd.xlane.f32.xlu0 %v14264_v23 }
0x6790   :  { %v14266_v10 = vpop.xlane.xlu0 %14265 }
0x6791   :  { %v14267_v25 = vmul.f32 0.03125, %v14266_v10 }
0x6793   :  { %v14268_v31 = vsub.f32 %v14261_v35, %v14267_v25 }
0x6795   :  { %v14269_v32 = vmul.f32 %v14268_v31, %v14268_v31 }
0x6797   :  { %v14270_v34 = vsel %vm1344_vm13, %v14269_v32, 0.0 }
0x6798   :  { %14271 = vadd.xlane.f32.xlu0 %v14270_v34 }
0x6825   :  { %v14272_v39 = vpop.xlane.xlu0 %14271 }
0x6826   :  { %v14273_v44 = vmul.f32 0.03125, %v14272_v39 }
0x6828   :  { %v14274_v33 = vadd.f32 1e-05, %v14273_v44 }
0x682a   :  { %16952 = vrsqrt.f32 %v14274_v33 }
0x6834   :  { %v16953_v26 = vpop.eup %16952 }
0x6835   :  { %v14276_v62 = vmul.f32 %v16953_v26, %v14268_v31 }
0x6837   :  { %v14283_v12 = vmul.f32 %v14883_v54, %v14276_v62 }
0x6839   :  { %v14290_v5 = vadd.f32 %v14884_v29, %v14283_v12 }
0x683b   :  { %16350 = vmatmul.mubr.msk.f32.vlgmr.msra.gmra.mrb[132].mxu0 %vm244_vm6, %v14290_v5 }
0x683c   :  { %16723 = vmatpush3.bf16.msra.mxu0 %v16722_v57  ;;  %16368 = vmatprep.mubr.msk.f32.mxu0 %vm17110_vm0, %v17111_v1  ;;  %v14890_v1 = vld [vmem:[%s19693_s30] ss:$0 sm:$0xff] }
0x683d   :  { %16724 = vmatprep.subr.bf16.mxu0 %v17109_v0 }
0x6840   :  { %16726 = vmatpush3.bf16.msra.mxu0 %v16725_v61 }
0x6841   :  { %16727 = vmatprep.subr.bf16.mxu0 %v17109_v0 }
0x6844   :  { %16729 = vmatpush3.bf16.msra.mxu0 %v16728_v3 }
0x6845   :  { %16730 = vmatprep.subr.bf16.mxu0 %v17109_v0 }
0x6848   :  { %16732 = vmatpush3.bf16.msra.mxu0 %v16731_v36 }
0x690e   :  { %v14365_v6 = vpop.f32.mrb[132].mxu0 }
0x690f   :  { %v14369_v59 = vadd.f32 %v14365_v6, %v19172_v13  ;;  %v16351_v8 = vpop.f32.mrb[133].mxu0 }
0x6911   :  { %v14377_v56 = vadd.f32 %v14890_v1, %v14369_v59 }
0x6913   :  { %v14378_v9 = vmax.f32 %v14377_v56, 0.0 }
0x6915   :  { %16369 = vmatmul.mubr.msk.f32.vlgmr.msra.gmra.mrb[134].mxu0 %vm1473_vm14, %v14378_v9 }
0x69e8   :  { %v14463_v0 = vpop.f32.mrb[134].mxu0 }
0x69e9   :  { %v14464_v55 = vadd.f32 %v14891_v38, %v14463_v0  ;;  %v16370_v11 = vpop.f32.mrb[135].mxu0 }
0x69eb   :  { %14467 = vst [vmem:[#allocation11] sm:$0x3] %v14464_v55 }
0x69ec   :  { %17083 = shalt.err (!%p17080_p2)
}
0x69ed   :  { %s19694_s4 = sld [smem:[#allocation23_spill]] }
0x69f3   :  { %s17084_s25 = scalar_lea.hbm %s19694_s4, 32 }
0x69f4   :  { %p17085_p3 = scmp.ne.s32.totalorder %s19694_s4, %s17084_s25  ;;  %p17088_p4 = scmp.lt.u32.totalorder %s17084_s25, %s19694_s4 }
0x69f6   :  { %p17090_p5 = pnand %p17088_p4, %p17085_p3 }
0x69f8   :  { %17093 = shalt.err (!%p17090_p5)
}
0x69f9   :  { %14477 = dma.vmem_to_hbm [thread:$0]  %s14475_s24, 32, %s19694_s4, [#allocation4]  }
0x69fa   :  { %17100 = dma.done.wait [#allocation4], 32  }
0x69fb   :  { %17101 = vsyncadd [#allocation4], 4294967264 }
0x69fc   :  { %14481 = vsyncpa [#allocation3], 1 }
0x69fd   :  { %14482 = vsyncpa [#allocation6], 1 }
0x69fe   :  { %14483 = vsyncpa [#allocation9], 1 }
0x69ff   :  { %14484 = vsyncpa [#allocation4], 1 }

</bundles_post_ra>
